<compile_context>
chip_gen: v5e
topology: v5e:2x2
jax: 0.10.0
libtpu: 0.0.40
codegen_flags: <defaults>
</compile_context>

<pallas_src>
import jax
import jax.numpy as jnp
from jax import lax
from jax.experimental import pallas as pl
from jax.experimental.pallas import tpu as pltpu


# ----------------------------- static geometry ------------------------------

S = 28                       # row stride of the flattened spatial index
ROWS1 = 736                  # flat conv rows computed per image (>= all consumed)
PAD1 = 64                    # zero pad after y1 so conv2 taps never read OOB
CH = 184                     # conv1/conv2 row chunk (736 = 4 * 184)
TAPS = tuple(kh * S + kw for kh in range(3) for kw in range(3))  # 0,1,2,28,...
BLOCK_B = 8                  # images per grid step of kernel 1


# ------------------------------- kernel 1 -----------------------------------


def conv_stack_kernel(x_ref, w1_ref, b1_ref, w2_ref, b2_ref, o_ref,
                      y1_ref, y2_ref, vm_ref):
    # x_ref:  (B, 784) f32   flattened 28x28 images
    # w1_ref: (9, 32)  f32   conv1 weight [kh*3+kw, cout]
    # b1_ref: (1, 32)  f32
    # w2_ref: (9, 32, 64) f32 conv2 weight [kh*3+kw, cin, cout]
    # b2_ref: (1, 64)  f32
    # o_ref:  (B, 144, 64) bf16  pooled features, row = ph*12+pw, lane = ch
    # y1_ref: (800, 32) f32 scratch  conv1+relu (rows 736..799 are zero pad)
    # y2_ref: (736, 64) f32 scratch  conv2+relu
    # vm_ref: (288, 64) f32 scratch  vertical pool maxima
    nb = x_ref.shape[0]

    # Zero the y1 tail once so conv2 tap reads past row 735 stay finite.
    y1_ref[pl.ds(ROWS1, PAD1), :] = jnp.zeros((PAD1, 32), jnp.float32)

    w1 = w1_ref[...]                                   # (9, 32)
    b1 = b1_ref[...]                                   # (1, 32)
    b2 = b2_ref[...]                                   # (1, 64)

    def per_image(b, carry):
        # ---- conv1 (1->32, 3x3) as transposed-LHS matmuls (no y1 transpose)
        xrow = x_ref[pl.ds(b, 1), :]                                   # (1, 784)
        xpad = jnp.concatenate(
            [xrow, jnp.zeros((1, 16), jnp.float32)], axis=1)           # (1, 800)
        for q in range(ROWS1 // CH):                 # 4 static chunks of 184 rows
            r0 = q * CH
            x9 = jnp.concatenate(
                [xpad[:, r0 + d:r0 + d + CH] for d in TAPS], axis=0)   # (9, 184)
            y1c = lax.dot_general(x9, w1, (((0,), (0,)), ((), ())),
                                  preferred_element_type=jnp.float32)  # (184, 32)
            y1_ref[pl.ds(r0, CH), :] = jnp.maximum(y1c + b1, 0.0)

        # ---- conv2 (32->64, 3x3) + relu: 9 tap matmuls per 184-row chunk ----
        def conv2_chunk(c, carry2):
            r0 = pl.multiple_of(c * CH, 8)
            acc = jnp.zeros((CH, 64), jnp.float32)
            for t, d in enumerate(TAPS):
                lhs = y1_ref[pl.ds(r0 + d, CH), :]                     # (184, 32)
                acc = acc + jnp.dot(lhs, w2_ref[t],
                                    preferred_element_type=jnp.float32)
            y2_ref[pl.ds(r0, CH), :] = jnp.maximum(acc + b2, 0.0)
            return carry2

        lax.fori_loop(0, ROWS1 // CH, conv2_chunk, 0)

        # ---- 2x2 max pool (stride 2): contiguous vertical maxima into vm_ref,
        #      then one stride-2 horizontal pass over all 144 pooled rows.
        for ph in range(12):
            top = y2_ref[pl.ds(56 * ph, 24), :]          # oh2 = 2*ph,   ow2 = 0..23
            bot = y2_ref[pl.ds(56 * ph + 28, 24), :]     # oh2 = 2*ph+1, ow2 = 0..23
            vm_ref[pl.ds(24 * ph, 24), :] = jnp.maximum(top, bot)
        p0 = vm_ref[pl.ds(0, 144, stride=2), :]          # even ow2
        p1 = vm_ref[pl.ds(1, 144, stride=2), :]          # odd  ow2
        o_ref[b] = jnp.maximum(p0, p1).astype(o_ref.dtype)
        return carry

    lax.fori_loop(0, nb, per_image, 0)


def conv_stack(x_flat, w1, b1, w2, b2, *, block_b=BLOCK_B):
    n = x_flat.shape[0]
    assert n % block_b == 0, "batch must be a multiple of BLOCK_B (pad upstream)"
    flops = n * (ROWS1 * 9 * 32 * 2 + ROWS1 * 9 * 32 * 64 * 2)
    bytes_accessed = n * (784 * 4 + 144 * 64 * 2) + 9 * 32 * 4 + 9 * 32 * 64 * 4 + 400
    return pl.pallas_call(
        conv_stack_kernel,
        out_shape=jax.ShapeDtypeStruct((n, 144, 64), jnp.bfloat16),
        grid=(n // block_b,),
        in_specs=[
            pl.BlockSpec((block_b, 784), lambda i: (i, 0)),
            pl.BlockSpec((9, 32), lambda i: (0, 0)),
            pl.BlockSpec((1, 32), lambda i: (0, 0)),
            pl.BlockSpec((9, 32, 64), lambda i: (0, 0, 0)),
            pl.BlockSpec((1, 64), lambda i: (0, 0)),
        ],
        out_specs=pl.BlockSpec((block_b, 144, 64), lambda i: (i, 0, 0)),
        scratch_shapes=[
            pltpu.VMEM((ROWS1 + PAD1, 32), jnp.float32),
            pltpu.VMEM((ROWS1, 64), jnp.float32),
            pltpu.VMEM((288, 64), jnp.float32),
        ],
        compiler_params=pltpu.CompilerParams(
            dimension_semantics=("parallel",)),
        cost_estimate=pl.CostEstimate(flops=flops, transcendentals=0,
                                      bytes_accessed=bytes_accessed),
    )(x_flat, w1, b1, w2, b2)


# ------------------------------- kernel 2 -----------------------------------


def mlp_head_kernel(x_ref, w1_ref, b1_ref, w2_ref, b2_ref, o_ref):
    # x_ref: (BM, 9216) bf16   w1_ref: (9216, 128) bf16  b1_ref: (1, 128) f32
    # w2_ref: (128, 10) f32    b2_ref: (1, 10) f32       o_ref: (BM, 10) f32
    h = jnp.dot(x_ref[...], w1_ref[...], preferred_element_type=jnp.float32)
    h = jnp.maximum(h + b1_ref[...], 0.0)                  # relu(fc1)
    logits = jnp.dot(h, w2_ref[...],
                     preferred_element_type=jnp.float32) + b2_ref[...]
    m = jnp.max(logits, axis=-1, keepdims=True)             # log_softmax
    z = logits - m
    lse = jnp.log(jnp.sum(jnp.exp(z), axis=-1, keepdims=True))
    o_ref[...] = (z - lse).astype(o_ref.dtype)


def mlp_head(feats, w1, b1, w2, b2, *, block_m=128):
    n, kdim = feats.shape
    bm = n if n <= block_m else block_m
    assert n % bm == 0
    flops = n * (kdim * 128 * 2 + 128 * 10 * 2)
    bytes_accessed = n * (kdim * 2 + 10 * 4) + kdim * 128 * 2 + 128 * 4 + 128 * 10 * 4
    return pl.pallas_call(
        mlp_head_kernel,
        out_shape=jax.ShapeDtypeStruct((n, 10), jnp.float32),
        grid=(n // bm,),
        in_specs=[
            pl.BlockSpec((bm, kdim), lambda i: (i, 0)),
            pl.BlockSpec((kdim, 128), lambda i: (0, 0)),
            pl.BlockSpec((1, 128), lambda i: (0, 0)),
            pl.BlockSpec((128, 10), lambda i: (0, 0)),
            pl.BlockSpec((1, 10), lambda i: (0, 0)),
        ],
        out_specs=pl.BlockSpec((bm, 10), lambda i: (i, 0)),
        compiler_params=pltpu.CompilerParams(
            dimension_semantics=("parallel",)),
        cost_estimate=pl.CostEstimate(flops=flops, transcendentals=11 * n,
                                      bytes_accessed=bytes_accessed),
    )(feats, w1, b1, w2, b2)


# ----------------------------- glue / params --------------------------------


def prepare_params(conv1_w, conv1_b, conv2_w, conv2_b,
                   fc1_w, fc1_b, fc2_w, fc2_b):
    """One-time (offline) conversion of torch-layout weights to kernel layout."""
    w1 = jnp.transpose(conv1_w.reshape(32, 9)).astype(jnp.float32)  # (tap, cout)
    b1 = conv1_b.reshape(1, 32).astype(jnp.float32)
    w2 = jnp.transpose(conv2_w, (2, 3, 1, 0)).reshape(9, 32, 64)
    w2 = w2.astype(jnp.float32)                                     # (tap, cin, cout)
    b2 = conv2_b.reshape(1, 64).astype(jnp.float32)
    # torch flattens NCHW -> feature index c*144 + s; our features are HWC
    # flattened (s*64 + c), so permute fc1 rows once here.  Also cast to bf16.
    wf1 = jnp.transpose(fc1_w.reshape(128, 64, 144), (2, 1, 0)).reshape(9216, 128)
    wf1 = wf1.astype(jnp.bfloat16)
    bf1 = fc1_b.reshape(1, 128).astype(jnp.float32)
    wf2 = fc2_w.T.astype(jnp.float32)                               # (128, 10)
    bf2 = fc2_b.reshape(1, 10).astype(jnp.float32)
    return (w1, b1, w2, b2, wf1, bf1, wf2, bf2)


@jax.jit
def net_forward(x_nchw, params):
    w1, b1, w2, b2, wf1, bf1, wf2, bf2 = params
    n = x_nchw.shape[0]
    x_flat = x_nchw.reshape(n, 784).astype(jnp.float32)    # free reshape
    feats = conv_stack(x_flat, w1, b1, w2, b2)              # (n, 144, 64) bf16
    feats = feats.reshape(n, 9216)                          # free reshape (HWC)
    return mlp_head(feats, wf1, bf1, wf2, bf2)              # (n, 10) f32


# ------------------------- pure-JAX reference (check) ------------------------


def reference_forward(x, conv1_w, conv1_b, conv2_w, conv2_b,
                      fc1_w, fc1_b, fc2_w, fc2_b):
    dn = ("NCHW", "OIHW", "NCHW")
    y = lax.conv_general_dilated(x, conv1_w, (1, 1), "VALID",
                                 dimension_numbers=dn)
    y = jnp.maximum(y + conv1_b[None, :, None, None], 0.0)
    y = lax.conv_general_dilated(y, conv2_w, (1, 1), "VALID",
                                 dimension_numbers=dn)
    y = jnp.maximum(y + conv2_b[None, :, None, None], 0.0)
    y = lax.reduce_window(y, -jnp.inf, lax.max,
                          (1, 1, 2, 2), (1, 1, 2, 2), "VALID")
    y = y.reshape(x.shape[0], -1)                            # CHW flatten
    h = jnp.maximum(y @ fc1_w.T + fc1_b, 0.0)
    logits = h @ fc2_w.T + fc2_b
    return jax.nn.log_softmax(logits, axis=-1)


# ---------------------------------- main -------------------------------------

if __name__ == "__main__":
    key = jax.random.PRNGKey(0)
    ks = jax.random.split(key, 9)
    N = 16                      # multiple of BLOCK_B; >= 2 grid steps for v7x
    # PyTorch-style NCHW input (MNIST-like: 1 channel, 28x28).
    x = jax.random.normal(ks[0], (N, 1, 28, 28), jnp.float32)

    # Parameters in torch layout.
    conv1_w = jax.random.normal(ks[1], (32, 1, 3, 3), jnp.float32) * (2.0 / 9) ** 0.5
    conv1_b = jax.random.normal(ks[2], (32,), jnp.float32) * 0.05
    conv2_w = jax.random.normal(ks[3], (64, 32, 3, 3), jnp.float32) * (2.0 / 288) ** 0.5
    conv2_b = jax.random.normal(ks[4], (64,), jnp.float32) * 0.05
    fc1_w = jax.random.normal(ks[5], (128, 9216), jnp.float32) * (2.0 / 9216) ** 0.5
    fc1_b = jax.random.normal(ks[6], (128,), jnp.float32) * 0.05
    fc2_w = jax.random.normal(ks[7], (10, 128), jnp.float32) * (2.0 / 128) ** 0.5
    fc2_b = jax.random.normal(ks[8], (10,), jnp.float32) * 0.05

    params = prepare_params(conv1_w, conv1_b, conv2_w, conv2_b,
                            fc1_w, fc1_b, fc2_w, fc2_b)

    out = jax.block_until_ready(net_forward(x, params))
    assert out.shape == (N, 10), out.shape

    # log_softmax sanity: probabilities sum to 1 per row.
    probs_sum = jnp.sum(jnp.exp(out), axis=1)
    assert jnp.allclose(probs_sum, 1.0, atol=1e-3), probs_sum

    # Compare against a pure-JAX reference (loose tol: feats + fc1 run in bf16).
    ref = reference_forward(x, conv1_w, conv1_b, conv2_w, conv2_b,
                            fc1_w, fc1_b, fc2_w, fc2_b)
    max_err = float(jnp.max(jnp.abs(out - ref)))
    assert max_err < 0.2, f"max |kernel - reference| = {max_err}"

    print("KERNEL_OK")
</pallas_src>

<mosaic_0001>
module attributes {stable_mosaic.version = 11 : i64} {
  func.func @conv_stack_kernel(%arg0: i32, %arg1: memref<8x784xf32, #tpu.memory_space<vmem>>, %arg2: memref<9x32xf32, #tpu.memory_space<vmem>>, %arg3: memref<1x32xf32, #tpu.memory_space<vmem>>, %arg4: memref<9x32x64xf32, #tpu.memory_space<vmem>>, %arg5: memref<1x64xf32, #tpu.memory_space<vmem>>, %arg6: memref<8x144x64xbf16, #tpu.memory_space<vmem>>, %arg7: memref<800x32xf32, #tpu.memory_space<vmem>>, %arg8: memref<736x64xf32, #tpu.memory_space<vmem>>, %arg9: memref<288x64xf32, #tpu.memory_space<vmem>>) attributes {dimension_semantics = [#tpu.dimension_semantics<parallel>], iteration_bounds = array<i64: 2>, scalar_prefetch = 0 : i64, scratch_operands = 3 : i64, tpu.core_type = #tpu.core_type<tc>, window_params = [{transform_indices = @transform_0, window_bounds = array<i64: 8, 784>}, {pipeline_mode = #tpu.pipeline_mode<synchronous>, transform_indices = @transform_1, window_bounds = array<i64: 9, 32>}, {pipeline_mode = #tpu.pipeline_mode<synchronous>, transform_indices = @transform_2, window_bounds = array<i64: 1, 32>}, {pipeline_mode = #tpu.pipeline_mode<synchronous>, transform_indices = @transform_3, window_bounds = array<i64: 9, 32, 64>}, {pipeline_mode = #tpu.pipeline_mode<synchronous>, transform_indices = @transform_4, window_bounds = array<i64: 1, 64>}, {transform_indices = @transform_5, window_bounds = array<i64: 8, 144, 64>}]} {
    %cst = arith.constant 0.000000e+00 : f32
    %0 = vector.broadcast %cst : f32 to vector<64x32xf32>
    %c736 = arith.constant 736 : index
    %c0 = arith.constant 0 : index
    %1 = vector.load %arg7[%c736, %c0] : memref<800x32xf32, #tpu.memory_space<vmem>>, vector<64x32xf32>
    tpu.vector_store %arg7[%c736, %c0], %0 {strides = array<i32>} : memref<800x32xf32, #tpu.memory_space<vmem>>, vector<64x32xf32>,
    %c0_0 = arith.constant 0 : index
    %c0_1 = arith.constant 0 : index
    %2 = vector.load %arg2[%c0_0, %c0_1] : memref<9x32xf32, #tpu.memory_space<vmem>>, vector<9x32xf32>
    %c0_2 = arith.constant 0 : index
    %c0_3 = arith.constant 0 : index
    %3 = vector.load %arg3[%c0_2, %c0_3] : memref<1x32xf32, #tpu.memory_space<vmem>>, vector<1x32xf32>
    %c0_4 = arith.constant 0 : index
    %c0_5 = arith.constant 0 : index
    %4 = vector.load %arg5[%c0_4, %c0_5] : memref<1x64xf32, #tpu.memory_space<vmem>>, vector<1x64xf32>
    %c0_i32 = arith.constant 0 : i32
    %c8_i32 = arith.constant 8 : i32
    %5 = arith.addi %c0_i32, %c8_i32 : i32
    %c1_i32 = arith.constant 1 : i32
    scf.for %arg10 = %c0_i32 to %5 step %c1_i32  : i32 {
      %6 = arith.index_cast %arg10 : i32 to index
      %c0_7 = arith.constant 0 : index
      %7 = vector.load %arg1[%6, %c0_7] : memref<8x784xf32, #tpu.memory_space<vmem>>, vector<1x784xf32>
      %cst_8 = arith.constant 0.000000e+00 : f32
      %8 = vector.broadcast %cst_8 : f32 to vector<1x16xf32>
      %9 = tpu.concatenate %7, %8 in 1 : vector<1x784xf32>, vector<1x16xf32> -> vector<1x800xf32>
      %10 = vector.extract_strided_slice %9 {offsets = [0, 0], sizes = [1, 184], strides = [1, 1]} : vector<1x800xf32> to vector<1x184xf32>
      %11 = vector.extract_strided_slice %9 {offsets = [0, 1], sizes = [1, 184], strides = [1, 1]} : vector<1x800xf32> to vector<1x184xf32>
      %12 = vector.extract_strided_slice %9 {offsets = [0, 2], sizes = [1, 184], strides = [1, 1]} : vector<1x800xf32> to vector<1x184xf32>
      %13 = vector.extract_strided_slice %9 {offsets = [0, 28], sizes = [1, 184], strides = [1, 1]} : vector<1x800xf32> to vector<1x184xf32>
      %14 = vector.extract_strided_slice %9 {offsets = [0, 29], sizes = [1, 184], strides = [1, 1]} : vector<1x800xf32> to vector<1x184xf32>
      %15 = vector.extract_strided_slice %9 {offsets = [0, 30], sizes = [1, 184], strides = [1, 1]} : vector<1x800xf32> to vector<1x184xf32>
      %16 = vector.extract_strided_slice %9 {offsets = [0, 56], sizes = [1, 184], strides = [1, 1]} : vector<1x800xf32> to vector<1x184xf32>
      %17 = vector.extract_strided_slice %9 {offsets = [0, 57], sizes = [1, 184], strides = [1, 1]} : vector<1x800xf32> to vector<1x184xf32>
      %18 = vector.extract_strided_slice %9 {offsets = [0, 58], sizes = [1, 184], strides = [1, 1]} : vector<1x800xf32> to vector<1x184xf32>
      %19 = tpu.concatenate %10, %11, %12, %13, %14, %15, %16, %17, %18 in 0 : vector<1x184xf32>, vector<1x184xf32>, vector<1x184xf32>, vector<1x184xf32>, vector<1x184xf32>, vector<1x184xf32>, vector<1x184xf32>, vector<1x184xf32>, vector<1x184xf32> -> vector<9x184xf32>
      %cst_9 = arith.constant dense<0.000000e+00> : vector<184x32xf32>
      %20 = tpu.matmul %19, %2, %cst_9 {dimension_numbers = #tpu.dot_dimension_numbers<[0], [0], [1], [1], [0, 1, 1, 1], [], []>} : vector<9x184xf32>, vector<9x32xf32>, vector<184x32xf32> -> vector<184x32xf32>
      %21 = vector.broadcast %3 : vector<1x32xf32> to vector<184x32xf32>
      %22 = arith.addf %20, %21 : vector<184x32xf32>
      %cst_10 = arith.constant 0.000000e+00 : f32
      %23 = vector.broadcast %cst_10 : f32 to vector<184x32xf32>
      %24 = arith.maximumf %22, %23 : vector<184x32xf32>
      %c0_11 = arith.constant 0 : index
      %c0_12 = arith.constant 0 : index
      %25 = vector.load %arg7[%c0_11, %c0_12] : memref<800x32xf32, #tpu.memory_space<vmem>>, vector<184x32xf32>
      tpu.vector_store %arg7[%c0_11, %c0_12], %24 {strides = array<i32>} : memref<800x32xf32, #tpu.memory_space<vmem>>, vector<184x32xf32>,
      %26 = vector.extract_strided_slice %9 {offsets = [0, 184], sizes = [1, 184], strides = [1, 1]} : vector<1x800xf32> to vector<1x184xf32>
      %27 = vector.extract_strided_slice %9 {offsets = [0, 185], sizes = [1, 184], strides = [1, 1]} : vector<1x800xf32> to vector<1x184xf32>
      %28 = vector.extract_strided_slice %9 {offsets = [0, 186], sizes = [1, 184], strides = [1, 1]} : vector<1x800xf32> to vector<1x184xf32>
      %29 = vector.extract_strided_slice %9 {offsets = [0, 212], sizes = [1, 184], strides = [1, 1]} : vector<1x800xf32> to vector<1x184xf32>
      %30 = vector.extract_strided_slice %9 {offsets = [0, 213], sizes = [1, 184], strides = [1, 1]} : vector<1x800xf32> to vector<1x184xf32>
      %31 = vector.extract_strided_slice %9 {offsets = [0, 214], sizes = [1, 184], strides = [1, 1]} : vector<1x800xf32> to vector<1x184xf32>
      %32 = vector.extract_strided_slice %9 {offsets = [0, 240], sizes = [1, 184], strides = [1, 1]} : vector<1x800xf32> to vector<1x184xf32>
      %33 = vector.extract_strided_slice %9 {offsets = [0, 241], sizes = [1, 184], strides = [1, 1]} : vector<1x800xf32> to vector<1x184xf32>
      %34 = vector.extract_strided_slice %9 {offsets = [0, 242], sizes = [1, 184], strides = [1, 1]} : vector<1x800xf32> to vector<1x184xf32>
      %35 = tpu.concatenate %26, %27, %28, %29, %30, %31, %32, %33, %34 in 0 : vector<1x184xf32>, vector<1x184xf32>, vector<1x184xf32>, vector<1x184xf32>, vector<1x184xf32>, vector<1x184xf32>, vector<1x184xf32>, vector<1x184xf32>, vector<1x184xf32> -> vector<9x184xf32>
      %cst_13 = arith.constant dense<0.000000e+00> : vector<184x32xf32>
      %36 = tpu.matmul %35, %2, %cst_13 {dimension_numbers = #tpu.dot_dimension_numbers<[0], [0], [1], [1], [0, 1, 1, 1], [], []>} : vector<9x184xf32>, vector<9x32xf32>, vector<184x32xf32> -> vector<184x32xf32>
      %37 = vector.broadcast %3 : vector<1x32xf32> to vector<184x32xf32>
      %38 = arith.addf %36, %37 : vector<184x32xf32>
      %cst_14 = arith.constant 0.000000e+00 : f32
      %39 = vector.broadcast %cst_14 : f32 to vector<184x32xf32>
      %40 = arith.maximumf %38, %39 : vector<184x32xf32>
      %c184 = arith.constant 184 : index
      %c0_15 = arith.constant 0 : index
      %41 = vector.load %arg7[%c184, %c0_15] : memref<800x32xf32, #tpu.memory_space<vmem>>, vector<184x32xf32>
      tpu.vector_store %arg7[%c184, %c0_15], %40 {strides = array<i32>} : memref<800x32xf32, #tpu.memory_space<vmem>>, vector<184x32xf32>,
      %42 = vector.extract_strided_slice %9 {offsets = [0, 368], sizes = [1, 184], strides = [1, 1]} : vector<1x800xf32> to vector<1x184xf32>
      %43 = vector.extract_strided_slice %9 {offsets = [0, 369], sizes = [1, 184], strides = [1, 1]} : vector<1x800xf32> to vector<1x184xf32>
      %44 = vector.extract_strided_slice %9 {offsets = [0, 370], sizes = [1, 184], strides = [1, 1]} : vector<1x800xf32> to vector<1x184xf32>
      %45 = vector.extract_strided_slice %9 {offsets = [0, 396], sizes = [1, 184], strides = [1, 1]} : vector<1x800xf32> to vector<1x184xf32>
      %46 = vector.extract_strided_slice %9 {offsets = [0, 397], sizes = [1, 184], strides = [1, 1]} : vector<1x800xf32> to vector<1x184xf32>
      %47 = vector.extract_strided_slice %9 {offsets = [0, 398], sizes = [1, 184], strides = [1, 1]} : vector<1x800xf32> to vector<1x184xf32>
      %48 = vector.extract_strided_slice %9 {offsets = [0, 424], sizes = [1, 184], strides = [1, 1]} : vector<1x800xf32> to vector<1x184xf32>
      %49 = vector.extract_strided_slice %9 {offsets = [0, 425], sizes = [1, 184], strides = [1, 1]} : vector<1x800xf32> to vector<1x184xf32>
      %50 = vector.extract_strided_slice %9 {offsets = [0, 426], sizes = [1, 184], strides = [1, 1]} : vector<1x800xf32> to vector<1x184xf32>
      %51 = tpu.concatenate %42, %43, %44, %45, %46, %47, %48, %49, %50 in 0 : vector<1x184xf32>, vector<1x184xf32>, vector<1x184xf32>, vector<1x184xf32>, vector<1x184xf32>, vector<1x184xf32>, vector<1x184xf32>, vector<1x184xf32>, vector<1x184xf32> -> vector<9x184xf32>
      %cst_16 = arith.constant dense<0.000000e+00> : vector<184x32xf32>
      %52 = tpu.matmul %51, %2, %cst_16 {dimension_numbers = #tpu.dot_dimension_numbers<[0], [0], [1], [1], [0, 1, 1, 1], [], []>} : vector<9x184xf32>, vector<9x32xf32>, vector<184x32xf32> -> vector<184x32xf32>
      %53 = vector.broadcast %3 : vector<1x32xf32> to vector<184x32xf32>
      %54 = arith.addf %52, %53 : vector<184x32xf32>
      %cst_17 = arith.constant 0.000000e+00 : f32
      %55 = vector.broadcast %cst_17 : f32 to vector<184x32xf32>
      %56 = arith.maximumf %54, %55 : vector<184x32xf32>
      %c368 = arith.constant 368 : index
      %c0_18 = arith.constant 0 : index
      %57 = vector.load %arg7[%c368, %c0_18] : memref<800x32xf32, #tpu.memory_space<vmem>>, vector<184x32xf32>
      tpu.vector_store %arg7[%c368, %c0_18], %56 {strides = array<i32>} : memref<800x32xf32, #tpu.memory_space<vmem>>, vector<184x32xf32>,
      %58 = vector.extract_strided_slice %9 {offsets = [0, 552], sizes = [1, 184], strides = [1, 1]} : vector<1x800xf32> to vector<1x184xf32>
      %59 = vector.extract_strided_slice %9 {offsets = [0, 553], sizes = [1, 184], strides = [1, 1]} : vector<1x800xf32> to vector<1x184xf32>
      %60 = vector.extract_strided_slice %9 {offsets = [0, 554], sizes = [1, 184], strides = [1, 1]} : vector<1x800xf32> to vector<1x184xf32>
      %61 = vector.extract_strided_slice %9 {offsets = [0, 580], sizes = [1, 184], strides = [1, 1]} : vector<1x800xf32> to vector<1x184xf32>
      %62 = vector.extract_strided_slice %9 {offsets = [0, 581], sizes = [1, 184], strides = [1, 1]} : vector<1x800xf32> to vector<1x184xf32>
      %63 = vector.extract_strided_slice %9 {offsets = [0, 582], sizes = [1, 184], strides = [1, 1]} : vector<1x800xf32> to vector<1x184xf32>
      %64 = vector.extract_strided_slice %9 {offsets = [0, 608], sizes = [1, 184], strides = [1, 1]} : vector<1x800xf32> to vector<1x184xf32>
      %65 = vector.extract_strided_slice %9 {offsets = [0, 609], sizes = [1, 184], strides = [1, 1]} : vector<1x800xf32> to vector<1x184xf32>
      %66 = vector.extract_strided_slice %9 {offsets = [0, 610], sizes = [1, 184], strides = [1, 1]} : vector<1x800xf32> to vector<1x184xf32>
      %67 = tpu.concatenate %58, %59, %60, %61, %62, %63, %64, %65, %66 in 0 : vector<1x184xf32>, vector<1x184xf32>, vector<1x184xf32>, vector<1x184xf32>, vector<1x184xf32>, vector<1x184xf32>, vector<1x184xf32>, vector<1x184xf32>, vector<1x184xf32> -> vector<9x184xf32>
      %cst_19 = arith.constant dense<0.000000e+00> : vector<184x32xf32>
      %68 = tpu.matmul %67, %2, %cst_19 {dimension_numbers = #tpu.dot_dimension_numbers<[0], [0], [1], [1], [0, 1, 1, 1], [], []>} : vector<9x184xf32>, vector<9x32xf32>, vector<184x32xf32> -> vector<184x32xf32>
      %69 = vector.broadcast %3 : vector<1x32xf32> to vector<184x32xf32>
      %70 = arith.addf %68, %69 : vector<184x32xf32>
      %cst_20 = arith.constant 0.000000e+00 : f32
      %71 = vector.broadcast %cst_20 : f32 to vector<184x32xf32>
      %72 = arith.maximumf %70, %71 : vector<184x32xf32>
      %c552 = arith.constant 552 : index
      %c0_21 = arith.constant 0 : index
      %73 = vector.load %arg7[%c552, %c0_21] : memref<800x32xf32, #tpu.memory_space<vmem>>, vector<184x32xf32>
      tpu.vector_store %arg7[%c552, %c0_21], %72 {strides = array<i32>} : memref<800x32xf32, #tpu.memory_space<vmem>>, vector<184x32xf32>,
      %c0_i32_22 = arith.constant 0 : i32
      %c4_i32 = arith.constant 4 : i32
      %74 = arith.addi %c0_i32_22, %c4_i32 : i32
      %c1_i32_23 = arith.constant 1 : i32
      scf.for %arg11 = %c0_i32_22 to %74 step %c1_i32_23  : i32 {
        %c184_i32 = arith.constant 184 : i32
        %131 = arith.muli %arg11, %c184_i32 : i32
        %132 = tpu.assume_multiple %131, 8 : i32
        %cst_69 = arith.constant 0.000000e+00 : f32
        %133 = vector.broadcast %cst_69 : f32 to vector<184x64xf32>
        %c0_i32_70 = arith.constant 0 : i32
        %134 = arith.addi %132, %c0_i32_70 : i32
        %135 = arith.index_cast %134 : i32 to index
        %c0_71 = arith.constant 0 : index
        %136 = vector.load %arg7[%135, %c0_71] : memref<800x32xf32, #tpu.memory_space<vmem>>, vector<184x32xf32>
        %c0_72 = arith.constant 0 : index
        %c0_73 = arith.constant 0 : index
        %c0_74 = arith.constant 0 : index
        %137 = vector.load %arg4[%c0_72, %c0_73, %c0_74] : memref<9x32x64xf32, #tpu.memory_space<vmem>>, vector<1x32x64xf32>
        %138 = vector.shape_cast %137 : vector<1x32x64xf32> to vector<32x64xf32>
        %cst_75 = arith.constant dense<0.000000e+00> : vector<184x64xf32>
        %139 = tpu.matmul %136, %138, %cst_75 {dimension_numbers = #tpu.dot_dimension_numbers<[1], [0], [0], [1], [0, 0, 1, 1], [], []>} : vector<184x32xf32>, vector<32x64xf32>, vector<184x64xf32> -> vector<184x64xf32>
        %140 = arith.addf %133, %139 : vector<184x64xf32>
        %c1_i32_76 = arith.constant 1 : i32
        %141 = arith.addi %132, %c1_i32_76 : i32
        %142 = arith.index_cast %141 : i32 to index
        %c0_77 = arith.constant 0 : index
        %143 = vector.load %arg7[%142, %c0_77] : memref<800x32xf32, #tpu.memory_space<vmem>>, vector<184x32xf32>
        %c1_78 = arith.constant 1 : index
        %c0_79 = arith.constant 0 : index
        %c0_80 = arith.constant 0 : index
        %144 = vector.load %arg4[%c1_78, %c0_79, %c0_80] : memref<9x32x64xf32, #tpu.memory_space<vmem>>, vector<1x32x64xf32>
        %145 = vector.shape_cast %144 : vector<1x32x64xf32> to vector<32x64xf32>
        %cst_81 = arith.constant dense<0.000000e+00> : vector<184x64xf32>
        %146 = tpu.matmul %143, %145, %cst_81 {dimension_numbers = #tpu.dot_dimension_numbers<[1], [0], [0], [1], [0, 0, 1, 1], [], []>} : vector<184x32xf32>, vector<32x64xf32>, vector<184x64xf32> -> vector<184x64xf32>
        %147 = arith.addf %140, %146 : vector<184x64xf32>
        %c2_i32 = arith.constant 2 : i32
        %148 = arith.addi %132, %c2_i32 : i32
        %149 = arith.index_cast %148 : i32 to index
        %c0_82 = arith.constant 0 : index
        %150 = vector.load %arg7[%149, %c0_82] : memref<800x32xf32, #tpu.memory_space<vmem>>, vector<184x32xf32>
        %c2 = arith.constant 2 : index
        %c0_83 = arith.constant 0 : index
        %c0_84 = arith.constant 0 : index
        %151 = vector.load %arg4[%c2, %c0_83, %c0_84] : memref<9x32x64xf32, #tpu.memory_space<vmem>>, vector<1x32x64xf32>
        %152 = vector.shape_cast %151 : vector<1x32x64xf32> to vector<32x64xf32>
        %cst_85 = arith.constant dense<0.000000e+00> : vector<184x64xf32>
        %153 = tpu.matmul %150, %152, %cst_85 {dimension_numbers = #tpu.dot_dimension_numbers<[1], [0], [0], [1], [0, 0, 1, 1], [], []>} : vector<184x32xf32>, vector<32x64xf32>, vector<184x64xf32> -> vector<184x64xf32>
        %154 = arith.addf %147, %153 : vector<184x64xf32>
        %c28_i32 = arith.constant 28 : i32
        %155 = arith.addi %132, %c28_i32 : i32
        %156 = arith.index_cast %155 : i32 to index
        %c0_86 = arith.constant 0 : index
        %157 = vector.load %arg7[%156, %c0_86] : memref<800x32xf32, #tpu.memory_space<vmem>>, vector<184x32xf32>
        %c3 = arith.constant 3 : index
        %c0_87 = arith.constant 0 : index
        %c0_88 = arith.constant 0 : index
        %158 = vector.load %arg4[%c3, %c0_87, %c0_88] : memref<9x32x64xf32, #tpu.memory_space<vmem>>, vector<1x32x64xf32>
        %159 = vector.shape_cast %158 : vector<1x32x64xf32> to vector<32x64xf32>
        %cst_89 = arith.constant dense<0.000000e+00> : vector<184x64xf32>
        %160 = tpu.matmul %157, %159, %cst_89 {dimension_numbers = #tpu.dot_dimension_numbers<[1], [0], [0], [1], [0, 0, 1, 1], [], []>} : vector<184x32xf32>, vector<32x64xf32>, vector<184x64xf32> -> vector<184x64xf32>
        %161 = arith.addf %154, %160 : vector<184x64xf32>
        %c29_i32 = arith.constant 29 : i32
        %162 = arith.addi %132, %c29_i32 : i32
        %163 = arith.index_cast %162 : i32 to index
        %c0_90 = arith.constant 0 : index
        %164 = vector.load %arg7[%163, %c0_90] : memref<800x32xf32, #tpu.memory_space<vmem>>, vector<184x32xf32>
        %c4 = arith.constant 4 : index
        %c0_91 = arith.constant 0 : index
        %c0_92 = arith.constant 0 : index
        %165 = vector.load %arg4[%c4, %c0_91, %c0_92] : memref<9x32x64xf32, #tpu.memory_space<vmem>>, vector<1x32x64xf32>
        %166 = vector.shape_cast %165 : vector<1x32x64xf32> to vector<32x64xf32>
        %cst_93 = arith.constant dense<0.000000e+00> : vector<184x64xf32>
        %167 = tpu.matmul %164, %166, %cst_93 {dimension_numbers = #tpu.dot_dimension_numbers<[1], [0], [0], [1], [0, 0, 1, 1], [], []>} : vector<184x32xf32>, vector<32x64xf32>, vector<184x64xf32> -> vector<184x64xf32>
        %168 = arith.addf %161, %167 : vector<184x64xf32>
        %c30_i32 = arith.constant 30 : i32
        %169 = arith.addi %132, %c30_i32 : i32
        %170 = arith.index_cast %169 : i32 to index
        %c0_94 = arith.constant 0 : index
        %171 = vector.load %arg7[%170, %c0_94] : memref<800x32xf32, #tpu.memory_space<vmem>>, vector<184x32xf32>
        %c5 = arith.constant 5 : index
        %c0_95 = arith.constant 0 : index
        %c0_96 = arith.constant 0 : index
        %172 = vector.load %arg4[%c5, %c0_95, %c0_96] : memref<9x32x64xf32, #tpu.memory_space<vmem>>, vector<1x32x64xf32>
        %173 = vector.shape_cast %172 : vector<1x32x64xf32> to vector<32x64xf32>
        %cst_97 = arith.constant dense<0.000000e+00> : vector<184x64xf32>
        %174 = tpu.matmul %171, %173, %cst_97 {dimension_numbers = #tpu.dot_dimension_numbers<[1], [0], [0], [1], [0, 0, 1, 1], [], []>} : vector<184x32xf32>, vector<32x64xf32>, vector<184x64xf32> -> vector<184x64xf32>
        %175 = arith.addf %168, %174 : vector<184x64xf32>
        %c56_i32 = arith.constant 56 : i32
        %176 = arith.addi %132, %c56_i32 : i32
        %177 = arith.index_cast %176 : i32 to index
        %c0_98 = arith.constant 0 : index
        %178 = vector.load %arg7[%177, %c0_98] : memref<800x32xf32, #tpu.memory_space<vmem>>, vector<184x32xf32>
        %c6 = arith.constant 6 : index
        %c0_99 = arith.constant 0 : index
        %c0_100 = arith.constant 0 : index
        %179 = vector.load %arg4[%c6, %c0_99, %c0_100] : memref<9x32x64xf32, #tpu.memory_space<vmem>>, vector<1x32x64xf32>
        %180 = vector.shape_cast %179 : vector<1x32x64xf32> to vector<32x64xf32>
        %cst_101 = arith.constant dense<0.000000e+00> : vector<184x64xf32>
        %181 = tpu.matmul %178, %180, %cst_101 {dimension_numbers = #tpu.dot_dimension_numbers<[1], [0], [0], [1], [0, 0, 1, 1], [], []>} : vector<184x32xf32>, vector<32x64xf32>, vector<184x64xf32> -> vector<184x64xf32>
        %182 = arith.addf %175, %181 : vector<184x64xf32>
        %c57_i32 = arith.constant 57 : i32
        %183 = arith.addi %132, %c57_i32 : i32
        %184 = arith.index_cast %183 : i32 to index
        %c0_102 = arith.constant 0 : index
        %185 = vector.load %arg7[%184, %c0_102] : memref<800x32xf32, #tpu.memory_space<vmem>>, vector<184x32xf32>
        %c7 = arith.constant 7 : index
        %c0_103 = arith.constant 0 : index
        %c0_104 = arith.constant 0 : index
        %186 = vector.load %arg4[%c7, %c0_103, %c0_104] : memref<9x32x64xf32, #tpu.memory_space<vmem>>, vector<1x32x64xf32>
        %187 = vector.shape_cast %186 : vector<1x32x64xf32> to vector<32x64xf32>
        %cst_105 = arith.constant dense<0.000000e+00> : vector<184x64xf32>
        %188 = tpu.matmul %185, %187, %cst_105 {dimension_numbers = #tpu.dot_dimension_numbers<[1], [0], [0], [1], [0, 0, 1, 1], [], []>} : vector<184x32xf32>, vector<32x64xf32>, vector<184x64xf32> -> vector<184x64xf32>
        %189 = arith.addf %182, %188 : vector<184x64xf32>
        %c58_i32 = arith.constant 58 : i32
        %190 = arith.addi %132, %c58_i32 : i32
        %191 = arith.index_cast %190 : i32 to index
        %c0_106 = arith.constant 0 : index
        %192 = vector.load %arg7[%191, %c0_106] : memref<800x32xf32, #tpu.memory_space<vmem>>, vector<184x32xf32>
        %c8 = arith.constant 8 : index
        %c0_107 = arith.constant 0 : index
        %c0_108 = arith.constant 0 : index
        %193 = vector.load %arg4[%c8, %c0_107, %c0_108] : memref<9x32x64xf32, #tpu.memory_space<vmem>>, vector<1x32x64xf32>
        %194 = vector.shape_cast %193 : vector<1x32x64xf32> to vector<32x64xf32>
        %cst_109 = arith.constant dense<0.000000e+00> : vector<184x64xf32>
        %195 = tpu.matmul %192, %194, %cst_109 {dimension_numbers = #tpu.dot_dimension_numbers<[1], [0], [0], [1], [0, 0, 1, 1], [], []>} : vector<184x32xf32>, vector<32x64xf32>, vector<184x64xf32> -> vector<184x64xf32>
        %196 = arith.addf %189, %195 : vector<184x64xf32>
        %197 = vector.broadcast %4 : vector<1x64xf32> to vector<184x64xf32>
        %198 = arith.addf %196, %197 : vector<184x64xf32>
        %cst_110 = arith.constant 0.000000e+00 : f32
        %199 = vector.broadcast %cst_110 : f32 to vector<184x64xf32>
        %200 = arith.maximumf %198, %199 : vector<184x64xf32>
        %201 = arith.index_cast %132 : i32 to index
        %c0_111 = arith.constant 0 : index
        %202 = vector.load %arg8[%201, %c0_111] : memref<736x64xf32, #tpu.memory_space<vmem>>, vector<184x64xf32>
        tpu.vector_store %arg8[%201, %c0_111], %200 {strides = array<i32>} : memref<736x64xf32, #tpu.memory_space<vmem>>, vector<184x64xf32>,
      }
      %c4_i32_24 = arith.constant 4 : i32
      %c0_25 = arith.constant 0 : index
      %c0_26 = arith.constant 0 : index
      %75 = vector.load %arg8[%c0_25, %c0_26] : memref<736x64xf32, #tpu.memory_space<vmem>>, vector<24x64xf32>
      %c28 = arith.constant 28 : index
      %c0_27 = arith.constant 0 : index
      %76 = vector.load %arg8[%c28, %c0_27] : memref<736x64xf32, #tpu.memory_space<vmem>>, vector<24x64xf32>
      %77 = arith.maximumf %75, %76 : vector<24x64xf32>
      %c0_28 = arith.constant 0 : index
      %c0_29 = arith.constant 0 : index
      %78 = vector.load %arg9[%c0_28, %c0_29] : memref<288x64xf32, #tpu.memory_space<vmem>>, vector<24x64xf32>
      tpu.vector_store %arg9[%c0_28, %c0_29], %77 {strides = array<i32>} : memref<288x64xf32, #tpu.memory_space<vmem>>, vector<24x64xf32>,
      %c56 = arith.constant 56 : index
      %c0_30 = arith.constant 0 : index
      %79 = vector.load %arg8[%c56, %c0_30] : memref<736x64xf32, #tpu.memory_space<vmem>>, vector<24x64xf32>
      %c84 = arith.constant 84 : index
      %c0_31 = arith.constant 0 : index
      %80 = vector.load %arg8[%c84, %c0_31] : memref<736x64xf32, #tpu.memory_space<vmem>>, vector<24x64xf32>
      %81 = arith.maximumf %79, %80 : vector<24x64xf32>
      %c24 = arith.constant 24 : index
      %c0_32 = arith.constant 0 : index
      %82 = vector.load %arg9[%c24, %c0_32] : memref<288x64xf32, #tpu.memory_space<vmem>>, vector<24x64xf32>
      tpu.vector_store %arg9[%c24, %c0_32], %81 {strides = array<i32>} : memref<288x64xf32, #tpu.memory_space<vmem>>, vector<24x64xf32>,
      %c112 = arith.constant 112 : index
      %c0_33 = arith.constant 0 : index
      %83 = vector.load %arg8[%c112, %c0_33] : memref<736x64xf32, #tpu.memory_space<vmem>>, vector<24x64xf32>
      %c140 = arith.constant 140 : index
      %c0_34 = arith.constant 0 : index
      %84 = vector.load %arg8[%c140, %c0_34] : memref<736x64xf32, #tpu.memory_space<vmem>>, vector<24x64xf32>
      %85 = arith.maximumf %83, %84 : vector<24x64xf32>
      %c48 = arith.constant 48 : index
      %c0_35 = arith.constant 0 : index
      %86 = vector.load %arg9[%c48, %c0_35] : memref<288x64xf32, #tpu.memory_space<vmem>>, vector<24x64xf32>
      tpu.vector_store %arg9[%c48, %c0_35], %85 {strides = array<i32>} : memref<288x64xf32, #tpu.memory_space<vmem>>, vector<24x64xf32>,
      %c168 = arith.constant 168 : index
      %c0_36 = arith.constant 0 : index
      %87 = vector.load %arg8[%c168, %c0_36] : memref<736x64xf32, #tpu.memory_space<vmem>>, vector<24x64xf32>
      %c196 = arith.constant 196 : index
      %c0_37 = arith.constant 0 : index
      %88 = vector.load %arg8[%c196, %c0_37] : memref<736x64xf32, #tpu.memory_space<vmem>>, vector<24x64xf32>
      %89 = arith.maximumf %87, %88 : vector<24x64xf32>
      %c72 = arith.constant 72 : index
      %c0_38 = arith.constant 0 : index
      %90 = vector.load %arg9[%c72, %c0_38] : memref<288x64xf32, #tpu.memory_space<vmem>>, vector<24x64xf32>
      tpu.vector_store %arg9[%c72, %c0_38], %89 {strides = array<i32>} : memref<288x64xf32, #tpu.memory_space<vmem>>, vector<24x64xf32>,
      %c224 = arith.constant 224 : index
      %c0_39 = arith.constant 0 : index
      %91 = vector.load %arg8[%c224, %c0_39] : memref<736x64xf32, #tpu.memory_space<vmem>>, vector<24x64xf32>
      %c252 = arith.constant 252 : index
      %c0_40 = arith.constant 0 : index
      %92 = vector.load %arg8[%c252, %c0_40] : memref<736x64xf32, #tpu.memory_space<vmem>>, vector<24x64xf32>
      %93 = arith.maximumf %91, %92 : vector<24x64xf32>
      %c96 = arith.constant 96 : index
      %c0_41 = arith.constant 0 : index
      %94 = vector.load %arg9[%c96, %c0_41] : memref<288x64xf32, #tpu.memory_space<vmem>>, vector<24x64xf32>
      tpu.vector_store %arg9[%c96, %c0_41], %93 {strides = array<i32>} : memref<288x64xf32, #tpu.memory_space<vmem>>, vector<24x64xf32>,
      %c280 = arith.constant 280 : index
      %c0_42 = arith.constant 0 : index
      %95 = vector.load %arg8[%c280, %c0_42] : memref<736x64xf32, #tpu.memory_space<vmem>>, vector<24x64xf32>
      %c308 = arith.constant 308 : index
      %c0_43 = arith.constant 0 : index
      %96 = vector.load %arg8[%c308, %c0_43] : memref<736x64xf32, #tpu.memory_space<vmem>>, vector<24x64xf32>
      %97 = arith.maximumf %95, %96 : vector<24x64xf32>
      %c120 = arith.constant 120 : index
      %c0_44 = arith.constant 0 : index
      %98 = vector.load %arg9[%c120, %c0_44] : memref<288x64xf32, #tpu.memory_space<vmem>>, vector<24x64xf32>
      tpu.vector_store %arg9[%c120, %c0_44], %97 {strides = array<i32>} : memref<288x64xf32, #tpu.memory_space<vmem>>, vector<24x64xf32>,
      %c336 = arith.constant 336 : index
      %c0_45 = arith.constant 0 : index
      %99 = vector.load %arg8[%c336, %c0_45] : memref<736x64xf32, #tpu.memory_space<vmem>>, vector<24x64xf32>
      %c364 = arith.constant 364 : index
      %c0_46 = arith.constant 0 : index
      %100 = vector.load %arg8[%c364, %c0_46] : memref<736x64xf32, #tpu.memory_space<vmem>>, vector<24x64xf32>
      %101 = arith.maximumf %99, %100 : vector<24x64xf32>
      %c144 = arith.constant 144 : index
      %c0_47 = arith.constant 0 : index
      %102 = vector.load %arg9[%c144, %c0_47] : memref<288x64xf32, #tpu.memory_space<vmem>>, vector<24x64xf32>
      tpu.vector_store %arg9[%c144, %c0_47], %101 {strides = array<i32>} : memref<288x64xf32, #tpu.memory_space<vmem>>, vector<24x64xf32>,
      %c392 = arith.constant 392 : index
      %c0_48 = arith.constant 0 : index
      %103 = vector.load %arg8[%c392, %c0_48] : memref<736x64xf32, #tpu.memory_space<vmem>>, vector<24x64xf32>
      %c420 = arith.constant 420 : index
      %c0_49 = arith.constant 0 : index
      %104 = vector.load %arg8[%c420, %c0_49] : memref<736x64xf32, #tpu.memory_space<vmem>>, vector<24x64xf32>
      %105 = arith.maximumf %103, %104 : vector<24x64xf32>
      %c168_50 = arith.constant 168 : index
      %c0_51 = arith.constant 0 : index
      %106 = vector.load %arg9[%c168_50, %c0_51] : memref<288x64xf32, #tpu.memory_space<vmem>>, vector<24x64xf32>
      tpu.vector_store %arg9[%c168_50, %c0_51], %105 {strides = array<i32>} : memref<288x64xf32, #tpu.memory_space<vmem>>, vector<24x64xf32>,
      %c448 = arith.constant 448 : index
      %c0_52 = arith.constant 0 : index
      %107 = vector.load %arg8[%c448, %c0_52] : memref<736x64xf32, #tpu.memory_space<vmem>>, vector<24x64xf32>
      %c476 = arith.constant 476 : index
      %c0_53 = arith.constant 0 : index
      %108 = vector.load %arg8[%c476, %c0_53] : memref<736x64xf32, #tpu.memory_space<vmem>>, vector<24x64xf32>
      %109 = arith.maximumf %107, %108 : vector<24x64xf32>
      %c192 = arith.constant 192 : index
      %c0_54 = arith.constant 0 : index
      %110 = vector.load %arg9[%c192, %c0_54] : memref<288x64xf32, #tpu.memory_space<vmem>>, vector<24x64xf32>
      tpu.vector_store %arg9[%c192, %c0_54], %109 {strides = array<i32>} : memref<288x64xf32, #tpu.memory_space<vmem>>, vector<24x64xf32>,
      %c504 = arith.constant 504 : index
      %c0_55 = arith.constant 0 : index
      %111 = vector.load %arg8[%c504, %c0_55] : memref<736x64xf32, #tpu.memory_space<vmem>>, vector<24x64xf32>
      %c532 = arith.constant 532 : index
      %c0_56 = arith.constant 0 : index
      %112 = vector.load %arg8[%c532, %c0_56] : memref<736x64xf32, #tpu.memory_space<vmem>>, vector<24x64xf32>
      %113 = arith.maximumf %111, %112 : vector<24x64xf32>
      %c216 = arith.constant 216 : index
      %c0_57 = arith.constant 0 : index
      %114 = vector.load %arg9[%c216, %c0_57] : memref<288x64xf32, #tpu.memory_space<vmem>>, vector<24x64xf32>
      tpu.vector_store %arg9[%c216, %c0_57], %113 {strides = array<i32>} : memref<288x64xf32, #tpu.memory_space<vmem>>, vector<24x64xf32>,
      %c560 = arith.constant 560 : index
      %c0_58 = arith.constant 0 : index
      %115 = vector.load %arg8[%c560, %c0_58] : memref<736x64xf32, #tpu.memory_space<vmem>>, vector<24x64xf32>
      %c588 = arith.constant 588 : index
      %c0_59 = arith.constant 0 : index
      %116 = vector.load %arg8[%c588, %c0_59] : memref<736x64xf32, #tpu.memory_space<vmem>>, vector<24x64xf32>
      %117 = arith.maximumf %115, %116 : vector<24x64xf32>
      %c240 = arith.constant 240 : index
      %c0_60 = arith.constant 0 : index
      %118 = vector.load %arg9[%c240, %c0_60] : memref<288x64xf32, #tpu.memory_space<vmem>>, vector<24x64xf32>
      tpu.vector_store %arg9[%c240, %c0_60], %117 {strides = array<i32>} : memref<288x64xf32, #tpu.memory_space<vmem>>, vector<24x64xf32>,
      %c616 = arith.constant 616 : index
      %c0_61 = arith.constant 0 : index
      %119 = vector.load %arg8[%c616, %c0_61] : memref<736x64xf32, #tpu.memory_space<vmem>>, vector<24x64xf32>
      %c644 = arith.constant 644 : index
      %c0_62 = arith.constant 0 : index
      %120 = vector.load %arg8[%c644, %c0_62] : memref<736x64xf32, #tpu.memory_space<vmem>>, vector<24x64xf32>
      %121 = arith.maximumf %119, %120 : vector<24x64xf32>
      %c264 = arith.constant 264 : index
      %c0_63 = arith.constant 0 : index
      %122 = vector.load %arg9[%c264, %c0_63] : memref<288x64xf32, #tpu.memory_space<vmem>>, vector<24x64xf32>
      tpu.vector_store %arg9[%c264, %c0_63], %121 {strides = array<i32>} : memref<288x64xf32, #tpu.memory_space<vmem>>, vector<24x64xf32>,
      %c0_64 = arith.constant 0 : index
      %c0_65 = arith.constant 0 : index
      %123 = tpu.strided_load %arg9[%c0_64, %c0_65] {strides = array<i32: 2, 1>} : memref<288x64xf32, #tpu.memory_space<vmem>>, vector<144x64xf32>
      %c1 = arith.constant 1 : index
      %c0_66 = arith.constant 0 : index
      %124 = tpu.strided_load %arg9[%c1, %c0_66] {strides = array<i32: 2, 1>} : memref<288x64xf32, #tpu.memory_space<vmem>>, vector<144x64xf32>
      %125 = arith.maximumf %123, %124 : vector<144x64xf32>
      %126 = arith.truncf %125 : vector<144x64xf32> to vector<144x64xbf16>
      %127 = arith.index_cast %arg10 : i32 to index
      %c0_67 = arith.constant 0 : index
      %c0_68 = arith.constant 0 : index
      %128 = vector.load %arg6[%127, %c0_67, %c0_68] : memref<8x144x64xbf16, #tpu.memory_space<vmem>>, vector<1x144x64xbf16>
      %129 = vector.shape_cast %128 : vector<1x144x64xbf16> to vector<144x64xbf16>
      %130 = vector.shape_cast %126 : vector<144x64xbf16> to vector<1x144x64xbf16>
      tpu.vector_store %arg6[%127, %c0_67, %c0_68], %130 {strides = array<i32>} : memref<8x144x64xbf16, #tpu.memory_space<vmem>>, vector<1x144x64xbf16>,
    }
    %c8_i32_6 = arith.constant 8 : i32
    return
  }
  func.func @transform_0(%arg0: i32) -> (i32, i32) {
    %c0_i32 = arith.constant 0 : i32
    %c0_i32_0 = arith.constant 0 : i32
    return %arg0, %c0_i32 : i32, i32
  }
  func.func @transform_1(%arg0: i32) -> (i32, i32) {
    %c0_i32 = arith.constant 0 : i32
    %c0_i32_0 = arith.constant 0 : i32
    %c0_i32_1 = arith.constant 0 : i32
    return %c0_i32, %c0_i32_0 : i32, i32
  }
  func.func @transform_2(%arg0: i32) -> (i32, i32) {
    %c0_i32 = arith.constant 0 : i32
    %c0_i32_0 = arith.constant 0 : i32
    %c0_i32_1 = arith.constant 0 : i32
    return %c0_i32, %c0_i32_0 : i32, i32
  }
  func.func @transform_3(%arg0: i32) -> (i32, i32, i32) {
    %c0_i32 = arith.constant 0 : i32
    %c0_i32_0 = arith.constant 0 : i32
    %c0_i32_1 = arith.constant 0 : i32
    %c0_i32_2 = arith.constant 0 : i32
    return %c0_i32, %c0_i32_0, %c0_i32_1 : i32, i32, i32
  }
  func.func @transform_4(%arg0: i32) -> (i32, i32) {
    %c0_i32 = arith.constant 0 : i32
    %c0_i32_0 = arith.constant 0 : i32
    %c0_i32_1 = arith.constant 0 : i32
    return %c0_i32, %c0_i32_0 : i32, i32
  }
  func.func @transform_5(%arg0: i32) -> (i32, i32, i32) {
    %c0_i32 = arith.constant 0 : i32
    %c0_i32_0 = arith.constant 0 : i32
    %c0_i32_1 = arith.constant 0 : i32
    return %arg0, %c0_i32, %c0_i32_0 : i32, i32, i32
  }
}

module attributes {stable_mosaic.version = 11 : i64} {
  func.func @mlp_head_kernel(%arg0: i32, %arg1: memref<16x9216xbf16, #tpu.memory_space<vmem>>, %arg2: memref<9216x128xbf16, #tpu.memory_space<vmem>>, %arg3: memref<1x128xf32, #tpu.memory_space<vmem>>, %arg4: memref<128x10xf32, #tpu.memory_space<vmem>>, %arg5: memref<1x10xf32, #tpu.memory_space<vmem>>, %arg6: memref<16x10xf32, #tpu.memory_space<vmem>>) attributes {dimension_semantics = [#tpu.dimension_semantics<parallel>], iteration_bounds = array<i64: 1>, scalar_prefetch = 0 : i64, scratch_operands = 0 : i64, tpu.core_type = #tpu.core_type<tc>, window_params = [{transform_indices = @transform_0, window_bounds = array<i64: 16, 9216>}, {pipeline_mode = #tpu.pipeline_mode<synchronous>, transform_indices = @transform_1, window_bounds = array<i64: 9216, 128>}, {pipeline_mode = #tpu.pipeline_mode<synchronous>, transform_indices = @transform_2, window_bounds = array<i64: 1, 128>}, {pipeline_mode = #tpu.pipeline_mode<synchronous>, transform_indices = @transform_3, window_bounds = array<i64: 128, 10>}, {pipeline_mode = #tpu.pipeline_mode<synchronous>, transform_indices = @transform_4, window_bounds = array<i64: 1, 10>}, {transform_indices = @transform_5, window_bounds = array<i64: 16, 10>}]} {
    %c0 = arith.constant 0 : index
    %c0_0 = arith.constant 0 : index
    %0 = vector.load %arg1[%c0, %c0_0] : memref<16x9216xbf16, #tpu.memory_space<vmem>>, vector<16x9216xbf16>
    %c0_1 = arith.constant 0 : index
    %c0_2 = arith.constant 0 : index
    %1 = vector.load %arg2[%c0_1, %c0_2] : memref<9216x128xbf16, #tpu.memory_space<vmem>>, vector<9216x128xbf16>
    %cst = arith.constant dense<0.000000e+00> : vector<16x128xf32>
    %2 = tpu.matmul %0, %1, %cst {dimension_numbers = #tpu.dot_dimension_numbers<[1], [0], [0], [1], [0, 0, 1, 1], [], []>} : vector<16x9216xbf16>, vector<9216x128xbf16>, vector<16x128xf32> -> vector<16x128xf32>
    %c0_3 = arith.constant 0 : index
    %c0_4 = arith.constant 0 : index
    %3 = vector.load %arg3[%c0_3, %c0_4] : memref<1x128xf32, #tpu.memory_space<vmem>>, vector<1x128xf32>
    %4 = vector.broadcast %3 : vector<1x128xf32> to vector<16x128xf32>
    %5 = arith.addf %2, %4 : vector<16x128xf32>
    %cst_5 = arith.constant 0.000000e+00 : f32
    %6 = vector.broadcast %cst_5 : f32 to vector<16x128xf32>
    %7 = arith.maximumf %5, %6 : vector<16x128xf32>
    %c0_6 = arith.constant 0 : index
    %c0_7 = arith.constant 0 : index
    %8 = vector.load %arg4[%c0_6, %c0_7] : memref<128x10xf32, #tpu.memory_space<vmem>>, vector<128x10xf32>
    %cst_8 = arith.constant dense<0.000000e+00> : vector<16x10xf32>
    %9 = tpu.matmul %7, %8, %cst_8 {dimension_numbers = #tpu.dot_dimension_numbers<[1], [0], [0], [1], [0, 0, 1, 1], [], []>} : vector<16x128xf32>, vector<128x10xf32>, vector<16x10xf32> -> vector<16x10xf32>
    %c0_9 = arith.constant 0 : index
    %c0_10 = arith.constant 0 : index
    %10 = vector.load %arg5[%c0_9, %c0_10] : memref<1x10xf32, #tpu.memory_space<vmem>>, vector<1x10xf32>
    %11 = vector.broadcast %10 : vector<1x10xf32> to vector<16x10xf32>
    %12 = arith.addf %9, %11 : vector<16x10xf32>
    %cst_11 = arith.constant dense<0xFF800000> : vector<16xf32>
    %13 = vector.multi_reduction <maximumf>, %12, %cst_11 [1] : vector<16x10xf32> to vector<16xf32>
    %14 = vector.shape_cast %13 : vector<16xf32> to vector<16x1xf32>
    %15 = vector.broadcast %14 : vector<16x1xf32> to vector<16x10xf32>
    %16 = arith.subf %12, %15 : vector<16x10xf32>
    %17 = math.exp %16 : vector<16x10xf32>
    %cst_12 = arith.constant dense<0.000000e+00> : vector<16xf32>
    %18 = vector.multi_reduction <add>, %17, %cst_12 [1] : vector<16x10xf32> to vector<16xf32>
    %19 = vector.shape_cast %18 : vector<16xf32> to vector<16x1xf32>
    %20 = math.log %19 : vector<16x1xf32>
    %21 = vector.broadcast %20 : vector<16x1xf32> to vector<16x10xf32>
    %22 = arith.subf %16, %21 : vector<16x10xf32>
    %c0_13 = arith.constant 0 : index
    %c0_14 = arith.constant 0 : index
    %23 = vector.load %arg6[%c0_13, %c0_14] : memref<16x10xf32, #tpu.memory_space<vmem>>, vector<16x10xf32>
    tpu.vector_store %arg6[%c0_13, %c0_14], %22 {strides = array<i32>} : memref<16x10xf32, #tpu.memory_space<vmem>>, vector<16x10xf32>,
    return
  }
  func.func @transform_0(%arg0: i32) -> (i32, i32) {
    %c0_i32 = arith.constant 0 : i32
    %c0_i32_0 = arith.constant 0 : i32
    return %arg0, %c0_i32 : i32, i32
  }
  func.func @transform_1(%arg0: i32) -> (i32, i32) {
    %c0_i32 = arith.constant 0 : i32
    %c0_i32_0 = arith.constant 0 : i32
    %c0_i32_1 = arith.constant 0 : i32
    return %c0_i32, %c0_i32_0 : i32, i32
  }
  func.func @transform_2(%arg0: i32) -> (i32, i32) {
    %c0_i32 = arith.constant 0 : i32
    %c0_i32_0 = arith.constant 0 : i32
    %c0_i32_1 = arith.constant 0 : i32
    return %c0_i32, %c0_i32_0 : i32, i32
  }
  func.func @transform_3(%arg0: i32) -> (i32, i32) {
    %c0_i32 = arith.constant 0 : i32
    %c0_i32_0 = arith.constant 0 : i32
    %c0_i32_1 = arith.constant 0 : i32
    return %c0_i32, %c0_i32_0 : i32, i32
  }
  func.func @transform_4(%arg0: i32) -> (i32, i32) {
    %c0_i32 = arith.constant 0 : i32
    %c0_i32_0 = arith.constant 0 : i32
    %c0_i32_1 = arith.constant 0 : i32
    return %c0_i32, %c0_i32_0 : i32, i32
  }
  func.func @transform_5(%arg0: i32) -> (i32, i32) {
    %c0_i32 = arith.constant 0 : i32
    %c0_i32_0 = arith.constant 0 : i32
    return %arg0, %c0_i32 : i32, i32
  }
}

</mosaic_0001>

<bundles_post_ra>
// kernel: net_forward.2
= control target key start
LH: loop header
LB: loop body
LE: loop exit
PB: predicated region body
PF: predicated region fallthrough
CT: control target
= control target key end

     0   :  { %10 = vsyncpa [#allocation6], 0  ;;  %s6546_s0 = inlined_call_operand.vmem [shape: f32[16,784], index: 0, kind: input, shape index: {}]   ;;  %s6547_s1 = inlined_call_operand.hbm [shape: f32[9,32], index: 1, kind: input, shape index: {}]   ;;  %s6548_s2 = inlined_call_operand.hbm [shape: f32[1,32], index: 2, kind: input, shape index: {}]   ;;  %s6549_s3 = inlined_call_operand.hbm [shape: f32[9,32,64], index: 3, kind: input, shape index: {}]   ;;  %s6550_s4 = inlined_call_operand.hbm [shape: f32[1,64], index: 4, kind: input, shape index: {}]   ;;  %s6551_s5 = inlined_call_operand.vmem [shape: bf16[16,144,64], index: 5, kind: output, shape index: {}]  }
   0x1   :  { %11 = vsyncpa [#allocation8], 0 }
   0x2   :  { %12 = vsyncpa [#allocation11], 0  ;;  %s4919_s18 = smov 0  }
   0x3 LB: > { %s185_s21 = sshll.u32 %s6548_s2, 4  ;;  %s4928_s22 = sadd.s32 4294967295, %s4862_s18   ;;  %s4862_s18 = sphi %s4919_s18, %s18_s18   ;;  %s186_s21 = int_to_ptr.hbm [resolvable:$true] %s185_s21 }
   0x4   : > { %p4117_p0 = scmp.ge.s32.totalorder %s4862_s18, 1  ;;  %p159_p1 = scmp.lt.s32.totalorder %s4862_s18, 3 }
   0x5   : > { %p4666_p2 = scmp.eq.s32.totalorder %s4928_s22, 0  ;;  %s4872_s24 = smov [#allocation7]  }
   0x6   : > { %p4933_p3 = pnand %p4117_p0, %p159_p1  ;;  %s187_s25 = sshll.u32 %s4872_s24, 4  ;;  %s188_s25 = int_to_ptr.vmem [resolvable:$true] %s187_s25 }
   0x7   : > { %s170_s28 = sshll.u32 %s6547_s1, 4  ;;  %s4873_s30 = smov [#allocation5]   ;;  %s171_s28 = int_to_ptr.hbm [resolvable:$true] %s170_s28 }
   0x8   : > { %p4653_p4 = pneg %p4933_p3  ;;  %s172_s6 = sshll.u32 %s4873_s30, 4  ;;  %s173_s6 = int_to_ptr.vmem [resolvable:$true] %s172_s6 }
   0x9   : > { %s196_s9 = sshll.u32 %s6549_s3, 4  ;;  %s4874_s10 = smov 128   ;;  %s197_s9 = int_to_ptr.hbm [resolvable:$true] %s196_s9 }
   0xa   : > { %p4944_p5 = pnand %p4666_p2, %p4653_p4  ;;  %s4875_s11 = smov 8  }
   0xb   : > { %s4876_s12 = smov [#allocation9]   ;;  %s211_s16 = sshll.u32 %s6550_s4, 4  ;;  %s212_s16 = int_to_ptr.hbm [resolvable:$true] %s211_s16 }
   0xc   : > { %4659 = dma.hbm_to_vmem [thread:$0]  (!%p4944_p5), %s186_s21, 16, %s188_s25, [#allocation8]  }
   0xd   : > { %4656 = dma.hbm_to_vmem [thread:$0]  (!%p4944_p5), %s171_s28, 256, %s173_s6, [#allocation6], %s4874_s10, %s4874_s10, %s4875_s11  }
   0xe   : > { %s198_s13 = sshll.u32 %s4876_s12, 4  ;;  %s4877_s17 = smov [#allocation10]   ;;  %s199_s13 = int_to_ptr.vmem [resolvable:$true] %s198_s13 }
   0xf   : > { %4662 = dma.hbm_to_vmem [thread:$0]  (!%p4944_p5), %s197_s9, 4608, %s199_s13, [#allocation8], %s4874_s10, %s4874_s10, %s4875_s11  }
  0x10   : > { %s213_s19 = sshll.u32 %s4877_s17, 4  ;;  %234 = sbr.rel (%p4933_p3) target bundleno = 1950 (0x79e), region = 40  ;;  %s214_s19 = int_to_ptr.vmem [resolvable:$true] %s213_s19 }
  0x11   : > { %4665 = dma.hbm_to_vmem [thread:$0]  (!%p4944_p5), %s212_s16, 16, %s214_s19, [#allocation11]  }
  0x15   : > { %4849 = dma.done.wait (%p4666_p2), [#allocation6], 256  }
  0x16   : > { %4851 = vsyncadd (%p4666_p2), [#allocation6], 4294967040 }
  0x17   : > { %4853 = dma.done.wait (%p4666_p2), [#allocation8], 4624  }
  0x18   : > { %4855 = vsyncadd (%p4666_p2), [#allocation8], 4294962672 }
  0x19   : > { %4857 = dma.done.wait (%p4666_p2), [#allocation11], 16  }
  0x1a   : > { %4859 = vsyncadd (%p4666_p2), [#allocation11], 4294967280  ;;  %p279_p6 = scmp.lt.s32.totalorder %s4928_s22, 1  ;;  %s4129_s20 = sshll.u32 %s4928_s22, 3  ;;  %vm291_vm0 = vcmask 261120   ;;  %v4878_v0 = vmov 0.0  }
  0x1b   : > { %p285_p7 = scmp.lt.s32.totalorder %s4129_s20, 15  ;;  %292 = vst.msk [vmem:[#allocation2 + $0x2e0] sm:$0xff] %vm291_vm0, %v4878_v0  ;;  %v4990_v1 = vld [vmem:[#allocation5] sm:$0xff]  ;;  %v4992_v2 = vld [vmem:[#allocation5 + $0x8] sm:$0x1]  ;;  %s5005_s29 = smov 0  }
  0x1c   : > { %s6597_s22 = smov (!%p279_p6, %s4928_s22), 1  ;;  %293 = vst.msk [vmem:[#allocation2 + $0x2e8] sm:$0xff] %vm291_vm0, %v4878_v0  ;;  %v4994_v3 = vld [vmem:[#allocation7] sm:$0x1]  ;;  %v5002_v4 = vld [vmem:[#allocation10] sm:$0x1] }
  0x1d   : > { %s6599_s20 = smov (!%p285_p7, %s4129_s20), 15  ;;  %294 = vst.msk [vmem:[#allocation2 + $0x2f0] sm:$0xff] %vm291_vm0, %v4878_v0  ;;  %s4635_s21 = smul.u32 56, %s6597_s22 }
  0x1e   : > { %295 = vst.msk [vmem:[#allocation2 + $0x2f8] sm:$0xff] %vm291_vm0, %v4878_v0  ;;  %s4636_s23 = smul.u32 72, %s6599_s20 }
  0x1f   : > { %296 = vst.msk [vmem:[#allocation2 + $0x300] sm:$0xff] %vm291_vm0, %v4878_v0  ;;  %s4987_s26 = scalar_lea.vmem %s6546_s0, %s4635_s21 }
  0x20   : > { %297 = vst.msk [vmem:[#allocation2 + $0x308] sm:$0xff] %vm291_vm0, %v4878_v0  ;;  %s4999_s28 = scalar_lea.vmem %s6551_s5, %s4636_s23 }
  0x21   : > { %6560 = vst [vmem:[#allocation15_spill] sm:$0xff] %v4990_v1 }
  0x22   : > { %6561 = vst [vmem:[#allocation16_spill] sm:$0xff] %v4992_v2 }
  0x23   : > { %6562 = vst [vmem:[#allocation17_spill] sm:$0xff] %v4994_v3 }
  0x24   : > { %298 = vst.msk [vmem:[#allocation2 + $0x310] sm:$0xff] %vm291_vm0, %v4878_v0 }
  0x25   : > { %6563 = vst [vmem:[#allocation18_spill] sm:$0xff] %v5002_v4 }
  0x26   : > { %299 = vst.msk [vmem:[#allocation2 + $0x318] sm:$0xff] %vm291_vm0, %v4878_v0 }
  0x27 LB: >> { %s310_s30 = sshra.s32 %s4866_s29, 3  ;;  %s313_s6 = sand.u32 7, %s4866_s29  ;;  %vm416_vm1 = vcmask 1040384   ;;  %vm364_vm2 = vcmask 818176   ;;  %vm354_vm3 = vcmask 1031168   ;;  %vm344_vm4 = vcmask 1039360   ;;  %s4866_s29 = sphi %s5005_s29, %s309_s29  }
  0x28   : >> { %v6565_v1 = vld [vmem:[#allocation15_spill] sm:$0xff]  ;;  %s4131_s7 = smul.u32 56, %s310_s30  ;;  %s4879_s10 = smov 100   ;;  %vm419_vm5 = vcmask 1041408   ;;  %vm422_vm6 = vcmask 1042432   ;;  %vm374_vm7 = vcmask 809984  }
  0x29   : >> { %v6564_v2 = vld [vmem:[#allocation16_spill] sm:$0xff]  ;;  %s4880_s11 = smov 126   ;;  %s4881_s12 = smov 127   ;;  %vm425_vm8 = vcmask 1043456   ;;  %vm394_vm9 = vcmask 588800   ;;  %vm384_vm10 = vcmask 801792  }
  0x2a   : >> { %s316_s8 = sadd.s32 %s4131_s7, %s313_s6  ;;  %s4882_s13 = smov 98   ;;  %4132 = vmatpush.msk.msra.mxu0 %vm416_vm1, %v6564_v2  ;;  %4204 = vmatpush.msk.msra.mxu3 %vm416_vm1, %v6564_v2  ;;  %vm428_vm11 = vcmask 1044480   ;;  %vm431_vm12 = vcmask 1045504   ;;  %vm404_vm13 = vcmask 580608   ;;  %vm434_vm14 = vcmask 1046528   ;;  %v6566_v3 = vld [vmem:[#allocation17_spill] sm:$0xff] }
  0x2b   : >> { %s317_s9 = scalar_lea.vmem %s4987_s26, %s316_s8  ;;  %s4883_s14 = smov 99   ;;  %4180 = vmatpush.msk.msra.mxu2 %vm416_vm1, %v6564_v2  ;;  %4156 = vmatpush.msk.msra.mxu1 %vm416_vm1, %v6564_v2  ;;  %vm336_vm15 = vcmask 130048  }
  0x2c   : >> { %v318_v5 = vld [vmem:[%s317_s9] ss:$8 sm:$0xf]  ;;  %s4884_s15 = smov 72   ;;  %s4885_s16 = smov 70   ;;  %592 = vmatpush.msra.mxu0 %v6565_v1  ;;  %1677 = vmatpush.msra.mxu3 %v6565_v1 }
  0x2d   : >> { %v319_v6 = vld [vmem:[%s317_s9] ss:$8 sm:$0x70]  ;;  %s4886_s17 = smov 71   ;;  %1324 = vmatpush.msra.mxu2 %v6565_v1  ;;  %955 = vmatpush.msra.mxu1 %v6565_v1  ;;  %s4887_s19 = smov 16  }
  0x2e   : >> { %v5013_v7 = vor.u32 %v319_v6, %v318_v5  ;;  %s4888_s20 = smov 88   ;;  %s5694_s21 = smov 0  }
  0x30   : >> { %v5016_v8 = vperm.slane %v5013_v7, 0  ;;  %v5024_v12 = vperm.slane %v5013_v7, 1  ;;  %v5051_v24 = vperm.slane %v5013_v7, 3  ;;  %v5057_v26 = vperm.slane %v5013_v7, 2 }
  0x31   : >> { %v5072_v32 = vperm.slane %v5013_v7, 4  ;;  %v5079_v34 = vperm.slane %v5013_v7, 5 }
  0x32   : >> { %v358_v9 = vrot.slane %v5016_v8, 5  ;;  %v348_v10 = vrot.slane %v5016_v8, 6  ;;  %v338_v11 = vrot.slane %v5016_v8, 7  ;;  %v359_v13 = vrot.slane %v5024_v12, 5 }
  0x33   : >> { %v349_v14 = vrot.slane %v5024_v12, 6  ;;  %v339_v15 = vrot.slane %v5024_v12, 7  ;;  %v378_v16 = vrot.slane %v5016_v8, 3  ;;  %v369_v17 = vrot.slane %v5024_v12, 4 }
  0x34   : >> { %360 = vrot.lane.b32.xlu2 %v358_v9, %s4879_s10  ;;  %350 = vrot.lane.b32.xlu1 %v348_v10, %s4880_s11  ;;  %v368_v18 = vrot.slane %v5016_v8, 4  ;;  %v389_v19 = vrot.slane %v5024_v12, 2  ;;  %v388_v20 = vrot.slane %v5016_v8, 2  ;;  %v379_v21 = vrot.slane %v5024_v12, 3 }
  0x35   : >> { %340 = vrot.lane.b32.xlu0 %v338_v11, %s4881_s12  ;;  %v399_v22 = vrot.slane %v5024_v12, 1  ;;  %v398_v23 = vrot.slane %v5016_v8, 1  ;;  %v1083_v25 = vrot.slane %v5051_v24, 6  ;;  %v722_v27 = vrot.slane %v5051_v24, 5 }
  0x36   : >> { %v721_v28 = vrot.slane %v5057_v26, 5  ;;  %v709_v29 = vrot.slane %v5057_v26, 7  ;;  %v741_v30 = vrot.slane %v5057_v26, 3  ;;  %v1072_v31 = vrot.slane %v5051_v24, 7 }
  0x37   : >> { %v1073_v33 = vrot.slane %v5072_v32, 7  ;;  %v1441_v35 = vrot.slane %v5079_v34, 7  ;;  %v715_v36 = vrot.slane %v5057_v26, 6  ;;  %v1084_v37 = vrot.slane %v5072_v32, 6 }
  0x38   : >> { %v1447_v39 = vrot.slane %v5079_v34, 6  ;;  %v1094_v42 = vrot.slane %v5072_v32, 5  ;;  %v1453_v43 = vrot.slane %v5079_v34, 5  ;;  %v732_v46 = vrot.slane %v5051_v24, 4 }
  0x39   : >> { %v1101_v54 = vrot.slane %v5072_v32, 4  ;;  %v1459_v63 = vrot.slane %v5079_v34, 4 }
  0x3c   : >> { %362 = vrot.lane.b32.xlu2 %v359_v13, %s4879_s10  ;;  %352 = vrot.lane.b32.xlu1 %v349_v14, %s4880_s11  ;;  %v742_v13 = vrot.slane %v5051_v24, 3 }
  0x3d   : >> { %342 = vrot.lane.b32.xlu0 %v339_v15, %s4881_s12 }
  0x44   : >> { %380 = vrot.lane.b32.xlu2 %v378_v16, %s4882_s13  ;;  %372 = vrot.lane.b32.xlu1 %v369_v17, %s4883_s14 }
  0x45   : >> { %370 = vrot.lane.b32.xlu0 %v368_v18, %s4883_s14 }
  0x4c   : >> { %392 = vrot.lane.b32.xlu2 %v389_v19, %s4884_s15  ;;  %390 = vrot.lane.b32.xlu1 %v388_v20, %s4884_s15  ;;  %v1108_v19 = vrot.slane %v5072_v32, 3 }
  0x4d   : >> { %382 = vrot.lane.b32.xlu0 %v379_v21, %s4882_s13 }
  0x54   : >> { %408 = vrot.lane.b32.xlu2 %v5016_v8, %s4885_s16  ;;  %402 = vrot.lane.b32.xlu1 %v399_v22, %s4886_s17  ;;  %v328_v22 = vperm.slane %v5013_v7, 6 }
  0x55   : >> { %400 = vrot.lane.b32.xlu0 %v398_v23, %s4886_s17  ;;  %v1465_v23 = vrot.slane %v5079_v34, 3 }
  0x5c   : >> { %1085 = vrot.lane.b32.xlu2 %v1083_v25, %s4880_s11  ;;  %725 = vrot.lane.b32.xlu1 %v722_v27, %s4879_s10  ;;  %v337_v25 = vsel %vm336_vm15, %v328_v22, 0.0 }
  0x5d   : >> { %410 = vrot.lane.b32.xlu0 %v5024_v12, %s4885_s16 }
  0x64   : >> { %723 = vrot.lane.b32.xlu2 %v721_v28, %s4879_s10  ;;  %v752_v28 = vrot.slane %v5051_v24, 2 }
  0x65   : >> { %710 = vrot.lane.b32.xlu0 %v709_v29, %s4881_s12 }
  0x6c   : >> { %743 = vrot.lane.b32.xlu2 %v741_v30, %s4882_s13  ;;  %v1115_v30 = vrot.slane %v5072_v32, 2 }
  0x6d   : >> { %1074 = vrot.lane.b32.xlu0 %v1072_v31, %s4881_s12 }
  0x74   : >> { %1129 = vrot.lane.b32.xlu2 %v5072_v32, %s4885_s16 }
  0x75   : >> { %1076 = vrot.lane.b32.xlu0 %v1073_v33, %s4881_s12 }
  0x7c   : >> { %1494 = vrot.lane.b32.xlu2 %v337_v25, %s4885_s16 }
  0x7d   : >> { %1442 = vrot.lane.b32.xlu0 %v1441_v35, %s4881_s12  ;;  %v1472_v35 = vrot.slane %v5079_v34, 2 }
  0x85   : >> { %716 = vrot.lane.b32.xlu0 %v715_v36, %s4880_s11 }
  0x8d   : >> { %1087 = vrot.lane.b32.xlu0 %v1084_v37, %s4880_s11 }
  0x8e   : >> { %v361_v38 = vpop.permute.xlu2 %360 }
  0x95   : >> { %1448 = vrot.lane.b32.xlu0 %v1447_v39, %s4880_s11  ;;  %v1473_v39 = vrot.slane %v337_v25, 2 }
  0x96   : >> { %v5101_v40 = vpop.permute.xlu2 %362 }
  0x97   : >> { %v365_v41 = vsel %vm364_vm2, %v361_v38, %v5101_v40 }
  0x9d   : >> { %1095 = vrot.lane.b32.xlu0 %v1094_v42, %s4879_s10 }
  0x9e   : >> { %v381_v58 = vpop.permute.xlu2 %380 }
  0xa5   : >> { %1454 = vrot.lane.b32.xlu0 %v1453_v43, %s4879_s10 }
  0xa6   : >> { %v351_v44 = vpop.permute.xlu1 %350  ;;  %v5139_v0 = vpop.permute.xlu2 %392 }
  0xa7   : >> { %v341_v45 = vpop.permute.xlu0 %340 }
  0xad   : >> { %735 = vrot.lane.b32.xlu0 %v732_v46, %s4883_s14 }
  0xae   : >> { %v5111_v47 = vpop.permute.xlu1 %352  ;;  %v5178_v31 = vpop.permute.xlu2 %408 }
  0xaf   : >> { %v355_v48 = vsel %vm354_vm3, %v351_v44, %v5111_v47  ;;  %v5115_v49 = vpop.permute.xlu0 %342 }
  0xb0   : >> { %v345_v50 = vsel %vm344_vm4, %v341_v45, %v5115_v49  ;;  %v418_v51 = vsel %vm416_vm1, %v5024_v12, %v5115_v49 }
  0xb1   : >> { %v417_v52 = vsel %vm416_vm1, %v5016_v8, %v345_v50  ;;  %v421_v53 = vsel %vm419_vm5, %v418_v51, %v5111_v47 }
  0xb2   : >> { %v420_v55 = vsel %vm419_vm5, %v417_v52, %v355_v48  ;;  %v424_v56 = vsel %vm422_vm6, %v421_v53, %v5101_v40 }
  0xb3   : >> { %v423_v57 = vsel %vm422_vm6, %v420_v55, %v365_v41  ;;  %v761_v41 = vrot.slane %v5057_v26, 1 }
  0xb5   : >> { %1102 = vrot.lane.b32.xlu0 %v1101_v54, %s4883_s14  ;;  %763 = vrot.lane.b32.xlu2 %v761_v41, %s4886_s17 }
  0xb6   : >> { %v5132_v59 = vpop.permute.xlu1 %372  ;;  %v1086_v36 = vpop.permute.xlu2 %1085 }
  0xb7   : >> { %v371_v60 = vpop.permute.xlu0 %370  ;;  %v427_v6 = vsel %vm425_vm8, %v424_v56, %v5132_v59 }
  0xb8   : >> { %v375_v61 = vsel %vm374_vm7, %v371_v60, %v5132_v59  ;;  %v1122_v60 = vrot.slane %v5072_v32, 1 }
  0xb9   : >> { %v426_v62 = vsel %vm425_vm8, %v423_v57, %v375_v61 }
  0xbd   : >> { %1460 = vrot.lane.b32.xlu0 %v1459_v63, %s4883_s14 }
  0xbe   : >> { %v391_v5 = vpop.permute.xlu1 %390  ;;  %v5193_v44 = vpop.permute.xlu2 %723 }
  0xbf   : >> { %v395_v8 = vsel %vm394_vm9, %v391_v5, %v5139_v0  ;;  %v5145_v9 = vpop.permute.xlu0 %382  ;;  %v727_v45 = vsel %vm364_vm2, %v5101_v40, %v5193_v44  ;;  %v762_v40 = vrot.slane %v5051_v24, 1 }
  0xc0   : >> { %v385_v10 = vsel %vm384_vm10, %v381_v58, %v5145_v9  ;;  %v5151_v11 = vsel %vm428_vm11, %v427_v6, %v5145_v9 }
  0xc1   : >> { %v429_v14 = vsel %vm428_vm11, %v426_v62, %v385_v10  ;;  %v1482_v10 = vrot.slane %v5079_v34, 1 }
  0xc2   : >> { %v432_v15 = vsel %vm431_vm12, %v429_v14, %v395_v8 }
  0xc5   : >> { %745 = vrot.lane.b32.xlu0 %v742_v13, %s4882_s13 }
  0xc6   : >> { %v5157_v16 = vpop.permute.xlu1 %402 }
  0xc7   : >> { %v401_v17 = vpop.permute.xlu0 %400 }
  0xc8   : >> { %v405_v18 = vsel %vm404_vm13, %v401_v17, %v5157_v16 }
  0xc9   : >> { %v5163_v20 = vsel %vm434_vm14, %v432_v15, %v405_v18  ;;  %v1483_v18 = vrot.slane %v337_v25, 1 }
  0xcd   : >> { %1109 = vrot.lane.b32.xlu0 %v1108_v19, %s4882_s13 }
  0xce   : >> { %v5234_v13 = vpop.permute.xlu1 %725 }
  0xcf   : >> { %v5166_v21 = vpop.permute.xlu0 %410 }
  0xd5   : >> { %1466 = vrot.lane.b32.xlu0 %v1465_v23, %s4882_s13 }
  0xd7   : >> { %v5173_v27 = vpop.permute.xlu0 %710 }
  0xd8   : >> { %v712_v42 = vsel %vm344_vm4, %v5115_v49, %v5173_v27 }
  0xd9   : >> { %v777_v50 = vsel %vm416_vm1, %v5024_v12, %v712_v42 }
  0xdd   : >> { %755 = vrot.lane.b32.xlu0 %v752_v28, %s4884_s15 }
  0xdf   : >> { %v1075_v29 = vpop.permute.xlu0 %1074 }
  0xe0   : >> { %v1078_v43 = vsel %vm344_vm4, %v5173_v27, %v1075_v29 }
  0xe1   : >> { %v1132_v48 = vsel %vm416_vm1, %v5057_v26, %v1078_v43 }
  0xe5   : >> { %1116 = vrot.lane.b32.xlu0 %v1115_v30, %s4884_s15 }
  0xe7   : >> { %v1077_v7 = vpop.permute.xlu0 %1076 }
  0xe8   : >> { %v1079_v33 = vsel %vm344_vm4, %v1075_v29, %v1077_v7  ;;  %v1134_v12 = vsel %vm416_vm1, %v5072_v32, %v1077_v7  ;;  %v731_v29 = vrot.slane %v5057_v26, 4 }
  0xed   : >> { %1474 = vrot.lane.b32.xlu0 %v1472_v35, %s4884_s15 }
  0xef   : >> { %v1443_v37 = vpop.permute.xlu0 %1442 }
  0xf0   : >> { %v1444_v38 = vsel %vm344_vm4, %v1077_v7, %v1443_v37  ;;  %v1499_v61 = vsel %vm416_vm1, %v5079_v34, %v1443_v37 }
  0xf1   : >> { %v1498_v63 = vsel %vm416_vm1, %v5072_v32, %v1444_v38 }
  0xf5   : >> { %1476 = vrot.lane.b32.xlu0 %v1473_v39, %s4884_s15 }
  0xf7   : >> { %v5198_v46 = vpop.permute.xlu0 %716 }
  0xf8   : >> { %v718_v49 = vsel %vm354_vm3, %v5111_v47, %v5198_v46  ;;  %v1089_v51 = vsel %vm354_vm3, %v5198_v46, %v1086_v36  ;;  %v1133_v47 = vsel %vm416_vm1, %v5051_v24, %v1079_v33 }
  0xf9   : >> { %v779_v52 = vsel %vm419_vm5, %v777_v50, %v718_v49  ;;  %v1135_v53 = vsel %vm419_vm5, %v1132_v48, %v1089_v51 }
  0xfa   : >> { %v5213_v54 = vsel %vm422_vm6, %v779_v52, %v727_v45  ;;  %v1138_v52 = vsel %vm422_vm6, %v1135_v53, %v5234_v13 }
  0xfd   : >> { %765 = vrot.lane.b32.xlu0 %v762_v40, %s4886_s17 }
  0xff   : >> { %v1088_v55 = vpop.permute.xlu0 %1087 }
 0x100   : >> { %v1090_v56 = vsel %vm354_vm3, %v1086_v36, %v1088_v55  ;;  %v1137_v57 = vsel %vm419_vm5, %v1134_v12, %v1088_v55 }
 0x101   : >> { %v1136_v58 = vsel %vm419_vm5, %v1133_v47, %v1090_v56 }
 0x105   : >> { %1123 = vrot.lane.b32.xlu0 %v1122_v60, %s4886_s17 }
 0x107   : >> { %v1449_v62 = vpop.permute.xlu0 %1448 }
 0x108   : >> { %v1450_v5 = vsel %vm354_vm3, %v1088_v55, %v1449_v62  ;;  %v1501_v6 = vsel %vm419_vm5, %v1499_v61, %v1449_v62  ;;  %vm504_vm3 = vcmask 72704  }
 0x109   : >> { %v1500_v8 = vsel %vm419_vm5, %v1498_v63, %v1450_v5 }
 0x10d   : >> { %1484 = vrot.lane.b32.xlu0 %v1482_v10, %s4886_s17 }
 0x10f   : >> { %v1096_v14 = vpop.permute.xlu0 %1095 }
 0x110   : >> { %v1097_v15 = vsel %vm364_vm2, %v5234_v13, %v1096_v14  ;;  %v1140_v17 = vsel %vm422_vm6, %v1137_v57, %v1096_v14 }
 0x111   : >> { %v1139_v32 = vsel %vm422_vm6, %v1136_v58, %v1097_v15 }
 0x115   : >> { %1486 = vrot.lane.b32.xlu0 %v1483_v18, %s4886_s17 }
 0x117   : >> { %v1455_v19 = vpop.permute.xlu0 %1454 }
 0x118   : >> { %v1456_v22 = vsel %vm364_vm2, %v1096_v14, %v1455_v19  ;;  %v1503_v23 = vsel %vm422_vm6, %v1501_v6, %v1455_v19 }
 0x119   : >> { %v1502_v28 = vsel %vm422_vm6, %v1500_v8, %v1456_v22 }
 0x11d   : >> { %733 = vrot.lane.b32.xlu0 %v731_v29, %s4883_s14 }
 0x11f   : >> { %v5246_v30 = vpop.permute.xlu0 %735 }
 0x120   : >> { %v1141_v40 = vsel %vm425_vm8, %v1138_v52, %v5246_v30 }
 0x125   : >> { %773 = vrot.lane.b32.xlu0 %v5051_v24, %s4885_s16  ;;  %v751_v24 = vrot.slane %v5057_v26, 2 }
 0x127   : >> { %v1103_v7 = vpop.permute.xlu0 %1102 }
 0x128   : >> { %v1104_v25 = vsel %vm374_vm7, %v5246_v30, %v1103_v7  ;;  %v1143_v33 = vsel %vm425_vm8, %v1140_v17, %v1103_v7 }
 0x129   : >> { %v1142_v35 = vsel %vm425_vm8, %v1139_v32, %v1104_v25  ;;  %v778_v25 = vsel %vm416_vm1, %v5057_v26, %v5173_v27  ;;  %vm412_vm1 = vcmask 572416  }
 0x12d   : >> { %1492 = vrot.lane.b32.xlu0 %v5079_v34, %s4885_s16 }
 0x12f   : >> { %v1461_v36 = vpop.permute.xlu0 %1460 }
 0x130   : >> { %v1462_v37 = vsel %vm374_vm7, %v1103_v7, %v1461_v36  ;;  %v1505_v38 = vsel %vm425_vm8, %v1503_v23, %v1461_v36  ;;  %v744_v7 = vpop.permute.xlu2 %743 }
 0x131   : >> { %v1504_v39 = vsel %vm425_vm8, %v1502_v28, %v1462_v37 }
 0x135   : >> { %753 = vrot.lane.b32.xlu0 %v751_v24, %s4884_s15  ;;  %v747_v24 = vsel %vm384_vm10, %v5145_v9, %v744_v7 }
 0x137   : >> { %v746_v41 = vpop.permute.xlu0 %745 }
 0x138   : >> { %v1144_v12 = vsel %vm428_vm11, %v1141_v40, %v746_v41 }
 0x13d   : >> { %771 = vrot.lane.b32.xlu0 %v5057_v26, %s4885_s16  ;;  %v748_v26 = vsel %vm384_vm10, %v744_v7, %v746_v41 }
 0x13f   : >> { %v1110_v42 = vpop.permute.xlu0 %1109 }
 0x140   : >> { %v1146_v43 = vsel %vm428_vm11, %v1143_v33, %v1110_v42  ;;  %v1111_v57 = vsel %vm384_vm10, %v746_v41, %v1110_v42  ;;  %v728_v33 = vsel %vm364_vm2, %v5193_v44, %v5234_v13  ;;  %vm1522_vm2 = vcmask 719872  }
 0x141   : >> { %v1145_v53 = vsel %vm428_vm11, %v1142_v35, %v1111_v57  ;;  %v780_v35 = vsel %vm419_vm5, %v778_v25, %v5198_v46  ;;  %v5319_v46 = vpop.permute.xlu2 %1129 }
 0x142   : >> { %v782_v37 = vsel %vm422_vm6, %v780_v35, %v728_v33 }
 0x147   : >> { %v1467_v45 = vpop.permute.xlu0 %1466 }
 0x148   : >> { %v1468_v6 = vsel %vm384_vm10, %v1110_v42, %v1467_v45  ;;  %v1507_v19 = vsel %vm428_vm11, %v1505_v38, %v1467_v45 }
 0x149   : >> { %v1506_v10 = vsel %vm428_vm11, %v1504_v39, %v1468_v6 }
 0x14f   : >> { %v5264_v34 = vpop.permute.xlu0 %755 }
 0x150   : >> { %v1147_v55 = vsel %vm431_vm12, %v1144_v12, %v5264_v34 }
 0x157   : >> { %v1117_v48 = vpop.permute.xlu0 %1116 }
 0x158   : >> { %v1149_v50 = vsel %vm431_vm12, %v1146_v43, %v1117_v48  ;;  %v1118_v58 = vsel %vm394_vm9, %v5264_v34, %v1117_v48 }
 0x159   : >> { %v1148_v62 = vsel %vm431_vm12, %v1145_v53, %v1118_v58  ;;  %v433_v58 = vsel %vm431_vm12, %v5151_v11, %v5139_v0 }
 0x15a   : >> { %v436_v53 = vsel %vm434_vm14, %v433_v58, %v5157_v16 }
 0x15f   : >> { %v1475_v49 = vpop.permute.xlu0 %1474 }
 0x160   : >> { %v1478_v8 = vsel %vm394_vm9, %v1117_v48, %v1475_v49 }
 0x161   : >> { %v1508_v17 = vsel %vm431_vm12, %v1506_v10, %v1478_v8 }
 0x167   : >> { %v1477_v51 = vpop.permute.xlu0 %1476 }
 0x168   : >> { %v1479_v18 = vsel %vm394_vm9, %v1475_v49, %v1477_v51 }
 0x169   : >> { %v1509_v28 = vsel %vm431_vm12, %v1507_v19, %v1479_v18 }
 0x16f   : >> { %v766_v47 = vpop.permute.xlu0 %765 }
 0x170   : >> { %v1150_v56 = vsel %vm434_vm14, %v1147_v55, %v766_v47 }
 0x171   : >> { %1156 = vrot.lane.b32.xlu2 %v1150_v56, %s4887_s19 }
 0x177   : >> { %v1124_v60 = vpop.permute.xlu0 %1123 }
 0x178   : >> { %v1125_v61 = vsel %vm404_vm13, %v766_v47, %v1124_v60  ;;  %v5283_v63 = vsel %vm434_vm14, %v1149_v50, %v1124_v60 }
 0x179   : >> { %v1151_v5 = vsel %vm434_vm14, %v1148_v62, %v1125_v61 }
 0x17a   : >> { %1158 = vrot.lane.b32.xlu0 %v1151_v5, %s4887_s19 }
 0x17f   : >> { %v1485_v14 = vpop.permute.xlu0 %1484 }
 0x180   : >> { %v1488_v15 = vsel %vm404_vm13, %v1124_v60, %v1485_v14  ;;  %v413_v60 = vsel %vm412_vm1, %v5178_v31, %v5166_v21 }
 0x181   : >> { %v1510_v32 = vsel %vm434_vm14, %v1508_v17, %v1488_v15 }
 0x182   : >> { %1514 = vrot.lane.b32.xlu2 %v1510_v32, %s4888_s20 }
 0x187   : >> { %v1487_v22 = vpop.permute.xlu0 %1486 }
 0x188   : >> { %v1489_v23 = vsel %vm404_vm13, %v1485_v14, %v1487_v22 }
 0x189   : >> { %v1511_v29 = vsel %vm434_vm14, %v1509_v28, %v1489_v23 }
 0x18a   : >> { %1516 = vrot.lane.b32.xlu0 %v1511_v29, %s4888_s20 }
 0x18f   : >> { %v734_v36 = vpop.permute.xlu0 %733 }
 0x190   : >> { %v737_v38 = vsel %vm374_vm7, %v5132_v59, %v734_v36  ;;  %v738_v39 = vsel %vm374_vm7, %v734_v36, %v5246_v30  ;;  %v1495_v30 = vpop.permute.xlu2 %1494 }
 0x191   : >> { %v783_v27 = vsel %vm425_vm8, %v5213_v54, %v737_v38  ;;  %v784_v44 = vsel %vm425_vm8, %v782_v37, %v738_v39 }
 0x192   : >> { %v786_v13 = vsel %vm428_vm11, %v784_v44, %v748_v26  ;;  %v785_v42 = vsel %vm428_vm11, %v783_v27, %v747_v24 }
 0x197   : >> { %v774_v59 = vpop.permute.xlu0 %773 }
 0x198   : >> { %1162 = vrot.lane.b32.xlu2 %v774_v59, %s4887_s19  ;;  %v1131_v9 = vsel %vm412_vm1, %v774_v59, %v5319_v46  ;;  %v764_v45 = vpop.permute.xlu2 %763 }
 0x199   : >> { %1164 = vrot.lane.b32.xlu0 %v1131_v9, %s4887_s19  ;;  %v767_v51 = vsel %vm404_vm13, %v5157_v16, %v764_v45  ;;  %v768_v52 = vsel %vm404_vm13, %v764_v45, %v766_v47 }
 0x19f   : >> { %v1493_v41 = vpop.permute.xlu0 %1492 }
 0x1a0   : >> { %v1497_v54 = vsel %vm412_vm1, %v1493_v41, %v1495_v30  ;;  %v1496_v43 = vsel %vm412_vm1, %v5319_v46, %v1493_v41 }
 0x1a1   : >> { %1520 = vrot.lane.b32.xlu0 %v1497_v54, %s4888_s20  ;;  %1518 = vrot.lane.b32.xlu2 %v1496_v43, %s4888_s20 }
 0x1a7   : >> { %v754_v48 = vpop.permute.xlu0 %753 }
 0x1a8   : >> { %v757_v50 = vsel %vm394_vm9, %v5139_v0, %v754_v48  ;;  %v758_v49 = vsel %vm394_vm9, %v754_v48, %v5264_v34 }
 0x1a9   : >> { %v788_v40 = vsel %vm431_vm12, %v786_v13, %v758_v49  ;;  %v787_v12 = vsel %vm431_vm12, %v785_v42, %v757_v50 }
 0x1aa   : >> { %v790_v55 = vsel %vm434_vm14, %v788_v40, %v768_v52  ;;  %v789_v56 = vsel %vm434_vm14, %v787_v12, %v767_v51 }
 0x1ab   : >> { %795 = vrot.lane.b32.xlu2 %v790_v55, %s4884_s15  ;;  %793 = vrot.lane.b32.xlu1 %v789_v56, %s4884_s15 }
 0x1af   : >> { %v772_v57 = vpop.permute.xlu0 %771 }
 0x1b0   : >> { %v775_v34 = vsel %vm412_vm1, %v5166_v21, %v772_v57  ;;  %v776_v47 = vsel %vm412_vm1, %v772_v57, %v774_v59 }
 0x1b1   : >> { %797 = vrot.lane.b32.xlu0 %v775_v34, %s4884_s15 }
 0x1b3   : >> { %799 = vrot.lane.b32.xlu1 %v776_v47, %s4884_s15 }
 0x1cb   : >> { %v1157_v61 = vpop.permute.xlu2 %1156 }
 0x1d1   : >> { %472 = vxpose.xlu2.b32.start [1/2] (short) (narrow) %v436_v53, 56 }
 0x1d9   : >> { %473 = vxpose.xlu2.b32.end [2/2] (short) (narrow) %v5166_v21, 56 }
 0x1dc   : >> { %v1515_v5 = vpop.permute.xlu2 %1514 }
 0x1e8   : >> { %440 = vxpose.xlu1.b32.start [1/2] (short) %v5163_v20, 128 }
 0x1ec   : >> { %v5360_v62 = vpop.permute.xlu0 %1158 }
 0x1ed   : >> { %v1168_v11 = vsel %vm336_vm15, %v1157_v61, %v5360_v62 }
 0x1f0   : >> { %441 = vxpose.xlu1.b32.end [2/2] (short) %v413_v60, 128 }
 0x1f2   : >> { %v1163_v16 = vpop.permute.xlu2 %1162 }
 0x1fb   : >> { %v1519_v31 = vpop.permute.xlu2 %1518 }
 0x1fc   : >> { %v5362_v6 = vpop.permute.xlu0 %1516 }
 0x1fd   : >> { %v1523_v0 = vsel %vm1522_vm2, %v1515_v5, %v5362_v6 }
 0x1fe   : >> { %1529 = vxpose.xlu0.b32.start [1/2] (short) %v1523_v0, 128 }
 0x205   : >> { %v5374_v14 = vpop.permute.xlu2 %795 }
 0x209   : >> { %1176 = vxpose.xlu2.b32.start [1/2] (short) %v1168_v11, 128  ;;  %v5439_v11 = vperm.slane %v6566_v3, 0 }
 0x20b   : >> { %v5367_v20 = vpop.permute.xlu0 %1164 }
 0x20c   : >> { %v1170_v21 = vsel %vm336_vm15, %v1163_v16, %v5367_v20 }
 0x211   : >> { %1177 = vxpose.xlu2.b32.end [2/2] (short) %v1170_v21, 128 }
 0x213   : >> { %v5371_v8 = vpop.permute.xlu0 %1520 }
 0x214   : >> { %v1524_v10 = vsel %vm1522_vm2, %v1519_v31, %v5371_v8 }
 0x215   : >> { %1530 = vxpose.xlu0.b32.end [2/2] (short) %v1524_v10, 128 }
 0x21d   : >> { %v794_v15 = vpop.permute.xlu1 %793 }
 0x21e   : >> { %v801_v17 = vsel %vm394_vm9, %v794_v15, %v5374_v14 }
 0x223   : >> { %v798_v19 = vpop.permute.xlu0 %797 }
 0x225   : >> { %v5380_v18 = vpop.permute.xlu1 %799 }
 0x226   : >> { %v802_v22 = vsel %vm394_vm9, %v798_v19, %v5380_v18 }
 0x268   : >> { %807 = vxpose.xlu1.b32.start [1/2] (short) %v801_v17, 128 }
 0x26a   : >> { %v5378_v32 = vpop.trf.xlu2 }
 0x270   : >> { %808 = vxpose.xlu1.b32.end [2/2] (short) %v802_v22, 128 }
 0x272   : >> { %v5384_v23 = vpop.trf.xlu2 }
 0x27a   : >> { %v5386_v28 = vpop.trf.xlu2 }
 0x282   : >> { %v5388_v29 = vpop.trf.xlu2 }
 0x28a   : >> { %v5390_v7 = vpop.trf.xlu2 }
 0x28c   : >> { %v456_v25 = vpop.trf.xlu1 }
 0x28d   : >> { %4133 = vmatmul.msk.f32.vlgmr.msra.gmra.mxu0 %vm504_vm3, %v456_v25 }
 0x292   : >> { %v5393_v33 = vpop.trf.xlu2 }
 0x294   : >> { %v457_v35 = vpop.trf.xlu1 }
 0x295   : >> { %4134 = vmatmul.msk.f32.gmra.mxu0 %vm504_vm3, %v457_v35 }
 0x29a   : >> { %v5396_v36 = vpop.trf.xlu2 }
 0x29c   : >> { %v458_v37 = vpop.trf.xlu1 }
 0x29d   : >> { %4135 = vmatmul.msk.f32.gmra.mxu0 %vm504_vm3, %v458_v37 }
 0x2a2   : >> { %v1192_v39 = vpop.trf.xlu2 }
 0x2a3   : >> { %4181 = vmatmul.msk.f32.vlgmr.msra.gmra.mxu2 %vm504_vm3, %v1192_v39 }
 0x2a4   : >> { %v459_v38 = vpop.trf.xlu1 }
 0x2a5   : >> { %4136 = vmatmul.msk.f32.gmra.mxu0 %vm504_vm3, %v459_v38 }
 0x2aa   : >> { %v1193_v26 = vpop.trf.xlu2 }
 0x2ab   : >> { %4182 = vmatmul.msk.f32.gmra.mxu2 %vm504_vm3, %v1193_v26 }
 0x2ac   : >> { %v460_v24 = vpop.trf.xlu1 }
 0x2ad   : >> { %4137 = vmatmul.msk.f32.gmra.mxu0 %vm504_vm3, %v460_v24 }
 0x2b1   : >> { %v1545_v30 = vpop.trf.xlu0 }
 0x2b2   : >> { %v1194_v44 = vpop.trf.xlu2  ;;  %4205 = vmatmul.msk.f32.vlgmr.msra.gmra.mxu3 %vm504_vm3, %v1545_v30 }
 0x2b3   : >> { %4183 = vmatmul.msk.f32.gmra.mxu2 %vm504_vm3, %v1194_v44 }
 0x2b4   : >> { %v461_v27 = vpop.trf.xlu1 }
 0x2b5   : >> { %4138 = vmatmul.msk.f32.gmra.mxu0 %vm504_vm3, %v461_v27 }
 0x2b9   : >> { %v1546_v43 = vpop.trf.xlu0 }
 0x2ba   : >> { %v1195_v42 = vpop.trf.xlu2  ;;  %4206 = vmatmul.msk.f32.gmra.mxu3 %vm504_vm3, %v1546_v43 }
 0x2bb   : >> { %4184 = vmatmul.msk.f32.gmra.mxu2 %vm504_vm3, %v1195_v42 }
 0x2bc   : >> { %v462_v13 = vpop.trf.xlu1 }
 0x2bd   : >> { %4139 = vmatmul.msk.f32.gmra.mxu0 %vm504_vm3, %v462_v13 }
 0x2c1   : >> { %v1547_v50 = vpop.trf.xlu0 }
 0x2c2   : >> { %v1196_v9 = vpop.trf.xlu2  ;;  %4207 = vmatmul.msk.f32.gmra.mxu3 %vm504_vm3, %v1547_v50 }
 0x2c3   : >> { %4185 = vmatmul.msk.f32.gmra.mxu2 %vm504_vm3, %v1196_v9 }
 0x2c4   : >> { %v463_v59 = vpop.trf.xlu1 }
 0x2c5   : >> { %4140 = vmatmul.msk.f32.gmra.mxu0 %vm504_vm3, %v463_v59 }
 0x2c9   : >> { %v1548_v52 = vpop.trf.xlu0 }
 0x2ca   : >> { %v1197_v54 = vpop.trf.xlu2  ;;  %4208 = vmatmul.msk.f32.gmra.mxu3 %vm504_vm3, %v1548_v52 }
 0x2cb   : >> { %4186 = vmatmul.msk.f32.gmra.mxu2 %vm504_vm3, %v1197_v54 }
 0x2cc   : >> { %v464_v41 = vpop.trf.xlu1 }
 0x2cd   : >> { %4141 = vmatmul.msk.f32.gmra.mxu0 %vm504_vm3, %v464_v41 }
 0x2d1   : >> { %v1549_v55 = vpop.trf.xlu0 }
 0x2d2   : >> { %v1198_v48 = vpop.trf.xlu2  ;;  %4209 = vmatmul.msk.f32.gmra.mxu3 %vm504_vm3, %v1549_v55 }
 0x2d3   : >> { %4187 = vmatmul.msk.f32.gmra.mxu2 %vm504_vm3, %v1198_v48 }
 0x2d4   : >> { %v465_v45 = vpop.trf.xlu1 }
 0x2d5   : >> { %4142 = vmatmul.msk.f32.gmra.mxu0 %vm504_vm3, %v465_v45 }
 0x2d9   : >> { %v1550_v34 = vpop.trf.xlu0 }
 0x2da   : >> { %v1199_v51 = vpop.trf.xlu2  ;;  %4210 = vmatmul.msk.f32.gmra.mxu3 %vm504_vm3, %v1550_v34 }
 0x2db   : >> { %4188 = vmatmul.msk.f32.gmra.mxu2 %vm504_vm3, %v1199_v51 }
 0x2dc   : >> { %v466_v49 = vpop.trf.xlu1 }
 0x2dd   : >> { %4143 = vmatmul.msk.f32.gmra.mxu0 %vm504_vm3, %v466_v49 }
 0x2e1   : >> { %v1551_v53 = vpop.trf.xlu0 }
 0x2e2   : >> { %v1200_v12 = vpop.trf.xlu2  ;;  %4211 = vmatmul.msk.f32.gmra.mxu3 %vm504_vm3, %v1551_v53 }
 0x2e3   : >> { %4189 = vmatmul.msk.f32.gmra.mxu2 %vm504_vm3, %v1200_v12 }
 0x2e4   : >> { %v467_v40 = vpop.trf.xlu1 }
 0x2e5   : >> { %4144 = vmatmul.msk.f32.gmra.mxu0 %vm504_vm3, %v467_v40 }
 0x2e9   : >> { %v1552_v61 = vpop.trf.xlu0 }
 0x2ea   : >> { %1166 = vrot.lane.b32.xlu2 %v5319_v46, %s4887_s19  ;;  %v1201_v57 = vpop.trf.xlu2  ;;  %4212 = vmatmul.msk.f32.gmra.mxu3 %vm504_vm3, %v1552_v61 }
 0x2eb   : >> { %4190 = vmatmul.msk.f32.gmra.mxu2 %vm504_vm3, %v1201_v57 }
 0x2ec   : >> { %v468_v56 = vpop.trf.xlu1 }
 0x2ed   : >> { %4145 = vmatmul.msk.f32.gmra.mxu0 %vm504_vm3, %v468_v56 }
 0x2f1   : >> { %v1553_v0 = vpop.trf.xlu0 }
 0x2f2   : >> { %v1202_v58 = vpop.trf.xlu2  ;;  %4213 = vmatmul.msk.f32.gmra.mxu3 %vm504_vm3, %v1553_v0 }
 0x2f3   : >> { %1160 = vrot.lane.b32.xlu0 %v5283_v63, %s4887_s19  ;;  %4191 = vmatmul.msk.f32.gmra.mxu2 %vm504_vm3, %v1202_v58 }
 0x2f4   : >> { %v469_v47 = vpop.trf.xlu1 }
 0x2f5   : >> { %4146 = vmatmul.msk.f32.gmra.mxu0 %vm504_vm3, %v469_v47 }
 0x2f9   : >> { %v1554_v15 = vpop.trf.xlu0 }
 0x2fa   : >> { %v1203_v60 = vpop.trf.xlu2  ;;  %4214 = vmatmul.msk.f32.gmra.mxu3 %vm504_vm3, %v1554_v15 }
 0x2fb   : >> { %4192 = vmatmul.msk.f32.gmra.mxu2 %vm504_vm3, %v1203_v60 }
 0x2fc   : >> { %v470_v46 = vpop.trf.xlu1 }
 0x2fd   : >> { %4147 = vmatmul.msk.f32.gmra.mxu0 %vm504_vm3, %v470_v46 }
 0x301   : >> { %v1555_v35 = vpop.trf.xlu0 }
 0x302   : >> { %v1204_v63 = vpop.trf.xlu2  ;;  %4215 = vmatmul.msk.f32.gmra.mxu3 %vm504_vm3, %v1555_v35 }
 0x303   : >> { %4193 = vmatmul.msk.f32.gmra.mxu2 %vm504_vm3, %v1204_v63 }
 0x304   : >> { %v471_v5 = vpop.trf.xlu1 }
 0x305   : >> { %4148 = vmatmul.msk.f32.gmra.mxu0 %vm504_vm3, %v471_v5 }
 0x309   : >> { %v1556_v24 = vpop.trf.xlu0 }
 0x30a   : >> { %v594_v16 = vpop.f32.mrf.mxu0  ;;  %v1205_v31 = vpop.trf.xlu2  ;;  %4216 = vmatmul.msk.f32.gmra.mxu3 %vm504_vm3, %v1556_v24 }
 0x30b   : >> { %v595_v21 = vadd.f32 %v594_v16, %v5439_v11  ;;  %4194 = vmatmul.msk.f32.gmra.mxu2 %vm504_vm3, %v1205_v31 }
 0x30d   : >> { %v663_v10 = vmax.f32 %v595_v21, 0.0  ;;  %4149 = vmatmul.msk.f32.gmra.mxu0 %vm504_vm3, %v5378_v32 }
 0x30f   : >> { %686 = vst.msk [vmem:[#allocation2] sm:$0xff] %vm291_vm0, %v663_v10 }
 0x311   : >> { %v1557_v44 = vpop.trf.xlu0 }
 0x312   : >> { %v597_v17 = vpop.f32.mrf.mxu0  ;;  %v1206_v22 = vpop.trf.xlu2  ;;  %4217 = vmatmul.msk.f32.gmra.mxu3 %vm504_vm3, %v1557_v44 }
 0x313   : >> { %v598_v19 = vadd.f32 %v597_v17, %v5439_v11  ;;  %4195 = vmatmul.msk.f32.gmra.mxu2 %vm504_vm3, %v1206_v22 }
 0x315   : >> { %v664_v25 = vmax.f32 %v598_v19, 0.0  ;;  %4150 = vmatmul.msk.f32.gmra.mxu0 %vm504_vm3, %v5384_v23 }
 0x317   : >> { %687 = vst.msk [vmem:[#allocation2 + $0x8] sm:$0xff] %vm291_vm0, %v664_v25 }
 0x319   : >> { %v1558_v59 = vpop.trf.xlu0 }
 0x31a   : >> { %v600_v32 = vpop.f32.mrf.mxu0  ;;  %v1207_v38 = vpop.trf.xlu2  ;;  %4218 = vmatmul.msk.f32.gmra.mxu3 %vm504_vm3, %v1558_v59 }
 0x31b   : >> { %v601_v37 = vadd.f32 %v600_v32, %v5439_v11  ;;  %4196 = vmatmul.msk.f32.gmra.mxu2 %vm504_vm3, %v1207_v38 }
 0x31d   : >> { %v665_v39 = vmax.f32 %v601_v37, 0.0  ;;  %4151 = vmatmul.msk.f32.gmra.mxu0 %vm504_vm3, %v5386_v28 }
 0x31f   : >> { %688 = vst.msk [vmem:[#allocation2 + $0x10] sm:$0xff] %vm291_vm0, %v665_v39 }
 0x321   : >> { %v1559_v41 = vpop.trf.xlu0 }
 0x322   : >> { %v603_v23 = vpop.f32.mrf.mxu0  ;;  %4219 = vmatmul.msk.f32.gmra.mxu3 %vm504_vm3, %v1559_v41 }
 0x323   : >> { %v604_v26 = vadd.f32 %v603_v23, %v5439_v11 }
 0x325   : >> { %v666_v27 = vmax.f32 %v604_v26, 0.0  ;;  %4152 = vmatmul.msk.f32.gmra.mxu0 %vm504_vm3, %v5388_v29 }
 0x327   : >> { %689 = vst.msk [vmem:[#allocation2 + $0x18] sm:$0xff] %vm291_vm0, %v666_v27 }
 0x329   : >> { %v1560_v45 = vpop.trf.xlu0 }
 0x32a   : >> { %v606_v28 = vpop.f32.mrf.mxu0  ;;  %4220 = vmatmul.msk.f32.gmra.mxu3 %vm504_vm3, %v1560_v45 }
 0x32b   : >> { %v607_v13 = vadd.f32 %v606_v28, %v5439_v11 }
 0x32d   : >> { %v667_v42 = vmax.f32 %v607_v13, 0.0  ;;  %4153 = vmatmul.msk.f32.gmra.mxu0 %vm504_vm3, %v5390_v7 }
 0x32f   : >> { %690 = vst.msk [vmem:[#allocation2 + $0x20] sm:$0xff] %vm291_vm0, %v667_v42 }
 0x332   : >> { %v609_v9 = vpop.f32.mrf.mxu0 }
 0x333   : >> { %v610_v29 = vadd.f32 %v609_v9, %v5439_v11 }
 0x335   : >> { %v668_v30 = vmax.f32 %v610_v29, 0.0  ;;  %4154 = vmatmul.msk.f32.gmra.mxu0 %vm504_vm3, %v5393_v33  ;;  %v1679_v49 = vpop.f32.mrf.mxu3  ;;  %v823_v29 = vpop.trf.xlu1 }
 0x336   : >> { %v1680_v52 = vadd.f32 %v1679_v49, %v5439_v11  ;;  %4157 = vmatmul.msk.f32.vlgmr.msra.gmra.mxu1 %vm504_vm3, %v823_v29 }
 0x337   : >> { %691 = vst.msk [vmem:[#allocation2 + $0x28] sm:$0xff] %vm291_vm0, %v668_v30 }
 0x338   : >> { %v1748_v12 = vmax.f32 %v1680_v52, 0.0 }
 0x33a   : >> { %v612_v54 = vpop.f32.mrf.mxu0  ;;  %1771 = vst.msk [vmem:[#allocation2 + $0x228] sm:$0xff] %vm291_vm0, %v1748_v12 }
 0x33b   : >> { %v613_v7 = vadd.f32 %v612_v54, %v5439_v11 }
 0x33d   : >> { %v669_v43 = vmax.f32 %v613_v7, 0.0  ;;  %4155 = vmatmul.msk.f32.gmra.mxu0 %vm504_vm3, %v5396_v36  ;;  %v1326_v36 = vpop.f32.mrf.mxu2  ;;  %v1682_v57 = vpop.f32.mrf.mxu3 }
 0x33e   : >> { %v1327_v56 = vadd.f32 %v1326_v36, %v5439_v11  ;;  %v1683_v58 = vadd.f32 %v1682_v57, %v5439_v11  ;;  %v824_v49 = vpop.trf.xlu1 }
 0x33f   : >> { %692 = vst.msk [vmem:[#allocation2 + $0x30] sm:$0xff] %vm291_vm0, %v669_v43  ;;  %4158 = vmatmul.msk.f32.gmra.mxu1 %vm504_vm3, %v824_v49 }
 0x340   : >> { %v1395_v47 = vmax.f32 %v1327_v56, 0.0  ;;  %v1749_v46 = vmax.f32 %v1683_v58, 0.0 }
 0x342   : >> { %v615_v48 = vpop.f32.mrf.mxu0  ;;  %1418 = vst.msk [vmem:[#allocation2 + $0x170] sm:$0xff] %vm291_vm0, %v1395_v47 }
 0x343   : >> { %v616_v33 = vadd.f32 %v615_v48, %v5439_v11  ;;  %1772 = vst.msk [vmem:[#allocation2 + $0x230] sm:$0xff] %vm291_vm0, %v1749_v46 }
 0x344   : >> { %v1167_v59 = vpop.permute.xlu2 %1166 }
 0x345   : >> { %v670_v50 = vmax.f32 %v616_v33, 0.0  ;;  %v1329_v61 = vpop.f32.mrf.mxu2  ;;  %v1685_v63 = vpop.f32.mrf.mxu3  ;;  %v1171_v41 = vsel %vm336_vm15, %v5367_v20, %v1167_v59 }
 0x346   : >> { %v1330_v5 = vadd.f32 %v1329_v61, %v5439_v11  ;;  %v1686_v21 = vadd.f32 %v1685_v63, %v5439_v11 }
 0x347   : >> { %693 = vst.msk [vmem:[#allocation2 + $0x38] sm:$0xff] %vm291_vm0, %v670_v50 }
 0x348   : >> { %v1396_v16 = vmax.f32 %v1330_v5, 0.0  ;;  %v1750_v10 = vmax.f32 %v1686_v21, 0.0 }
 0x34a   : >> { %v618_v51 = vpop.f32.mrf.mxu0  ;;  %1419 = vst.msk [vmem:[#allocation2 + $0x178] sm:$0xff] %vm291_vm0, %v1396_v16 }
 0x34b   : >> { %v619_v40 = vadd.f32 %v618_v51, %v5439_v11  ;;  %1773 = vst.msk [vmem:[#allocation2 + $0x238] sm:$0xff] %vm291_vm0, %v1750_v10 }
 0x34d   : >> { %v671_v55 = vmax.f32 %v619_v40, 0.0  ;;  %v1332_v17 = vpop.f32.mrf.mxu2  ;;  %v1688_v22 = vpop.f32.mrf.mxu3 }
 0x34e   : >> { %v1333_v19 = vadd.f32 %v1332_v17, %v5439_v11  ;;  %v1689_v32 = vadd.f32 %v1688_v22, %v5439_v11 }
 0x34f   : >> { %694 = vst.msk [vmem:[#allocation2 + $0x40] sm:$0xff] %vm291_vm0, %v671_v55 }
 0x350   : >> { %v1397_v35 = vmax.f32 %v1333_v19, 0.0  ;;  %v1751_v38 = vmax.f32 %v1689_v32, 0.0 }
 0x352   : >> { %v621_v34 = vpop.f32.mrf.mxu0  ;;  %1420 = vst.msk [vmem:[#allocation2 + $0x180] sm:$0xff] %vm291_vm0, %v1397_v35 }
 0x353   : >> { %v622_v53 = vadd.f32 %v621_v34, %v5439_v11  ;;  %1774 = vst.msk [vmem:[#allocation2 + $0x240] sm:$0xff] %vm291_vm0, %v1751_v38  ;;  %v825_v34 = vpop.trf.xlu1 }
 0x354   : >> { %4159 = vmatmul.msk.f32.gmra.mxu1 %vm504_vm3, %v825_v34 }
 0x355   : >> { %v672_v60 = vmax.f32 %v622_v53, 0.0  ;;  %v1335_v26 = vpop.f32.mrf.mxu2  ;;  %v1691_v44 = vpop.f32.mrf.mxu3 }
 0x356   : >> { %v1336_v27 = vadd.f32 %v1335_v26, %v5439_v11  ;;  %v1692_v42 = vadd.f32 %v1691_v44, %v5439_v11 }
 0x357   : >> { %695 = vst.msk [vmem:[#allocation2 + $0x48] sm:$0xff] %vm291_vm0, %v672_v60 }
 0x358   : >> { %v1398_v13 = vmax.f32 %v1336_v27, 0.0 }
 0x35a   : >> { %v624_v0 = vpop.f32.mrf.mxu0  ;;  %1421 = vst.msk [vmem:[#allocation2 + $0x188] sm:$0xff] %vm291_vm0, %v1398_v13 }
 0x35b   : >> { %v625_v31 = vadd.f32 %v624_v0, %v5439_v11  ;;  %v826_v16 = vpop.trf.xlu1 }
 0x35c   : >> { %4160 = vmatmul.msk.f32.gmra.mxu1 %vm504_vm3, %v826_v16 }
 0x35d   : >> { %v673_v15 = vmax.f32 %v625_v31, 0.0  ;;  %v1338_v54 = vpop.f32.mrf.mxu2  ;;  %v1694_v43 = vpop.f32.mrf.mxu3 }
 0x35e   : >> { %v1339_v7 = vadd.f32 %v1338_v54, %v5439_v11  ;;  %v1695_v33 = vadd.f32 %v1694_v43, %v5439_v11 }
 0x35f   : >> { %696 = vst.msk [vmem:[#allocation2 + $0x50] sm:$0xff] %vm291_vm0, %v673_v15 }
 0x360   : >> { %v1399_v48 = vmax.f32 %v1339_v7, 0.0  ;;  %v1753_v51 = vmax.f32 %v1695_v33, 0.0 }
 0x362   : >> { %v627_v25 = vpop.f32.mrf.mxu0  ;;  %1422 = vst.msk [vmem:[#allocation2 + $0x190] sm:$0xff] %vm291_vm0, %v1399_v48 }
 0x363   : >> { %v628_v37 = vadd.f32 %v627_v25, %v5439_v11  ;;  %1776 = vst.msk [vmem:[#allocation2 + $0x250] sm:$0xff] %vm291_vm0, %v1753_v51  ;;  %v827_v32 = vpop.trf.xlu1 }
 0x364   : >> { %4161 = vmatmul.msk.f32.gmra.mxu1 %vm504_vm3, %v827_v32 }
 0x365   : >> { %v674_v39 = vmax.f32 %v628_v37, 0.0  ;;  %v1161_v24 = vpop.permute.xlu0 %1160  ;;  %v1341_v52 = vpop.f32.mrf.mxu2 }
 0x366   : >> { %v1169_v23 = vsel %vm336_vm15, %v5360_v62, %v1161_v24  ;;  %v1752_v62 = vmax.f32 %v1692_v42, 0.0  ;;  %v1342_v40 = vadd.f32 %v1341_v52, %v5439_v11  ;;  %v1697_v12 = vpop.f32.mrf.mxu3 }
 0x367   : >> { %697 = vst.msk [vmem:[#allocation2 + $0x58] sm:$0xff] %vm291_vm0, %v674_v39  ;;  %1208 = vxpose.xlu1.b32.start [1/2] (short) (narrow) %v1169_v23, 56  ;;  %v1698_v56 = vadd.f32 %v1697_v12, %v5439_v11 }
 0x368   : >> { %1775 = vst.msk [vmem:[#allocation2 + $0x248] sm:$0xff] %vm291_vm0, %v1752_v62  ;;  %v1400_v36 = vmax.f32 %v1342_v40, 0.0 }
 0x369   : >> { %v1754_v47 = vmax.f32 %v1698_v56, 0.0 }
 0x36a   : >> { %v630_v28 = vpop.f32.mrf.mxu0  ;;  %1423 = vst.msk [vmem:[#allocation2 + $0x198] sm:$0xff] %vm291_vm0, %v1400_v36 }
 0x36b   : >> { %v631_v9 = vadd.f32 %v630_v28, %v5439_v11  ;;  %1777 = vst.msk [vmem:[#allocation2 + $0x258] sm:$0xff] %vm291_vm0, %v1754_v47  ;;  %v828_v13 = vpop.trf.xlu1 }
 0x36c   : >> { %4162 = vmatmul.msk.f32.gmra.mxu1 %vm504_vm3, %v828_v13 }
 0x36d   : >> { %v675_v30 = vmax.f32 %v631_v9, 0.0  ;;  %v1344_v53 = vpop.f32.mrf.mxu2 }
 0x36e   : >> { %v1345_v46 = vadd.f32 %v1344_v53, %v5439_v11  ;;  %v1700_v60 = vpop.f32.mrf.mxu3 }
 0x36f   : >> { %698 = vst.msk [vmem:[#allocation2 + $0x60] sm:$0xff] %vm291_vm0, %v675_v30  ;;  %1209 = vxpose.xlu1.b32.end [2/2] (short) (narrow) %v1171_v41, 56  ;;  %v1701_v63 = vadd.f32 %v1700_v60, %v5439_v11 }
 0x370   : >> { %v1401_v5 = vmax.f32 %v1345_v46, 0.0 }
 0x371   : >> { %v1755_v21 = vmax.f32 %v1701_v63, 0.0 }
 0x372   : >> { %v633_v45 = vpop.f32.mrf.mxu0  ;;  %1424 = vst.msk [vmem:[#allocation2 + $0x1a0] sm:$0xff] %vm291_vm0, %v1401_v5 }
 0x373   : >> { %v634_v50 = vadd.f32 %v633_v45, %v5439_v11  ;;  %1778 = vst.msk [vmem:[#allocation2 + $0x260] sm:$0xff] %vm291_vm0, %v1755_v21  ;;  %v829_v43 = vpop.trf.xlu1 }
 0x374   : >> { %4163 = vmatmul.msk.f32.gmra.mxu1 %vm504_vm3, %v829_v43 }
 0x375   : >> { %v676_v20 = vmax.f32 %v634_v50, 0.0  ;;  %v1347_v10 = vpop.f32.mrf.mxu2 }
 0x376   : >> { %v1348_v15 = vadd.f32 %v1347_v10, %v5439_v11  ;;  %v1703_v17 = vpop.f32.mrf.mxu3 }
 0x377   : >> { %699 = vst.msk [vmem:[#allocation2 + $0x68] sm:$0xff] %vm291_vm0, %v676_v20  ;;  %v1704_v25 = vadd.f32 %v1703_v17, %v5439_v11 }
 0x378   : >> { %v1402_v22 = vmax.f32 %v1348_v15, 0.0 }
 0x379   : >> { %v1756_v37 = vmax.f32 %v1704_v25, 0.0 }
 0x37a   : >> { %v636_v55 = vpop.f32.mrf.mxu0  ;;  %1425 = vst.msk [vmem:[#allocation2 + $0x1a8] sm:$0xff] %vm291_vm0, %v1402_v22 }
 0x37b   : >> { %v637_v57 = vadd.f32 %v636_v55, %v5439_v11  ;;  %1779 = vst.msk [vmem:[#allocation2 + $0x268] sm:$0xff] %vm291_vm0, %v1756_v37  ;;  %v830_v12 = vpop.trf.xlu1 }
 0x37c   : >> { %4164 = vmatmul.msk.f32.gmra.mxu1 %vm504_vm3, %v830_v12 }
 0x37d   : >> { %v677_v58 = vmax.f32 %v637_v57, 0.0  ;;  %v1350_v39 = vpop.f32.mrf.mxu2 }
 0x37e   : >> { %v1351_v24 = vadd.f32 %v1350_v39, %v5439_v11  ;;  %v1706_v23 = vpop.f32.mrf.mxu3 }
 0x37f   : >> { %700 = vst.msk [vmem:[#allocation2 + $0x70] sm:$0xff] %vm291_vm0, %v677_v58  ;;  %v1707_v44 = vadd.f32 %v1706_v23, %v5439_v11 }
 0x380   : >> { %v1403_v27 = vmax.f32 %v1351_v24, 0.0 }
 0x381   : >> { %v1757_v42 = vmax.f32 %v1707_v44, 0.0 }
 0x382   : >> { %v639_v61 = vpop.f32.mrf.mxu0  ;;  %1426 = vst.msk [vmem:[#allocation2 + $0x1b0] sm:$0xff] %vm291_vm0, %v1403_v27 }
 0x383   : >> { %v640_v0 = vadd.f32 %v639_v61, %v5439_v11  ;;  %1780 = vst.msk [vmem:[#allocation2 + $0x270] sm:$0xff] %vm291_vm0, %v1757_v42  ;;  %v831_v46 = vpop.trf.xlu1 }
 0x384   : >> { %4165 = vmatmul.msk.f32.gmra.mxu1 %vm504_vm3, %v831_v46 }
 0x385   : >> { %v678_v31 = vmax.f32 %v640_v0, 0.0  ;;  %v1353_v9 = vpop.f32.mrf.mxu2 }
 0x386   : >> { %v1354_v29 = vadd.f32 %v1353_v9, %v5439_v11  ;;  %v1709_v62 = vpop.f32.mrf.mxu3 }
 0x387   : >> { %701 = vst.msk [vmem:[#allocation2 + $0x78] sm:$0xff] %vm291_vm0, %v678_v31  ;;  %v1710_v54 = vadd.f32 %v1709_v62, %v5439_v11 }
 0x388   : >> { %v1404_v41 = vmax.f32 %v1354_v29, 0.0 }
 0x389   : >> { %v1758_v45 = vmax.f32 %v1710_v54, 0.0 }
 0x38a   : >> { %v642_v19 = vpop.f32.mrf.mxu0  ;;  %1427 = vst.msk [vmem:[#allocation2 + $0x1b8] sm:$0xff] %vm291_vm0, %v1404_v41 }
 0x38b   : >> { %v643_v35 = vadd.f32 %v642_v19, %v5439_v11  ;;  %1781 = vst.msk [vmem:[#allocation2 + $0x278] sm:$0xff] %vm291_vm0, %v1758_v45  ;;  %v832_v10 = vpop.trf.xlu1 }
 0x38c   : >> { %4166 = vmatmul.msk.f32.gmra.mxu1 %vm504_vm3, %v832_v10 }
 0x38d   : >> { %v679_v38 = vmax.f32 %v643_v35, 0.0  ;;  %v1356_v33 = vpop.f32.mrf.mxu2 }
 0x38e   : >> { %v1357_v50 = vadd.f32 %v1356_v33, %v5439_v11  ;;  %v1712_v49 = vpop.f32.mrf.mxu3 }
 0x38f   : >> { %702 = vst.msk [vmem:[#allocation2 + $0x80] sm:$0xff] %vm291_vm0, %v679_v38  ;;  %v1713_v52 = vadd.f32 %v1712_v49, %v5439_v11 }
 0x390   : >> { %v1405_v20 = vmax.f32 %v1357_v50, 0.0 }
 0x391   : >> { %v1759_v55 = vmax.f32 %v1713_v52, 0.0 }
 0x392   : >> { %v645_v26 = vpop.f32.mrf.mxu0  ;;  %1428 = vst.msk [vmem:[#allocation2 + $0x1c0] sm:$0xff] %vm291_vm0, %v1405_v20 }
 0x393   : >> { %v646_v28 = vadd.f32 %v645_v26, %v5439_v11  ;;  %1782 = vst.msk [vmem:[#allocation2 + $0x280] sm:$0xff] %vm291_vm0, %v1759_v55  ;;  %v833_v39 = vpop.trf.xlu1 }
 0x394   : >> { %4167 = vmatmul.msk.f32.gmra.mxu1 %vm504_vm3, %v833_v39 }
 0x395   : >> { %v680_v59 = vmax.f32 %v646_v28, 0.0 }
 0x396   : >> { %v1715_v57 = vpop.f32.mrf.mxu3 }
 0x397   : >> { %703 = vst.msk [vmem:[#allocation2 + $0x88] sm:$0xff] %vm291_vm0, %v680_v59  ;;  %v1716_v58 = vadd.f32 %v1715_v57, %v5439_v11 }
 0x399   : >> { %v1760_v60 = vmax.f32 %v1716_v58, 0.0 }
 0x39a   : >> { %v648_v30 = vpop.f32.mrf.mxu0 }
 0x39b   : >> { %v649_v7 = vadd.f32 %v648_v30, %v5439_v11  ;;  %1783 = vst.msk [vmem:[#allocation2 + $0x288] sm:$0xff] %vm291_vm0, %v1760_v60  ;;  %v834_v42 = vpop.trf.xlu1 }
 0x39c   : >> { %4168 = vmatmul.msk.f32.gmra.mxu1 %vm504_vm3, %v834_v42 }
 0x39d   : >> { %v681_v48 = vmax.f32 %v649_v7, 0.0 }
 0x39e   : >> { %v1718_v63 = vpop.f32.mrf.mxu3 }
 0x39f   : >> { %704 = vst.msk [vmem:[#allocation2 + $0x90] sm:$0xff] %vm291_vm0, %v681_v48  ;;  %1561 = vxpose.xlu1.b32.start [1/2] (short) (narrow) %v5362_v6, 56  ;;  %v1359_v6 = vpop.f32.mrf.mxu2  ;;  %v1719_v21 = vadd.f32 %v1718_v63, %v5439_v11 }
 0x3a0   : >> { %v1360_v56 = vadd.f32 %v1359_v6, %v5439_v11 }
 0x3a1   : >> { %v1761_v15 = vmax.f32 %v1719_v21, 0.0 }
 0x3a2   : >> { %v651_v51 = vpop.f32.mrf.mxu0  ;;  %v1406_v47 = vmax.f32 %v1360_v56, 0.0 }
 0x3a3   : >> { %v652_v40 = vadd.f32 %v651_v51, %v5439_v11  ;;  %1784 = vst.msk [vmem:[#allocation2 + $0x290] sm:$0xff] %vm291_vm0, %v1761_v15  ;;  %v835_v30 = vpop.trf.xlu1 }
 0x3a4   : >> { %1429 = vst.msk [vmem:[#allocation2 + $0x1c8] sm:$0xff] %vm291_vm0, %v1406_v47  ;;  %4169 = vmatmul.msk.f32.gmra.mxu1 %vm504_vm3, %v835_v30 }
 0x3a5   : >> { %v682_v36 = vmax.f32 %v652_v40, 0.0 }
 0x3a6   : >> { %v1721_v25 = vpop.f32.mrf.mxu3 }
 0x3a7   : >> { %705 = vst.msk [vmem:[#allocation2 + $0x98] sm:$0xff] %vm291_vm0, %v682_v36  ;;  %1562 = vxpose.xlu1.b32.end [2/2] (short) (narrow) %v5371_v8, 56  ;;  %v1362_v8 = vpop.f32.mrf.mxu2  ;;  %v1722_v37 = vadd.f32 %v1721_v25, %v5439_v11 }
 0x3a8   : >> { %v1363_v5 = vadd.f32 %v1362_v8, %v5439_v11 }
 0x3a9   : >> { %v1762_v24 = vmax.f32 %v1722_v37, 0.0 }
 0x3aa   : >> { %v654_v34 = vpop.f32.mrf.mxu0  ;;  %v1407_v16 = vmax.f32 %v1363_v5, 0.0 }
 0x3ab   : >> { %v655_v53 = vadd.f32 %v654_v34, %v5439_v11  ;;  %1785 = vst.msk [vmem:[#allocation2 + $0x298] sm:$0xff] %vm291_vm0, %v1762_v24  ;;  %v836_v41 = vpop.trf.xlu1 }
 0x3ac   : >> { %1430 = vst.msk [vmem:[#allocation2 + $0x1d0] sm:$0xff] %vm291_vm0, %v1407_v16  ;;  %4170 = vmatmul.msk.f32.gmra.mxu1 %vm504_vm3, %v836_v41 }
 0x3ad   : >> { %v683_v61 = vmax.f32 %v655_v53, 0.0 }
 0x3ae   : >> { %v1724_v44 = vpop.f32.mrf.mxu3 }
 0x3af   : >> { %706 = vst.msk [vmem:[#allocation2 + $0xa0] sm:$0xff] %vm291_vm0, %v683_v61  ;;  %v1365_v19 = vpop.f32.mrf.mxu2  ;;  %v1725_v13 = vadd.f32 %v1724_v44, %v5439_v11 }
 0x3b0   : >> { %v1366_v22 = vadd.f32 %v1365_v19, %v5439_v11 }
 0x3b1   : >> { %v1763_v59 = vmax.f32 %v1725_v13, 0.0 }
 0x3b2   : >> { %v657_v0 = vpop.f32.mrf.mxu0  ;;  %v1408_v32 = vmax.f32 %v1366_v22, 0.0 }
 0x3b3   : >> { %v658_v31 = vadd.f32 %v657_v0, %v5439_v11  ;;  %1786 = vst.msk [vmem:[#allocation2 + $0x2a0] sm:$0xff] %vm291_vm0, %v1763_v59  ;;  %v837_v54 = vpop.trf.xlu1  ;;  %v957_v43 = vpop.f32.mrf.mxu1 }
 0x3b4   : >> { %1431 = vst.msk [vmem:[#allocation2 + $0x1d8] sm:$0xff] %vm291_vm0, %v1408_v32  ;;  %4171 = vmatmul.msk.f32.gmra.mxu1 %vm504_vm3, %v837_v54  ;;  %v958_v45 = vadd.f32 %v957_v43, %v5439_v11 }
 0x3b5   : >> { %v684_v17 = vmax.f32 %v658_v31, 0.0 }
 0x3b6   : >> { %v1026_v48 = vmax.f32 %v958_v45, 0.0 }
 0x3b7   : >> { %707 = vst.msk [vmem:[#allocation2 + $0xa8] sm:$0xff] %vm291_vm0, %v684_v17  ;;  %v1368_v26 = vpop.f32.mrf.mxu2 }
 0x3b8   : >> { %v1369_v27 = vadd.f32 %v1368_v26, %v5439_v11  ;;  %1049 = vst.msk [vmem:[#allocation2 + $0xb8] sm:$0xff] %vm291_vm0, %v1026_v48 }
 0x3ba   : >> { %v660_v35 = vpop.f32.mrf.mxu0  ;;  %v1409_v28 = vmax.f32 %v1369_v27, 0.0 }
 0x3bb   : >> { %v661_v38 = vadd.f32 %v660_v35, %v5439_v11  ;;  %v838_v7 = vpop.trf.xlu1 }
 0x3bc   : >> { %1432 = vst.msk [vmem:[#allocation2 + $0x1e0] sm:$0xff] %vm291_vm0, %v1409_v28  ;;  %4172 = vmatmul.msk.f32.gmra.mxu1 %vm504_vm3, %v838_v7  ;;  %v960_v33 = vpop.f32.mrf.mxu1 }
 0x3bd   : >> { %v685_v23 = vmax.f32 %v661_v38, 0.0  ;;  %v961_v50 = vadd.f32 %v960_v33, %v5439_v11 }
 0x3bf   : >> { %708 = vst.msk [vmem:[#allocation2 + $0xb0] sm:$0xff] %vm291_vm0, %v685_v23  ;;  %v1371_v9 = vpop.f32.mrf.mxu2  ;;  %v1027_v49 = vmax.f32 %v961_v50, 0.0 }
 0x3c0   : >> { %v1372_v29 = vadd.f32 %v1371_v9, %v5439_v11 }
 0x3c1   : >> { %1050 = vst.msk [vmem:[#allocation2 + $0xc0] sm:$0xff] %vm291_vm0, %v1027_v49 }
 0x3c2   : >> { %v1410_v62 = vmax.f32 %v1372_v29, 0.0 }
 0x3c4   : >> { %1433 = vst.msk [vmem:[#allocation2 + $0x1e8] sm:$0xff] %vm291_vm0, %v1410_v62 }
 0x3d7   : >> { %839 = vxpose.xlu1.b32.start [1/2] (short) (narrow) %v5374_v14, 56  ;;  %v963_v14 = vpop.f32.mrf.mxu1 }
 0x3d8   : >> { %v964_v51 = vadd.f32 %v963_v14, %v5439_v11 }
 0x3da   : >> { %v1028_v20 = vmax.f32 %v964_v51, 0.0 }
 0x3dc   : >> { %1051 = vst.msk [vmem:[#allocation2 + $0xc8] sm:$0xff] %vm291_vm0, %v1028_v20 }
 0x3df   : >> { %840 = vxpose.xlu1.b32.end [2/2] (short) (narrow) %v5380_v18, 56  ;;  %v966_v18 = vpop.f32.mrf.mxu1 }
 0x3e0   : >> { %v967_v52 = vadd.f32 %v966_v18, %v5439_v11 }
 0x3e2   : >> { %v1029_v40 = vmax.f32 %v967_v52, 0.0 }
 0x3e4   : >> { %1052 = vst.msk [vmem:[#allocation2 + $0xd0] sm:$0xff] %vm291_vm0, %v1029_v40 }
 0x3e7   : >> { %v969_v12 = vpop.f32.mrf.mxu1 }
 0x3e8   : >> { %v970_v55 = vadd.f32 %v969_v12, %v5439_v11 }
 0x3ea   : >> { %v1030_v6 = vmax.f32 %v970_v55, 0.0 }
 0x3ec   : >> { %1053 = vst.msk [vmem:[#allocation2 + $0xd8] sm:$0xff] %vm291_vm0, %v1030_v6 }
 0x3ef   : >> { %v972_v56 = vpop.f32.mrf.mxu1 }
 0x3f0   : >> { %v973_v57 = vadd.f32 %v972_v56, %v5439_v11 }
 0x3f2   : >> { %v1031_v47 = vmax.f32 %v973_v57, 0.0 }
 0x3f4   : >> { %1054 = vst.msk [vmem:[#allocation2 + $0xe0] sm:$0xff] %vm291_vm0, %v1031_v47 }
 0x3f7   : >> { %v975_v58 = vpop.f32.mrf.mxu1 }
 0x3f8   : >> { %v976_v53 = vadd.f32 %v975_v58, %v5439_v11 }
 0x3fa   : >> { %v1032_v60 = vmax.f32 %v976_v53, 0.0 }
 0x3fc   : >> { %1055 = vst.msk [vmem:[#allocation2 + $0xe8] sm:$0xff] %vm291_vm0, %v1032_v60 }
 0x3ff   : >> { %v978_v61 = vpop.f32.mrf.mxu1 }
 0x400   : >> { %v979_v8 = vadd.f32 %v978_v61, %v5439_v11 }
 0x402   : >> { %v1033_v63 = vmax.f32 %v979_v8, 0.0 }
 0x404   : >> { %1056 = vst.msk [vmem:[#allocation2 + $0xf0] sm:$0xff] %vm291_vm0, %v1033_v63 }
 0x407   : >> { %v981_v0 = vpop.f32.mrf.mxu1 }
 0x408   : >> { %v982_v16 = vadd.f32 %v981_v0, %v5439_v11 }
 0x40a   : >> { %v1034_v31 = vmax.f32 %v982_v16, 0.0 }
 0x40b   : >> { %v1224_v36 = vpop.trf.xlu1 }
 0x40c   : >> { %4197 = vmatmul.msk.f32.gmra.mxu2 %vm504_vm3, %v1224_v36  ;;  %1057 = vst.msk [vmem:[#allocation2 + $0xf8] sm:$0xff] %vm291_vm0, %v1034_v31 }
 0x40f   : >> { %v984_v10 = vpop.f32.mrf.mxu1 }
 0x410   : >> { %v985_v15 = vadd.f32 %v984_v10, %v5439_v11 }
 0x412   : >> { %v1035_v19 = vmax.f32 %v985_v15, 0.0 }
 0x413   : >> { %v1225_v34 = vpop.trf.xlu1 }
 0x414   : >> { %4198 = vmatmul.msk.f32.gmra.mxu2 %vm504_vm3, %v1225_v34  ;;  %1058 = vst.msk [vmem:[#allocation2 + $0x100] sm:$0xff] %vm291_vm0, %v1035_v19 }
 0x417   : >> { %v987_v22 = vpop.f32.mrf.mxu1 }
 0x418   : >> { %v988_v25 = vadd.f32 %v987_v22, %v5439_v11 }
 0x41a   : >> { %v1036_v32 = vmax.f32 %v988_v25, 0.0 }
 0x41b   : >> { %v1226_v46 = vpop.trf.xlu1 }
 0x41c   : >> { %4199 = vmatmul.msk.f32.gmra.mxu2 %vm504_vm3, %v1226_v46  ;;  %1059 = vst.msk [vmem:[#allocation2 + $0x108] sm:$0xff] %vm291_vm0, %v1036_v32 }
 0x41f   : >> { %v990_v37 = vpop.f32.mrf.mxu1 }
 0x420   : >> { %v991_v38 = vadd.f32 %v990_v37, %v5439_v11 }
 0x422   : >> { %v1037_v24 = vmax.f32 %v991_v38, 0.0 }
 0x423   : >> { %v1227_v5 = vpop.trf.xlu1 }
 0x424   : >> { %4200 = vmatmul.msk.f32.gmra.mxu2 %vm504_vm3, %v1227_v5  ;;  %1060 = vst.msk [vmem:[#allocation2 + $0x110] sm:$0xff] %vm291_vm0, %v1037_v24 }
 0x427   : >> { %v993_v23 = vpop.f32.mrf.mxu1 }
 0x428   : >> { %v994_v26 = vadd.f32 %v993_v23, %v5439_v11 }
 0x42a   : >> { %v1038_v44 = vmax.f32 %v994_v26, 0.0 }
 0x42b   : >> { %v1228_v21 = vpop.trf.xlu1 }
 0x42c   : >> { %4201 = vmatmul.msk.f32.gmra.mxu2 %vm504_vm3, %v1228_v21  ;;  %1061 = vst.msk [vmem:[#allocation2 + $0x118] sm:$0xff] %vm291_vm0, %v1038_v44 }
 0x42f   : >> { %v996_v28 = vpop.f32.mrf.mxu1 }
 0x430   : >> { %v997_v13 = vadd.f32 %v996_v28, %v5439_v11 }
 0x432   : >> { %v1039_v59 = vmax.f32 %v997_v13, 0.0 }
 0x433   : >> { %v1229_v17 = vpop.trf.xlu1 }
 0x434   : >> { %4202 = vmatmul.msk.f32.gmra.mxu2 %vm504_vm3, %v1229_v17  ;;  %1062 = vst.msk [vmem:[#allocation2 + $0x120] sm:$0xff] %vm291_vm0, %v1039_v59 }
 0x437   : >> { %v999_v9 = vpop.f32.mrf.mxu1 }
 0x438   : >> { %v1000_v29 = vadd.f32 %v999_v9, %v5439_v11 }
 0x43a   : >> { %v1040_v30 = vmax.f32 %v1000_v29, 0.0 }
 0x43b   : >> { %v1230_v35 = vpop.trf.xlu1 }
 0x43c   : >> { %4203 = vmatmul.msk.f32.gmra.mxu2 %vm504_vm3, %v1230_v35  ;;  %1063 = vst.msk [vmem:[#allocation2 + $0x128] sm:$0xff] %vm291_vm0, %v1040_v30 }
 0x43f   : >> { %v1002_v41 = vpop.f32.mrf.mxu1 }
 0x440   : >> { %v1003_v54 = vadd.f32 %v1002_v41, %v5439_v11 }
 0x442   : >> { %v1041_v43 = vmax.f32 %v1003_v54, 0.0 }
 0x443   : >> { %v1577_v39 = vpop.trf.xlu1 }
 0x444   : >> { %4221 = vmatmul.msk.f32.gmra.mxu3 %vm504_vm3, %v1577_v39  ;;  %1064 = vst.msk [vmem:[#allocation2 + $0x130] sm:$0xff] %vm291_vm0, %v1041_v43 }
 0x44b   : >> { %v1578_v27 = vpop.trf.xlu1 }
 0x44c   : >> { %4222 = vmatmul.msk.f32.gmra.mxu3 %vm504_vm3, %v1578_v27 }
 0x453   : >> { %v1579_v42 = vpop.trf.xlu1 }
 0x454   : >> { %4223 = vmatmul.msk.f32.gmra.mxu3 %vm504_vm3, %v1579_v42 }
 0x45b   : >> { %v1580_v62 = vpop.trf.xlu1 }
 0x45c   : >> { %4224 = vmatmul.msk.f32.gmra.mxu3 %vm504_vm3, %v1580_v62 }
 0x463   : >> { %v1581_v7 = vpop.trf.xlu1 }
 0x464   : >> { %4225 = vmatmul.msk.f32.gmra.mxu3 %vm504_vm3, %v1581_v7 }
 0x46b   : >> { %v1582_v45 = vpop.trf.xlu1 }
 0x46c   : >> { %4226 = vmatmul.msk.f32.gmra.mxu3 %vm504_vm3, %v1582_v45 }
 0x473   : >> { %v1583_v48 = vpop.trf.xlu1 }
 0x474   : >> { %4227 = vmatmul.msk.f32.gmra.mxu3 %vm504_vm3, %v1583_v48 }
 0x47b   : >> { %v855_v33 = vpop.trf.xlu1 }
 0x47c   : >> { %4173 = vmatmul.msk.f32.gmra.mxu1 %vm504_vm3, %v855_v33 }
 0x483   : >> { %v856_v50 = vpop.trf.xlu1 }
 0x484   : >> { %4174 = vmatmul.msk.f32.gmra.mxu1 %vm504_vm3, %v856_v50 }
 0x48b   : >> { %v857_v49 = vpop.trf.xlu1 }
 0x48c   : >> { %4175 = vmatmul.msk.f32.gmra.mxu1 %vm504_vm3, %v857_v49 }
 0x48f   : >> { %v1374_v14 = vpop.f32.mrf.mxu2 }
 0x490   : >> { %v1375_v51 = vadd.f32 %v1374_v14, %v5439_v11 }
 0x492   : >> { %v1411_v20 = vmax.f32 %v1375_v51, 0.0 }
 0x493   : >> { %v858_v18 = vpop.trf.xlu1 }
 0x494   : >> { %1434 = vst.msk [vmem:[#allocation2 + $0x1f0] sm:$0xff] %vm291_vm0, %v1411_v20  ;;  %4176 = vmatmul.msk.f32.gmra.mxu1 %vm504_vm3, %v858_v18 }
 0x497   : >> { %v1377_v52 = vpop.f32.mrf.mxu2 }
 0x498   : >> { %v1378_v40 = vadd.f32 %v1377_v52, %v5439_v11 }
 0x49a   : >> { %v1412_v12 = vmax.f32 %v1378_v40, 0.0 }
 0x49b   : >> { %v859_v55 = vpop.trf.xlu1 }
 0x49c   : >> { %1435 = vst.msk [vmem:[#allocation2 + $0x1f8] sm:$0xff] %vm291_vm0, %v1412_v12  ;;  %4177 = vmatmul.msk.f32.gmra.mxu1 %vm504_vm3, %v859_v55 }
 0x49f   : >> { %v1380_v36 = vpop.f32.mrf.mxu2 }
 0x4a0   : >> { %v1381_v6 = vadd.f32 %v1380_v36, %v5439_v11 }
 0x4a2   : >> { %v1413_v56 = vmax.f32 %v1381_v6, 0.0 }
 0x4a3   : >> { %v860_v57 = vpop.trf.xlu1 }
 0x4a4   : >> { %1436 = vst.msk [vmem:[#allocation2 + $0x200] sm:$0xff] %vm291_vm0, %v1413_v56  ;;  %4178 = vmatmul.msk.f32.gmra.mxu1 %vm504_vm3, %v860_v57 }
 0x4a7   : >> { %v1383_v34 = vpop.f32.mrf.mxu2 }
 0x4a8   : >> { %v1384_v47 = vadd.f32 %v1383_v34, %v5439_v11 }
 0x4aa   : >> { %v1414_v58 = vmax.f32 %v1384_v47, 0.0 }
 0x4ab   : >> { %v861_v53 = vpop.trf.xlu1 }
 0x4ac   : >> { %1437 = vst.msk [vmem:[#allocation2 + $0x208] sm:$0xff] %vm291_vm0, %v1414_v58  ;;  %4179 = vmatmul.msk.f32.gmra.mxu1 %vm504_vm3, %v861_v53 }
 0x4af   : >> { %v1386_v46 = vpop.f32.mrf.mxu2 }
 0x4b0   : >> { %v1387_v60 = vadd.f32 %v1386_v46, %v5439_v11 }
 0x4b2   : >> { %v1415_v61 = vmax.f32 %v1387_v60, 0.0 }
 0x4b4   : >> { %1438 = vst.msk [vmem:[#allocation2 + $0x210] sm:$0xff] %vm291_vm0, %v1415_v61 }
 0x4b7   : >> { %v1389_v8 = vpop.f32.mrf.mxu2 }
 0x4b8   : >> { %v1390_v5 = vadd.f32 %v1389_v8, %v5439_v11 }
 0x4ba   : >> { %v1416_v63 = vmax.f32 %v1390_v5, 0.0 }
 0x4bc   : >> { %1439 = vst.msk [vmem:[#allocation2 + $0x218] sm:$0xff] %vm291_vm0, %v1416_v63 }
 0x4bf   : >> { %v1392_v0 = vpop.f32.mrf.mxu2 }
 0x4c0   : >> { %v1393_v16 = vadd.f32 %v1392_v0, %v5439_v11 }
 0x4c2   : >> { %v1417_v21 = vmax.f32 %v1393_v16, 0.0 }
 0x4c4   : >> { %1440 = vst.msk [vmem:[#allocation2 + $0x220] sm:$0xff] %vm291_vm0, %v1417_v21 }
 0x4c7   : >> { %v1727_v31 = vpop.f32.mrf.mxu3 }
 0x4c8   : >> { %v1728_v10 = vadd.f32 %v1727_v31, %v5439_v11 }
 0x4ca   : >> { %v1764_v15 = vmax.f32 %v1728_v10, 0.0 }
 0x4cc   : >> { %1787 = vst.msk [vmem:[#allocation2 + $0x2a8] sm:$0xff] %vm291_vm0, %v1764_v15 }
 0x4cf   : >> { %v1730_v17 = vpop.f32.mrf.mxu3 }
 0x4d0   : >> { %v1731_v19 = vadd.f32 %v1730_v17, %v5439_v11 }
 0x4d2   : >> { %v1765_v22 = vmax.f32 %v1731_v19, 0.0 }
 0x4d4   : >> { %1788 = vst.msk [vmem:[#allocation2 + $0x2b0] sm:$0xff] %vm291_vm0, %v1765_v22 }
 0x4d7   : >> { %v1733_v25 = vpop.f32.mrf.mxu3 }
 0x4d8   : >> { %v1734_v35 = vadd.f32 %v1733_v25, %v5439_v11 }
 0x4da   : >> { %v1766_v32 = vmax.f32 %v1734_v35, 0.0 }
 0x4dc   : >> { %1789 = vst.msk [vmem:[#allocation2 + $0x2b8] sm:$0xff] %vm291_vm0, %v1766_v32 }
 0x4df   : >> { %v1736_v37 = vpop.f32.mrf.mxu3 }
 0x4e0   : >> { %v1737_v38 = vadd.f32 %v1736_v37, %v5439_v11 }
 0x4e2   : >> { %v1767_v39 = vmax.f32 %v1737_v38, 0.0 }
 0x4e4   : >> { %1790 = vst.msk [vmem:[#allocation2 + $0x2c0] sm:$0xff] %vm291_vm0, %v1767_v39 }
 0x4e7   : >> { %v1739_v24 = vpop.f32.mrf.mxu3 }
 0x4e8   : >> { %v1740_v23 = vadd.f32 %v1739_v24, %v5439_v11 }
 0x4ea   : >> { %v1768_v26 = vmax.f32 %v1740_v23, 0.0 }
 0x4ec   : >> { %1791 = vst.msk [vmem:[#allocation2 + $0x2c8] sm:$0xff] %vm291_vm0, %v1768_v26 }
 0x4ef   : >> { %v1742_v27 = vpop.f32.mrf.mxu3 }
 0x4f0   : >> { %v1743_v44 = vadd.f32 %v1742_v27, %v5439_v11 }
 0x4f2   : >> { %v1769_v28 = vmax.f32 %v1743_v44, 0.0 }
 0x4f4   : >> { %1792 = vst.msk [vmem:[#allocation2 + $0x2d0] sm:$0xff] %vm291_vm0, %v1769_v28 }
 0x4f7   : >> { %v1745_v13 = vpop.f32.mrf.mxu3 }
 0x4f8   : >> { %v1746_v42 = vadd.f32 %v1745_v13, %v5439_v11 }
 0x4f9   : >> { %v1005_v59 = vpop.f32.mrf.mxu1 }
 0x4fa   : >> { %v1770_v9 = vmax.f32 %v1746_v42, 0.0  ;;  %v1006_v29 = vadd.f32 %v1005_v59, %v5439_v11 }
 0x4fc   : >> { %1793 = vst.msk [vmem:[#allocation2 + $0x2d8] sm:$0xff] %vm291_vm0, %v1770_v9  ;;  %v1042_v62 = vmax.f32 %v1006_v29, 0.0 }
 0x4fe   : >> { %1065 = vst.msk [vmem:[#allocation2 + $0x138] sm:$0xff] %vm291_vm0, %v1042_v62 }
 0x501   : >> { %v1008_v30 = vpop.f32.mrf.mxu1 }
 0x502   : >> { %v1009_v41 = vadd.f32 %v1008_v30, %v5439_v11 }
 0x504   : >> { %v1043_v54 = vmax.f32 %v1009_v41, 0.0 }
 0x506   : >> { %1066 = vst.msk [vmem:[#allocation2 + $0x140] sm:$0xff] %vm291_vm0, %v1043_v54 }
 0x509   : >> { %v1011_v7 = vpop.f32.mrf.mxu1 }
 0x50a   : >> { %v1012_v43 = vadd.f32 %v1011_v7, %v5439_v11 }
 0x50c   : >> { %v1044_v45 = vmax.f32 %v1012_v43, 0.0 }
 0x50e   : >> { %1067 = vst.msk [vmem:[#allocation2 + $0x148] sm:$0xff] %vm291_vm0, %v1044_v45 }
 0x511   : >> { %v1014_v48 = vpop.f32.mrf.mxu1 }
 0x512   : >> { %v1015_v33 = vadd.f32 %v1014_v48, %v5439_v11 }
 0x514   : >> { %v1045_v50 = vmax.f32 %v1015_v33, 0.0 }
 0x516   : >> { %1068 = vst.msk [vmem:[#allocation2 + $0x150] sm:$0xff] %vm291_vm0, %v1045_v50 }
 0x519   : >> { %v1017_v49 = vpop.f32.mrf.mxu1 }
 0x51a   : >> { %v1018_v14 = vadd.f32 %v1017_v49, %v5439_v11 }
 0x51c   : >> { %v1046_v51 = vmax.f32 %v1018_v14, 0.0 }
 0x51e   : >> { %1069 = vst.msk [vmem:[#allocation2 + $0x158] sm:$0xff] %vm291_vm0, %v1046_v51 }
 0x521   : >> { %v1020_v20 = vpop.f32.mrf.mxu1 }
 0x522   : >> { %v1021_v18 = vadd.f32 %v1020_v20, %v5439_v11 }
 0x524   : >> { %v1047_v52 = vmax.f32 %v1021_v18, 0.0 }
 0x526   : >> { %1070 = vst.msk [vmem:[#allocation2 + $0x160] sm:$0xff] %vm291_vm0, %v1047_v52 }
 0x529   : >> { %v1023_v40 = vpop.f32.mrf.mxu1 }
 0x52a   : >> { %v1024_v12 = vadd.f32 %v1023_v40, %v5439_v11 }
 0x52c   : >> { %v1048_v55 = vmax.f32 %v1024_v12, 0.0 }
 0x52e   : >> { %1071 = vst.msk [vmem:[#allocation2 + $0x168] sm:$0xff] %vm291_vm0, %v1048_v55 }
 0x52f LB: >>> { %v1858_v36 = vld [vmem:[#allocation9 + $0x38] sm:$0xff]  ;;  %v1857_v6 = vld [vmem:[#allocation9 + $0x30] sm:$0xff]  ;;  %v1856_v56 = vld [vmem:[#allocation9 + $0x28] sm:$0xff]  ;;  %s1800_s23 = smul.u32 184, %s4870_s21  ;;  %vm3675_vm4 = vcmask 523264   ;;  %s1799_s21 = sadd.s32 1, %s4870_s21   ;;  %s4870_s21 = sphi %s5694_s21, %s1799_s21  }
 0x530   : >>> { %4623 = vmatpush.msra.mxu1 %v1858_v36  ;;  %4624 = vmatpush.msra.mxu2 %v1858_v36  ;;  %v1855_v11 = vld [vmem:[#allocation9 + $0x20] sm:$0xff]  ;;  %v2198_v47 = vld [vmem:[#allocation9 + $0x58] sm:$0xff]  ;;  %v2197_v8 = vld [vmem:[#allocation9 + $0x50] sm:$0xff]  ;;  %p1796_p8 = scmp.ge.s32.totalorder %s1799_s21, 4  }
 0x531   : >>> { %1940 = vmatpush.msra.mxu0 %v1858_v36  ;;  %4625 = vmatpush.msra.mxu3 %v1858_v36  ;;  %s5702_s24 = scalar_lea.vmem [#allocation2], %s1800_s23  ;;  %v1828_v58 = vld [vmem:[#allocation9 + $0x18] sm:$0xff]  ;;  %v1827_v5 = vld [vmem:[#allocation9 + $0x10] sm:$0xff]  ;;  %v2196_v16 = vld [vmem:[#allocation9 + $0x48] sm:$0xff]  ;;  %s6334_s25 = scalar_lea.vmem [#allocation3], %s1800_s23  ;;  %vm3954_vm5 = vcmask (%p1796_p8), 519168  }
 0x532   : >>> { %4626 = vmatpush.msra.mxu1 %v1857_v6  ;;  %4627 = vmatpush.msra.mxu2 %v1857_v6  ;;  %v2406_v60 = vld [vmem:[#allocation9 + $0x78] sm:$0xff]  ;;  %v2405_v63 = vld [vmem:[#allocation9 + $0x70] sm:$0xff]  ;;  %v1826_v21 = vld [vmem:[#allocation9 + $0x8] sm:$0xff]  ;;  %s4622_s27 = smul.u32 (%p1796_p8), 72, %s4866_s29  ;;  %s309_s29 = sadd.s32 (%p1796_p8), 1, %s4866_s29  }
 0x533   : >>> { %1941 = vmatpush.msra.mxu0 %v1857_v6  ;;  %4628 = vmatpush.msra.mxu3 %v1857_v6  ;;  %v2614_v61 = vld [vmem:[#allocation9 + $0x98] sm:$0xff]  ;;  %v2613_v0 = vld [vmem:[#allocation9 + $0x90] sm:$0xff]  ;;  %v2404_v15 = vld [vmem:[#allocation9 + $0x68] sm:$0xff]  ;;  %p306_p9 = scmp.ge.s32.totalorder (%p1796_p8), %s309_s29, 8  }
 0x534   : >>> { %4629 = vmatpush.msra.mxu1 %v1856_v56  ;;  %4630 = vmatpush.msra.mxu2 %v1856_v56  ;;  %v2612_v17 = vld [vmem:[#allocation9 + $0x88] sm:$0xff]  ;;  %v2195_v19 = vld [vmem:[#allocation9 + $0x40] sm:$0xff]  ;;  %v3030_v26 = vld [vmem:[#allocation9 + $0xd8] sm:$0xff]  ;;  %s6500_s22 = scalar_lea.vmem (%p1796_p8), %s4999_s28, %s4622_s27 }
 0x535   : >>> { %v4234_v57 = vld [vmem:[%s5702_s24 + $0x31] sm:$0xff]  ;;  %v5706_v34 = vld [vmem:[%s5702_s24 + $0x61] sm:$0xff]  ;;  %1942 = vmatpush.msra.mxu0 %v1856_v56  ;;  %4631 = vmatpush.msra.mxu3 %v1856_v56  ;;  %v5716_v31 = vld [vmem:[%s5702_s24 + $0x39] sm:$0xff] }
 0x536   : >>> { %4632 = vmatpush.msra.mxu1 %v1855_v11  ;;  %4633 = vmatpush.msra.mxu2 %v1855_v11  ;;  %v4228_v53 = vld [vmem:[%s5702_s24 + $0x1] sm:$0xff]  ;;  %v4246_v46 = vld [vmem:[%s5702_s24 + $0x91] sm:$0xff]  ;;  %v5719_v10 = vld [vmem:[%s5702_s24 + $0x69] sm:$0xff] }
 0x537   : >>> { %4257 = vmatmul.msk.f32.vlgmr.msra.gmra.mxu1 %vm291_vm0, %v4234_v57  ;;  %4263 = vmatmul.msk.f32.vlgmr.msra.gmra.mxu2 %vm291_vm0, %v5706_v34  ;;  %v4229_v22 = vld [vmem:[%s5702_s24 + $0x9] sm:$0xff]  ;;  %v4247_v25 = vld [vmem:[%s5702_s24 + $0x99] sm:$0xff]  ;;  %v5730_v38 = vld [vmem:[%s5702_s24 + $0x41] sm:$0xff] }
 0x538   : >>> { %2280 = vmatpush.msrb.mxu2 %v2198_v47  ;;  %2095 = vmatpush.msrb.mxu1 %v1828_v58  ;;  %v1825_v35 = vld [vmem:[#allocation9] sm:$0xff]  ;;  %v4248_v23 = vld [vmem:[%s5702_s24 + $0xa1] sm:$0xff]  ;;  %v3238_v27 = vld [vmem:[#allocation9 + $0xf8] sm:$0xff] }
 0x539   : >>> { %1943 = vmatpush.msra.mxu0 %v1855_v11  ;;  %4634 = vmatpush.msra.mxu3 %v1855_v11  ;;  %v2403_v32 = vld [vmem:[#allocation9 + $0x60] sm:$0xff]  ;;  %v2822_v44 = vld [vmem:[#allocation9 + $0xb8] sm:$0xff]  ;;  %v5761_v62 = vld [vmem:[%s5702_s24 + $0x81] sm:$0xff] }
 0x53a   : >>> { %4251 = vmatmul.msk.f32.vlgmr.msra.gmra.mxu0 %vm291_vm0, %v4228_v53  ;;  %4269 = vmatmul.msk.f32.vlgmr.msra.gmra.mxu3 %vm291_vm0, %v4246_v46  ;;  %v2611_v37 = vld [vmem:[#allocation9 + $0x80] sm:$0xff]  ;;  %v5744_v28 = vld [vmem:[%s5702_s24 + $0x49] sm:$0xff]  ;;  %v4232_v30 = vld [vmem:[%s5702_s24 + $0x21] sm:$0xff] }
 0x53b   : >>> { %2488 = vmatpush.msrb.mxu3 %v2406_v60  ;;  %2696 = vmatpush.msrb.mxu0 %v2614_v61  ;;  %v5733_v39 = vld [vmem:[%s5702_s24 + $0x71] sm:$0xff]  ;;  %v5747_v13 = vld [vmem:[%s5702_s24 + $0x79] sm:$0xff]  ;;  %v4249_v59 = vld [vmem:[%s5702_s24 + $0xa9] sm:$0xff] }
 0x53c   : >>> { %2281 = vmatpush.msrb.mxu2 %v2197_v8  ;;  %2096 = vmatpush.msrb.mxu1 %v1827_v5  ;;  %v4230_v24 = vld [vmem:[%s5702_s24 + $0x11] sm:$0xff]  ;;  %v4231_v42 = vld [vmem:[%s5702_s24 + $0x19] sm:$0xff]  ;;  %v5775_v7 = vld [vmem:[%s5702_s24 + $0x89] sm:$0xff] }
 0x53d   : >>> { %2489 = vmatpush.msrb.mxu3 %v2405_v63  ;;  %2697 = vmatpush.msrb.mxu0 %v2613_v0  ;;  %v3446_v9 = vld [vmem:[#allocation9 + $0x118] sm:$0xff]  ;;  %v5772_v54 = vld [vmem:[%s5702_s24 + $0x59] sm:$0xff]  ;;  %v4297_v33 = vld [vmem:[%s5702_s24 + $0x2] sm:$0xff] }
 0x53e   : >>> { %2282 = vmatpush.msrb.mxu2 %v2196_v16  ;;  %2097 = vmatpush.msrb.mxu1 %v1826_v21  ;;  %v5758_v29 = vld [vmem:[%s5702_s24 + $0x51] sm:$0xff]  ;;  %v4233_v43 = vld [vmem:[%s5702_s24 + $0x29] sm:$0xff]  ;;  %v4343_v45 = vld [vmem:[%s5702_s24 + $0x1c] sm:$0xff] }
 0x53f   : >>> { %4258 = vmatmul.msk.f32.gmra.mxu1 %vm291_vm0, %v5716_v31  ;;  %4264 = vmatmul.msk.f32.gmra.mxu2 %vm291_vm0, %v5719_v10  ;;  %v4250_v41 = vld [vmem:[%s5702_s24 + $0xb1] sm:$0xff]  ;;  %v1802_v48 = vld [vmem:[%s5702_s24] sm:$0xff]  ;;  %v1803_v14 = vld [vmem:[%s5702_s24 + $0x8] sm:$0xff] }
 0x540   : >>> { %2490 = vmatpush.msrb.mxu3 %v2404_v15  ;;  %2698 = vmatpush.msrb.mxu0 %v2612_v17  ;;  %v4344_v50 = vld [vmem:[%s5702_s24 + $0x24] sm:$0xff]  ;;  %v4345_v20 = vld [vmem:[%s5702_s24 + $0x2c] sm:$0xff]  ;;  %v4346_v55 = vld [vmem:[%s5702_s24 + $0x34] sm:$0xff] }
 0x541   : >>> { %2283 = vmatpush.msrb.mxu2 %v2195_v19  ;;  %2098 = vmatpush.msrb.mxu1 %v1825_v35  ;;  %v4389_v49 = vld [vmem:[%s5702_s24 + $0x1d] sm:$0xff]  ;;  %v4298_v51 = vld [vmem:[%s5702_s24 + $0xa] sm:$0xff]  ;;  %v4299_v12 = vld [vmem:[%s5702_s24 + $0x12] sm:$0xff] }
 0x542   : >>> { %4252 = vmatmul.msk.f32.gmra.mxu0 %vm291_vm0, %v4229_v22  ;;  %4270 = vmatmul.msk.f32.gmra.mxu3 %vm291_vm0, %v4247_v25  ;;  %v4390_v18 = vld [vmem:[%s5702_s24 + $0x25] sm:$0xff]  ;;  %v1804_v40 = vld [vmem:[%s5702_s24 + $0x10] sm:$0xff]  ;;  %v1805_v11 = vld [vmem:[%s5702_s24 + $0x18] sm:$0xff] }
 0x543   : >>> { %2491 = vmatpush.msrb.mxu3 %v2403_v32  ;;  %2699 = vmatpush.msrb.mxu0 %v2611_v37  ;;  %v3029_v52 = vld [vmem:[#allocation9 + $0xd0] sm:$0xff]  ;;  %v4391_v36 = vld [vmem:[%s5702_s24 + $0x2d] sm:$0xff]  ;;  %v4300_v57 = vld [vmem:[%s5702_s24 + $0x1a] sm:$0xff] }
 0x544   : >>> { %3112 = vmatpush.msra.mxu2 %v3030_v26  ;;  %2904 = vmatpush.msra.mxu1 %v2822_v44  ;;  %v3237_v6 = vld [vmem:[#allocation9 + $0xf0] sm:$0xff]  ;;  %v4392_v58 = vld [vmem:[%s5702_s24 + $0x35] sm:$0xff]  ;;  %v4302_v63 = vld [vmem:[%s5702_s24 + $0x2a] sm:$0xff] }
 0x545   : >>> { %3320 = vmatpush.msra.mxu3 %v3238_v27  ;;  %3528 = vmatpush.msra.mxu0 %v3446_v9  ;;  %v2821_v56 = vld [vmem:[#allocation9 + $0xb0] sm:$0xff]  ;;  %v4349_v0 = vld [vmem:[%s5702_s24 + $0x4c] sm:$0xff]  ;;  %v4350_v17 = vld [vmem:[%s5702_s24 + $0x54] sm:$0xff] }
 0x546   : >>> { %3113 = vmatpush.msra.mxu2 %v3029_v52  ;;  %2905 = vmatpush.msra.mxu1 %v2821_v56  ;;  %v4347_v47 = vld [vmem:[%s5702_s24 + $0x3c] sm:$0xff]  ;;  %v4348_v61 = vld [vmem:[%s5702_s24 + $0x44] sm:$0xff]  ;;  %v1808_v21 = vld [vmem:[%s5702_s24 + $0x30] sm:$0xff] }
 0x547   : >>> { %4259 = vmatmul.msk.f32.gmra.mxu1 %vm291_vm0, %v5730_v38  ;;  %4265 = vmatmul.msk.f32.gmra.mxu2 %vm291_vm0, %v5733_v39  ;;  %v3445_v53 = vld [vmem:[#allocation9 + $0x110] sm:$0xff]  ;;  %v4303_v15 = vld [vmem:[%s5702_s24 + $0x32] sm:$0xff]  ;;  %v5845_v25 = vld [vmem:[%s5702_s24 + $0x3a] sm:$0xff] }
 0x548   : >>> { %3321 = vmatpush.msra.mxu3 %v3237_v6  ;;  %3529 = vmatpush.msra.mxu0 %v3445_v53  ;;  %v1806_v46 = vld [vmem:[%s5702_s24 + $0x20] sm:$0xff]  ;;  %v1807_v5 = vld [vmem:[%s5702_s24 + $0x28] sm:$0xff]  ;;  %v5842_v22 = vld [vmem:[%s5702_s24 + $0x38] sm:$0xff] }
 0x549   : >>> { %v4301_v60 = vld [vmem:[%s5702_s24 + $0x22] sm:$0xff]  ;;  %v4395_v19 = vld [vmem:[%s5702_s24 + $0x4d] sm:$0xff]  ;;  %v4396_v32 = vld [vmem:[%s5702_s24 + $0x55] sm:$0xff] }
 0x54a   : >>> { %4253 = vmatmul.msk.f32.gmra.mxu0 %vm291_vm0, %v4230_v24  ;;  %4271 = vmatmul.msk.f32.gmra.mxu3 %vm291_vm0, %v4248_v23  ;;  %v4393_v8 = vld [vmem:[%s5702_s24 + $0x3d] sm:$0xff]  ;;  %v4394_v16 = vld [vmem:[%s5702_s24 + $0x45] sm:$0xff] }
 0x54b   : >>> { %v4351_v35 = vld [vmem:[%s5702_s24 + $0x5c] sm:$0xff]  ;;  %v4352_v27 = vld [vmem:[%s5702_s24 + $0x64] sm:$0xff] }
 0x54c   : >>> { %v3028_v37 = vld [vmem:[#allocation9 + $0xc8] sm:$0xff]  ;;  %v5859_v23 = vld [vmem:[%s5702_s24 + $0x42] sm:$0xff]  ;;  %v5873_v9 = vld [vmem:[%s5702_s24 + $0x4a] sm:$0xff] }
 0x54d   : >>> { %3114 = vmatpush.msra.mxu2 %v3028_v37  ;;  %v5856_v24 = vld [vmem:[%s5702_s24 + $0x40] sm:$0xff]  ;;  %v5975_v37 = vld [vmem:[%s5702_s24 + $0x72] sm:$0xff]  ;;  %v6029_v4 = vld [vmem:[%s5702_s24 + $0x88] sm:$0xff] }
 0x54e   : >>> { %v3236_v26 = vld [vmem:[#allocation9 + $0xe8] sm:$0xff]  ;;  %v4356_v53 = vld [vmem:[%s5702_s24 + $0x84] sm:$0xff] }
 0x54f   : >>> { %4260 = vmatmul.msk.f32.gmra.mxu1 %vm291_vm0, %v5744_v28  ;;  %4266 = vmatmul.msk.f32.gmra.mxu2 %vm291_vm0, %v5747_v13  ;;  %v4397_v44 = vld [vmem:[%s5702_s24 + $0x5d] sm:$0xff] }
 0x550   : >>> { %3322 = vmatpush.msra.mxu3 %v3236_v26  ;;  %v5909_v52 = vld [vmem:[%s5702_s24 + $0x5a] sm:$0xff] }
 0x552   : >>> { %4254 = vmatmul.msk.f32.gmra.mxu0 %vm291_vm0, %v4231_v42  ;;  %4272 = vmatmul.msk.f32.gmra.mxu3 %vm291_vm0, %v4249_v59  ;;  %v2820_v42 = vld [vmem:[#allocation9 + $0xa8] sm:$0xff]  ;;  %v5870_v59 = vld [vmem:[%s5702_s24 + $0x48] sm:$0xff] }
 0x553   : >>> { %2906 = vmatpush.msra.mxu1 %v2820_v42  ;;  %v4358_v42 = vld [vmem:[%s5702_s24 + $0x94] sm:$0xff] }
 0x557   : >>> { %4261 = vmatmul.msk.f32.gmra.mxu1 %vm291_vm0, %v5758_v29  ;;  %4267 = vmatmul.msk.f32.gmra.mxu2 %vm291_vm0, %v5761_v62 }
 0x55a   : >>> { %4255 = vmatmul.msk.f32.gmra.mxu0 %vm291_vm0, %v4232_v30  ;;  %4273 = vmatmul.msk.f32.gmra.mxu3 %vm291_vm0, %v4250_v41  ;;  %v3444_v30 = vld [vmem:[#allocation9 + $0x108] sm:$0xff]  ;;  %v4353_v41 = vld [vmem:[%s5702_s24 + $0x6c] sm:$0xff] }
 0x55b   : >>> { %3530 = vmatpush.msra.mxu0 %v3444_v30  ;;  %v4403_v30 = vld [vmem:[%s5702_s24 + $0x8d] sm:$0xff] }
 0x55f   : >>> { %4262 = vmatmul.msk.f32.gmra.mxu1 %vm291_vm0, %v5772_v54  ;;  %4268 = vmatmul.msk.f32.gmra.mxu2 %vm291_vm0, %v5775_v7 }
 0x562   : >>> { %4256 = vmatmul.msk.f32.gmra.mxu0 %vm291_vm0, %v4233_v43  ;;  %4366 = vmatmul.msk.f32.vlgmr.msrb.gmra.mxu3 %vm291_vm0, %v4343_v45  ;;  %v4398_v43 = vld [vmem:[%s5702_s24 + $0x65] sm:$0xff] }
 0x567   : >>> { %4274 = vmatmul.msk.f32.vlgmr.msrb.gmra.mxu1 %vm291_vm0, %v1802_v48  ;;  %4320 = vmatmul.msk.f32.vlgmr.msrb.gmra.mxu2 %vm291_vm0, %v4297_v33  ;;  %v5886_v48 = vld [vmem:[%s5702_s24 + $0x50] sm:$0xff] }
 0x568   : >>> { %v5889_v33 = vld [vmem:[%s5702_s24 + $0x52] sm:$0xff] }
 0x56a   : >>> { %4367 = vmatmul.msk.f32.gmra.mxu3 %vm291_vm0, %v4344_v50  ;;  %4412 = vmatmul.msk.f32.vlgmr.msrb.gmra.mxu0 %vm291_vm0, %v4389_v49  ;;  %v4354_v49 = vld [vmem:[%s5702_s24 + $0x74] sm:$0xff] }
 0x56f   : >>> { %4275 = vmatmul.msk.f32.gmra.mxu1 %vm291_vm0, %v1803_v14  ;;  %4321 = vmatmul.msk.f32.gmra.mxu2 %vm291_vm0, %v4298_v51  ;;  %v4399_v14 = vld [vmem:[%s5702_s24 + $0x6d] sm:$0xff] }
 0x572   : >>> { %4368 = vmatmul.msk.f32.gmra.mxu3 %vm291_vm0, %v4345_v20  ;;  %4413 = vmatmul.msk.f32.gmra.mxu0 %vm291_vm0, %v4390_v18  ;;  %v5906_v18 = vld [vmem:[%s5702_s24 + $0x58] sm:$0xff] }
 0x577   : >>> { %4276 = vmatmul.msk.f32.gmra.mxu1 %vm291_vm0, %v1804_v40  ;;  %4322 = vmatmul.msk.f32.gmra.mxu2 %vm291_vm0, %v4299_v12 }
 0x57a   : >>> { %4369 = vmatmul.msk.f32.gmra.mxu3 %vm291_vm0, %v4346_v55  ;;  %4414 = vmatmul.msk.f32.gmra.mxu0 %vm291_vm0, %v4391_v36  ;;  %v4355_v55 = vld [vmem:[%s5702_s24 + $0x7c] sm:$0xff] }
 0x57b   : >>> { %v4400_v36 = vld [vmem:[%s5702_s24 + $0x75] sm:$0xff] }
 0x57f   : >>> { %4277 = vmatmul.msk.f32.gmra.mxu1 %vm291_vm0, %v1805_v11  ;;  %4323 = vmatmul.msk.f32.gmra.mxu2 %vm291_vm0, %v4300_v57  ;;  %v5928_v11 = vld [vmem:[%s5702_s24 + $0x60] sm:$0xff] }
 0x580   : >>> { %v5931_v57 = vld [vmem:[%s5702_s24 + $0x62] sm:$0xff] }
 0x582   : >>> { %4370 = vmatmul.msk.f32.gmra.mxu3 %vm291_vm0, %v4347_v47  ;;  %4415 = vmatmul.msk.f32.gmra.mxu0 %vm291_vm0, %v4392_v58 }
 0x587   : >>> { %4278 = vmatmul.msk.f32.gmra.mxu1 %vm291_vm0, %v1806_v46  ;;  %4324 = vmatmul.msk.f32.gmra.mxu2 %vm291_vm0, %v4301_v60  ;;  %v4401_v46 = vld [vmem:[%s5702_s24 + $0x7d] sm:$0xff] }
 0x58a   : >>> { %4371 = vmatmul.msk.f32.gmra.mxu3 %vm291_vm0, %v4348_v61  ;;  %4416 = vmatmul.msk.f32.gmra.mxu0 %vm291_vm0, %v4393_v8  ;;  %v5950_v8 = vld [vmem:[%s5702_s24 + $0x68] sm:$0xff] }
 0x58f   : >>> { %4279 = vmatmul.msk.f32.gmra.mxu1 %vm291_vm0, %v1807_v5  ;;  %4325 = vmatmul.msk.f32.gmra.mxu2 %vm291_vm0, %v4302_v63  ;;  %v5953_v5 = vld [vmem:[%s5702_s24 + $0x6a] sm:$0xff] }
 0x592   : >>> { %4372 = vmatmul.msk.f32.gmra.mxu3 %vm291_vm0, %v4349_v0  ;;  %4417 = vmatmul.msk.f32.gmra.mxu0 %vm291_vm0, %v4394_v16  ;;  %v4357_v16 = vld [vmem:[%s5702_s24 + $0x8c] sm:$0xff] }
 0x597   : >>> { %4280 = vmatmul.msk.f32.gmra.mxu1 %vm291_vm0, %v1808_v21  ;;  %4326 = vmatmul.msk.f32.gmra.mxu2 %vm291_vm0, %v4303_v15  ;;  %v4402_v21 = vld [vmem:[%s5702_s24 + $0x85] sm:$0xff]  ;;  %v3027_v15 = vld [vmem:[#allocation9 + $0xc0] sm:$0xff] }
 0x598   : >>> { %3115 = vmatpush.msra.mxu2 %v3027_v15 }
 0x59a   : >>> { %4373 = vmatmul.msk.f32.gmra.mxu3 %vm291_vm0, %v4350_v17  ;;  %4418 = vmatmul.msk.f32.gmra.mxu0 %vm291_vm0, %v4395_v19  ;;  %v3235_v19 = vld [vmem:[#allocation9 + $0xe0] sm:$0xff] }
 0x59b   : >>> { %3323 = vmatpush.msra.mxu3 %v3235_v19  ;;  %v6014_v19 = vld [vmem:[%s5702_s24 + $0x80] sm:$0xff] }
 0x59f   : >>> { %4281 = vmatmul.msk.f32.gmra.mxu1 %vm291_vm0, %v5842_v22  ;;  %4327 = vmatmul.msk.f32.gmra.mxu2 %vm291_vm0, %v5845_v25 }
 0x5a2   : >>> { %4374 = vmatmul.msk.f32.gmra.mxu3 %vm291_vm0, %v4351_v35  ;;  %4419 = vmatmul.msk.f32.gmra.mxu0 %vm291_vm0, %v4396_v32  ;;  %v5972_v32 = vld [vmem:[%s5702_s24 + $0x70] sm:$0xff] }
 0x5a7   : >>> { %4282 = vmatmul.msk.f32.gmra.mxu1 %vm291_vm0, %v5856_v24  ;;  %4328 = vmatmul.msk.f32.gmra.mxu2 %vm291_vm0, %v5859_v23 }
 0x5aa   : >>> { %4375 = vmatmul.msk.f32.gmra.mxu3 %vm291_vm0, %v4352_v27  ;;  %4420 = vmatmul.msk.f32.gmra.mxu0 %vm291_vm0, %v4397_v44  ;;  %v2819_v27 = vld [vmem:[#allocation9 + $0xa0] sm:$0xff] }
 0x5ab   : >>> { %2907 = vmatpush.msra.mxu1 %v2819_v27  ;;  %v6017_v27 = vld [vmem:[%s5702_s24 + $0x82] sm:$0xff] }
 0x5af   : >>> { %4283 = vmatmul.msk.f32.gmra.mxu1 %vm291_vm0, %v5870_v59  ;;  %4329 = vmatmul.msk.f32.gmra.mxu2 %vm291_vm0, %v5873_v9 }
 0x5b2   : >>> { %4376 = vmatmul.msk.f32.gmra.mxu3 %vm291_vm0, %v4353_v41  ;;  %4421 = vmatmul.msk.f32.gmra.mxu0 %vm291_vm0, %v4398_v43  ;;  %v3443_v43 = vld [vmem:[#allocation9 + $0x100] sm:$0xff] }
 0x5b3   : >>> { %3531 = vmatpush.msra.mxu0 %v3443_v43  ;;  %v4360_v43 = vld [vmem:[%s5702_s24 + $0xa4] sm:$0xff] }
 0x5b4   : >>> { %v5883_v45 = vpop.f32.mrf.mxu1 }
 0x5b7   : >>> { %4284 = vmatmul.msk.f32.gmra.mxu1 %vm291_vm0, %v5886_v48  ;;  %4330 = vmatmul.msk.f32.gmra.mxu2 %vm291_vm0, %v5889_v33  ;;  %v5895_v50 = vpop.f32.mrf.mxu0 }
 0x5ba   : >>> { %v5899_v51 = vpop.f32.mrf.mxu2  ;;  %4377 = vmatmul.msk.f32.gmra.mxu3 %vm291_vm0, %v4354_v49  ;;  %4422 = vmatmul.msk.f32.gmra.mxu0 %vm291_vm0, %v4399_v14  ;;  %v5994_v14 = vld [vmem:[%s5702_s24 + $0x78] sm:$0xff] }
 0x5bc   : >>> { %v5903_v20 = vpop.f32.mrf.mxu1 }
 0x5bd   : >>> { %v5911_v40 = vpop.f32.mrf.mxu3 }
 0x5be   : >>> { %6567 = vst [vmem:[#allocation19_spill] sm:$0xff] %v5911_v40 }
 0x5bf   : >>> { %4285 = vmatmul.msk.f32.gmra.mxu1 %vm291_vm0, %v5906_v18  ;;  %4331 = vmatmul.msk.f32.gmra.mxu2 %vm291_vm0, %v5909_v52  ;;  %v5917_v12 = vpop.f32.mrf.mxu0 }
 0x5c2   : >>> { %v5921_v6 = vpop.f32.mrf.mxu2  ;;  %4378 = vmatmul.msk.f32.gmra.mxu3 %vm291_vm0, %v4355_v55  ;;  %4423 = vmatmul.msk.f32.gmra.mxu0 %vm291_vm0, %v4400_v36  ;;  %v5997_v55 = vld [vmem:[%s5702_s24 + $0x7a] sm:$0xff] }
 0x5c4   : >>> { %v5925_v56 = vpop.f32.mrf.mxu1 }
 0x5c5   : >>> { %v5933_v47 = vpop.f32.mrf.mxu3 }
 0x5c6   : >>> { %6568 = vst [vmem:[#allocation20_spill] sm:$0xff] %v5933_v47 }
 0x5c7   : >>> { %4286 = vmatmul.msk.f32.gmra.mxu1 %vm291_vm0, %v5928_v11  ;;  %4332 = vmatmul.msk.f32.gmra.mxu2 %vm291_vm0, %v5931_v57  ;;  %v5939_v58 = vpop.f32.mrf.mxu0 }
 0x5ca   : >>> { %v5943_v60 = vpop.f32.mrf.mxu2  ;;  %4379 = vmatmul.msk.f32.gmra.mxu3 %vm291_vm0, %v4356_v53  ;;  %4424 = vmatmul.msk.f32.gmra.mxu0 %vm291_vm0, %v4401_v46  ;;  %v4359_v46 = vld [vmem:[%s5702_s24 + $0x9c] sm:$0xff] }
 0x5cc   : >>> { %v5947_v61 = vpop.f32.mrf.mxu1 }
 0x5cd   : >>> { %v5955_v63 = vpop.f32.mrf.mxu3 }
 0x5ce   : >>> { %6569 = vst [vmem:[#allocation21_spill] sm:$0xff] %v5955_v63 }
 0x5cf   : >>> { %4287 = vmatmul.msk.f32.gmra.mxu1 %vm291_vm0, %v5950_v8  ;;  %4333 = vmatmul.msk.f32.gmra.mxu2 %vm291_vm0, %v5953_v5  ;;  %v5961_v0 = vpop.f32.mrf.mxu0 }
 0x5d2   : >>> { %v5965_v17 = vpop.f32.mrf.mxu2  ;;  %4380 = vmatmul.msk.f32.gmra.mxu3 %vm291_vm0, %v4357_v16  ;;  %4425 = vmatmul.msk.f32.gmra.mxu0 %vm291_vm0, %v4402_v21  ;;  %v4404_v16 = vld [vmem:[%s5702_s24 + $0x95] sm:$0xff] }
 0x5d4   : >>> { %v5969_v35 = vpop.f32.mrf.mxu1 }
 0x5d5   : >>> { %v5977_v26 = vpop.f32.mrf.mxu3 }
 0x5d6   : >>> { %6570 = vst [vmem:[#allocation22_spill] sm:$0xff] %v5977_v26 }
 0x5d7   : >>> { %4288 = vmatmul.msk.f32.gmra.mxu1 %vm291_vm0, %v5972_v32  ;;  %4334 = vmatmul.msk.f32.gmra.mxu2 %vm291_vm0, %v5975_v37  ;;  %v5983_v44 = vpop.f32.mrf.mxu0 }
 0x5da   : >>> { %v5987_v41 = vpop.f32.mrf.mxu2  ;;  %4381 = vmatmul.msk.f32.gmra.mxu3 %vm291_vm0, %v4358_v42  ;;  %4426 = vmatmul.msk.f32.gmra.mxu0 %vm291_vm0, %v4403_v30 }
 0x5dc   : >>> { %v5991_v49 = vpop.f32.mrf.mxu1 }
 0x5dd   : >>> { %v5999_v36 = vpop.f32.mrf.mxu3 }
 0x5de   : >>> { %6571 = vst [vmem:[#allocation23_spill] sm:$0xff] %v5999_v36  ;;  %v6032_v36 = vld [vmem:[%s5702_s24 + $0x8a] sm:$0xff] }
 0x5df   : >>> { %4289 = vmatmul.msk.f32.gmra.mxu1 %vm291_vm0, %v5994_v14  ;;  %4335 = vmatmul.msk.f32.gmra.mxu2 %vm291_vm0, %v5997_v55  ;;  %v6005_v53 = vpop.f32.mrf.mxu0 }
 0x5e2   : >>> { %v6009_v21 = vpop.f32.mrf.mxu2  ;;  %4382 = vmatmul.msk.f32.gmra.mxu3 %vm291_vm0, %v4359_v46  ;;  %4427 = vmatmul.msk.f32.gmra.mxu0 %vm291_vm0, %v4404_v16  ;;  %v4405_v46 = vld [vmem:[%s5702_s24 + $0x9d] sm:$0xff] }
 0x5e4   : >>> { %v2100_v15 = vpop.f32.mrf.mxu1 }
 0x5e5   : >>> { %v2493_v42 = vpop.f32.mrf.mxu3  ;;  %v2101_v16 = vadd.f32 %v2100_v15, %v5895_v50  ;;  %v4361_v15 = vld [vmem:[%s5702_s24 + $0xac] sm:$0xff] }
 0x5e7   : >>> { %4290 = vmatmul.msk.f32.gmra.mxu1 %vm291_vm0, %v6014_v19  ;;  %4336 = vmatmul.msk.f32.gmra.mxu2 %vm291_vm0, %v6017_v27  ;;  %v2701_v30 = vpop.f32.mrf.mxu0 }
 0x5ea   : >>> { %v2285_v1 = vpop.f32.mrf.mxu2  ;;  %4383 = vmatmul.msk.f32.gmra.mxu3 %vm291_vm0, %v4360_v43  ;;  %4428 = vmatmul.msk.f32.gmra.mxu0 %vm291_vm0, %v4405_v46 }
 0x5eb   : >>> { %v2354_v2 = vadd.f32 %v2285_v1, %v2101_v16  ;;  %v4406_v1 = vld [vmem:[%s5702_s24 + $0xa5] sm:$0xff] }
 0x5ec   : >>> { %v2103_v3 = vpop.f32.mrf.mxu1 }
 0x5ed   : >>> { %v2562_v26 = vadd.f32 %v2493_v42, %v2354_v2  ;;  %v2496_v63 = vpop.f32.mrf.mxu3  ;;  %v2104_v43 = vadd.f32 %v2103_v3, %v5917_v12  ;;  %v6046_v42 = vld [vmem:[%s5702_s24 + $0x90] sm:$0xff] }
 0x5ee   : >>> { %v4362_v12 = vld [vmem:[%s5702_s24 + $0xb4] sm:$0xff] }
 0x5ef   : >>> { %v6034_v47 = vadd.f32 %v2701_v30, %v2562_v26  ;;  %4291 = vmatmul.msk.f32.gmra.mxu1 %vm291_vm0, %v6029_v4  ;;  %4337 = vmatmul.msk.f32.gmra.mxu2 %vm291_vm0, %v6032_v36  ;;  %v2704_v50 = vpop.f32.mrf.mxu0  ;;  %v6049_v30 = vld [vmem:[%s5702_s24 + $0x92] sm:$0xff] }
 0x5f0   : >>> { %6573 = vst [vmem:[#allocation25_spill] sm:$0xff] %v6049_v30 }
 0x5f1   : >>> { %6572 = vst [vmem:[#allocation24_spill] sm:$0xff] %v6034_v47 }
 0x5f2   : >>> { %v2288_v46 = vpop.f32.mrf.mxu2  ;;  %4384 = vmatmul.msk.f32.gmra.mxu3 %vm291_vm0, %v4361_v15  ;;  %4429 = vmatmul.msk.f32.gmra.mxu0 %vm291_vm0, %v4406_v1  ;;  %v4407_v15 = vld [vmem:[%s5702_s24 + $0xad] sm:$0xff] }
 0x5f3   : >>> { %v2355_v2 = vadd.f32 %v2288_v46, %v2104_v43  ;;  %v6063_v46 = vld [vmem:[%s5702_s24 + $0x98] sm:$0xff] }
 0x5f4   : >>> { %v2106_v26 = vpop.f32.mrf.mxu1 }
 0x5f5   : >>> { %v2563_v16 = vadd.f32 %v2496_v63, %v2355_v2  ;;  %v2499_v47 = vpop.f32.mrf.mxu3  ;;  %v2107_v1 = vadd.f32 %v2106_v26, %v5939_v58  ;;  %v6066_v2 = vld [vmem:[%s5702_s24 + $0x9a] sm:$0xff] }
 0x5f6   : >>> { %6575 = vst [vmem:[#allocation27_spill] sm:$0xff] %v6066_v2  ;;  %v4363_v26 = vld [vmem:[%s5702_s24 + $0xbc] sm:$0xff] }
 0x5f7   : >>> { %v6051_v40 = vadd.f32 %v2704_v50, %v2563_v16  ;;  %4292 = vmatmul.msk.f32.gmra.mxu1 %vm291_vm0, %v6046_v42  ;;  %4338 = vmatmul.msk.f32.gmra.mxu2 %vm291_vm0, %v6049_v30  ;;  %v2707_v3 = vpop.f32.mrf.mxu0 }
 0x5f9   : >>> { %6574 = vst [vmem:[#allocation26_spill] sm:$0xff] %v6051_v40 }
 0x5fa   : >>> { %v2291_v43 = vpop.f32.mrf.mxu2  ;;  %4385 = vmatmul.msk.f32.gmra.mxu3 %vm291_vm0, %v4362_v12  ;;  %4430 = vmatmul.msk.f32.gmra.mxu0 %vm291_vm0, %v4407_v15  ;;  %v4408_v12 = vld [vmem:[%s5702_s24 + $0xb5] sm:$0xff] }
 0x5fb   : >>> { %v2356_v63 = vadd.f32 %v2291_v43, %v2107_v1  ;;  %v6080_v43 = vld [vmem:[%s5702_s24 + $0xa0] sm:$0xff] }
 0x5fc   : >>> { %v2109_v50 = vpop.f32.mrf.mxu1 }
 0x5fd   : >>> { %v2564_v16 = vadd.f32 %v2499_v47, %v2356_v63  ;;  %v2502_v40 = vpop.f32.mrf.mxu3  ;;  %v2110_v15 = vadd.f32 %v2109_v50, %v5961_v0  ;;  %v6083_v63 = vld [vmem:[%s5702_s24 + $0xa2] sm:$0xff] }
 0x5fe   : >>> { %6577 = vst [vmem:[#allocation29_spill] sm:$0xff] %v6083_v63  ;;  %v4364_v50 = vld [vmem:[%s5702_s24 + $0xc4] sm:$0xff] }
 0x5ff   : >>> { %v6068_v30 = vadd.f32 %v2707_v3, %v2564_v16  ;;  %4293 = vmatmul.msk.f32.gmra.mxu1 %vm291_vm0, %v6063_v46  ;;  %4339 = vmatmul.msk.f32.gmra.mxu2 %vm291_vm0, %v6066_v2  ;;  %v2710_v58 = vpop.f32.mrf.mxu0 }
 0x601   : >>> { %6576 = vst [vmem:[#allocation28_spill] sm:$0xff] %v6068_v30 }
 0x602   : >>> { %v2294_v1 = vpop.f32.mrf.mxu2  ;;  %4386 = vmatmul.msk.f32.gmra.mxu3 %vm291_vm0, %v4363_v26  ;;  %4431 = vmatmul.msk.f32.gmra.mxu0 %vm291_vm0, %v4408_v12  ;;  %v4409_v26 = vld [vmem:[%s5702_s24 + $0xbd] sm:$0xff] }
 0x603   : >>> { %v2357_v47 = vadd.f32 %v2294_v1, %v2110_v15  ;;  %v6097_v1 = vld [vmem:[%s5702_s24 + $0xa8] sm:$0xff] }
 0x604   : >>> { %v2112_v3 = vpop.f32.mrf.mxu1 }
 0x605   : >>> { %v2565_v16 = vadd.f32 %v2502_v40, %v2357_v47  ;;  %v2505_v30 = vpop.f32.mrf.mxu3  ;;  %v2113_v12 = vadd.f32 %v2112_v3, %v5983_v44  ;;  %v6100_v47 = vld [vmem:[%s5702_s24 + $0xaa] sm:$0xff] }
 0x606   : >>> { %6579 = vst [vmem:[#allocation31_spill] sm:$0xff] %v6100_v47  ;;  %v4365_v3 = vld [vmem:[%s5702_s24 + $0xcc] sm:$0xff] }
 0x607   : >>> { %v6085_v2 = vadd.f32 %v2710_v58, %v2565_v16  ;;  %4294 = vmatmul.msk.f32.gmra.mxu1 %vm291_vm0, %v6080_v43  ;;  %4340 = vmatmul.msk.f32.gmra.mxu2 %vm291_vm0, %v6083_v63  ;;  %v2713_v0 = vpop.f32.mrf.mxu0 }
 0x609   : >>> { %6578 = vst [vmem:[#allocation30_spill] sm:$0xff] %v6085_v2 }
 0x60a   : >>> { %v2297_v15 = vpop.f32.mrf.mxu2  ;;  %4387 = vmatmul.msk.f32.gmra.mxu3 %vm291_vm0, %v4364_v50  ;;  %4432 = vmatmul.msk.f32.gmra.mxu0 %vm291_vm0, %v4409_v26  ;;  %v4410_v50 = vld [vmem:[%s5702_s24 + $0xc5] sm:$0xff] }
 0x60b   : >>> { %v2358_v40 = vadd.f32 %v2297_v15, %v2113_v12  ;;  %v6114_v15 = vld [vmem:[%s5702_s24 + $0xb0] sm:$0xff] }
 0x60c   : >>> { %v2115_v58 = vpop.f32.mrf.mxu1 }
 0x60d   : >>> { %v2566_v16 = vadd.f32 %v2505_v30, %v2358_v40  ;;  %v2508_v2 = vpop.f32.mrf.mxu3  ;;  %v2116_v26 = vadd.f32 %v2115_v58, %v6005_v53  ;;  %v6117_v40 = vld [vmem:[%s5702_s24 + $0xb2] sm:$0xff] }
 0x60e   : >>> { %v4411_v58 = vld [vmem:[%s5702_s24 + $0xcd] sm:$0xff] }
 0x60f   : >>> { %v6102_v63 = vadd.f32 %v2713_v0, %v2566_v16  ;;  %4295 = vmatmul.msk.f32.gmra.mxu1 %vm291_vm0, %v6097_v1  ;;  %4341 = vmatmul.msk.f32.gmra.mxu2 %vm291_vm0, %v6100_v47  ;;  %v2716_v44 = vpop.f32.mrf.mxu0 }
 0x611   : >>> { %6580 = vst [vmem:[#allocation32_spill] sm:$0xff] %v6102_v63 }
 0x612   : >>> { %v2300_v12 = vpop.f32.mrf.mxu2  ;;  %4388 = vmatmul.msk.f32.gmra.mxu3 %vm291_vm0, %v4365_v3  ;;  %4433 = vmatmul.msk.f32.gmra.mxu0 %vm291_vm0, %v4410_v50 }
 0x613   : >>> { %v2359_v30 = vadd.f32 %v2300_v12, %v2116_v26  ;;  %v4435_v26 = vld [vmem:[%s5702_s24 + $0x1e] sm:$0xff] }
 0x614   : >>> { %v2118_v0 = vpop.f32.mrf.mxu1 }
 0x615   : >>> { %v2567_v16 = vadd.f32 %v2508_v2, %v2359_v30  ;;  %v2511_v63 = vpop.f32.mrf.mxu3  ;;  %v2119_v3 = vadd.f32 %v2118_v0, %v5883_v45 }
 0x617   : >>> { %v6119_v47 = vadd.f32 %v2716_v44, %v2567_v16  ;;  %4296 = vmatmul.msk.f32.gmra.mxu1 %vm291_vm0, %v6114_v15  ;;  %4342 = vmatmul.msk.f32.gmra.mxu2 %vm291_vm0, %v6117_v40  ;;  %v2719_v53 = vpop.f32.mrf.mxu0 }
 0x61a   : >>> { %v2303_v50 = vpop.f32.mrf.mxu2  ;;  %4434 = vmatmul.msk.f32.gmra.mxu0 %vm291_vm0, %v4411_v58  ;;  %4550 = vmatmul.msk.f32.vlgmr.msra.gmra.mxu3 %vm291_vm0, %v5716_v31 }
 0x61b   : >>> { %v2360_v2 = vadd.f32 %v2303_v50, %v2119_v3 }
 0x61c   : >>> { %v2121_v44 = vpop.f32.mrf.mxu1 }
 0x61d   : >>> { %v2568_v12 = vadd.f32 %v2511_v63, %v2360_v2  ;;  %v2514_v30 = vpop.f32.mrf.mxu3  ;;  %v2122_v0 = vadd.f32 %v2121_v44, %v5903_v20 }
 0x61f   : >>> { %v6131_v16 = vadd.f32 %v2719_v53, %v2568_v12  ;;  %4458 = vmatmul.msk.f32.vlgmr.msra.gmra.mxu1 %vm291_vm0, %v4435_v26  ;;  %4504 = vmatmul.msk.f32.vlgmr.msra.gmra.mxu2 %vm291_vm0, %v5842_v22  ;;  %v2722_v45 = vpop.f32.mrf.mxu0  ;;  %v4436_v53 = vld [vmem:[%s5702_s24 + $0x26] sm:$0xff]  ;;  %v4437_v26 = vld [vmem:[%s5702_s24 + $0x2e] sm:$0xff] }
 0x622   : >>> { %v2306_v58 = vpop.f32.mrf.mxu2  ;;  %4551 = vmatmul.msk.f32.gmra.mxu3 %vm291_vm0, %v5730_v38  ;;  %4596 = vmatmul.msk.f32.vlgmr.msra.gmra.mxu0 %vm291_vm0, %v5845_v25 }
 0x623   : >>> { %v2361_v31 = vadd.f32 %v2306_v58, %v2122_v0  ;;  %v4438_v58 = vld [vmem:[%s5702_s24 + $0x36] sm:$0xff] }
 0x624   : >>> { %v2124_v63 = vpop.f32.mrf.mxu1 }
 0x625   : >>> { %v2569_v3 = vadd.f32 %v2514_v30, %v2361_v31  ;;  %v2517_v50 = vpop.f32.mrf.mxu3  ;;  %v2125_v20 = vadd.f32 %v2124_v63, %v5925_v56 }
 0x627   : >>> { %v6142_v2 = vadd.f32 %v2722_v45, %v2569_v3  ;;  %4459 = vmatmul.msk.f32.gmra.mxu1 %vm291_vm0, %v4436_v53  ;;  %4505 = vmatmul.msk.f32.gmra.mxu2 %vm291_vm0, %v5856_v24  ;;  %v2725_v22 = vpop.f32.mrf.mxu0 }
 0x62a   : >>> { %v2309_v38 = vpop.f32.mrf.mxu2  ;;  %4552 = vmatmul.msk.f32.gmra.mxu3 %vm291_vm0, %v5744_v28  ;;  %4597 = vmatmul.msk.f32.gmra.mxu0 %vm291_vm0, %v5859_v23 }
 0x62b   : >>> { %v2362_v25 = vadd.f32 %v2309_v38, %v2125_v20 }
 0x62c   : >>> { %v2127_v44 = vpop.f32.mrf.mxu1 }
 0x62d   : >>> { %v2570_v12 = vadd.f32 %v2517_v50, %v2362_v25  ;;  %v2520_v30 = vpop.f32.mrf.mxu3  ;;  %v2128_v56 = vadd.f32 %v2127_v44, %v5947_v61  ;;  %v4439_v50 = vld [vmem:[%s5702_s24 + $0x3e] sm:$0xff]  ;;  %v4440_v44 = vld [vmem:[%s5702_s24 + $0x46] sm:$0xff] }
 0x62f   : >>> { %v6153_v45 = vadd.f32 %v2725_v22, %v2570_v12  ;;  %4460 = vmatmul.msk.f32.gmra.mxu1 %vm291_vm0, %v4437_v26  ;;  %4506 = vmatmul.msk.f32.gmra.mxu2 %vm291_vm0, %v5870_v59  ;;  %v2728_v24 = vpop.f32.mrf.mxu0 }
 0x632   : >>> { %v2312_v28 = vpop.f32.mrf.mxu2  ;;  %4553 = vmatmul.msk.f32.gmra.mxu3 %vm291_vm0, %v5758_v29  ;;  %4598 = vmatmul.msk.f32.gmra.mxu0 %vm291_vm0, %v5873_v9 }
 0x633   : >>> { %v2363_v23 = vadd.f32 %v2312_v28, %v2128_v56  ;;  %v4441_v56 = vld [vmem:[%s5702_s24 + $0x4e] sm:$0xff] }
 0x634   : >>> { %v2130_v0 = vpop.f32.mrf.mxu1 }
 0x635   : >>> { %v2571_v31 = vadd.f32 %v2520_v30, %v2363_v23  ;;  %v2523_v63 = vpop.f32.mrf.mxu3  ;;  %v2131_v61 = vadd.f32 %v2130_v0, %v5969_v35 }
 0x637   : >>> { %v6164_v53 = vadd.f32 %v2728_v24, %v2571_v31  ;;  %4461 = vmatmul.msk.f32.gmra.mxu1 %vm291_vm0, %v4438_v58  ;;  %4507 = vmatmul.msk.f32.gmra.mxu2 %vm291_vm0, %v5886_v48  ;;  %v2731_v59 = vpop.f32.mrf.mxu0  ;;  %v4442_v31 = vld [vmem:[%s5702_s24 + $0x56] sm:$0xff] }
 0x63a   : >>> { %v2315_v29 = vpop.f32.mrf.mxu2  ;;  %4554 = vmatmul.msk.f32.gmra.mxu3 %vm291_vm0, %v5772_v54  ;;  %4599 = vmatmul.msk.f32.gmra.mxu0 %vm291_vm0, %v5889_v33 }
 0x63b   : >>> { %v2364_v9 = vadd.f32 %v2315_v29, %v2131_v61 }
 0x63c   : >>> { %v2133_v3 = vpop.f32.mrf.mxu1 }
 0x63d   : >>> { %v2572_v22 = vadd.f32 %v2523_v63, %v2364_v9  ;;  %v2526_v20 = vpop.f32.mrf.mxu3  ;;  %v2134_v35 = vadd.f32 %v2133_v3, %v5991_v49  ;;  %v4443_v9 = vld [vmem:[%s5702_s24 + $0x5e] sm:$0xff] }
 0x63f   : >>> { %v6175_v38 = vadd.f32 %v2731_v59, %v2572_v22  ;;  %4462 = vmatmul.msk.f32.gmra.mxu1 %vm291_vm0, %v4439_v50  ;;  %4508 = vmatmul.msk.f32.gmra.mxu2 %vm291_vm0, %v5906_v18  ;;  %v2734_v48 = vpop.f32.mrf.mxu0 }
 0x642   : >>> { %v2318_v54 = vpop.f32.mrf.mxu2  ;;  %4555 = vmatmul.msk.f32.gmra.mxu3 %vm291_vm0, %v5706_v34  ;;  %4600 = vmatmul.msk.f32.gmra.mxu0 %vm291_vm0, %v5909_v52 }
 0x643   : >>> { %v2365_v33 = vadd.f32 %v2318_v54, %v2134_v35 }
 0x644   : >>> { %v2136_v25 = vpop.f32.mrf.mxu1 }
 0x645   : >>> { %v2573_v26 = vadd.f32 %v2526_v20, %v2365_v33  ;;  %v2529_v12 = vpop.f32.mrf.mxu3  ;;  %v2137_v49 = vadd.f32 %v2136_v25, %v5899_v51 }
 0x647   : >>> { %v6186_v30 = vadd.f32 %v2734_v48, %v2573_v26  ;;  %4463 = vmatmul.msk.f32.gmra.mxu1 %vm291_vm0, %v4440_v44  ;;  %4509 = vmatmul.msk.f32.gmra.mxu2 %vm291_vm0, %v5928_v11  ;;  %v2737_v18 = vpop.f32.mrf.mxu0  ;;  %v4444_v48 = vld [vmem:[%s5702_s24 + $0x66] sm:$0xff]  ;;  %v4445_v44 = vld [vmem:[%s5702_s24 + $0x6e] sm:$0xff] }
 0x64a   : >>> { %v2321_v34 = vpop.f32.mrf.mxu2  ;;  %4556 = vmatmul.msk.f32.gmra.mxu3 %vm291_vm0, %v5719_v10  ;;  %4601 = vmatmul.msk.f32.gmra.mxu0 %vm291_vm0, %v5931_v57 }
 0x64b   : >>> { %v2366_v52 = vadd.f32 %v2321_v34, %v2137_v49 }
 0x64c   : >>> { %v2139_v24 = vpop.f32.mrf.mxu1 }
 0x64d   : >>> { %v2574_v28 = vadd.f32 %v2529_v12, %v2366_v52  ;;  %v2532_v23 = vpop.f32.mrf.mxu3  ;;  %v2140_v11 = vadd.f32 %v2139_v24, %v5921_v6  ;;  %v4446_v52 = vld [vmem:[%s5702_s24 + $0x76] sm:$0xff] }
 0x64f   : >>> { %v6197_v0 = vadd.f32 %v2737_v18, %v2574_v28  ;;  %4464 = vmatmul.msk.f32.gmra.mxu1 %vm291_vm0, %v4441_v56  ;;  %4510 = vmatmul.msk.f32.gmra.mxu2 %vm291_vm0, %v5950_v8  ;;  %v2740_v51 = vpop.f32.mrf.mxu0 }
 0x652   : >>> { %v2324_v10 = vpop.f32.mrf.mxu2  ;;  %4557 = vmatmul.msk.f32.gmra.mxu3 %vm291_vm0, %v5733_v39  ;;  %4602 = vmatmul.msk.f32.gmra.mxu0 %vm291_vm0, %v5953_v5 }
 0x653   : >>> { %v2367_v57 = vadd.f32 %v2324_v10, %v2140_v11 }
 0x654   : >>> { %v2142_v58 = vpop.f32.mrf.mxu1 }
 0x655   : >>> { %v2575_v63 = vadd.f32 %v2532_v23, %v2367_v57  ;;  %v2535_v59 = vpop.f32.mrf.mxu3  ;;  %v2143_v8 = vadd.f32 %v2142_v58, %v5943_v60  ;;  %v6581_v23 = vld [vmem:[#allocation19_spill] sm:$0xff]  ;;  %v4447_v58 = vld [vmem:[%s5702_s24 + $0x7e] sm:$0xff] }
 0x657   : >>> { %v6208_v61 = vadd.f32 %v2740_v51, %v2575_v63  ;;  %4465 = vmatmul.msk.f32.gmra.mxu1 %vm291_vm0, %v4442_v31  ;;  %4511 = vmatmul.msk.f32.gmra.mxu2 %vm291_vm0, %v5972_v32  ;;  %v2743_v6 = vpop.f32.mrf.mxu0 }
 0x65a   : >>> { %v2327_v39 = vpop.f32.mrf.mxu2  ;;  %4558 = vmatmul.msk.f32.gmra.mxu3 %vm291_vm0, %v5747_v13  ;;  %4603 = vmatmul.msk.f32.gmra.mxu0 %vm291_vm0, %v5975_v37 }
 0x65b   : >>> { %v2368_v5 = vadd.f32 %v2327_v39, %v2143_v8  ;;  %v6583_v8 = vld [vmem:[#allocation20_spill] sm:$0xff] }
 0x65c   : >>> { %v2145_v29 = vpop.f32.mrf.mxu1 }
 0x65d   : >>> { %v2576_v3 = vadd.f32 %v2535_v59, %v2368_v5  ;;  %v2538_v50 = vpop.f32.mrf.mxu3  ;;  %v2146_v32 = vadd.f32 %v2145_v29, %v5965_v17  ;;  %v6584_v29 = vld [vmem:[#allocation27_spill] sm:$0xff] }
 0x65f   : >>> { %v6219_v22 = vadd.f32 %v2743_v6, %v2576_v3  ;;  %4466 = vmatmul.msk.f32.gmra.mxu1 %vm291_vm0, %v4443_v9  ;;  %4512 = vmatmul.msk.f32.gmra.mxu2 %vm291_vm0, %v5994_v14  ;;  %v2746_v60 = vpop.f32.mrf.mxu0  ;;  %v4540_v6 = vld [vmem:[%s5702_s24 + $0xa1] sm:$0xff] }
 0x662   : >>> { %v2330_v13 = vpop.f32.mrf.mxu2  ;;  %4559 = vmatmul.msk.f32.gmra.mxu3 %vm291_vm0, %v5761_v62  ;;  %4604 = vmatmul.msk.f32.gmra.mxu0 %vm291_vm0, %v5997_v55 }
 0x663   : >>> { %v2369_v37 = vadd.f32 %v2330_v13, %v2146_v32 }
 0x664   : >>> { %v2148_v20 = vpop.f32.mrf.mxu1 }
 0x665   : >>> { %v2577_v35 = vadd.f32 %v2538_v50, %v2369_v37  ;;  %v2541_v54 = vpop.f32.mrf.mxu3  ;;  %v2149_v62 = vadd.f32 %v2148_v20, %v5987_v41  ;;  %v4448_v50 = vld [vmem:[%s5702_s24 + $0x86] sm:$0xff] }
 0x666   : >>> { %v4541_v37 = vld [vmem:[%s5702_s24 + $0xa9] sm:$0xff] }
 0x667   : >>> { %v6230_v33 = vadd.f32 %v2746_v60, %v2577_v35  ;;  %4467 = vmatmul.msk.f32.gmra.mxu1 %vm291_vm0, %v4444_v48  ;;  %4513 = vmatmul.msk.f32.gmra.mxu2 %vm291_vm0, %v6014_v19  ;;  %v2749_v17 = vpop.f32.mrf.mxu0  ;;  %v4538_v19 = vld [vmem:[%s5702_s24 + $0x91] sm:$0xff]  ;;  %v6585_v20 = vld [vmem:[#allocation21_spill] sm:$0xff] }
 0x66a   : >>> { %v2333_v14 = vpop.f32.mrf.mxu2  ;;  %4560 = vmatmul.msk.f32.gmra.mxu3 %vm291_vm0, %v5775_v7  ;;  %4605 = vmatmul.msk.f32.gmra.mxu0 %vm291_vm0, %v6017_v27 }
 0x66b   : >>> { %v2370_v55 = vadd.f32 %v2333_v14, %v2149_v62  ;;  %v4449_v14 = vld [vmem:[%s5702_s24 + $0x8e] sm:$0xff] }
 0x66c   : >>> { %v2151_v25 = vpop.f32.mrf.mxu1 }
 0x66d   : >>> { %v2578_v26 = vadd.f32 %v2541_v54, %v2370_v55  ;;  %v2544_v12 = vpop.f32.mrf.mxu3  ;;  %v2152_v7 = vadd.f32 %v2151_v25, %v6009_v21  ;;  %v4539_v21 = vld [vmem:[%s5702_s24 + $0x99] sm:$0xff]  ;;  %v6586_v54 = vld [vmem:[#allocation29_spill] sm:$0xff] }
 0x66f   : >>> { %v6241_v18 = vadd.f32 %v2749_v17, %v2578_v26  ;;  %4468 = vmatmul.msk.f32.gmra.mxu1 %vm291_vm0, %v4445_v44  ;;  %4514 = vmatmul.msk.f32.gmra.mxu2 %vm291_vm0, %v6029_v4  ;;  %v2752_v41 = vpop.f32.mrf.mxu0  ;;  %v4542_v26 = vld [vmem:[%s5702_s24 + $0xb1] sm:$0xff] }
 0x672   : >>> { %v2336_v49 = vpop.f32.mrf.mxu2  ;;  %4561 = vmatmul.msk.f32.gmra.mxu3 %vm291_vm0, %v4538_v19  ;;  %4606 = vmatmul.msk.f32.gmra.mxu0 %vm291_vm0, %v6032_v36  ;;  %v6582_v36 = vld [vmem:[#allocation25_spill] sm:$0xff] }
 0x673   : >>> { %v2371_v27 = vadd.f32 %v2336_v49, %v2152_v7  ;;  %v6588_v7 = vld [vmem:[#allocation31_spill] sm:$0xff] }
 0x674   : >>> { %v2154_v34 = vpop.f32.mrf.mxu1 }
 0x675   : >>> { %v2579_v24 = vadd.f32 %v2544_v12, %v2371_v27  ;;  %v2547_v56 = vpop.f32.mrf.mxu3  ;;  %v2155_v51 = vadd.f32 %v2154_v34, %v6581_v23  ;;  %v6587_v12 = vld [vmem:[#allocation22_spill] sm:$0xff]  ;;  %v4450_v34 = vld [vmem:[%s5702_s24 + $0x96] sm:$0xff] }
 0x677   : >>> { %v6252_v28 = vadd.f32 %v2752_v41, %v2579_v24  ;;  %4469 = vmatmul.msk.f32.gmra.mxu1 %vm291_vm0, %v4446_v52  ;;  %4515 = vmatmul.msk.f32.gmra.mxu2 %vm291_vm0, %v6046_v42  ;;  %v2755_v4 = vpop.f32.mrf.mxu0 }
 0x67a   : >>> { %v2339_v11 = vpop.f32.mrf.mxu2  ;;  %4562 = vmatmul.msk.f32.gmra.mxu3 %vm291_vm0, %v4539_v21  ;;  %4607 = vmatmul.msk.f32.gmra.mxu0 %vm291_vm0, %v6582_v36  ;;  %v6589_v21 = vld [vmem:[#allocation23_spill] sm:$0xff] }
 0x67b   : >>> { %v2372_v10 = vadd.f32 %v2339_v11, %v2155_v51 }
 0x67c   : >>> { %v2157_v57 = vpop.f32.mrf.mxu1 }
 0x67d   : >>> { %v2580_v31 = vadd.f32 %v2547_v56, %v2372_v10  ;;  %v2550_v63 = vpop.f32.mrf.mxu3  ;;  %v2158_v39 = vadd.f32 %v2157_v57, %v6583_v8  ;;  %v4451_v10 = vld [vmem:[%s5702_s24 + $0x9e] sm:$0xff] }
 0x67e   : >>> { %v4497_v57 = vld [vmem:[%s5702_s24 + $0xb8] sm:$0xff] }
 0x67f   : >>> { %v6263_v59 = vadd.f32 %v2755_v4, %v2580_v31  ;;  %4470 = vmatmul.msk.f32.gmra.mxu1 %vm291_vm0, %v4447_v58  ;;  %4516 = vmatmul.msk.f32.gmra.mxu2 %vm291_vm0, %v6063_v46  ;;  %v2758_v42 = vpop.f32.mrf.mxu0  ;;  %v4543_v4 = vld [vmem:[%s5702_s24 + $0xb9] sm:$0xff] }
 0x680   : >>> { %v6590_v8 = vld [vmem:[#allocation24_spill] sm:$0xff] }
 0x682   : >>> { %v2342_v5 = vpop.f32.mrf.mxu2  ;;  %4563 = vmatmul.msk.f32.gmra.mxu3 %vm291_vm0, %v4540_v6  ;;  %4608 = vmatmul.msk.f32.gmra.mxu0 %vm291_vm0, %v6584_v29  ;;  %v4589_v6 = vld [vmem:[%s5702_s24 + $0xba] sm:$0xff] }
 0x683   : >>> { %v2373_v9 = vadd.f32 %v2342_v5, %v2158_v39 }
 0x684   : >>> { %v2160_v3 = vpop.f32.mrf.mxu1 }
 0x685   : >>> { %v2581_v60 = vadd.f32 %v2550_v63, %v2373_v9  ;;  %v2553_v32 = vpop.f32.mrf.mxu3  ;;  %v2161_v48 = vadd.f32 %v2160_v3, %v6585_v20  ;;  %v4452_v9 = vld [vmem:[%s5702_s24 + $0xa6] sm:$0xff] }
 0x686   : >>> { %v4498_v3 = vld [vmem:[%s5702_s24 + $0xc0] sm:$0xff] }
 0x687   : >>> { %v6274_v13 = vadd.f32 %v2758_v42, %v2581_v60  ;;  %4471 = vmatmul.msk.f32.gmra.mxu1 %vm291_vm0, %v4448_v50  ;;  %4517 = vmatmul.msk.f32.gmra.mxu2 %vm291_vm0, %v6080_v43  ;;  %v2761_v46 = vpop.f32.mrf.mxu0  ;;  %v4544_v42 = vld [vmem:[%s5702_s24 + $0xc1] sm:$0xff]  ;;  %v6591_v60 = vld [vmem:[#allocation18_spill] sm:$0xff] }
 0x68a   : >>> { %v2345_v35 = vpop.f32.mrf.mxu2  ;;  %4564 = vmatmul.msk.f32.gmra.mxu3 %vm291_vm0, %v4541_v37  ;;  %4609 = vmatmul.msk.f32.gmra.mxu0 %vm291_vm0, %v6586_v54  ;;  %v6592_v54 = vld [vmem:[#allocation26_spill] sm:$0xff] }
 0x68b   : >>> { %v2374_v17 = vadd.f32 %v2345_v35, %v2161_v48  ;;  %v4545_v48 = vld [vmem:[%s5702_s24 + $0xc9] sm:$0xff] }
 0x68c   : >>> { %v2163_v62 = vpop.f32.mrf.mxu1  ;;  %v4590_v35 = vld [vmem:[%s5702_s24 + $0xc2] sm:$0xff] }
 0x68d   : >>> { %v2582_v55 = vadd.f32 %v2553_v32, %v2374_v17  ;;  %v2556_v25 = vpop.f32.mrf.mxu3  ;;  %v2164_v41 = vadd.f32 %v2163_v62, %v6587_v12  ;;  %v6320_v32 = vperm.slane %v6591_v60, 0  ;;  %v4499_v12 = vld [vmem:[%s5702_s24 + $0xc8] sm:$0xff] }
 0x68f   : >>> { %v6285_v44 = vadd.f32 %v2761_v46, %v2582_v55  ;;  %4472 = vmatmul.msk.f32.gmra.mxu1 %vm291_vm0, %v4449_v14  ;;  %4518 = vmatmul.msk.f32.gmra.mxu2 %vm291_vm0, %v6097_v1  ;;  %v2764_v43 = vpop.f32.mrf.mxu0 }
 0x692   : >>> { %v2348_v19 = vpop.f32.mrf.mxu2  ;;  %4565 = vmatmul.msk.f32.gmra.mxu3 %vm291_vm0, %v4542_v26  ;;  %4610 = vmatmul.msk.f32.gmra.mxu0 %vm291_vm0, %v6588_v7  ;;  %v4453_v26 = vld [vmem:[%s5702_s24 + $0xae] sm:$0xff] }
 0x693   : >>> { %v2375_v49 = vadd.f32 %v2348_v19, %v2164_v41 }
 0x694   : >>> { %v2166_v27 = vpop.f32.mrf.mxu1 }
 0x695   : >>> { %v2583_v52 = vadd.f32 %v2556_v25, %v2375_v49  ;;  %v2559_v24 = vpop.f32.mrf.mxu3  ;;  %v2167_v23 = vadd.f32 %v2166_v27, %v6589_v21  ;;  %v4546_v27 = vld [vmem:[%s5702_s24 + $0xd1] sm:$0xff] }
 0x697   : >>> { %v6296_v56 = vadd.f32 %v2764_v43, %v2583_v52  ;;  %4473 = vmatmul.msk.f32.gmra.mxu1 %vm291_vm0, %v4450_v34  ;;  %4519 = vmatmul.msk.f32.gmra.mxu2 %vm291_vm0, %v6114_v15  ;;  %v2767_v1 = vpop.f32.mrf.mxu0  ;;  %v4591_v34 = vld [vmem:[%s5702_s24 + $0xca] sm:$0xff]  ;;  %v6593_v52 = vld [vmem:[#allocation28_spill] sm:$0xff] }
 0x69a   : >>> { %v2351_v51 = vpop.f32.mrf.mxu2  ;;  %4566 = vmatmul.msk.f32.gmra.mxu3 %vm291_vm0, %v4543_v4  ;;  %4611 = vmatmul.msk.f32.gmra.mxu0 %vm291_vm0, %v6117_v40 }
 0x69b   : >>> { %v2376_v11 = vadd.f32 %v2351_v51, %v2167_v23 }
 0x69c   : >>> { %v2909_v36 = vpop.f32.mrf.mxu1 }
 0x69d   : >>> { %v2584_v58 = vadd.f32 %v2559_v24, %v2376_v11  ;;  %v3325_v15 = vpop.f32.mrf.mxu3  ;;  %v2978_v40 = vadd.f32 %v2909_v36, %v6590_v8  ;;  %v4454_v11 = vld [vmem:[%s5702_s24 + $0xb6] sm:$0xff] }
 0x69e   : >>> { %v4500_v36 = vld [vmem:[%s5702_s24 + $0xd0] sm:$0xff] }
 0x69f   : >>> { %v6308_v31 = vadd.f32 %v2767_v1, %v2584_v58  ;;  %4474 = vmatmul.msk.f32.gmra.mxu1 %vm291_vm0, %v4451_v10  ;;  %4520 = vmatmul.msk.f32.gmra.mxu2 %vm291_vm0, %v4497_v57  ;;  %v3533_v63 = vpop.f32.mrf.mxu0 }
 0x6a2   : >>> { %v3117_v39 = vpop.f32.mrf.mxu2  ;;  %4567 = vmatmul.msk.f32.gmra.mxu3 %vm291_vm0, %v4544_v42  ;;  %4612 = vmatmul.msk.f32.gmra.mxu0 %vm291_vm0, %v4589_v6  ;;  %v4592_v42 = vld [vmem:[%s5702_s24 + $0xd2] sm:$0xff] }
 0x6a3   : >>> { %v3186_v5 = vadd.f32 %v3117_v39, %v2978_v40  ;;  %v6594_v6 = vld [vmem:[#allocation30_spill] sm:$0xff] }
 0x6a4   : >>> { %v2912_v29 = vpop.f32.mrf.mxu1 }
 0x6a5   : >>> { %v3394_v50 = vadd.f32 %v3325_v15, %v3186_v5  ;;  %v3328_v46 = vpop.f32.mrf.mxu3  ;;  %v2979_v17 = vadd.f32 %v2912_v29, %v6592_v54  ;;  %v6595_v54 = vld [vmem:[#allocation32_spill] sm:$0xff] }
 0x6a7   : >>> { %v3602_v37 = vadd.f32 %v3533_v63, %v3394_v50  ;;  %4475 = vmatmul.msk.f32.gmra.mxu1 %vm291_vm0, %v4452_v9  ;;  %4521 = vmatmul.msk.f32.gmra.mxu2 %vm291_vm0, %v4498_v3  ;;  %v3536_v20 = vpop.f32.mrf.mxu0  ;;  %v4547_v63 = vld [vmem:[%s5702_s24 + $0xd9] sm:$0xff] }
 0x6a8   : >>> { %v4455_v3 = vld [vmem:[%s5702_s24 + $0xbe] sm:$0xff] }
 0x6a9   : >>> { %v3628_v62 = vadd.f32 %v6320_v32, %v3602_v37  ;;  %v4501_v50 = vld [vmem:[%s5702_s24 + $0xd8] sm:$0xff] }
 0x6aa   : >>> { %v3120_v14 = vpop.f32.mrf.mxu2  ;;  %4568 = vmatmul.msk.f32.gmra.mxu3 %vm291_vm0, %v4545_v48  ;;  %4613 = vmatmul.msk.f32.gmra.mxu0 %vm291_vm0, %v4590_v35  ;;  %v4548_v48 = vld [vmem:[%s5702_s24 + $0xe1] sm:$0xff] }
 0x6ab   : >>> { %v3651_v55 = vmax.f32 %v3628_v62, 0.0  ;;  %v3187_v25 = vadd.f32 %v3120_v14, %v2979_v17  ;;  %v4593_v35 = vld [vmem:[%s5702_s24 + $0xda] sm:$0xff] }
 0x6ac   : >>> { %v2915_v43 = vpop.f32.mrf.mxu1 }
 0x6ad   : >>> { %3676 = vst.msk [vmem:[%s6334_s25] sm:$0xff] %vm3675_vm4, %v3651_v55  ;;  %v3395_v41 = vadd.f32 %v3328_v46, %v3187_v25  ;;  %v3331_v19 = vpop.f32.mrf.mxu3  ;;  %v2980_v24 = vadd.f32 %v2915_v43, %v6593_v52 }
 0x6af   : >>> { %v3603_v7 = vadd.f32 %v3536_v20, %v3395_v41  ;;  %4476 = vmatmul.msk.f32.gmra.mxu1 %vm291_vm0, %v4453_v26  ;;  %4522 = vmatmul.msk.f32.gmra.mxu2 %vm291_vm0, %v4499_v12  ;;  %v3539_v49 = vpop.f32.mrf.mxu0  ;;  %v4456_v26 = vld [vmem:[%s5702_s24 + $0xc6] sm:$0xff] }
 0x6b0   : >>> { %v4502_v12 = vld [vmem:[%s5702_s24 + $0xe0] sm:$0xff] }
 0x6b1   : >>> { %v3629_v1 = vadd.f32 %v6320_v32, %v3603_v7 }
 0x6b2   : >>> { %v3123_v4 = vpop.f32.mrf.mxu2  ;;  %4569 = vmatmul.msk.f32.gmra.mxu3 %vm291_vm0, %v4546_v27  ;;  %4614 = vmatmul.msk.f32.gmra.mxu0 %vm291_vm0, %v4591_v34  ;;  %v4549_v27 = vld [vmem:[%s5702_s24 + $0xe9] sm:$0xff] }
 0x6b3   : >>> { %v3652_v21 = vmax.f32 %v3629_v1, 0.0  ;;  %v3188_v23 = vadd.f32 %v3123_v4, %v2980_v24  ;;  %v4594_v34 = vld [vmem:[%s5702_s24 + $0xe2] sm:$0xff] }
 0x6b4   : >>> { %v2918_v51 = vpop.f32.mrf.mxu1 }
 0x6b5   : >>> { %3677 = vst.msk [vmem:[%s6334_s25 + $0x8] sm:$0xff] %vm3675_vm4, %v3652_v21  ;;  %v3396_v10 = vadd.f32 %v3331_v19, %v3188_v23  ;;  %v3334_v57 = vpop.f32.mrf.mxu3  ;;  %v2981_v8 = vadd.f32 %v2918_v51, %v6594_v6  ;;  %v4457_v51 = vld [vmem:[%s5702_s24 + $0xce] sm:$0xff] }
 0x6b7   : >>> { %v3604_v58 = vadd.f32 %v3539_v49, %v3396_v10  ;;  %4477 = vmatmul.msk.f32.gmra.mxu1 %vm291_vm0, %v4454_v11  ;;  %4523 = vmatmul.msk.f32.gmra.mxu2 %vm291_vm0, %v4500_v36  ;;  %v3542_v15 = vpop.f32.mrf.mxu0  ;;  %v4503_v11 = vld [vmem:[%s5702_s24 + $0xe8] sm:$0xff] }
 0x6b9   : >>> { %v3630_v40 = vadd.f32 %v6320_v32, %v3604_v58  ;;  %v4595_v58 = vld [vmem:[%s5702_s24 + $0xea] sm:$0xff] }
 0x6ba   : >>> { %v3126_v39 = vpop.f32.mrf.mxu2  ;;  %4570 = vmatmul.msk.f32.gmra.mxu3 %vm291_vm0, %v4547_v63  ;;  %4615 = vmatmul.msk.f32.gmra.mxu0 %vm291_vm0, %v4592_v42 }
 0x6bb   : >>> { %v3653_v5 = vmax.f32 %v3630_v40, 0.0  ;;  %v3189_v29 = vadd.f32 %v3126_v39, %v2981_v8 }
 0x6bc   : >>> { %v2921_v9 = vpop.f32.mrf.mxu1 }
 0x6bd   : >>> { %3678 = vst.msk [vmem:[%s6334_s25 + $0x10] sm:$0xff] %vm3675_vm4, %v3653_v5  ;;  %v3397_v60 = vadd.f32 %v3334_v57, %v3189_v29  ;;  %v3337_v46 = vpop.f32.mrf.mxu3  ;;  %v2982_v17 = vadd.f32 %v2921_v9, %v6595_v54 }
 0x6bf   : >>> { %v3605_v37 = vadd.f32 %v3542_v15, %v3397_v60  ;;  %4478 = vmatmul.msk.f32.gmra.mxu1 %vm291_vm0, %v4455_v3  ;;  %4524 = vmatmul.msk.f32.gmra.mxu2 %vm291_vm0, %v4501_v50  ;;  %v3545_v20 = vpop.f32.mrf.mxu0 }
 0x6c1   : >>> { %v3631_v62 = vadd.f32 %v6320_v32, %v3605_v37 }
 0x6c2   : >>> { %v3129_v14 = vpop.f32.mrf.mxu2  ;;  %4571 = vmatmul.msk.f32.gmra.mxu3 %vm291_vm0, %v4548_v48  ;;  %4616 = vmatmul.msk.f32.gmra.mxu0 %vm291_vm0, %v4593_v35 }
 0x6c3   : >>> { %v3654_v55 = vmax.f32 %v3631_v62, 0.0  ;;  %v3190_v25 = vadd.f32 %v3129_v14, %v2982_v17 }
 0x6c4   : >>> { %v2924_v43 = vpop.f32.mrf.mxu1 }
 0x6c5   : >>> { %3679 = vst.msk [vmem:[%s6334_s25 + $0x18] sm:$0xff] %vm3675_vm4, %v3654_v55  ;;  %v3398_v41 = vadd.f32 %v3337_v46, %v3190_v25  ;;  %v3340_v19 = vpop.f32.mrf.mxu3  ;;  %v2983_v52 = vadd.f32 %v2924_v43, %v6119_v47 }
 0x6c7   : >>> { %v3606_v7 = vadd.f32 %v3545_v20, %v3398_v41  ;;  %4479 = vmatmul.msk.f32.gmra.mxu1 %vm291_vm0, %v4456_v26  ;;  %4525 = vmatmul.msk.f32.gmra.mxu2 %vm291_vm0, %v4502_v12  ;;  %v3548_v49 = vpop.f32.mrf.mxu0 }
 0x6c9   : >>> { %v3632_v24 = vadd.f32 %v6320_v32, %v3606_v7 }
 0x6ca   : >>> { %v3132_v1 = vpop.f32.mrf.mxu2  ;;  %4572 = vmatmul.msk.f32.gmra.mxu3 %vm291_vm0, %v4549_v27  ;;  %4617 = vmatmul.msk.f32.gmra.mxu0 %vm291_vm0, %v4594_v34 }
 0x6cb   : >>> { %v3655_v4 = vmax.f32 %v3632_v24, 0.0  ;;  %v3191_v21 = vadd.f32 %v3132_v1, %v2983_v52 }
 0x6cc   : >>> { %v2927_v23 = vpop.f32.mrf.mxu1 }
 0x6cd   : >>> { %3680 = vst.msk [vmem:[%s6334_s25 + $0x20] sm:$0xff] %vm3675_vm4, %v3655_v4  ;;  %v3399_v36 = vadd.f32 %v3340_v19, %v3191_v21  ;;  %v3343_v10 = vpop.f32.mrf.mxu3  ;;  %v2984_v15 = vadd.f32 %v2927_v23, %v6131_v16 }
 0x6cf   : >>> { %v3607_v57 = vadd.f32 %v3548_v49, %v3399_v36  ;;  %4480 = vmatmul.msk.f32.gmra.mxu1 %vm291_vm0, %v4457_v51  ;;  %4526 = vmatmul.msk.f32.gmra.mxu2 %vm291_vm0, %v4503_v11  ;;  %v3551_v47 = vpop.f32.mrf.mxu0 }
 0x6d1   : >>> { %v3633_v63 = vadd.f32 %v6320_v32, %v3607_v57 }
 0x6d2   : >>> { %v3135_v42 = vpop.f32.mrf.mxu2  ;;  %4618 = vmatmul.msk.f32.gmra.mxu0 %vm291_vm0, %v4595_v58 }
 0x6d3   : >>> { %v3656_v6 = vmax.f32 %v3633_v63, 0.0  ;;  %v3192_v8 = vadd.f32 %v3135_v42, %v2984_v15 }
 0x6d4   : >>> { %v2930_v40 = vpop.f32.mrf.mxu1 }
 0x6d5   : >>> { %3681 = vst.msk [vmem:[%s6334_s25 + $0x28] sm:$0xff] %vm3675_vm4, %v3656_v6  ;;  %v3400_v39 = vadd.f32 %v3343_v10, %v3192_v8  ;;  %v3346_v5 = vpop.f32.mrf.mxu3  ;;  %v2985_v3 = vadd.f32 %v2930_v40, %v6142_v2 }
 0x6d7   : >>> { %v3608_v29 = vadd.f32 %v3551_v47, %v3400_v39  ;;  %v3554_v9 = vpop.f32.mrf.mxu0 }
 0x6d9   : >>> { %v3634_v50 = vadd.f32 %v6320_v32, %v3608_v29 }
 0x6da   : >>> { %v3138_v16 = vpop.f32.mrf.mxu2 }
 0x6db   : >>> { %v3657_v60 = vmax.f32 %v3634_v50, 0.0  ;;  %v3193_v46 = vadd.f32 %v3138_v16, %v2985_v3 }
 0x6dc   : >>> { %v2933_v37 = vpop.f32.mrf.mxu1 }
 0x6dd   : >>> { %3682 = vst.msk [vmem:[%s6334_s25 + $0x30] sm:$0xff] %vm3675_vm4, %v3657_v60  ;;  %v3401_v20 = vadd.f32 %v3346_v5, %v3193_v46  ;;  %v3349_v48 = vpop.f32.mrf.mxu3  ;;  %v2986_v17 = vadd.f32 %v2933_v37, %v6153_v45 }
 0x6df   : >>> { %v3609_v35 = vadd.f32 %v3554_v9, %v3401_v20  ;;  %v3557_v54 = vpop.f32.mrf.mxu0 }
 0x6e1   : >>> { %v3635_v62 = vadd.f32 %v6320_v32, %v3609_v35 }
 0x6e2   : >>> { %v3141_v14 = vpop.f32.mrf.mxu2 }
 0x6e3   : >>> { %v3658_v2 = vmax.f32 %v3635_v62, 0.0  ;;  %v3194_v55 = vadd.f32 %v3141_v14, %v2986_v17 }
 0x6e4   : >>> { %v2936_v25 = vpop.f32.mrf.mxu1 }
 0x6e5   : >>> { %3683 = vst.msk [vmem:[%s6334_s25 + $0x38] sm:$0xff] %vm3675_vm4, %v3658_v2  ;;  %v3402_v43 = vadd.f32 %v3349_v48, %v3194_v55  ;;  %v3352_v26 = vpop.f32.mrf.mxu3  ;;  %v2987_v19 = vadd.f32 %v2936_v25, %v6164_v53 }
 0x6e7   : >>> { %v3610_v12 = vadd.f32 %v3557_v54, %v3402_v43  ;;  %v3560_v41 = vpop.f32.mrf.mxu0 }
 0x6e9   : >>> { %v3636_v7 = vadd.f32 %v6320_v32, %v3610_v12 }
 0x6ea   : >>> { %v3144_v49 = vpop.f32.mrf.mxu2 }
 0x6eb   : >>> { %v3659_v45 = vmax.f32 %v3636_v7, 0.0  ;;  %v3195_v27 = vadd.f32 %v3144_v49, %v2987_v19 }
 0x6ec   : >>> { %v2939_v34 = vpop.f32.mrf.mxu1 }
 0x6ed   : >>> { %3684 = vst.msk [vmem:[%s6334_s25 + $0x40] sm:$0xff] %vm3675_vm4, %v3659_v45  ;;  %v3403_v52 = vadd.f32 %v3352_v26, %v3195_v27  ;;  %v3355_v24 = vpop.f32.mrf.mxu3  ;;  %v2988_v21 = vadd.f32 %v2939_v34, %v6175_v38 }
 0x6ef   : >>> { %v3611_v1 = vadd.f32 %v3560_v41, %v3403_v52  ;;  %v3563_v4 = vpop.f32.mrf.mxu0 }
 0x6f1   : >>> { %v3637_v23 = vadd.f32 %v6320_v32, %v3611_v1 }
 0x6f2   : >>> { %v3147_v51 = vpop.f32.mrf.mxu2 }
 0x6f3   : >>> { %v3660_v53 = vmax.f32 %v3637_v23, 0.0  ;;  %v3196_v11 = vadd.f32 %v3147_v51, %v2988_v21 }
 0x6f4   : >>> { %v2942_v36 = vpop.f32.mrf.mxu1 }
 0x6f5   : >>> { %3685 = vst.msk [vmem:[%s6334_s25 + $0x48] sm:$0xff] %vm3675_vm4, %v3660_v53  ;;  %v3404_v10 = vadd.f32 %v3355_v24, %v3196_v11  ;;  %v3358_v57 = vpop.f32.mrf.mxu3  ;;  %v2989_v15 = vadd.f32 %v2942_v36, %v6186_v30 }
 0x6f7   : >>> { %v3612_v47 = vadd.f32 %v3563_v4, %v3404_v10  ;;  %v3566_v58 = vpop.f32.mrf.mxu0 }
 0x6f9   : >>> { %v3638_v63 = vadd.f32 %v6320_v32, %v3612_v47 }
 0x6fa   : >>> { %v3150_v42 = vpop.f32.mrf.mxu2 }
 0x6fb   : >>> { %v3661_v38 = vmax.f32 %v3638_v63, 0.0  ;;  %v3197_v6 = vadd.f32 %v3150_v42, %v2989_v15 }
 0x6fc   : >>> { %v2945_v8 = vpop.f32.mrf.mxu1 }
 0x6fd   : >>> { %3686 = vst.msk [vmem:[%s6334_s25 + $0x50] sm:$0xff] %vm3675_vm4, %v3661_v38  ;;  %v3405_v40 = vadd.f32 %v3358_v57, %v3197_v6  ;;  %v3361_v39 = vpop.f32.mrf.mxu3  ;;  %v2990_v9 = vadd.f32 %v2945_v8, %v6197_v0 }
 0x6ff   : >>> { %v3613_v5 = vadd.f32 %v3566_v58, %v3405_v40  ;;  %v3569_v29 = vpop.f32.mrf.mxu0 }
 0x701   : >>> { %v3639_v3 = vadd.f32 %v6320_v32, %v3613_v5 }
 0x702   : >>> { %v3153_v50 = vpop.f32.mrf.mxu2 }
 0x703   : >>> { %v3662_v30 = vmax.f32 %v3639_v3, 0.0  ;;  %v3198_v16 = vadd.f32 %v3153_v50, %v2990_v9 }
 0x704   : >>> { %v2948_v60 = vpop.f32.mrf.mxu1 }
 0x705   : >>> { %3687 = vst.msk [vmem:[%s6334_s25 + $0x58] sm:$0xff] %vm3675_vm4, %v3662_v30  ;;  %v3406_v46 = vadd.f32 %v3361_v39, %v3198_v16  ;;  %v3364_v37 = vpop.f32.mrf.mxu3  ;;  %v2991_v35 = vadd.f32 %v2948_v60, %v6208_v61 }
 0x707   : >>> { %v3614_v20 = vadd.f32 %v3569_v29, %v3406_v46  ;;  %v3572_v48 = vpop.f32.mrf.mxu0 }
 0x709   : >>> { %v3640_v54 = vadd.f32 %v6320_v32, %v3614_v20 }
 0x70a   : >>> { %v3156_v17 = vpop.f32.mrf.mxu2 }
 0x70b   : >>> { %v3663_v0 = vmax.f32 %v3640_v54, 0.0  ;;  %v3199_v62 = vadd.f32 %v3156_v17, %v2991_v35 }
 0x70c   : >>> { %v2951_v14 = vpop.f32.mrf.mxu1 }
 0x70d   : >>> { %3688 = vst.msk [vmem:[%s6334_s25 + $0x60] sm:$0xff] %vm3675_vm4, %v3663_v0  ;;  %v3407_v2 = vadd.f32 %v3364_v37, %v3199_v62  ;;  %v3367_v55 = vpop.f32.mrf.mxu3  ;;  %v2992_v26 = vadd.f32 %v2951_v14, %v6219_v22 }
 0x70f   : >>> { %v3615_v25 = vadd.f32 %v3572_v48, %v3407_v2  ;;  %v3575_v43 = vpop.f32.mrf.mxu0 }
 0x711   : >>> { %v3641_v12 = vadd.f32 %v6320_v32, %v3615_v25 }
 0x712   : >>> { %v3159_v41 = vpop.f32.mrf.mxu2 }
 0x713   : >>> { %v3664_v61 = vmax.f32 %v3641_v12, 0.0  ;;  %v3200_v19 = vadd.f32 %v3159_v41, %v2992_v26 }
 0x714   : >>> { %v2954_v7 = vpop.f32.mrf.mxu1 }
 0x715   : >>> { %3689 = vst.msk [vmem:[%s6334_s25 + $0x68] sm:$0xff] %vm3675_vm4, %v3664_v61  ;;  %v3408_v49 = vadd.f32 %v3367_v55, %v3200_v19  ;;  %v3370_v45 = vpop.f32.mrf.mxu3  ;;  %v2993_v52 = vadd.f32 %v2954_v7, %v6230_v33 }
 0x717   : >>> { %v3616_v27 = vadd.f32 %v3575_v43, %v3408_v49  ;;  %v3578_v34 = vpop.f32.mrf.mxu0 }
 0x719   : >>> { %v3642_v24 = vadd.f32 %v6320_v32, %v3616_v27 }
 0x71a   : >>> { %v3162_v1 = vpop.f32.mrf.mxu2 }
 0x71b   : >>> { %v3665_v22 = vmax.f32 %v3642_v24, 0.0  ;;  %v3201_v4 = vadd.f32 %v3162_v1, %v2993_v52 }
 0x71c   : >>> { %v2957_v21 = vpop.f32.mrf.mxu1 }
 0x71d   : >>> { %3690 = vst.msk [vmem:[%s6334_s25 + $0x70] sm:$0xff] %vm3675_vm4, %v3665_v22  ;;  %v3409_v23 = vadd.f32 %v3370_v45, %v3201_v4  ;;  %v3373_v51 = vpop.f32.mrf.mxu3  ;;  %v2994_v36 = vadd.f32 %v2957_v21, %v6241_v18 }
 0x71f   : >>> { %v3617_v53 = vadd.f32 %v3578_v34, %v3409_v23  ;;  %v3581_v11 = vpop.f32.mrf.mxu0 }
 0x721   : >>> { %v3643_v10 = vadd.f32 %v6320_v32, %v3617_v53 }
 0x722   : >>> { %v3165_v57 = vpop.f32.mrf.mxu2 }
 0x723   : >>> { %v3666_v33 = vmax.f32 %v3643_v10, 0.0  ;;  %v3202_v47 = vadd.f32 %v3165_v57, %v2994_v36 }
 0x724   : >>> { %v2960_v58 = vpop.f32.mrf.mxu1 }
 0x725   : >>> { %3691 = vst.msk [vmem:[%s6334_s25 + $0x78] sm:$0xff] %vm3675_vm4, %v3666_v33  ;;  %v3410_v15 = vadd.f32 %v3373_v51, %v3202_v47  ;;  %v3376_v63 = vpop.f32.mrf.mxu3  ;;  %v2995_v6 = vadd.f32 %v2960_v58, %v6252_v28 }
 0x727   : >>> { %v3618_v42 = vadd.f32 %v3581_v11, %v3410_v15  ;;  %v3584_v38 = vpop.f32.mrf.mxu0 }
 0x729   : >>> { %v3644_v8 = vadd.f32 %v6320_v32, %v3618_v42 }
 0x72a   : >>> { %v3168_v40 = vpop.f32.mrf.mxu2 }
 0x72b   : >>> { %v3667_v18 = vmax.f32 %v3644_v8, 0.0  ;;  %v3203_v39 = vadd.f32 %v3168_v40, %v2995_v6 }
 0x72c   : >>> { %v2963_v5 = vpop.f32.mrf.mxu1 }
 0x72d   : >>> { %3692 = vst.msk [vmem:[%s6334_s25 + $0x80] sm:$0xff] %vm3675_vm4, %v3667_v18  ;;  %v3411_v29 = vadd.f32 %v3376_v63, %v3203_v39  ;;  %v3379_v9 = vpop.f32.mrf.mxu3  ;;  %v2996_v30 = vadd.f32 %v2963_v5, %v6263_v59 }
 0x72f   : >>> { %v3619_v3 = vadd.f32 %v3584_v38, %v3411_v29  ;;  %v3587_v50 = vpop.f32.mrf.mxu0 }
 0x731   : >>> { %v3645_v16 = vadd.f32 %v6320_v32, %v3619_v3 }
 0x732   : >>> { %v3171_v60 = vpop.f32.mrf.mxu2 }
 0x733   : >>> { %v3668_v28 = vmax.f32 %v3645_v16, 0.0  ;;  %v3204_v46 = vadd.f32 %v3171_v60, %v2996_v30 }
 0x734   : >>> { %v2966_v37 = vpop.f32.mrf.mxu1 }
 0x735   : >>> { %3693 = vst.msk [vmem:[%s6334_s25 + $0x88] sm:$0xff] %vm3675_vm4, %v3668_v28  ;;  %v3412_v20 = vadd.f32 %v3379_v9, %v3204_v46  ;;  %v3382_v48 = vpop.f32.mrf.mxu3  ;;  %v2997_v17 = vadd.f32 %v2966_v37, %v6274_v13 }
 0x737   : >>> { %v3620_v35 = vadd.f32 %v3587_v50, %v3412_v20  ;;  %v3590_v54 = vpop.f32.mrf.mxu0 }
 0x739   : >>> { %v3646_v0 = vadd.f32 %v6320_v32, %v3620_v35 }
 0x73a   : >>> { %v3174_v62 = vpop.f32.mrf.mxu2 }
 0x73b   : >>> { %v3669_v59 = vmax.f32 %v3646_v0, 0.0  ;;  %v3205_v14 = vadd.f32 %v3174_v62, %v2997_v17 }
 0x73c   : >>> { %v2969_v2 = vpop.f32.mrf.mxu1 }
 0x73d   : >>> { %3694 = vst.msk [vmem:[%s6334_s25 + $0x90] sm:$0xff] %vm3675_vm4, %v3669_v59  ;;  %v3413_v55 = vadd.f32 %v3382_v48, %v3205_v14  ;;  %v3385_v25 = vpop.f32.mrf.mxu3  ;;  %v2998_v12 = vadd.f32 %v2969_v2, %v6285_v44 }
 0x73f   : >>> { %v3621_v43 = vadd.f32 %v3590_v54, %v3413_v55  ;;  %v3593_v26 = vpop.f32.mrf.mxu0 }
 0x741   : >>> { %v3647_v41 = vadd.f32 %v6320_v32, %v3621_v43 }
 0x742   : >>> { %v3177_v61 = vpop.f32.mrf.mxu2 }
 0x743   : >>> { %v3670_v13 = vmax.f32 %v3647_v41, 0.0  ;;  %v3206_v19 = vadd.f32 %v3177_v61, %v2998_v12 }
 0x744   : >>> { %v2972_v7 = vpop.f32.mrf.mxu1 }
 0x745   : >>> { %3695 = vst.msk [vmem:[%s6334_s25 + $0x98] sm:$0xff] %vm3675_vm4, %v3670_v13  ;;  %v3414_v49 = vadd.f32 %v3385_v25, %v3206_v19  ;;  %v3388_v27 = vpop.f32.mrf.mxu3  ;;  %v2999_v34 = vadd.f32 %v2972_v7, %v6296_v56 }
 0x747   : >>> { %v3622_v45 = vadd.f32 %v3593_v26, %v3414_v49  ;;  %v3596_v1 = vpop.f32.mrf.mxu0 }
 0x749   : >>> { %v3648_v52 = vadd.f32 %v6320_v32, %v3622_v45 }
 0x74a   : >>> { %v3180_v24 = vpop.f32.mrf.mxu2 }
 0x74b   : >>> { %v3671_v44 = vmax.f32 %v3648_v52, 0.0  ;;  %v3207_v22 = vadd.f32 %v3180_v24, %v2999_v34 }
 0x74c   : >>> { %v2975_v21 = vpop.f32.mrf.mxu1 }
 0x74d   : >>> { %3696 = vst.msk [vmem:[%s6334_s25 + $0xa0] sm:$0xff] %vm3675_vm4, %v3671_v44  ;;  %v3415_v4 = vadd.f32 %v3388_v27, %v3207_v22  ;;  %v3000_v51 = vadd.f32 %v2975_v21, %v6308_v31  ;;  %v3391_v36 = vpop.f32.mrf.mxu3 }
 0x74f   : >>> { %v3623_v23 = vadd.f32 %v3596_v1, %v3415_v4  ;;  %v3599_v57 = vpop.f32.mrf.mxu0 }
 0x751   : >>> { %v3649_v53 = vadd.f32 %v6320_v32, %v3623_v23 }
 0x752   : >>> { %v3183_v11 = vpop.f32.mrf.mxu2 }
 0x753   : >>> { %v3672_v56 = vmax.f32 %v3649_v53, 0.0  ;;  %v3208_v10 = vadd.f32 %v3183_v11, %v3000_v51 }
 0x755   : >>> { %3697 = vst.msk [vmem:[%s6334_s25 + $0xa8] sm:$0xff] %vm3675_vm4, %v3672_v56  ;;  %v3416_v33 = vadd.f32 %v3391_v36, %v3208_v10 }
 0x757   : >>> { %v3624_v47 = vadd.f32 %v3599_v57, %v3416_v33 }
 0x759   : >>> { %v3650_v58 = vadd.f32 %v6320_v32, %v3624_v47  ;;  %1798 = sbr.rel (!%p1796_p8) target bundleno = 1327 (0x52f), region = 156 }
 0x75b   : >>> { %v3673_v15 = vmax.f32 %v3650_v58, 0.0 }
 0x75d   : >>> { %3698 = vst.msk [vmem:[%s6334_s25 + $0xb0] sm:$0xff] %vm3675_vm4, %v3673_v15 }
 0x764   : >> { %v3699_v31 = vld [vmem:[#allocation3] sm:$0xff]  ;;  %v3700_v42 = vld [vmem:[#allocation3 + $0x8] sm:$0xff]  ;;  %v3701_v8 = vld [vmem:[#allocation3 + $0x10] sm:$0xff] }
 0x765   : >> { %v3702_v63 = vld [vmem:[#allocation3 + $0x1c] sm:$0xff]  ;;  %v3703_v6 = vld [vmem:[#allocation3 + $0x24] sm:$0xff]  ;;  %v3704_v40 = vld [vmem:[#allocation3 + $0x2c] sm:$0xff] }
 0x766   : >> { %v3705_v38 = vmax.f32 %v3699_v31, %v3702_v63  ;;  %v3706_v18 = vmax.f32 %v3700_v42, %v3703_v6  ;;  %v3707_v39 = vmax.f32 %v3701_v8, %v3704_v40  ;;  %v3712_v5 = vld [vmem:[#allocation3 + $0x38] sm:$0xff]  ;;  %v3713_v29 = vld [vmem:[#allocation3 + $0x40] sm:$0xff]  ;;  %v3714_v50 = vld [vmem:[#allocation3 + $0x48] sm:$0xff] }
 0x767   : >> { %v3715_v32 = vld [vmem:[#allocation3 + $0x54] sm:$0xff]  ;;  %v3716_v3 = vld [vmem:[#allocation3 + $0x5c] sm:$0xff]  ;;  %v3717_v30 = vld [vmem:[#allocation3 + $0x64] sm:$0xff] }
 0x768   : >> { %3709 = vst.msk [vmem:[#allocation4] sm:$0xff] %vm3675_vm4, %v3705_v38  ;;  %v3718_v9 = vmax.f32 %v3712_v5, %v3715_v32  ;;  %v3719_v16 = vmax.f32 %v3713_v29, %v3716_v3  ;;  %v3720_v60 = vmax.f32 %v3714_v50, %v3717_v30  ;;  %v3724_v28 = vld [vmem:[#allocation3 + $0x70] sm:$0xff]  ;;  %v3725_v37 = vld [vmem:[#allocation3 + $0x78] sm:$0xff]  ;;  %v3726_v35 = vld [vmem:[#allocation3 + $0x80] sm:$0xff] }
 0x769   : >> { %3710 = vst.msk [vmem:[#allocation4 + $0x8] sm:$0xff] %vm3675_vm4, %v3706_v18  ;;  %v3727_v46 = vld [vmem:[#allocation3 + $0x8c] sm:$0xff]  ;;  %v3728_v48 = vld [vmem:[#allocation3 + $0x94] sm:$0xff]  ;;  %v3729_v54 = vld [vmem:[#allocation3 + $0x9c] sm:$0xff] }
 0x76a   : >> { %3711 = vst.msk [vmem:[#allocation4 + $0x10] sm:$0xff] %vm3675_vm4, %v3707_v39  ;;  %v3730_v20 = vmax.f32 %v3724_v28, %v3727_v46  ;;  %v3731_v17 = vmax.f32 %v3725_v37, %v3728_v48  ;;  %v3736_v0 = vld [vmem:[#allocation3 + $0xa8] sm:$0xff]  ;;  %v3737_v59 = vld [vmem:[#allocation3 + $0xb0] sm:$0xff]  ;;  %v3732_v14 = vmax.f32 %v3726_v35, %v3729_v54  ;;  %v3738_v55 = vld [vmem:[#allocation3 + $0xb8] sm:$0xff] }
 0x76b   : >> { %3721 = vst.msk [vmem:[#allocation4 + $0x18] sm:$0xff] %vm3675_vm4, %v3718_v9  ;;  %v3739_v62 = vld [vmem:[#allocation3 + $0xc4] sm:$0xff]  ;;  %v3740_v2 = vld [vmem:[#allocation3 + $0xcc] sm:$0xff]  ;;  %v3741_v25 = vld [vmem:[#allocation3 + $0xd4] sm:$0xff] }
 0x76c   : >> { %3722 = vst.msk [vmem:[#allocation4 + $0x20] sm:$0xff] %vm3675_vm4, %v3719_v16  ;;  %v3742_v43 = vmax.f32 %v3736_v0, %v3739_v62  ;;  %v3748_v26 = vld [vmem:[#allocation3 + $0xe0] sm:$0xff]  ;;  %v3743_v41 = vmax.f32 %v3737_v59, %v3740_v2  ;;  %v3749_v61 = vld [vmem:[#allocation3 + $0xe8] sm:$0xff]  ;;  %v3744_v19 = vmax.f32 %v3738_v55, %v3741_v25  ;;  %v3750_v7 = vld [vmem:[#allocation3 + $0xf0] sm:$0xff] }
 0x76d   : >> { %3723 = vst.msk [vmem:[#allocation4 + $0x28] sm:$0xff] %vm3675_vm4, %v3720_v60  ;;  %v3751_v12 = vld [vmem:[#allocation3 + $0xfc] sm:$0xff]  ;;  %v3752_v13 = vld [vmem:[#allocation3 + $0x104] sm:$0xff]  ;;  %v3753_v49 = vld [vmem:[#allocation3 + $0x10c] sm:$0xff] }
 0x76e   : >> { %3733 = vst.msk [vmem:[#allocation4 + $0x30] sm:$0xff] %vm3675_vm4, %v3730_v20  ;;  %v3754_v45 = vmax.f32 %v3748_v26, %v3751_v12  ;;  %v3760_v27 = vld [vmem:[#allocation3 + $0x118] sm:$0xff]  ;;  %v3755_v52 = vmax.f32 %v3749_v61, %v3752_v13  ;;  %v3761_v24 = vld [vmem:[#allocation3 + $0x120] sm:$0xff]  ;;  %v3756_v44 = vmax.f32 %v3750_v7, %v3753_v49  ;;  %v3762_v22 = vld [vmem:[#allocation3 + $0x128] sm:$0xff] }
 0x76f   : >> { %3734 = vst.msk [vmem:[#allocation4 + $0x38] sm:$0xff] %vm3675_vm4, %v3731_v17  ;;  %v3763_v34 = vld [vmem:[#allocation3 + $0x134] sm:$0xff]  ;;  %v3764_v1 = vld [vmem:[#allocation3 + $0x13c] sm:$0xff]  ;;  %v3765_v4 = vld [vmem:[#allocation3 + $0x144] sm:$0xff] }
 0x770   : >> { %3735 = vst.msk [vmem:[#allocation4 + $0x40] sm:$0xff] %vm3675_vm4, %v3732_v14  ;;  %v3766_v21 = vmax.f32 %v3760_v27, %v3763_v34  ;;  %v3772_v23 = vld [vmem:[#allocation3 + $0x150] sm:$0xff]  ;;  %v3767_v53 = vmax.f32 %v3761_v24, %v3764_v1  ;;  %v3773_v11 = vld [vmem:[#allocation3 + $0x158] sm:$0xff]  ;;  %v3768_v56 = vmax.f32 %v3762_v22, %v3765_v4  ;;  %v3774_v10 = vld [vmem:[#allocation3 + $0x160] sm:$0xff] }
 0x771   : >> { %3745 = vst.msk [vmem:[#allocation4 + $0x48] sm:$0xff] %vm3675_vm4, %v3742_v43  ;;  %v3775_v51 = vld [vmem:[#allocation3 + $0x16c] sm:$0xff]  ;;  %v3776_v36 = vld [vmem:[#allocation3 + $0x174] sm:$0xff]  ;;  %v3777_v57 = vld [vmem:[#allocation3 + $0x17c] sm:$0xff] }
 0x772   : >> { %3746 = vst.msk [vmem:[#allocation4 + $0x50] sm:$0xff] %vm3675_vm4, %v3743_v41  ;;  %v3778_v33 = vmax.f32 %v3772_v23, %v3775_v51  ;;  %v3784_v47 = vld [vmem:[#allocation3 + $0x188] sm:$0xff]  ;;  %v3779_v15 = vmax.f32 %v3773_v11, %v3776_v36  ;;  %v3785_v31 = vld [vmem:[#allocation3 + $0x190] sm:$0xff]  ;;  %v3780_v42 = vmax.f32 %v3774_v10, %v3777_v57  ;;  %v3786_v38 = vld [vmem:[#allocation3 + $0x198] sm:$0xff] }
 0x773   : >> { %3747 = vst.msk [vmem:[#allocation4 + $0x58] sm:$0xff] %vm3675_vm4, %v3744_v19  ;;  %v3787_v58 = vld [vmem:[#allocation3 + $0x1a4] sm:$0xff]  ;;  %v3788_v63 = vld [vmem:[#allocation3 + $0x1ac] sm:$0xff]  ;;  %v3789_v6 = vld [vmem:[#allocation3 + $0x1b4] sm:$0xff] }
 0x774   : >> { %3757 = vst.msk [vmem:[#allocation4 + $0x60] sm:$0xff] %vm3675_vm4, %v3754_v45  ;;  %v3790_v8 = vmax.f32 %v3784_v47, %v3787_v58  ;;  %v3796_v40 = vld [vmem:[#allocation3 + $0x1c0] sm:$0xff]  ;;  %v3791_v39 = vmax.f32 %v3785_v31, %v3788_v63  ;;  %v3797_v5 = vld [vmem:[#allocation3 + $0x1c8] sm:$0xff]  ;;  %v3792_v29 = vmax.f32 %v3786_v38, %v3789_v6  ;;  %v3798_v9 = vld [vmem:[#allocation3 + $0x1d0] sm:$0xff] }
 0x775   : >> { %3758 = vst.msk [vmem:[#allocation4 + $0x68] sm:$0xff] %vm3675_vm4, %v3755_v52  ;;  %v3799_v18 = vld [vmem:[#allocation3 + $0x1dc] sm:$0xff]  ;;  %v3800_v32 = vld [vmem:[#allocation3 + $0x1e4] sm:$0xff]  ;;  %v3801_v3 = vld [vmem:[#allocation3 + $0x1ec] sm:$0xff] }
 0x776   : >> { %3759 = vst.msk [vmem:[#allocation4 + $0x70] sm:$0xff] %vm3675_vm4, %v3756_v44  ;;  %v3802_v50 = vmax.f32 %v3796_v40, %v3799_v18  ;;  %v3808_v30 = vld [vmem:[#allocation3 + $0x1f8] sm:$0xff]  ;;  %v3803_v60 = vmax.f32 %v3797_v5, %v3800_v32  ;;  %v3809_v28 = vld [vmem:[#allocation3 + $0x200] sm:$0xff]  ;;  %v3810_v37 = vld [vmem:[#allocation3 + $0x208] sm:$0xff]  ;;  %v3804_v20 = vmax.f32 %v3798_v9, %v3801_v3 }
 0x777   : >> { %3769 = vst.msk [vmem:[#allocation4 + $0x78] sm:$0xff] %vm3675_vm4, %v3766_v21  ;;  %v3811_v16 = vld [vmem:[#allocation3 + $0x214] sm:$0xff]  ;;  %v3812_v46 = vld [vmem:[#allocation3 + $0x21c] sm:$0xff]  ;;  %v3813_v48 = vld [vmem:[#allocation3 + $0x224] sm:$0xff] }
 0x778   : >> { %3770 = vst.msk [vmem:[#allocation4 + $0x80] sm:$0xff] %vm3675_vm4, %v3767_v53  ;;  %v3820_v35 = vld [vmem:[#allocation3 + $0x230] sm:$0xff]  ;;  %v3814_v17 = vmax.f32 %v3808_v30, %v3811_v16  ;;  %v3821_v0 = vld [vmem:[#allocation3 + $0x238] sm:$0xff]  ;;  %v3822_v59 = vld [vmem:[#allocation3 + $0x240] sm:$0xff]  ;;  %v3815_v14 = vmax.f32 %v3809_v28, %v3812_v46  ;;  %v3816_v43 = vmax.f32 %v3810_v37, %v3813_v48 }
 0x779   : >> { %3771 = vst.msk [vmem:[#allocation4 + $0x88] sm:$0xff] %vm3675_vm4, %v3768_v56  ;;  %v3823_v54 = vld [vmem:[#allocation3 + $0x24c] sm:$0xff]  ;;  %v3824_v62 = vld [vmem:[#allocation3 + $0x254] sm:$0xff]  ;;  %v3825_v2 = vld [vmem:[#allocation3 + $0x25c] sm:$0xff] }
 0x77a   : >> { %3781 = vst.msk [vmem:[#allocation4 + $0x90] sm:$0xff] %vm3675_vm4, %v3778_v33  ;;  %v3832_v55 = vld [vmem:[#allocation3 + $0x268] sm:$0xff]  ;;  %v3833_v26 = vld [vmem:[#allocation3 + $0x270] sm:$0xff]  ;;  %v3826_v61 = vmax.f32 %v3820_v35, %v3823_v54  ;;  %v3827_v49 = vmax.f32 %v3821_v0, %v3824_v62  ;;  %v3834_v45 = vld [vmem:[#allocation3 + $0x278] sm:$0xff]  ;;  %v3828_v52 = vmax.f32 %v3822_v59, %v3825_v2 }
 0x77b   : >> { %3782 = vst.msk [vmem:[#allocation4 + $0x98] sm:$0xff] %vm3675_vm4, %v3779_v15  ;;  %v3835_v25 = vld [vmem:[#allocation3 + $0x284] sm:$0xff]  ;;  %v3836_v13 = vld [vmem:[#allocation3 + $0x28c] sm:$0xff]  ;;  %v3837_v24 = vld [vmem:[#allocation3 + $0x294] sm:$0xff] }
 0x77c   : >> { %3783 = vst.msk [vmem:[#allocation4 + $0xa0] sm:$0xff] %vm3675_vm4, %v3780_v42  ;;  %v3844_v12 = vld [vmem:[#allocation4] ss:$2 sm:$0xff]  ;;  %v3880_v41 = vld [vmem:[#allocation4 + $0x1] ss:$2 sm:$0xff]  ;;  %v3838_v4 = vmax.f32 %v3832_v55, %v3835_v25  ;;  %v3839_v53 = vmax.f32 %v3833_v26, %v3836_v13  ;;  %v3840_v10 = vmax.f32 %v3834_v45, %v3837_v24 }
 0x77d   : >> { %3793 = vst.msk [vmem:[#allocation4 + $0xa8] sm:$0xff] %vm3675_vm4, %v3790_v8  ;;  %v3846_v19 = vld [vmem:[#allocation4 + $0x10] ss:$2 sm:$0xff]  ;;  %v3882_v7 = vld [vmem:[#allocation4 + $0x11] ss:$2 sm:$0xff]  ;;  %v3915_v1 = vmax.f32 %v3844_v12, %v3880_v41 }
 0x77e   : >> { %3794 = vst.msk [vmem:[#allocation4 + $0xb0] sm:$0xff] %vm3675_vm4, %v3791_v39  ;;  %v3848_v27 = vld [vmem:[#allocation4 + $0x20] ss:$2 sm:$0xff]  ;;  %v3884_v34 = vld [vmem:[#allocation4 + $0x21] ss:$2 sm:$0xff]  ;;  %v3916_v21 = vmax.f32 %v3846_v19, %v3882_v7 }
 0x77f   : >> { %3795 = vst.msk [vmem:[#allocation4 + $0xb8] sm:$0xff] %vm3675_vm4, %v3792_v29  ;;  %v3850_v44 = vld [vmem:[#allocation4 + $0x30] ss:$2 sm:$0xff]  ;;  %v3886_v22 = vld [vmem:[#allocation4 + $0x31] ss:$2 sm:$0xff]  ;;  %v3917_v11 = vmax.f32 %v3848_v27, %v3884_v34  ;;  %v3933_v58 = vpack.c.bf16 %v3915_v1, %v3915_v1 }
 0x780   : >> { %3805 = vst.msk [vmem:[#allocation4 + $0xc0] sm:$0xff] %vm3675_vm4, %v3802_v50  ;;  %v3852_v23 = vld [vmem:[#allocation4 + $0x40] ss:$2 sm:$0xff]  ;;  %v3888_v51 = vld [vmem:[#allocation4 + $0x41] ss:$2 sm:$0xff]  ;;  %v3918_v57 = vmax.f32 %v3850_v44, %v3886_v22  ;;  %v3934_v42 = vpack.c.bf16 %v3916_v21, %v3916_v21 }
 0x781   : >> { %3806 = vst.msk [vmem:[#allocation4 + $0xc8] sm:$0xff] %vm3675_vm4, %v3803_v60  ;;  %v3854_v36 = vld [vmem:[#allocation4 + $0x50] ss:$2 sm:$0xff]  ;;  %v3890_v56 = vld [vmem:[#allocation4 + $0x51] ss:$2 sm:$0xff]  ;;  %v3919_v15 = vmax.f32 %v3852_v23, %v3888_v51  ;;  %v3935_v40 = vpack.c.bf16 %v3917_v11, %v3917_v11 }
 0x782   : >> { %3807 = vst.msk [vmem:[#allocation4 + $0xd0] sm:$0xff] %vm3675_vm4, %v3804_v20  ;;  %v3856_v33 = vld [vmem:[#allocation4 + $0x60] ss:$2 sm:$0xff]  ;;  %v3892_v47 = vld [vmem:[#allocation4 + $0x61] ss:$2 sm:$0xff]  ;;  %v3920_v38 = vmax.f32 %v3854_v36, %v3890_v56  ;;  %v3936_v32 = vpack.c.bf16 %v3918_v57, %v3918_v57 }
 0x783   : >> { %3817 = vst.msk [vmem:[#allocation4 + $0xd8] sm:$0xff] %vm3675_vm4, %v3814_v17  ;;  %v3858_v31 = vld [vmem:[#allocation4 + $0x70] ss:$2 sm:$0xff]  ;;  %v3894_v63 = vld [vmem:[#allocation4 + $0x71] ss:$2 sm:$0xff]  ;;  %v3921_v18 = vmax.f32 %v3856_v33, %v3892_v47  ;;  %v3937_v50 = vpack.c.bf16 %v3919_v15, %v3919_v15 }
 0x784   : >> { %3818 = vst.msk [vmem:[#allocation4 + $0xe0] sm:$0xff] %vm3675_vm4, %v3815_v14  ;;  %v3860_v6 = vld [vmem:[#allocation4 + $0x80] ss:$2 sm:$0xff]  ;;  %v3896_v8 = vld [vmem:[#allocation4 + $0x81] ss:$2 sm:$0xff]  ;;  %v3922_v29 = vmax.f32 %v3858_v31, %v3894_v63  ;;  %v3938_v28 = vpack.c.bf16 %v3920_v38, %v3920_v38 }
 0x785   : >> { %3819 = vst.msk [vmem:[#allocation4 + $0xe8] sm:$0xff] %vm3675_vm4, %v3816_v43  ;;  %v3862_v39 = vld [vmem:[#allocation4 + $0x90] ss:$2 sm:$0xff]  ;;  %v3898_v5 = vld [vmem:[#allocation4 + $0x91] ss:$2 sm:$0xff]  ;;  %v3923_v30 = vmax.f32 %v3860_v6, %v3896_v8  ;;  %v3939_v48 = vpack.c.bf16 %v3921_v18, %v3921_v18 }
 0x786   : >> { %3829 = vst.msk [vmem:[#allocation4 + $0xf0] sm:$0xff] %vm3675_vm4, %v3826_v61  ;;  %v3864_v9 = vld [vmem:[#allocation4 + $0xa0] ss:$2 sm:$0xff]  ;;  %v3900_v3 = vld [vmem:[#allocation4 + $0xa1] ss:$2 sm:$0xff]  ;;  %v3924_v46 = vmax.f32 %v3862_v39, %v3898_v5  ;;  %v3940_v0 = vpack.c.bf16 %v3922_v29, %v3922_v29 }
 0x787   : >> { %3830 = vst.msk [vmem:[#allocation4 + $0xf8] sm:$0xff] %vm3675_vm4, %v3827_v49  ;;  %v3866_v16 = vld [vmem:[#allocation4 + $0xb0] ss:$2 sm:$0xff]  ;;  %v3902_v60 = vld [vmem:[#allocation4 + $0xb1] ss:$2 sm:$0xff]  ;;  %v3925_v35 = vmax.f32 %v3864_v9, %v3900_v3  ;;  %v3941_v2 = vpack.c.bf16 %v3923_v30, %v3923_v30 }
 0x788   : >> { %3831 = vst.msk [vmem:[#allocation4 + $0x100] sm:$0xff] %vm3675_vm4, %v3828_v52  ;;  %v3868_v37 = vld [vmem:[#allocation4 + $0xc0] ss:$2 sm:$0xff]  ;;  %v3904_v20 = vld [vmem:[#allocation4 + $0xc1] ss:$2 sm:$0xff]  ;;  %v3926_v62 = vmax.f32 %v3866_v16, %v3902_v60  ;;  %v3942_v26 = vpack.c.bf16 %v3924_v46, %v3924_v46 }
 0x789   : >> { %3841 = vst.msk [vmem:[#allocation4 + $0x108] sm:$0xff] %vm3675_vm4, %v3838_v4  ;;  %v3927_v55 = vmax.f32 %v3868_v37, %v3904_v20  ;;  %v3943_v13 = vpack.c.bf16 %v3925_v35, %v3925_v35 }
 0x78a   : >> { %3842 = vst.msk [vmem:[#allocation4 + $0x110] sm:$0xff] %vm3675_vm4, %v3839_v53  ;;  %v3870_v54 = vld [vmem:[#allocation4 + $0xd0] ss:$2 sm:$0xff]  ;;  %v3906_v17 = vld [vmem:[#allocation4 + $0xd1] ss:$2 sm:$0xff]  ;;  %v3944_v45 = vpack.c.bf16 %v3926_v62, %v3926_v62 }
 0x78b   : >> { %3843 = vst.msk [vmem:[#allocation4 + $0x118] sm:$0xff] %vm3675_vm4, %v3840_v10  ;;  %v3928_v12 = vmax.f32 %v3870_v54, %v3906_v17  ;;  %v3945_v34 = vpack.c.bf16 %v3927_v55, %v3927_v55 }
 0x78c   : >> { %3955 = vst.msk [vmem:[%s6500_s22] sm:$0xf] %vm3954_vm5, %v3933_v58  ;;  %v3872_v59 = vld [vmem:[#allocation4 + $0xe0] ss:$2 sm:$0xff]  ;;  %v3908_v14 = vld [vmem:[#allocation4 + $0xe1] ss:$2 sm:$0xff] }
 0x78d   : >> { %3956 = vst.msk [vmem:[%s6500_s22 + $0x4] sm:$0xf] %vm3954_vm5, %v3934_v42  ;;  %v3929_v19 = vmax.f32 %v3872_v59, %v3908_v14  ;;  %v3946_v24 = vpack.c.bf16 %v3928_v12, %v3928_v12 }
 0x78e   : >> { %3957 = vst.msk [vmem:[%s6500_s22 + $0x8] sm:$0xf] %vm3954_vm5, %v3935_v40  ;;  %v3874_v25 = vld [vmem:[#allocation4 + $0xf0] ss:$2 sm:$0xff]  ;;  %v3910_v43 = vld [vmem:[#allocation4 + $0xf1] ss:$2 sm:$0xff] }
 0x78f   : >> { %3958 = vst.msk [vmem:[%s6500_s22 + $0xc] sm:$0xf] %vm3954_vm5, %v3936_v32  ;;  %v3930_v27 = vmax.f32 %v3874_v25, %v3910_v43  ;;  %v3947_v44 = vpack.c.bf16 %v3929_v19, %v3929_v19 }
 0x790   : >> { %3959 = vst.msk [vmem:[%s6500_s22 + $0x10] sm:$0xf] %vm3954_vm5, %v3937_v50  ;;  %v3876_v41 = vld [vmem:[#allocation4 + $0x100] ss:$2 sm:$0xff]  ;;  %v3912_v61 = vld [vmem:[#allocation4 + $0x101] ss:$2 sm:$0xff] }
 0x791   : >> { %3960 = vst.msk [vmem:[%s6500_s22 + $0x14] sm:$0xf] %vm3954_vm5, %v3938_v28  ;;  %v3931_v52 = vmax.f32 %v3876_v41, %v3912_v61  ;;  %v3948_v22 = vpack.c.bf16 %v3930_v27, %v3930_v27 }
 0x792   : >> { %3961 = vst.msk [vmem:[%s6500_s22 + $0x18] sm:$0xf] %vm3954_vm5, %v3939_v48  ;;  %v3878_v7 = vld [vmem:[#allocation4 + $0x110] ss:$2 sm:$0xff]  ;;  %v3914_v49 = vld [vmem:[#allocation4 + $0x111] ss:$2 sm:$0xff] }
 0x793   : >> { %3962 = vst.msk [vmem:[%s6500_s22 + $0x1c] sm:$0xf] %vm3954_vm5, %v3940_v0  ;;  %v3932_v1 = vmax.f32 %v3878_v7, %v3914_v49  ;;  %v3949_v4 = vpack.c.bf16 %v3931_v52, %v3931_v52 }
 0x794   : >> { %3963 = vst.msk [vmem:[%s6500_s22 + $0x20] sm:$0xf] %vm3954_vm5, %v3941_v2 }
 0x795   : >> { %3964 = vst.msk [vmem:[%s6500_s22 + $0x24] sm:$0xf] %vm3954_vm5, %v3942_v26  ;;  %v3950_v21 = vpack.c.bf16 %v3932_v1, %v3932_v1 }
 0x796   : >> { %3965 = vst.msk [vmem:[%s6500_s22 + $0x28] sm:$0xf] %vm3954_vm5, %v3943_v13 }
 0x797   : >> { %3966 = vst.msk [vmem:[%s6500_s22 + $0x2c] sm:$0xf] %vm3954_vm5, %v3944_v45 }
 0x798   : >> { %3967 = vst.msk [vmem:[%s6500_s22 + $0x30] sm:$0xf] %vm3954_vm5, %v3945_v34 }
 0x799   : >> { %3968 = vst.msk [vmem:[%s6500_s22 + $0x34] sm:$0xf] %vm3954_vm5, %v3946_v24  ;;  %308 = sbr.rel (!%p306_p9) target bundleno = 39 (0x27), region = 167 }
 0x79a   : >> { %3969 = vst.msk [vmem:[%s6500_s22 + $0x38] sm:$0xf] %vm3954_vm5, %v3947_v44 }
 0x79b   : >> { %3970 = vst.msk [vmem:[%s6500_s22 + $0x3c] sm:$0xf] %vm3954_vm5, %v3948_v22 }
 0x79c   : >> { %3971 = vst.msk [vmem:[%s6500_s22 + $0x40] sm:$0xf] %vm3954_vm5, %v3949_v4 }
 0x79d   : >> { %3972 = vst.msk [vmem:[%s6500_s22 + $0x44] sm:$0xf] %vm3954_vm5, %v3950_v21 }
 0x79e PF: > { %s18_s18 = sadd.s32 1, %s4862_s18  }
 0x79f   : > { %p15_p10 = scmp.ge.s32.totalorder %s18_s18, 4  }
 0x7a1   :  { %17 = sbr.rel (!%p15_p10) target bundleno = 3 (0x3), region = 178 }
 0x7a6   :  { %3997 = vsyncpa [#allocation6], 1 }
 0x7a7   :  { %3999 = vsyncpa [#allocation6 + $0x1], 1 }
 0x7a8   :  { %4000 = vsyncpa [#allocation8], 1 }
 0x7a9   :  { %4001 = vsyncpa [#allocation11], 1 }

// kernel: net_forward.3
= control target key start
LH: loop header
LB: loop body
LE: loop exit
PB: predicated region body
PF: predicated region fallthrough
CT: control target
= control target key end

     0   :  { %s11823_s0 = inlined_call_operand.vmem [shape: bf16[16,9216], index: 0, kind: input, shape index: {}]   ;;  %s11824_s1 = inlined_call_operand.vmem [shape: bf16[9216,128], index: 1, kind: input, shape index: {}]   ;;  %s11825_s2 = inlined_call_operand.vmem [shape: f32[1,128], index: 2, kind: input, shape index: {}]   ;;  %s11826_s3 = inlined_call_operand.vmem [shape: f32[128,10], index: 3, kind: input, shape index: {}]   ;;  %s11827_s4 = inlined_call_operand.vmem [shape: f32[1,10], index: 4, kind: input, shape index: {}]   ;;  %s11828_s5 = inlined_call_operand.hbm [shape: f32[16,10], index: 5, kind: output, shape index: {}]  }
   0x1   :  { %v8834_v0 = vld [vmem:[%s11824_s1 + $0x38] sm:$0xff]  ;;  %v8833_v4 = vld [vmem:[%s11824_s1 + $0x30] sm:$0xff]  ;;  %v8832_v8 = vld [vmem:[%s11824_s1 + $0x28] sm:$0xff] }
   0x2   :  { %v8842_v1 = vld [vmem:[%s11824_s1 + $0x78] sm:$0xff]  ;;  %5065 = vmatpush.bf16.msra.mxu0 %v8834_v0  ;;  %v8841_v5 = vld [vmem:[%s11824_s1 + $0x70] sm:$0xff]  ;;  %v8840_v9 = vld [vmem:[%s11824_s1 + $0x68] sm:$0xff] }
   0x3   :  { %v8850_v2 = vld [vmem:[%s11824_s1 + $0xb8] sm:$0xff]  ;;  %5079 = vmatpush.bf16.msra.mxu1 %v8842_v1  ;;  %v8849_v6 = vld [vmem:[%s11824_s1 + $0xb0] sm:$0xff]  ;;  %v8848_v10 = vld [vmem:[%s11824_s1 + $0xa8] sm:$0xff] }
   0x4   :  { %v8858_v3 = vld [vmem:[%s11824_s1 + $0xf8] sm:$0xff]  ;;  %5093 = vmatpush.bf16.msra.mxu2 %v8850_v2  ;;  %v8857_v7 = vld [vmem:[%s11824_s1 + $0xf0] sm:$0xff]  ;;  %v8856_v11 = vld [vmem:[%s11824_s1 + $0xe8] sm:$0xff] }
   0x5   :  { %5107 = vmatpush.bf16.msra.mxu3 %v8858_v3  ;;  %v8831_v12 = vld [vmem:[%s11824_s1 + $0x20] sm:$0xff]  ;;  %v8830_v16 = vld [vmem:[%s11824_s1 + $0x18] sm:$0xff]  ;;  %v8829_v20 = vld [vmem:[%s11824_s1 + $0x10] sm:$0xff] }
   0x6   :  { %5066 = vmatpush.bf16.msra.mxu0 %v8833_v4  ;;  %v8839_v13 = vld [vmem:[%s11824_s1 + $0x60] sm:$0xff]  ;;  %v8838_v17 = vld [vmem:[%s11824_s1 + $0x58] sm:$0xff]  ;;  %v8837_v21 = vld [vmem:[%s11824_s1 + $0x50] sm:$0xff] }
   0x7   :  { %5080 = vmatpush.bf16.msra.mxu1 %v8841_v5  ;;  %v8847_v14 = vld [vmem:[%s11824_s1 + $0xa0] sm:$0xff]  ;;  %v8846_v18 = vld [vmem:[%s11824_s1 + $0x98] sm:$0xff]  ;;  %v8845_v22 = vld [vmem:[%s11824_s1 + $0x90] sm:$0xff] }
   0x8   :  { %5094 = vmatpush.bf16.msra.mxu2 %v8849_v6  ;;  %v8855_v15 = vld [vmem:[%s11824_s1 + $0xe0] sm:$0xff]  ;;  %v8854_v19 = vld [vmem:[%s11824_s1 + $0xd8] sm:$0xff]  ;;  %v8853_v23 = vld [vmem:[%s11824_s1 + $0xd0] sm:$0xff] }
   0x9   :  { %5108 = vmatpush.bf16.msra.mxu3 %v8857_v7  ;;  %v8828_v24 = vld [vmem:[%s11824_s1 + $0x8] sm:$0xff] }
   0xa   :  { %5067 = vmatpush.bf16.msra.mxu0 %v8832_v8  ;;  %v8836_v25 = vld [vmem:[%s11824_s1 + $0x48] sm:$0xff] }
   0xb   :  { %5081 = vmatpush.bf16.msra.mxu1 %v8840_v9 }
   0xc   :  { %5095 = vmatpush.bf16.msra.mxu2 %v8848_v10 }
   0xd   :  { %5109 = vmatpush.bf16.msra.mxu3 %v8856_v11 }
   0xe   :  { %5068 = vmatpush.bf16.msra.mxu0 %v8831_v12 }
   0xf   :  { %5082 = vmatpush.bf16.msra.mxu1 %v8839_v13 }
  0x10   :  { %5096 = vmatpush.bf16.msra.mxu2 %v8847_v14 }
  0x11   :  { %5110 = vmatpush.bf16.msra.mxu3 %v8855_v15 }
  0x12   :  { %5069 = vmatpush.bf16.msra.mxu0 %v8830_v16 }
  0x13   :  { %5083 = vmatpush.bf16.msra.mxu1 %v8838_v17 }
  0x14   :  { %5097 = vmatpush.bf16.msra.mxu2 %v8846_v18 }
  0x15   :  { %5111 = vmatpush.bf16.msra.mxu3 %v8854_v19 }
  0x16   :  { %5070 = vmatpush.bf16.msra.mxu0 %v8829_v20 }
  0x17   :  { %5084 = vmatpush.bf16.msra.mxu1 %v8837_v21 }
  0x18   :  { %10 = vsyncpa [#allocation3], 0  ;;  %5098 = vmatpush.bf16.msra.mxu2 %v8845_v22  ;;  %v8844_v26 = vld [vmem:[%s11824_s1 + $0x88] sm:$0xff]  ;;  %v8827_v28 = vld [vmem:[%s11824_s1] sm:$0xff]  ;;  %vm6118_vm0 = vcmask 80896   ;;  %s6151_s26 = sshll.u32 %s11828_s5, 4  ;;  %s6152_s26 = int_to_ptr.hbm [resolvable:$true] %s6151_s26 }
  0x19   :  { %5112 = vmatpush.bf16.msra.mxu3 %v8853_v23  ;;  %v8852_v27 = vld [vmem:[%s11824_s1 + $0xc8] sm:$0xff]  ;;  %v8835_v29 = vld [vmem:[%s11824_s1 + $0x40] sm:$0xff]  ;;  %v8866_v32 = vld [vmem:[%s11824_s1 + $0x138] sm:$0xff]  ;;  %s9459_s27 = smov 128   ;;  %s9460_s28 = smov 8  }
  0x1a   :  { %v8843_v30 = vld [vmem:[%s11824_s1 + $0x80] sm:$0xff]  ;;  %5071 = vmatpush.bf16.msra.mxu0 %v8828_v24  ;;  %v8874_v33 = vld [vmem:[%s11824_s1 + $0x178] sm:$0xff]  ;;  %v6173_v36 = vld [vmem:[%s11823_s0 + $0x8] sm:$0xf] }
  0x1b   :  { %v8851_v31 = vld [vmem:[%s11824_s1 + $0xc0] sm:$0xff]  ;;  %5085 = vmatpush.bf16.msra.mxu1 %v8836_v25  ;;  %v8792_v37 = vld [vmem:[%s11823_s0 + $0x124] sm:$0xf0]  ;;  %v8756_v40 = vld [vmem:[%s11823_s0 + $0xc] sm:$0xf] }
  0x1c   :  { %v6165_v34 = vld [vmem:[%s11823_s0] sm:$0xf]  ;;  %5099 = vmatpush.bf16.msra.mxu2 %v8844_v26  ;;  %v8755_v38 = vld [vmem:[%s11823_s0 + $0x4] sm:$0xf]  ;;  %v6175_v41 = vld [vmem:[%s11823_s0 + $0x128] sm:$0xf0]  ;;  %v6174_v45 = vor.u32 %v8792_v37, %v6173_v36 }
  0x1d   :  { %v8791_v35 = vld [vmem:[%s11823_s0 + $0x11c] sm:$0xf0]  ;;  %5113 = vmatpush.bf16.msra.mxu3 %v8852_v27  ;;  %v6167_v39 = vld [vmem:[%s11823_s0 + $0x120] sm:$0xf0]  ;;  %v8882_v42 = vld [vmem:[%s11824_s1 + $0x1b8] sm:$0xff]  ;;  %v6178_v47 = vor.u32 %v8756_v40, %v6175_v41 }
  0x1e   :  { %v8890_v43 = vld [vmem:[%s11824_s1 + $0x1f8] sm:$0xff]  ;;  %5072 = vmatpush.bf16.msra.mxu0 %v8827_v28  ;;  %v6166_v44 = vor.u32 %v8791_v35, %v6165_v34  ;;  %v6170_v46 = vor.u32 %v8755_v38, %v6167_v39  ;;  %v8865_v48 = vld [vmem:[%s11824_s1 + $0x130] sm:$0xff]  ;;  %v8864_v52 = vld [vmem:[%s11824_s1 + $0x128] sm:$0xff] }
  0x1f   :  { %5086 = vmatpush.bf16.msra.mxu1 %v8835_v29  ;;  %v8873_v49 = vld [vmem:[%s11824_s1 + $0x170] sm:$0xff]  ;;  %v8872_v53 = vld [vmem:[%s11824_s1 + $0x168] sm:$0xff]  ;;  %v8863_v56 = vld [vmem:[%s11824_s1 + $0x120] sm:$0xff] }
  0x20   :  { %5100 = vmatpush.bf16.msra.mxu2 %v8843_v30  ;;  %v8881_v50 = vld [vmem:[%s11824_s1 + $0x1b0] sm:$0xff]  ;;  %v8880_v54 = vld [vmem:[%s11824_s1 + $0x1a8] sm:$0xff]  ;;  %v8871_v57 = vld [vmem:[%s11824_s1 + $0x160] sm:$0xff] }
  0x21   :  { %5114 = vmatpush.bf16.msra.mxu3 %v8851_v31  ;;  %v8889_v51 = vld [vmem:[%s11824_s1 + $0x1f0] sm:$0xff]  ;;  %5073 = vmatmul.bf16.vlgmr.msra.gmra.mxu0 %v6166_v44  ;;  %v8888_v55 = vld [vmem:[%s11824_s1 + $0x1e8] sm:$0xff]  ;;  %v8879_v58 = vld [vmem:[%s11824_s1 + $0x1a0] sm:$0xff] }
  0x22   :  { %5121 = vmatpush.bf16.msrb.mxu0 %v8866_v32  ;;  %5087 = vmatmul.bf16.vlgmr.msra.gmra.mxu1 %v6170_v46  ;;  %v8887_v59 = vld [vmem:[%s11824_s1 + $0x1e0] sm:$0xff]  ;;  %v8862_v60 = vld [vmem:[%s11824_s1 + $0x118] sm:$0xff]  ;;  %v8861_v0 = vld [vmem:[%s11824_s1 + $0x110] sm:$0xff] }
  0x23   :  { %5135 = vmatpush.bf16.msrb.mxu1 %v8874_v33  ;;  %5101 = vmatmul.bf16.vlgmr.msra.gmra.mxu2 %v6174_v45  ;;  %v8870_v61 = vld [vmem:[%s11824_s1 + $0x158] sm:$0xff]  ;;  %v8869_v1 = vld [vmem:[%s11824_s1 + $0x150] sm:$0xff]  ;;  %v8860_v4 = vld [vmem:[%s11824_s1 + $0x108] sm:$0xff] }
  0x24   :  { %5149 = vmatpush.bf16.msrb.mxu2 %v8882_v42  ;;  %5115 = vmatmul.bf16.vlgmr.msra.gmra.mxu3 %v6178_v47  ;;  %v8878_v62 = vld [vmem:[%s11824_s1 + $0x198] sm:$0xff]  ;;  %v8877_v2 = vld [vmem:[%s11824_s1 + $0x190] sm:$0xff]  ;;  %v8868_v5 = vld [vmem:[%s11824_s1 + $0x148] sm:$0xff] }
  0x25   :  { %5163 = vmatpush.bf16.msrb.mxu3 %v8890_v43  ;;  %v8886_v63 = vld [vmem:[%s11824_s1 + $0x1d8] sm:$0xff]  ;;  %v8885_v3 = vld [vmem:[%s11824_s1 + $0x1d0] sm:$0xff]  ;;  %v8876_v6 = vld [vmem:[%s11824_s1 + $0x188] sm:$0xff] }
  0x26   :  { %5122 = vmatpush.bf16.msrb.mxu0 %v8865_v48  ;;  %v8884_v7 = vld [vmem:[%s11824_s1 + $0x1c8] sm:$0xff]  ;;  %v8859_v8 = vld [vmem:[%s11824_s1 + $0x100] sm:$0xff]  ;;  %v8898_v12 = vld [vmem:[%s11824_s1 + $0x238] sm:$0xff] }
  0x27   :  { %5136 = vmatpush.bf16.msrb.mxu1 %v8873_v49  ;;  %v8867_v9 = vld [vmem:[%s11824_s1 + $0x140] sm:$0xff]  ;;  %v8906_v13 = vld [vmem:[%s11824_s1 + $0x278] sm:$0xff]  ;;  %v6181_v14 = vld [vmem:[%s11823_s0 + $0x10] sm:$0xf] }
  0x28   :  { %5150 = vmatpush.bf16.msrb.mxu2 %v8881_v50  ;;  %v8875_v10 = vld [vmem:[%s11824_s1 + $0x180] sm:$0xff]  ;;  %v8793_v15 = vld [vmem:[%s11823_s0 + $0x12c] sm:$0xf0]  ;;  %v6189_v16 = vld [vmem:[%s11823_s0 + $0x18] sm:$0xf] }
  0x29   :  { %5164 = vmatpush.bf16.msrb.mxu3 %v8889_v51  ;;  %v8883_v11 = vld [vmem:[%s11824_s1 + $0x1c0] sm:$0xff]  ;;  %v8794_v17 = vld [vmem:[%s11823_s0 + $0x134] sm:$0xf0]  ;;  %v8757_v18 = vld [vmem:[%s11823_s0 + $0x14] sm:$0xf]  ;;  %v6182_v24 = vor.u32 %v8793_v15, %v6181_v14 }
  0x2a   :  { %5123 = vmatpush.bf16.msrb.mxu0 %v8864_v52  ;;  %v6183_v19 = vld [vmem:[%s11823_s0 + $0x130] sm:$0xf0]  ;;  %v8758_v20 = vld [vmem:[%s11823_s0 + $0x1c] sm:$0xf]  ;;  %v6190_v25 = vor.u32 %v8794_v17, %v6189_v16  ;;  %v8896_v32 = vld [vmem:[%s11824_s1 + $0x228] sm:$0xff] }
  0x2b   :  { %5137 = vmatpush.bf16.msrb.mxu1 %v8872_v53  ;;  %v6191_v21 = vld [vmem:[%s11823_s0 + $0x138] sm:$0xf0]  ;;  %v6186_v26 = vor.u32 %v8757_v18, %v6183_v19  ;;  %v8897_v28 = vld [vmem:[%s11824_s1 + $0x230] sm:$0xff]  ;;  %v8904_v33 = vld [vmem:[%s11824_s1 + $0x268] sm:$0xff] }
  0x2c   :  { %5151 = vmatpush.bf16.msrb.mxu2 %v8880_v54  ;;  %v8914_v22 = vld [vmem:[%s11824_s1 + $0x2b8] sm:$0xff]  ;;  %v6194_v27 = vor.u32 %v8758_v20, %v6191_v21  ;;  %v8905_v29 = vld [vmem:[%s11824_s1 + $0x270] sm:$0xff]  ;;  %v8912_v34 = vld [vmem:[%s11824_s1 + $0x2a8] sm:$0xff] }
  0x2d   :  { %5165 = vmatpush.bf16.msrb.mxu3 %v8888_v55  ;;  %v8922_v23 = vld [vmem:[%s11824_s1 + $0x2f8] sm:$0xff]  ;;  %v8913_v30 = vld [vmem:[%s11824_s1 + $0x2b0] sm:$0xff]  ;;  %v8920_v35 = vld [vmem:[%s11824_s1 + $0x2e8] sm:$0xff] }
  0x2e   :  { %5124 = vmatpush.bf16.msrb.mxu0 %v8863_v56  ;;  %v8921_v31 = vld [vmem:[%s11824_s1 + $0x2f0] sm:$0xff]  ;;  %v8895_v36 = vld [vmem:[%s11824_s1 + $0x220] sm:$0xff]  ;;  %v8894_v40 = vld [vmem:[%s11824_s1 + $0x218] sm:$0xff] }
  0x2f   :  { %5138 = vmatpush.bf16.msrb.mxu1 %v8871_v57  ;;  %v8903_v37 = vld [vmem:[%s11824_s1 + $0x260] sm:$0xff]  ;;  %v8902_v41 = vld [vmem:[%s11824_s1 + $0x258] sm:$0xff]  ;;  %v8893_v44 = vld [vmem:[%s11824_s1 + $0x210] sm:$0xff] }
  0x30   :  { %5152 = vmatpush.bf16.msrb.mxu2 %v8879_v58  ;;  %v8911_v38 = vld [vmem:[%s11824_s1 + $0x2a0] sm:$0xff]  ;;  %v8910_v42 = vld [vmem:[%s11824_s1 + $0x298] sm:$0xff]  ;;  %v8901_v45 = vld [vmem:[%s11824_s1 + $0x250] sm:$0xff] }
  0x31   :  { %5166 = vmatpush.bf16.msrb.mxu3 %v8887_v59  ;;  %v8919_v39 = vld [vmem:[%s11824_s1 + $0x2e0] sm:$0xff]  ;;  %v8918_v43 = vld [vmem:[%s11824_s1 + $0x2d8] sm:$0xff]  ;;  %v8909_v46 = vld [vmem:[%s11824_s1 + $0x290] sm:$0xff] }
  0x32   :  { %5125 = vmatpush.bf16.msrb.mxu0 %v8862_v60  ;;  %v8917_v47 = vld [vmem:[%s11824_s1 + $0x2d0] sm:$0xff]  ;;  %v8892_v48 = vld [vmem:[%s11824_s1 + $0x208] sm:$0xff]  ;;  %v8891_v52 = vld [vmem:[%s11824_s1 + $0x200] sm:$0xff] }
  0x33   :  { %5139 = vmatpush.bf16.msrb.mxu1 %v8870_v61  ;;  %v8900_v49 = vld [vmem:[%s11824_s1 + $0x248] sm:$0xff]  ;;  %v8899_v53 = vld [vmem:[%s11824_s1 + $0x240] sm:$0xff]  ;;  %v8930_v56 = vld [vmem:[%s11824_s1 + $0x338] sm:$0xff] }
  0x34   :  { %5153 = vmatpush.bf16.msrb.mxu2 %v8878_v62  ;;  %v8908_v50 = vld [vmem:[%s11824_s1 + $0x288] sm:$0xff]  ;;  %v8907_v54 = vld [vmem:[%s11824_s1 + $0x280] sm:$0xff]  ;;  %v8938_v57 = vld [vmem:[%s11824_s1 + $0x378] sm:$0xff] }
  0x35   :  { %5167 = vmatpush.bf16.msrb.mxu3 %v8886_v63  ;;  %v8916_v51 = vld [vmem:[%s11824_s1 + $0x2c8] sm:$0xff]  ;;  %v8915_v55 = vld [vmem:[%s11824_s1 + $0x2c0] sm:$0xff]  ;;  %v8926_v20 = vld [vmem:[%s11824_s1 + $0x318] sm:$0xff] }
  0x36   :  { %5126 = vmatpush.bf16.msrb.mxu0 %v8861_v0  ;;  %v6197_v58 = vld [vmem:[%s11823_s0 + $0x20] sm:$0xf]  ;;  %v6205_v60 = vld [vmem:[%s11823_s0 + $0x28] sm:$0xf]  ;;  %v8759_v62 = vld [vmem:[%s11823_s0 + $0x24] sm:$0xf] }
  0x37   :  { %5140 = vmatpush.bf16.msrb.mxu1 %v8869_v1  ;;  %v8795_v59 = vld [vmem:[%s11823_s0 + $0x13c] sm:$0xf0]  ;;  %v8796_v61 = vld [vmem:[%s11823_s0 + $0x144] sm:$0xf0]  ;;  %v6199_v63 = vld [vmem:[%s11823_s0 + $0x140] sm:$0xf0] }
  0x38   :  { %5154 = vmatpush.bf16.msrb.mxu2 %v8877_v2  ;;  %v8760_v0 = vld [vmem:[%s11823_s0 + $0x2c] sm:$0xf]  ;;  %v8946_v2 = vld [vmem:[%s11824_s1 + $0x3b8] sm:$0xff]  ;;  %v8927_v16 = vld [vmem:[%s11824_s1 + $0x320] sm:$0xff] }
  0x39   :  { %5168 = vmatpush.bf16.msrb.mxu3 %v8885_v3  ;;  %v6207_v1 = vld [vmem:[%s11823_s0 + $0x148] sm:$0xf0]  ;;  %v8954_v3 = vld [vmem:[%s11824_s1 + $0x3f8] sm:$0xff]  ;;  %v8935_v17 = vld [vmem:[%s11824_s1 + $0x360] sm:$0xff] }
  0x3a   :  { %5127 = vmatpush.bf16.msrb.mxu0 %v8860_v4  ;;  %v6198_v4 = vor.u32 %v8795_v59, %v6197_v58  ;;  %v8944_v14 = vld [vmem:[%s11824_s1 + $0x3a8] sm:$0xff]  ;;  %v8943_v18 = vld [vmem:[%s11824_s1 + $0x3a0] sm:$0xff]  ;;  %v8934_v21 = vld [vmem:[%s11824_s1 + $0x358] sm:$0xff] }
  0x3b   :  { %5141 = vmatpush.bf16.msrb.mxu1 %v8868_v5  ;;  %v6206_v5 = vor.u32 %v8796_v61, %v6205_v60  ;;  %v8952_v15 = vld [vmem:[%s11824_s1 + $0x3e8] sm:$0xff]  ;;  %v8951_v19 = vld [vmem:[%s11824_s1 + $0x3e0] sm:$0xff] }
  0x3c   :  { %5155 = vmatpush.bf16.msrb.mxu2 %v8876_v6  ;;  %v6202_v6 = vor.u32 %v8759_v62, %v6199_v63  ;;  %v8976_v58 = vld [vmem:[%s11824_s1 + $0x4a8] sm:$0xff]  ;;  %v8959_v60 = vld [vmem:[%s11824_s1 + $0x420] sm:$0xff] }
  0x3d   :  { %5169 = vmatpush.bf16.msrb.mxu3 %v8884_v7  ;;  %v6210_v7 = vor.u32 %v8760_v0, %v6207_v1  ;;  %v8984_v59 = vld [vmem:[%s11824_s1 + $0x4e8] sm:$0xff]  ;;  %v8967_v61 = vld [vmem:[%s11824_s1 + $0x460] sm:$0xff]  ;;  %v8958_v0 = vld [vmem:[%s11824_s1 + $0x418] sm:$0xff] }
  0x3e   :  { %5128 = vmatpush.bf16.msrb.mxu0 %v8859_v8  ;;  %v8929_v8 = vld [vmem:[%s11824_s1 + $0x330] sm:$0xff]  ;;  %v8975_v62 = vld [vmem:[%s11824_s1 + $0x4a0] sm:$0xff]  ;;  %v8966_v1 = vld [vmem:[%s11824_s1 + $0x458] sm:$0xff] }
  0x3f   :  { %5142 = vmatpush.bf16.msrb.mxu1 %v8867_v9  ;;  %v8937_v9 = vld [vmem:[%s11824_s1 + $0x370] sm:$0xff]  ;;  %v8983_v63 = vld [vmem:[%s11824_s1 + $0x4e0] sm:$0xff] }
  0x40   :  { %5156 = vmatpush.bf16.msrb.mxu2 %v8875_v10  ;;  %v8945_v10 = vld [vmem:[%s11824_s1 + $0x3b0] sm:$0xff] }
  0x41   :  { %5170 = vmatpush.bf16.msrb.mxu3 %v8883_v11  ;;  %5129 = vmatmul.bf16.vlgmr.msrb.gmra.mxu0 %v6182_v24  ;;  %v8953_v11 = vld [vmem:[%s11824_s1 + $0x3f0] sm:$0xff] }
  0x42   :  { %5177 = vmatpush.bf16.msra.mxu0 %v8898_v12  ;;  %5143 = vmatmul.bf16.vlgmr.msrb.gmra.mxu1 %v6186_v26  ;;  %v8928_v12 = vld [vmem:[%s11824_s1 + $0x328] sm:$0xff]  ;;  %v8925_v24 = vld [vmem:[%s11824_s1 + $0x310] sm:$0xff] }
  0x43   :  { %5191 = vmatpush.bf16.msra.mxu1 %v8906_v13  ;;  %5157 = vmatmul.bf16.vlgmr.msrb.gmra.mxu2 %v6190_v25  ;;  %v8936_v13 = vld [vmem:[%s11824_s1 + $0x368] sm:$0xff]  ;;  %v8933_v25 = vld [vmem:[%s11824_s1 + $0x350] sm:$0xff] }
  0x44   :  { %5205 = vmatpush.bf16.msra.mxu2 %v8914_v22  ;;  %5171 = vmatmul.bf16.vlgmr.msrb.gmra.mxu3 %v6194_v27  ;;  %v8942_v22 = vld [vmem:[%s11824_s1 + $0x398] sm:$0xff]  ;;  %v8941_v26 = vld [vmem:[%s11824_s1 + $0x390] sm:$0xff] }
  0x45   :  { %5219 = vmatpush.bf16.msra.mxu3 %v8922_v23  ;;  %v8950_v23 = vld [vmem:[%s11824_s1 + $0x3d8] sm:$0xff]  ;;  %v8949_v27 = vld [vmem:[%s11824_s1 + $0x3d0] sm:$0xff] }
  0x46   :  { %5178 = vmatpush.bf16.msra.mxu0 %v8897_v28  ;;  %v8924_v28 = vld [vmem:[%s11824_s1 + $0x308] sm:$0xff] }
  0x47   :  { %5192 = vmatpush.bf16.msra.mxu1 %v8905_v29  ;;  %v8932_v29 = vld [vmem:[%s11824_s1 + $0x348] sm:$0xff] }
  0x48   :  { %5206 = vmatpush.bf16.msra.mxu2 %v8913_v30  ;;  %v8940_v30 = vld [vmem:[%s11824_s1 + $0x388] sm:$0xff] }
  0x49   :  { %5220 = vmatpush.bf16.msra.mxu3 %v8921_v31  ;;  %v8948_v31 = vld [vmem:[%s11824_s1 + $0x3c8] sm:$0xff] }
  0x4a   :  { %5179 = vmatpush.bf16.msra.mxu0 %v8896_v32  ;;  %v8923_v32 = vld [vmem:[%s11824_s1 + $0x300] sm:$0xff] }
  0x4b   :  { %5193 = vmatpush.bf16.msra.mxu1 %v8904_v33  ;;  %v8931_v33 = vld [vmem:[%s11824_s1 + $0x340] sm:$0xff] }
  0x4c   :  { %5207 = vmatpush.bf16.msra.mxu2 %v8912_v34  ;;  %v8939_v34 = vld [vmem:[%s11824_s1 + $0x380] sm:$0xff] }
  0x4d   :  { %5221 = vmatpush.bf16.msra.mxu3 %v8920_v35  ;;  %v8947_v35 = vld [vmem:[%s11824_s1 + $0x3c0] sm:$0xff] }
  0x4e   :  { %5180 = vmatpush.bf16.msra.mxu0 %v8895_v36  ;;  %v8962_v36 = vld [vmem:[%s11824_s1 + $0x438] sm:$0xff] }
  0x4f   :  { %5194 = vmatpush.bf16.msra.mxu1 %v8903_v37  ;;  %v8970_v37 = vld [vmem:[%s11824_s1 + $0x478] sm:$0xff] }
  0x50   :  { %5208 = vmatpush.bf16.msra.mxu2 %v8911_v38  ;;  %v6213_v38 = vld [vmem:[%s11823_s0 + $0x30] sm:$0xf] }
  0x51   :  { %5222 = vmatpush.bf16.msra.mxu3 %v8919_v39  ;;  %v8797_v39 = vld [vmem:[%s11823_s0 + $0x14c] sm:$0xf0] }
  0x52   :  { %5181 = vmatpush.bf16.msra.mxu0 %v8894_v40  ;;  %v6221_v40 = vld [vmem:[%s11823_s0 + $0x38] sm:$0xf] }
  0x53   :  { %5195 = vmatpush.bf16.msra.mxu1 %v8902_v41  ;;  %v8798_v41 = vld [vmem:[%s11823_s0 + $0x154] sm:$0xf0] }
  0x54   :  { %5209 = vmatpush.bf16.msra.mxu2 %v8910_v42  ;;  %v8761_v42 = vld [vmem:[%s11823_s0 + $0x34] sm:$0xf] }
  0x55   :  { %5223 = vmatpush.bf16.msra.mxu3 %v8918_v43  ;;  %v6215_v43 = vld [vmem:[%s11823_s0 + $0x150] sm:$0xf0] }
  0x56   :  { %5182 = vmatpush.bf16.msra.mxu0 %v8893_v44  ;;  %v8762_v44 = vld [vmem:[%s11823_s0 + $0x3c] sm:$0xf] }
  0x57   :  { %5196 = vmatpush.bf16.msra.mxu1 %v8901_v45  ;;  %v6223_v45 = vld [vmem:[%s11823_s0 + $0x158] sm:$0xf0] }
  0x58   :  { %5210 = vmatpush.bf16.msra.mxu2 %v8909_v46  ;;  %v8978_v46 = vld [vmem:[%s11824_s1 + $0x4b8] sm:$0xff] }
  0x59   :  { %5224 = vmatpush.bf16.msra.mxu3 %v8917_v47  ;;  %v8986_v47 = vld [vmem:[%s11824_s1 + $0x4f8] sm:$0xff] }
  0x5a   :  { %5183 = vmatpush.bf16.msra.mxu0 %v8892_v48  ;;  %v6214_v48 = vor.u32 %v8797_v39, %v6213_v38  ;;  %v10124_v38 = vld [vmem:[%s11825_s2] ss:$0 sm:$0xff]  ;;  %v9008_v39 = vld [vmem:[%s11824_s1 + $0x5a8] sm:$0xff] }
  0x5b   :  { %5197 = vmatpush.bf16.msra.mxu1 %v8900_v49  ;;  %v6222_v49 = vor.u32 %v8798_v41, %v6221_v40  ;;  %v9016_v40 = vld [vmem:[%s11824_s1 + $0x5e8] sm:$0xff] }
  0x5c   :  { %5211 = vmatpush.bf16.msra.mxu2 %v8908_v50  ;;  %v6218_v50 = vor.u32 %v8761_v42, %v6215_v43  ;;  %v8991_v42 = vld [vmem:[%s11824_s1 + $0x520] sm:$0xff] }
  0x5d   :  { %5225 = vmatpush.bf16.msra.mxu3 %v8916_v51  ;;  %v6226_v51 = vor.u32 %v8762_v44, %v6223_v45  ;;  %v8999_v43 = vld [vmem:[%s11824_s1 + $0x560] sm:$0xff] }
  0x5e   :  { %5184 = vmatpush.bf16.msra.mxu0 %v8891_v52  ;;  %v8961_v52 = vld [vmem:[%s11824_s1 + $0x430] sm:$0xff]  ;;  %v9007_v45 = vld [vmem:[%s11824_s1 + $0x5a0] sm:$0xff] }
  0x5f   :  { %5198 = vmatpush.bf16.msra.mxu1 %v8899_v53  ;;  %v8969_v53 = vld [vmem:[%s11824_s1 + $0x470] sm:$0xff] }
  0x60   :  { %5212 = vmatpush.bf16.msra.mxu2 %v8907_v54  ;;  %v8977_v54 = vld [vmem:[%s11824_s1 + $0x4b0] sm:$0xff] }
  0x61   :  { %5226 = vmatpush.bf16.msra.mxu3 %v8915_v55  ;;  %5185 = vmatmul.bf16.vlgmr.msra.gmra.mxu0 %v6198_v4  ;;  %v8985_v55 = vld [vmem:[%s11824_s1 + $0x4f0] sm:$0xff] }
  0x62   :  { %5233 = vmatpush.bf16.msrb.mxu0 %v8930_v56  ;;  %5199 = vmatmul.bf16.vlgmr.msra.gmra.mxu1 %v6202_v6  ;;  %v8960_v56 = vld [vmem:[%s11824_s1 + $0x428] sm:$0xff]  ;;  %v8957_v4 = vld [vmem:[%s11824_s1 + $0x410] sm:$0xff] }
  0x63   :  { %5247 = vmatpush.bf16.msrb.mxu1 %v8938_v57  ;;  %5213 = vmatmul.bf16.vlgmr.msra.gmra.mxu2 %v6206_v5  ;;  %v8968_v57 = vld [vmem:[%s11824_s1 + $0x468] sm:$0xff]  ;;  %v8965_v5 = vld [vmem:[%s11824_s1 + $0x450] sm:$0xff] }
  0x64   :  { %5261 = vmatpush.bf16.msrb.mxu2 %v8946_v2  ;;  %5227 = vmatmul.bf16.vlgmr.msra.gmra.mxu3 %v6210_v7  ;;  %v8974_v2 = vld [vmem:[%s11824_s1 + $0x498] sm:$0xff]  ;;  %v8973_v6 = vld [vmem:[%s11824_s1 + $0x490] sm:$0xff] }
  0x65   :  { %5275 = vmatpush.bf16.msrb.mxu3 %v8954_v3  ;;  %v8982_v3 = vld [vmem:[%s11824_s1 + $0x4d8] sm:$0xff]  ;;  %v8981_v7 = vld [vmem:[%s11824_s1 + $0x4d0] sm:$0xff] }
  0x66   :  { %5234 = vmatpush.bf16.msrb.mxu0 %v8929_v8  ;;  %v8956_v8 = vld [vmem:[%s11824_s1 + $0x408] sm:$0xff] }
  0x67   :  { %5248 = vmatpush.bf16.msrb.mxu1 %v8937_v9  ;;  %v8964_v9 = vld [vmem:[%s11824_s1 + $0x448] sm:$0xff] }
  0x68   :  { %5262 = vmatpush.bf16.msrb.mxu2 %v8945_v10  ;;  %v8972_v10 = vld [vmem:[%s11824_s1 + $0x488] sm:$0xff] }
  0x69   :  { %5276 = vmatpush.bf16.msrb.mxu3 %v8953_v11  ;;  %v8980_v11 = vld [vmem:[%s11824_s1 + $0x4c8] sm:$0xff] }
  0x6a   :  { %5235 = vmatpush.bf16.msrb.mxu0 %v8928_v12  ;;  %v8955_v12 = vld [vmem:[%s11824_s1 + $0x400] sm:$0xff] }
  0x6b   :  { %5249 = vmatpush.bf16.msrb.mxu1 %v8936_v13  ;;  %v8963_v13 = vld [vmem:[%s11824_s1 + $0x440] sm:$0xff] }
  0x6c   :  { %5263 = vmatpush.bf16.msrb.mxu2 %v8944_v14  ;;  %v8971_v14 = vld [vmem:[%s11824_s1 + $0x480] sm:$0xff] }
  0x6d   :  { %5277 = vmatpush.bf16.msrb.mxu3 %v8952_v15  ;;  %v8979_v15 = vld [vmem:[%s11824_s1 + $0x4c0] sm:$0xff] }
  0x6e   :  { %5236 = vmatpush.bf16.msrb.mxu0 %v8927_v16  ;;  %v8994_v16 = vld [vmem:[%s11824_s1 + $0x538] sm:$0xff] }
  0x6f   :  { %5250 = vmatpush.bf16.msrb.mxu1 %v8935_v17  ;;  %v9002_v17 = vld [vmem:[%s11824_s1 + $0x578] sm:$0xff] }
  0x70   :  { %5264 = vmatpush.bf16.msrb.mxu2 %v8943_v18  ;;  %v6229_v18 = vld [vmem:[%s11823_s0 + $0x40] sm:$0xf] }
  0x71   :  { %5278 = vmatpush.bf16.msrb.mxu3 %v8951_v19  ;;  %v8799_v19 = vld [vmem:[%s11823_s0 + $0x15c] sm:$0xf0] }
  0x72   :  { %5237 = vmatpush.bf16.msrb.mxu0 %v8926_v20  ;;  %v6237_v20 = vld [vmem:[%s11823_s0 + $0x48] sm:$0xf] }
  0x73   :  { %5251 = vmatpush.bf16.msrb.mxu1 %v8934_v21  ;;  %v8800_v21 = vld [vmem:[%s11823_s0 + $0x164] sm:$0xf0] }
  0x74   :  { %5265 = vmatpush.bf16.msrb.mxu2 %v8942_v22  ;;  %v8763_v22 = vld [vmem:[%s11823_s0 + $0x44] sm:$0xf] }
  0x75   :  { %5279 = vmatpush.bf16.msrb.mxu3 %v8950_v23  ;;  %v6231_v23 = vld [vmem:[%s11823_s0 + $0x160] sm:$0xf0] }
  0x76   :  { %5238 = vmatpush.bf16.msrb.mxu0 %v8925_v24  ;;  %v8764_v24 = vld [vmem:[%s11823_s0 + $0x4c] sm:$0xf] }
  0x77   :  { %5252 = vmatpush.bf16.msrb.mxu1 %v8933_v25  ;;  %v6239_v25 = vld [vmem:[%s11823_s0 + $0x168] sm:$0xf0] }
  0x78   :  { %5266 = vmatpush.bf16.msrb.mxu2 %v8941_v26  ;;  %v9010_v26 = vld [vmem:[%s11824_s1 + $0x5b8] sm:$0xff] }
  0x79   :  { %5280 = vmatpush.bf16.msrb.mxu3 %v8949_v27  ;;  %v9018_v27 = vld [vmem:[%s11824_s1 + $0x5f8] sm:$0xff] }
  0x7a   :  { %5239 = vmatpush.bf16.msrb.mxu0 %v8924_v28  ;;  %v6230_v28 = vor.u32 %v8799_v19, %v6229_v18 }
  0x7b   :  { %5253 = vmatpush.bf16.msrb.mxu1 %v8932_v29  ;;  %v6238_v29 = vor.u32 %v8800_v21, %v6237_v20 }
  0x7c   :  { %5267 = vmatpush.bf16.msrb.mxu2 %v8940_v30  ;;  %v6234_v30 = vor.u32 %v8763_v22, %v6231_v23  ;;  %v9025_v23 = vld [vmem:[%s11824_s1 + $0x630] sm:$0xff] }
  0x7d   :  { %5281 = vmatpush.bf16.msrb.mxu3 %v8948_v31  ;;  %v6242_v31 = vor.u32 %v8764_v24, %v6239_v25  ;;  %v9033_v24 = vld [vmem:[%s11824_s1 + $0x670] sm:$0xff] }
  0x7e   :  { %5240 = vmatpush.bf16.msrb.mxu0 %v8923_v32  ;;  %v8993_v32 = vld [vmem:[%s11824_s1 + $0x530] sm:$0xff] }
  0x7f   :  { %5254 = vmatpush.bf16.msrb.mxu1 %v8931_v33  ;;  %v9001_v33 = vld [vmem:[%s11824_s1 + $0x570] sm:$0xff] }
  0x80   :  { %5268 = vmatpush.bf16.msrb.mxu2 %v8939_v34  ;;  %v9009_v34 = vld [vmem:[%s11824_s1 + $0x5b0] sm:$0xff] }
  0x81   :  { %5282 = vmatpush.bf16.msrb.mxu3 %v8947_v35  ;;  %5241 = vmatmul.bf16.vlgmr.msrb.gmra.mxu0 %v6214_v48  ;;  %v9017_v35 = vld [vmem:[%s11824_s1 + $0x5f0] sm:$0xff] }
  0x82   :  { %5289 = vmatpush.bf16.msra.mxu0 %v8962_v36  ;;  %5255 = vmatmul.bf16.vlgmr.msrb.gmra.mxu1 %v6218_v50  ;;  %v8992_v36 = vld [vmem:[%s11824_s1 + $0x528] sm:$0xff]  ;;  %v8998_v50 = vld [vmem:[%s11824_s1 + $0x558] sm:$0xff]  ;;  %v9041_v25 = vld [vmem:[%s11824_s1 + $0x6b0] sm:$0xff] }
  0x83   :  { %5303 = vmatpush.bf16.msra.mxu1 %v8970_v37  ;;  %5269 = vmatmul.bf16.vlgmr.msrb.gmra.mxu2 %v6222_v49  ;;  %v9000_v37 = vld [vmem:[%s11824_s1 + $0x568] sm:$0xff]  ;;  %v8990_v49 = vld [vmem:[%s11824_s1 + $0x518] sm:$0xff] }
  0x84   :  { %5317 = vmatpush.bf16.msra.mxu2 %v8978_v46  ;;  %5283 = vmatmul.bf16.vlgmr.msrb.gmra.mxu3 %v6226_v51  ;;  %v9015_v46 = vld [vmem:[%s11824_s1 + $0x5e0] sm:$0xff]  ;;  %v9006_v51 = vld [vmem:[%s11824_s1 + $0x598] sm:$0xff] }
  0x85   :  { %5331 = vmatpush.bf16.msra.mxu3 %v8986_v47 }
  0x86   :  { %5290 = vmatpush.bf16.msra.mxu0 %v8961_v52  ;;  %v9014_v52 = vld [vmem:[%s11824_s1 + $0x5d8] sm:$0xff] }
  0x87   :  { %5304 = vmatpush.bf16.msra.mxu1 %v8969_v53 }
  0x88   :  { %5318 = vmatpush.bf16.msra.mxu2 %v8977_v54 }
  0x89   :  { %5332 = vmatpush.bf16.msra.mxu3 %v8985_v55 }
  0x8a   :  { %5291 = vmatpush.bf16.msra.mxu0 %v8960_v56  ;;  %v8989_v56 = vld [vmem:[%s11824_s1 + $0x510] sm:$0xff] }
  0x8b   :  { %5305 = vmatpush.bf16.msra.mxu1 %v8968_v57  ;;  %v8997_v57 = vld [vmem:[%s11824_s1 + $0x550] sm:$0xff] }
  0x8c   :  { %5319 = vmatpush.bf16.msra.mxu2 %v8976_v58 }
  0x8d   :  { %5333 = vmatpush.bf16.msra.mxu3 %v8984_v59  ;;  %v9005_v59 = vld [vmem:[%s11824_s1 + $0x590] sm:$0xff] }
  0x8e   :  { %5292 = vmatpush.bf16.msra.mxu0 %v8959_v60  ;;  %v9013_v60 = vld [vmem:[%s11824_s1 + $0x5d0] sm:$0xff] }
  0x8f   :  { %5306 = vmatpush.bf16.msra.mxu1 %v8967_v61  ;;  %v8988_v61 = vld [vmem:[%s11824_s1 + $0x508] sm:$0xff] }
  0x90   :  { %5320 = vmatpush.bf16.msra.mxu2 %v8975_v62  ;;  %v8996_v62 = vld [vmem:[%s11824_s1 + $0x548] sm:$0xff] }
  0x91   :  { %5334 = vmatpush.bf16.msra.mxu3 %v8983_v63  ;;  %v9004_v63 = vld [vmem:[%s11824_s1 + $0x588] sm:$0xff] }
  0x92   :  { %5293 = vmatpush.bf16.msra.mxu0 %v8958_v0  ;;  %v9012_v0 = vld [vmem:[%s11824_s1 + $0x5c8] sm:$0xff] }
  0x93   :  { %5307 = vmatpush.bf16.msra.mxu1 %v8966_v1  ;;  %v8987_v1 = vld [vmem:[%s11824_s1 + $0x500] sm:$0xff] }
  0x94   :  { %5321 = vmatpush.bf16.msra.mxu2 %v8974_v2  ;;  %v8995_v2 = vld [vmem:[%s11824_s1 + $0x540] sm:$0xff] }
  0x95   :  { %5335 = vmatpush.bf16.msra.mxu3 %v8982_v3  ;;  %v9003_v3 = vld [vmem:[%s11824_s1 + $0x580] sm:$0xff] }
  0x96   :  { %5294 = vmatpush.bf16.msra.mxu0 %v8957_v4  ;;  %v9011_v4 = vld [vmem:[%s11824_s1 + $0x5c0] sm:$0xff] }
  0x97   :  { %5308 = vmatpush.bf16.msra.mxu1 %v8965_v5  ;;  %v9026_v5 = vld [vmem:[%s11824_s1 + $0x638] sm:$0xff] }
  0x98   :  { %5322 = vmatpush.bf16.msra.mxu2 %v8973_v6  ;;  %v9034_v6 = vld [vmem:[%s11824_s1 + $0x678] sm:$0xff] }
  0x99   :  { %5336 = vmatpush.bf16.msra.mxu3 %v8981_v7  ;;  %v6245_v7 = vld [vmem:[%s11823_s0 + $0x50] sm:$0xf] }
  0x9a   :  { %5295 = vmatpush.bf16.msra.mxu0 %v8956_v8  ;;  %v8801_v8 = vld [vmem:[%s11823_s0 + $0x16c] sm:$0xf0] }
  0x9b   :  { %5309 = vmatpush.bf16.msra.mxu1 %v8964_v9  ;;  %v6253_v9 = vld [vmem:[%s11823_s0 + $0x58] sm:$0xf]  ;;  %v6246_v18 = vor.u32 %v8801_v8, %v6245_v7  ;;  %v6271_v7 = vld [vmem:[%s11823_s0 + $0x188] sm:$0xf0] }
  0x9c   :  { %5323 = vmatpush.bf16.msra.mxu2 %v8972_v10  ;;  %v8802_v10 = vld [vmem:[%s11823_s0 + $0x174] sm:$0xf0] }
  0x9d   :  { %5337 = vmatpush.bf16.msra.mxu3 %v8980_v11  ;;  %v8765_v11 = vld [vmem:[%s11823_s0 + $0x54] sm:$0xf]  ;;  %v6254_v19 = vor.u32 %v8802_v10, %v6253_v9  ;;  %v9074_v8 = vld [vmem:[%s11824_s1 + $0x7b8] sm:$0xff] }
  0x9e   :  { %5296 = vmatpush.bf16.msra.mxu0 %v8955_v12  ;;  %v5074_v41 = vpop.f32.mrf.mxu0  ;;  %v6247_v12 = vld [vmem:[%s11823_s0 + $0x170] sm:$0xf0]  ;;  %v9082_v9 = vld [vmem:[%s11824_s1 + $0x7f8] sm:$0xff] }
  0x9f   :  { %5310 = vmatpush.bf16.msra.mxu1 %v8963_v13  ;;  %v5075_v44 = vadd.f32 %v10124_v38, %v5074_v41  ;;  %v5088_v47 = vpop.f32.mrf.mxu1  ;;  %v8766_v13 = vld [vmem:[%s11823_s0 + $0x5c] sm:$0xf]  ;;  %v6250_v20 = vor.u32 %v8765_v11, %v6247_v12 }
  0xa0   :  { %5324 = vmatpush.bf16.msra.mxu2 %v8971_v14  ;;  %v6255_v14 = vld [vmem:[%s11823_s0 + $0x178] sm:$0xf0] }
  0xa1   :  { %5338 = vmatpush.bf16.msra.mxu3 %v8979_v15  ;;  %5297 = vmatmul.bf16.vlgmr.msra.gmra.mxu0 %v6230_v28  ;;  %v5089_v48 = vadd.f32 %v5088_v47, %v5075_v44  ;;  %v9042_v15 = vld [vmem:[%s11824_s1 + $0x6b8] sm:$0xff]  ;;  %v6258_v21 = vor.u32 %v8766_v13, %v6255_v14  ;;  %v9024_v28 = vld [vmem:[%s11824_s1 + $0x628] sm:$0xff] }
  0xa2   :  { %5345 = vmatpush.bf16.msrb.mxu0 %v8994_v16  ;;  %5311 = vmatmul.bf16.vlgmr.msra.gmra.mxu1 %v6234_v30  ;;  %v9050_v16 = vld [vmem:[%s11824_s1 + $0x6f8] sm:$0xff]  ;;  %v9040_v30 = vld [vmem:[%s11824_s1 + $0x6a8] sm:$0xff] }
  0xa3   :  { %5359 = vmatpush.bf16.msrb.mxu1 %v9002_v17  ;;  %5325 = vmatmul.bf16.vlgmr.msra.gmra.mxu2 %v6238_v29  ;;  %v9032_v29 = vld [vmem:[%s11824_s1 + $0x668] sm:$0xff]  ;;  %v9038_v44 = vld [vmem:[%s11824_s1 + $0x698] sm:$0xff] }
  0xa4   :  { %5373 = vmatpush.bf16.msrb.mxu2 %v9010_v26  ;;  %5339 = vmatmul.bf16.vlgmr.msra.gmra.mxu3 %v6242_v31  ;;  %v9049_v26 = vld [vmem:[%s11824_s1 + $0x6f0] sm:$0xff]  ;;  %v9048_v31 = vld [vmem:[%s11824_s1 + $0x6e8] sm:$0xff] }
  0xa5   :  { %5387 = vmatpush.bf16.msrb.mxu3 %v9018_v27 }
  0xa6   :  { %5346 = vmatpush.bf16.msrb.mxu0 %v8993_v32  ;;  %v5102_v53 = vpop.f32.mrf.mxu2  ;;  %v10231_v17 = vpop.f32.mrf.mxu0 }
  0xa7   :  { %5360 = vmatpush.bf16.msrb.mxu1 %v9001_v33  ;;  %v5103_v54 = vadd.f32 %v5102_v53, %v5089_v48  ;;  %v5116_v55 = vpop.f32.mrf.mxu3  ;;  %v10233_v22 = vpop.f32.mrf.mxu1  ;;  %v9045_v53 = vld [vmem:[%s11824_s1 + $0x6d0] sm:$0xff] }
  0xa8   :  { %5374 = vmatpush.bf16.msrb.mxu2 %v9009_v34 }
  0xa9   :  { %5388 = vmatpush.bf16.msrb.mxu3 %v9017_v35  ;;  %v10163_v58 = vadd.f32 %v5116_v55, %v5103_v54  ;;  %v9023_v35 = vld [vmem:[%s11824_s1 + $0x620] sm:$0xff]  ;;  %v9020_v54 = vld [vmem:[%s11824_s1 + $0x608] sm:$0xff] }
  0xaa   :  { %5347 = vmatpush.bf16.msrb.mxu0 %v8992_v36  ;;  %v9031_v36 = vld [vmem:[%s11824_s1 + $0x660] sm:$0xff]  ;;  %v9028_v55 = vld [vmem:[%s11824_s1 + $0x648] sm:$0xff] }
  0xab   :  { %5361 = vmatpush.bf16.msrb.mxu1 %v9000_v37  ;;  %v9039_v37 = vld [vmem:[%s11824_s1 + $0x6a0] sm:$0xff] }
  0xac   :  { %5375 = vmatpush.bf16.msrb.mxu2 %v9008_v39  ;;  %v9047_v39 = vld [vmem:[%s11824_s1 + $0x6e0] sm:$0xff] }
  0xad   :  { %5389 = vmatpush.bf16.msrb.mxu3 %v9016_v40 }
  0xae   :  { %5348 = vmatpush.bf16.msrb.mxu0 %v8991_v42  ;;  %v10247_v27 = vpop.f32.mrf.mxu2  ;;  %v9022_v42 = vld [vmem:[%s11824_s1 + $0x618] sm:$0xff] }
  0xaf   :  { %5362 = vmatpush.bf16.msrb.mxu1 %v8999_v43  ;;  %v10261_v32 = vpop.f32.mrf.mxu3  ;;  %v9030_v43 = vld [vmem:[%s11824_s1 + $0x658] sm:$0xff] }
  0xb0   :  { %5376 = vmatpush.bf16.msrb.mxu2 %v9007_v45  ;;  %v9046_v45 = vld [vmem:[%s11824_s1 + $0x6d8] sm:$0xff] }
  0xb1   :  { %5390 = vmatpush.bf16.msrb.mxu3 %v9015_v46 }
  0xb2   :  { %5349 = vmatpush.bf16.msrb.mxu0 %v8990_v49 }
  0xb3   :  { %5363 = vmatpush.bf16.msrb.mxu1 %v8998_v50  ;;  %v9021_v50 = vld [vmem:[%s11824_s1 + $0x610] sm:$0xff] }
  0xb4   :  { %5377 = vmatpush.bf16.msrb.mxu2 %v9006_v51  ;;  %v9029_v51 = vld [vmem:[%s11824_s1 + $0x650] sm:$0xff] }
  0xb5   :  { %5391 = vmatpush.bf16.msrb.mxu3 %v9014_v52  ;;  %v9037_v52 = vld [vmem:[%s11824_s1 + $0x690] sm:$0xff] }
  0xb6   :  { %5350 = vmatpush.bf16.msrb.mxu0 %v8989_v56  ;;  %v9036_v56 = vld [vmem:[%s11824_s1 + $0x688] sm:$0xff] }
  0xb7   :  { %5364 = vmatpush.bf16.msrb.mxu1 %v8997_v57  ;;  %v9044_v57 = vld [vmem:[%s11824_s1 + $0x6c8] sm:$0xff] }
  0xb8   :  { %5378 = vmatpush.bf16.msrb.mxu2 %v9005_v59  ;;  %v9027_v59 = vld [vmem:[%s11824_s1 + $0x640] sm:$0xff] }
  0xb9   :  { %5392 = vmatpush.bf16.msrb.mxu3 %v9013_v60  ;;  %v9035_v60 = vld [vmem:[%s11824_s1 + $0x680] sm:$0xff] }
  0xba   :  { %5351 = vmatpush.bf16.msrb.mxu0 %v8988_v61  ;;  %v9043_v61 = vld [vmem:[%s11824_s1 + $0x6c0] sm:$0xff] }
  0xbb   :  { %5365 = vmatpush.bf16.msrb.mxu1 %v8996_v62  ;;  %v9058_v62 = vld [vmem:[%s11824_s1 + $0x738] sm:$0xff] }
  0xbc   :  { %5379 = vmatpush.bf16.msrb.mxu2 %v9004_v63  ;;  %v9066_v63 = vld [vmem:[%s11824_s1 + $0x778] sm:$0xff] }
  0xbd   :  { %5393 = vmatpush.bf16.msrb.mxu3 %v9012_v0  ;;  %v6261_v0 = vld [vmem:[%s11823_s0 + $0x60] sm:$0xf] }
  0xbe   :  { %5352 = vmatpush.bf16.msrb.mxu0 %v8987_v1  ;;  %v5130_v33 = vpop.f32.mrf.mxu0  ;;  %v8803_v1 = vld [vmem:[%s11823_s0 + $0x17c] sm:$0xf0] }
  0xbf   :  { %5366 = vmatpush.bf16.msrb.mxu1 %v8995_v2  ;;  %v5131_v34 = vadd.f32 %v5130_v33, %v10163_v58  ;;  %v5144_v40 = vpop.f32.mrf.mxu1  ;;  %v9019_v58 = vld [vmem:[%s11824_s1 + $0x600] sm:$0xff]  ;;  %v6269_v2 = vld [vmem:[%s11823_s0 + $0x68] sm:$0xf]  ;;  %v6262_v10 = vor.u32 %v8803_v1, %v6261_v0  ;;  %v8806_v0 = vld [vmem:[%s11823_s0 + $0x194] sm:$0xf0] }
  0xc0   :  { %5380 = vmatpush.bf16.msrb.mxu2 %v9003_v3  ;;  %v8804_v3 = vld [vmem:[%s11823_s0 + $0x184] sm:$0xf0]  ;;  %v9063_v33 = vld [vmem:[%s11824_s1 + $0x760] sm:$0xff]  ;;  %v8769_v1 = vld [vmem:[%s11823_s0 + $0x74] sm:$0xf] }
  0xc1   :  { %5394 = vmatpush.bf16.msrb.mxu3 %v9011_v4  ;;  %5353 = vmatmul.bf16.vlgmr.msrb.gmra.mxu0 %v6246_v18  ;;  %v5145_v41 = vadd.f32 %v5144_v40, %v5131_v34  ;;  %v8767_v4 = vld [vmem:[%s11823_s0 + $0x64] sm:$0xf]  ;;  %v6270_v11 = vor.u32 %v8804_v3, %v6269_v2  ;;  %v9065_v18 = vld [vmem:[%s11824_s1 + $0x770] sm:$0xff]  ;;  %v9062_v40 = vld [vmem:[%s11824_s1 + $0x758] sm:$0xff] }
  0xc2   :  { %5401 = vmatpush.bf16.msra.mxu0 %v9026_v5  ;;  %5367 = vmatmul.bf16.vlgmr.msrb.gmra.mxu1 %v6250_v20  ;;  %v6263_v5 = vld [vmem:[%s11823_s0 + $0x180] sm:$0xf0]  ;;  %v9081_v20 = vld [vmem:[%s11824_s1 + $0x7f0] sm:$0xff]  ;;  %v8770_v3 = vld [vmem:[%s11823_s0 + $0x7c] sm:$0xf] }
  0xc3   :  { %5415 = vmatpush.bf16.msra.mxu1 %v9034_v6  ;;  %5381 = vmatmul.bf16.vlgmr.msrb.gmra.mxu2 %v6254_v19  ;;  %v8768_v6 = vld [vmem:[%s11823_s0 + $0x6c] sm:$0xf]  ;;  %v6266_v13 = vor.u32 %v8767_v4, %v6263_v5  ;;  %v9073_v19 = vld [vmem:[%s11824_s1 + $0x7b0] sm:$0xff]  ;;  %v6287_v4 = vld [vmem:[%s11823_s0 + $0x198] sm:$0xf0] }
  0xc4   :  { %5429 = vmatpush.bf16.msra.mxu2 %v9042_v15  ;;  %5395 = vmatmul.bf16.vlgmr.msrb.gmra.mxu3 %v6258_v21  ;;  %v6274_v14 = vor.u32 %v8768_v6, %v6271_v7  ;;  %v9056_v21 = vld [vmem:[%s11824_s1 + $0x728] sm:$0xff]  ;;  %v6279_v2 = vld [vmem:[%s11823_s0 + $0x190] sm:$0xf0]  ;;  %v9106_v5 = vld [vmem:[%s11824_s1 + $0x8b8] sm:$0xff] }
  0xc5   :  { %5443 = vmatpush.bf16.msra.mxu3 %v9050_v16  ;;  %v9057_v16 = vld [vmem:[%s11824_s1 + $0x730] sm:$0xff]  ;;  %v9114_v6 = vld [vmem:[%s11824_s1 + $0x8f8] sm:$0xff] }
  0xc6   :  { %5402 = vmatpush.bf16.msra.mxu0 %v9025_v23  ;;  %v5158_v46 = vpop.f32.mrf.mxu2  ;;  %v10362_v12 = vpop.f32.mrf.mxu0  ;;  %v9064_v23 = vld [vmem:[%s11824_s1 + $0x768] sm:$0xff] }
  0xc7   :  { %5416 = vmatpush.bf16.msra.mxu1 %v9033_v24  ;;  %v5159_v47 = vadd.f32 %v5158_v46, %v5145_v41  ;;  %v5172_v48 = vpop.f32.mrf.mxu3  ;;  %v10364_v15 = vpop.f32.mrf.mxu1  ;;  %v9070_v41 = vld [vmem:[%s11824_s1 + $0x798] sm:$0xff] }
  0xc8   :  { %5430 = vmatpush.bf16.msra.mxu2 %v9041_v25  ;;  %v9072_v25 = vld [vmem:[%s11824_s1 + $0x7a8] sm:$0xff] }
  0xc9   :  { %5444 = vmatpush.bf16.msra.mxu3 %v9049_v26  ;;  %v10288_v49 = vadd.f32 %v5172_v48, %v5159_v47  ;;  %v9080_v26 = vld [vmem:[%s11824_s1 + $0x7e8] sm:$0xff]  ;;  %v9053_v47 = vld [vmem:[%s11824_s1 + $0x710] sm:$0xff] }
  0xca   :  { %5403 = vmatpush.bf16.msra.mxu0 %v9024_v28  ;;  %v9061_v48 = vld [vmem:[%s11824_s1 + $0x750] sm:$0xff] }
  0xcb   :  { %5417 = vmatpush.bf16.msra.mxu1 %v9032_v29 }
  0xcc   :  { %5431 = vmatpush.bf16.msra.mxu2 %v9040_v30 }
  0xcd   :  { %5445 = vmatpush.bf16.msra.mxu3 %v9048_v31  ;;  %v9055_v31 = vld [vmem:[%s11824_s1 + $0x720] sm:$0xff] }
  0xce   :  { %5404 = vmatpush.bf16.msra.mxu0 %v9023_v35  ;;  %v10384_v24 = vpop.f32.mrf.mxu2  ;;  %v9071_v35 = vld [vmem:[%s11824_s1 + $0x7a0] sm:$0xff] }
  0xcf   :  { %5418 = vmatpush.bf16.msra.mxu1 %v9031_v36  ;;  %v10392_v28 = vpop.f32.mrf.mxu3  ;;  %v9079_v36 = vld [vmem:[%s11824_s1 + $0x7e0] sm:$0xff] }
  0xd0   :  { %5432 = vmatpush.bf16.msra.mxu2 %v9039_v37 }
  0xd1   :  { %5446 = vmatpush.bf16.msra.mxu3 %v9047_v39  ;;  %v9054_v39 = vld [vmem:[%s11824_s1 + $0x718] sm:$0xff] }
  0xd2   :  { %5405 = vmatpush.bf16.msra.mxu0 %v9022_v42  ;;  %v9078_v42 = vld [vmem:[%s11824_s1 + $0x7d8] sm:$0xff] }
  0xd3   :  { %5419 = vmatpush.bf16.msra.mxu1 %v9030_v43 }
  0xd4   :  { %5433 = vmatpush.bf16.msra.mxu2 %v9038_v44 }
  0xd5   :  { %5447 = vmatpush.bf16.msra.mxu3 %v9046_v45 }
  0xd6   :  { %5406 = vmatpush.bf16.msra.mxu0 %v9021_v50  ;;  %v9077_v50 = vld [vmem:[%s11824_s1 + $0x7d0] sm:$0xff] }
  0xd7   :  { %5420 = vmatpush.bf16.msra.mxu1 %v9029_v51  ;;  %v9052_v51 = vld [vmem:[%s11824_s1 + $0x708] sm:$0xff] }
  0xd8   :  { %5434 = vmatpush.bf16.msra.mxu2 %v9037_v52  ;;  %v9060_v52 = vld [vmem:[%s11824_s1 + $0x748] sm:$0xff] }
  0xd9   :  { %5448 = vmatpush.bf16.msra.mxu3 %v9045_v53  ;;  %v9068_v53 = vld [vmem:[%s11824_s1 + $0x788] sm:$0xff] }
  0xda   :  { %5407 = vmatpush.bf16.msra.mxu0 %v9020_v54  ;;  %v9076_v54 = vld [vmem:[%s11824_s1 + $0x7c8] sm:$0xff] }
  0xdb   :  { %5421 = vmatpush.bf16.msra.mxu1 %v9028_v55  ;;  %v9051_v55 = vld [vmem:[%s11824_s1 + $0x700] sm:$0xff] }
  0xdc   :  { %5435 = vmatpush.bf16.msra.mxu2 %v9036_v56  ;;  %v9059_v56 = vld [vmem:[%s11824_s1 + $0x740] sm:$0xff] }
  0xdd   :  { %5449 = vmatpush.bf16.msra.mxu3 %v9044_v57  ;;  %v9067_v57 = vld [vmem:[%s11824_s1 + $0x780] sm:$0xff] }
  0xde   :  { %5408 = vmatpush.bf16.msra.mxu0 %v9019_v58  ;;  %v5186_v29 = vpop.f32.mrf.mxu0  ;;  %v9075_v58 = vld [vmem:[%s11824_s1 + $0x7c0] sm:$0xff] }
  0xdf   :  { %5422 = vmatpush.bf16.msra.mxu1 %v9027_v59  ;;  %v5187_v30 = vadd.f32 %v5186_v29, %v10288_v49  ;;  %v5200_v34 = vpop.f32.mrf.mxu1  ;;  %v9069_v49 = vld [vmem:[%s11824_s1 + $0x790] sm:$0xff]  ;;  %v9090_v59 = vld [vmem:[%s11824_s1 + $0x838] sm:$0xff] }
  0xe0   :  { %5436 = vmatpush.bf16.msra.mxu2 %v9035_v60  ;;  %v9098_v60 = vld [vmem:[%s11824_s1 + $0x878] sm:$0xff] }
  0xe1   :  { %5450 = vmatpush.bf16.msra.mxu3 %v9043_v61  ;;  %5409 = vmatmul.bf16.vlgmr.msra.gmra.mxu0 %v6262_v10  ;;  %v5201_v37 = vadd.f32 %v5200_v34, %v5187_v30  ;;  %v6277_v61 = vld [vmem:[%s11823_s0 + $0x70] sm:$0xf]  ;;  %v6282_v10 = vor.u32 %v8769_v1, %v6279_v2  ;;  %v9095_v34 = vld [vmem:[%s11824_s1 + $0x860] sm:$0xff]  ;;  %v8808_v1 = vld [vmem:[%s11823_s0 + $0x1a4] sm:$0xf0] }
  0xe2   :  { %5457 = vmatpush.bf16.msrb.mxu0 %v9058_v62  ;;  %5423 = vmatmul.bf16.vlgmr.msra.gmra.mxu1 %v6266_v13  ;;  %v8805_v62 = vld [vmem:[%s11823_s0 + $0x18c] sm:$0xf0]  ;;  %v8771_v2 = vld [vmem:[%s11823_s0 + $0x84] sm:$0xf] }
  0xe3   :  { %5471 = vmatpush.bf16.msrb.mxu1 %v9066_v63  ;;  %5437 = vmatmul.bf16.vlgmr.msra.gmra.mxu2 %v6270_v11  ;;  %v6285_v63 = vld [vmem:[%s11823_s0 + $0x78] sm:$0xf]  ;;  %v6278_v7 = vor.u32 %v8805_v62, %v6277_v61  ;;  %v6290_v11 = vor.u32 %v8770_v3, %v6287_v4  ;;  %v6293_v62 = vld [vmem:[%s11823_s0 + $0x80] sm:$0xf]  ;;  %v6295_v3 = vld [vmem:[%s11823_s0 + $0x1a0] sm:$0xf0] }
  0xe4   :  { %5485 = vmatpush.bf16.msrb.mxu2 %v9074_v8  ;;  %5451 = vmatmul.bf16.vlgmr.msra.gmra.mxu3 %v6274_v14  ;;  %v6286_v8 = vor.u32 %v8806_v0, %v6285_v63  ;;  %v9089_v14 = vld [vmem:[%s11824_s1 + $0x830] sm:$0xff]  ;;  %v9130_v61 = vld [vmem:[%s11824_s1 + $0x978] sm:$0xff]  ;;  %v8807_v63 = vld [vmem:[%s11823_s0 + $0x19c] sm:$0xf0] }
  0xe5   :  { %5499 = vmatpush.bf16.msrb.mxu3 %v9082_v9  ;;  %v6301_v0 = vld [vmem:[%s11823_s0 + $0x88] sm:$0xf]  ;;  %v8772_v4 = vld [vmem:[%s11823_s0 + $0x8c] sm:$0xf] }
  0xe6   :  { %5458 = vmatpush.bf16.msrb.mxu0 %v9057_v16  ;;  %v5214_v43 = vpop.f32.mrf.mxu2  ;;  %v10493_v9 = vpop.f32.mrf.mxu0  ;;  %v9097_v16 = vld [vmem:[%s11824_s1 + $0x870] sm:$0xff] }
  0xe7   :  { %5472 = vmatpush.bf16.msrb.mxu1 %v9065_v18  ;;  %v5215_v44 = vadd.f32 %v5214_v43, %v5201_v37  ;;  %v5228_v45 = vpop.f32.mrf.mxu3  ;;  %v10495_v13 = vpop.f32.mrf.mxu1  ;;  %v9105_v18 = vld [vmem:[%s11824_s1 + $0x8b0] sm:$0xff]  ;;  %v9111_v37 = vld [vmem:[%s11824_s1 + $0x8e0] sm:$0xff]  ;;  %v9110_v43 = vld [vmem:[%s11824_s1 + $0x8d8] sm:$0xff] }
  0xe8   :  { %5486 = vmatpush.bf16.msrb.mxu2 %v9073_v19  ;;  %v9113_v19 = vld [vmem:[%s11824_s1 + $0x8f0] sm:$0xff] }
  0xe9   :  { %5500 = vmatpush.bf16.msrb.mxu3 %v9081_v20  ;;  %v10419_v46 = vadd.f32 %v5228_v45, %v5215_v44  ;;  %v9088_v20 = vld [vmem:[%s11824_s1 + $0x828] sm:$0xff] }
  0xea   :  { %5459 = vmatpush.bf16.msrb.mxu0 %v9056_v21  ;;  %v9096_v21 = vld [vmem:[%s11824_s1 + $0x868] sm:$0xff] }
  0xeb   :  { %5473 = vmatpush.bf16.msrb.mxu1 %v9064_v23 }
  0xec   :  { %5487 = vmatpush.bf16.msrb.mxu2 %v9072_v25  ;;  %v9104_v25 = vld [vmem:[%s11824_s1 + $0x8a8] sm:$0xff] }
  0xed   :  { %5501 = vmatpush.bf16.msrb.mxu3 %v9080_v26  ;;  %v9112_v26 = vld [vmem:[%s11824_s1 + $0x8e8] sm:$0xff] }
  0xee   :  { %5460 = vmatpush.bf16.msrb.mxu0 %v9055_v31  ;;  %v10515_v23 = vpop.f32.mrf.mxu2 }
  0xef   :  { %5474 = vmatpush.bf16.msrb.mxu1 %v9063_v33  ;;  %v10523_v29 = vpop.f32.mrf.mxu3  ;;  %v9087_v33 = vld [vmem:[%s11824_s1 + $0x820] sm:$0xff] }
  0xf0   :  { %5488 = vmatpush.bf16.msrb.mxu2 %v9071_v35 }
  0xf1   :  { %5502 = vmatpush.bf16.msrb.mxu3 %v9079_v36  ;;  %v9103_v36 = vld [vmem:[%s11824_s1 + $0x8a0] sm:$0xff] }
  0xf2   :  { %5461 = vmatpush.bf16.msrb.mxu0 %v9054_v39 }
  0xf3   :  { %5475 = vmatpush.bf16.msrb.mxu1 %v9062_v40  ;;  %v9086_v40 = vld [vmem:[%s11824_s1 + $0x818] sm:$0xff] }
  0xf4   :  { %5489 = vmatpush.bf16.msrb.mxu2 %v9070_v41  ;;  %v9094_v41 = vld [vmem:[%s11824_s1 + $0x858] sm:$0xff] }
  0xf5   :  { %5503 = vmatpush.bf16.msrb.mxu3 %v9078_v42  ;;  %v9102_v42 = vld [vmem:[%s11824_s1 + $0x898] sm:$0xff] }
  0xf6   :  { %5462 = vmatpush.bf16.msrb.mxu0 %v9053_v47 }
  0xf7   :  { %5476 = vmatpush.bf16.msrb.mxu1 %v9061_v48  ;;  %v9085_v48 = vld [vmem:[%s11824_s1 + $0x810] sm:$0xff] }
  0xf8   :  { %5490 = vmatpush.bf16.msrb.mxu2 %v9069_v49  ;;  %v9093_v49 = vld [vmem:[%s11824_s1 + $0x850] sm:$0xff] }
  0xf9   :  { %5504 = vmatpush.bf16.msrb.mxu3 %v9077_v50  ;;  %v9101_v50 = vld [vmem:[%s11824_s1 + $0x890] sm:$0xff] }
  0xfa   :  { %5463 = vmatpush.bf16.msrb.mxu0 %v9052_v51  ;;  %v9109_v51 = vld [vmem:[%s11824_s1 + $0x8d0] sm:$0xff] }
  0xfb   :  { %5477 = vmatpush.bf16.msrb.mxu1 %v9060_v52  ;;  %v9084_v52 = vld [vmem:[%s11824_s1 + $0x808] sm:$0xff] }
  0xfc   :  { %5491 = vmatpush.bf16.msrb.mxu2 %v9068_v53  ;;  %v9092_v53 = vld [vmem:[%s11824_s1 + $0x848] sm:$0xff] }
  0xfd   :  { %5505 = vmatpush.bf16.msrb.mxu3 %v9076_v54  ;;  %v9100_v54 = vld [vmem:[%s11824_s1 + $0x888] sm:$0xff] }
  0xfe   :  { %5464 = vmatpush.bf16.msrb.mxu0 %v9051_v55  ;;  %v5242_v30 = vpop.f32.mrf.mxu0  ;;  %v9108_v55 = vld [vmem:[%s11824_s1 + $0x8c8] sm:$0xff] }
  0xff   :  { %5478 = vmatpush.bf16.msrb.mxu1 %v9059_v56  ;;  %v5243_v31 = vadd.f32 %v5242_v30, %v10419_v46  ;;  %v5256_v35 = vpop.f32.mrf.mxu1  ;;  %v9083_v56 = vld [vmem:[%s11824_s1 + $0x800] sm:$0xff]  ;;  %v9128_v30 = vld [vmem:[%s11824_s1 + $0x968] sm:$0xff] }
 0x100   :  { %5492 = vmatpush.bf16.msrb.mxu2 %v9067_v57  ;;  %v9091_v57 = vld [vmem:[%s11824_s1 + $0x840] sm:$0xff] }
 0x101   :  { %5506 = vmatpush.bf16.msrb.mxu3 %v9075_v58  ;;  %5465 = vmatmul.bf16.vlgmr.msrb.gmra.mxu0 %v6278_v7  ;;  %v5257_v39 = vadd.f32 %v5256_v35, %v5243_v31  ;;  %v9099_v58 = vld [vmem:[%s11824_s1 + $0x880] sm:$0xff]  ;;  %v9146_v7 = vld [vmem:[%s11824_s1 + $0x9f8] sm:$0xff] }
 0x102   :  { %5513 = vmatpush.bf16.msra.mxu0 %v9090_v59  ;;  %5479 = vmatmul.bf16.vlgmr.msrb.gmra.mxu1 %v6282_v10  ;;  %v9107_v59 = vld [vmem:[%s11824_s1 + $0x8c0] sm:$0xff]  ;;  %v6302_v10 = vor.u32 %v8808_v1, %v6301_v0  ;;  %v9162_v1 = vld [vmem:[%s11824_s1 + $0xa78] sm:$0xff] }
 0x103   :  { %5527 = vmatpush.bf16.msra.mxu1 %v9098_v60  ;;  %5493 = vmatmul.bf16.vlgmr.msrb.gmra.mxu2 %v6286_v8  ;;  %v9122_v60 = vld [vmem:[%s11824_s1 + $0x938] sm:$0xff]  ;;  %v6294_v8 = vor.u32 %v8807_v63, %v6293_v62  ;;  %v9123_v62 = vld [vmem:[%s11824_s1 + $0x940] sm:$0xff] }
 0x104   :  { %5541 = vmatpush.bf16.msra.mxu2 %v9106_v5  ;;  %5507 = vmatmul.bf16.vlgmr.msrb.gmra.mxu3 %v6290_v11  ;;  %v6303_v5 = vld [vmem:[%s11823_s0 + $0x1a8] sm:$0xf0]  ;;  %v9131_v63 = vld [vmem:[%s11824_s1 + $0x980] sm:$0xff] }
 0x105   :  { %5555 = vmatpush.bf16.msra.mxu3 %v9114_v6  ;;  %v9138_v6 = vld [vmem:[%s11824_s1 + $0x9b8] sm:$0xff]  ;;  %v9139_v0 = vld [vmem:[%s11824_s1 + $0x9c0] sm:$0xff] }
 0x106   :  { %5514 = vmatpush.bf16.msra.mxu0 %v9089_v14  ;;  %v5270_v44 = vpop.f32.mrf.mxu2  ;;  %v10624_v11 = vpop.f32.mrf.mxu0  ;;  %v6298_v14 = vor.u32 %v8771_v2, %v6295_v3  ;;  %v6309_v2 = vld [vmem:[%s11823_s0 + $0x90] sm:$0xf] }
 0x107   :  { %5528 = vmatpush.bf16.msra.mxu1 %v9097_v16  ;;  %v5271_v45 = vadd.f32 %v5270_v44, %v5257_v39  ;;  %v5284_v46 = vpop.f32.mrf.mxu3  ;;  %v6306_v16 = vor.u32 %v8772_v4, %v6303_v5  ;;  %v9119_v39 = vld [vmem:[%s11824_s1 + $0x920] sm:$0xff]  ;;  %v8809_v3 = vld [vmem:[%s11823_s0 + $0x1ac] sm:$0xf0]  ;;  %v6317_v4 = vld [vmem:[%s11823_s0 + $0x98] sm:$0xf] }
 0x108   :  { %5542 = vmatpush.bf16.msra.mxu2 %v9105_v18  ;;  %v5077_v18 = vadd.f32 %v10124_v38, %v10231_v17  ;;  %v9145_v38 = vld [vmem:[%s11824_s1 + $0x9f0] sm:$0xff]  ;;  %v8810_v5 = vld [vmem:[%s11823_s0 + $0x1b4] sm:$0xf0] }
 0x109   :  { %5556 = vmatpush.bf16.msra.mxu3 %v9113_v19  ;;  %v10550_v47 = vadd.f32 %v5284_v46, %v5271_v45  ;;  %v10628_v19 = vpop.f32.mrf.mxu1  ;;  %v9118_v45 = vld [vmem:[%s11824_s1 + $0x918] sm:$0xff] }
 0x10a   :  { %5515 = vmatpush.bf16.msra.mxu0 %v9088_v20  ;;  %v9121_v20 = vld [vmem:[%s11824_s1 + $0x930] sm:$0xff]  ;;  %v5091_v17 = vadd.f32 %v10233_v22, %v5077_v18  ;;  %v9144_v22 = vld [vmem:[%s11824_s1 + $0x9e8] sm:$0xff]  ;;  %v9126_v46 = vld [vmem:[%s11824_s1 + $0x958] sm:$0xff] }
 0x10b   :  { %5529 = vmatpush.bf16.msra.mxu1 %v9096_v21  ;;  %v9129_v21 = vld [vmem:[%s11824_s1 + $0x970] sm:$0xff] }
 0x10c   :  { %5543 = vmatpush.bf16.msra.mxu2 %v9104_v25  ;;  %v9137_v25 = vld [vmem:[%s11824_s1 + $0x9b0] sm:$0xff] }
 0x10d   :  { %5557 = vmatpush.bf16.msra.mxu3 %v9112_v26  ;;  %v9120_v26 = vld [vmem:[%s11824_s1 + $0x928] sm:$0xff] }
 0x10e   :  { %5516 = vmatpush.bf16.msra.mxu0 %v9087_v33  ;;  %v10649_v31 = vpop.f32.mrf.mxu2  ;;  %v9136_v33 = vld [vmem:[%s11824_s1 + $0x9a8] sm:$0xff] }
 0x10f   :  { %5530 = vmatpush.bf16.msra.mxu1 %v9095_v34  ;;  %v10657_v34 = vpop.f32.mrf.mxu3 }
 0x110   :  { %5544 = vmatpush.bf16.msra.mxu2 %v9103_v36  ;;  %v5105_v36 = vadd.f32 %v10247_v27, %v5091_v17  ;;  %v9143_v27 = vld [vmem:[%s11824_s1 + $0x9e0] sm:$0xff] }
 0x111   :  { %5558 = vmatpush.bf16.msra.mxu3 %v9111_v37 }
 0x112   :  { %5517 = vmatpush.bf16.msra.mxu0 %v9086_v40  ;;  %v9127_v40 = vld [vmem:[%s11824_s1 + $0x960] sm:$0xff]  ;;  %v5119_v44 = vadd.f32 %v10261_v32, %v5105_v36  ;;  %v9142_v32 = vld [vmem:[%s11824_s1 + $0x9d8] sm:$0xff] }
 0x113   :  { %5531 = vmatpush.bf16.msra.mxu1 %v9094_v41 }
 0x114   :  { %5545 = vmatpush.bf16.msra.mxu2 %v9102_v42  ;;  %v9135_v42 = vld [vmem:[%s11824_s1 + $0x9a0] sm:$0xff] }
 0x115   :  { %5559 = vmatpush.bf16.msra.mxu3 %v9110_v43 }
 0x116   :  { %5518 = vmatpush.bf16.msra.mxu0 %v9085_v48 }
 0x117   :  { %5532 = vmatpush.bf16.msra.mxu1 %v9093_v49 }
 0x118   :  { %5546 = vmatpush.bf16.msra.mxu2 %v9101_v50 }
 0x119   :  { %5560 = vmatpush.bf16.msra.mxu3 %v9109_v51  ;;  %v5133_v51 = vadd.f32 %v10362_v12, %v5119_v44  ;;  %v9141_v12 = vld [vmem:[%s11824_s1 + $0x9d0] sm:$0xff]  ;;  %v9151_v44 = vld [vmem:[%s11824_s1 + $0xa20] sm:$0xff] }
 0x11a   :  { %5519 = vmatpush.bf16.msra.mxu0 %v9084_v52 }
 0x11b   :  { %5533 = vmatpush.bf16.msra.mxu1 %v9092_v53  ;;  %v9117_v53 = vld [vmem:[%s11824_s1 + $0x910] sm:$0xff] }
 0x11c   :  { %5547 = vmatpush.bf16.msra.mxu2 %v9100_v54  ;;  %v9125_v54 = vld [vmem:[%s11824_s1 + $0x950] sm:$0xff] }
 0x11d   :  { %5561 = vmatpush.bf16.msra.mxu3 %v9108_v55  ;;  %v9133_v55 = vld [vmem:[%s11824_s1 + $0x990] sm:$0xff] }
 0x11e   :  { %5520 = vmatpush.bf16.msra.mxu0 %v9083_v56  ;;  %v5298_v35 = vpop.f32.mrf.mxu0  ;;  %v5147_v56 = vadd.f32 %v10364_v15, %v5133_v51  ;;  %v9140_v15 = vld [vmem:[%s11824_s1 + $0x9c8] sm:$0xff]  ;;  %v9166_v51 = vld [vmem:[%s11824_s1 + $0xa98] sm:$0xff] }
 0x11f   :  { %5534 = vmatpush.bf16.msra.mxu1 %v9091_v57  ;;  %v5299_v37 = vadd.f32 %v5298_v35, %v10550_v47  ;;  %v5312_v41 = vpop.f32.mrf.mxu1  ;;  %v9134_v47 = vld [vmem:[%s11824_s1 + $0x998] sm:$0xff]  ;;  %v9116_v57 = vld [vmem:[%s11824_s1 + $0x908] sm:$0xff] }
 0x120   :  { %5548 = vmatpush.bf16.msra.mxu2 %v9099_v58  ;;  %v9124_v58 = vld [vmem:[%s11824_s1 + $0x948] sm:$0xff] }
 0x121   :  { %5562 = vmatpush.bf16.msra.mxu3 %v9107_v59  ;;  %5521 = vmatmul.bf16.vlgmr.msra.gmra.mxu0 %v6294_v8  ;;  %v5313_v43 = vadd.f32 %v5312_v41, %v5299_v37  ;;  %v9132_v59 = vld [vmem:[%s11824_s1 + $0x988] sm:$0xff]  ;;  %v6311_v8 = vld [vmem:[%s11823_s0 + $0x1b0] sm:$0xf0] }
 0x122   :  { %5569 = vmatpush.bf16.msrb.mxu0 %v9122_v60  ;;  %5535 = vmatmul.bf16.vlgmr.msra.gmra.mxu1 %v6298_v14  ;;  %v5161_v60 = vadd.f32 %v10384_v24, %v5147_v56  ;;  %v9154_v24 = vld [vmem:[%s11824_s1 + $0xa38] sm:$0xff]  ;;  %v9152_v37 = vld [vmem:[%s11824_s1 + $0xa28] sm:$0xff] }
 0x123   :  { %5583 = vmatpush.bf16.msrb.mxu1 %v9130_v61  ;;  %5549 = vmatmul.bf16.vlgmr.msra.gmra.mxu2 %v6302_v10  ;;  %v9115_v61 = vld [vmem:[%s11824_s1 + $0x900] sm:$0xff]  ;;  %v8774_v10 = vld [vmem:[%s11823_s0 + $0x9c] sm:$0xf] }
 0x124   :  { %5597 = vmatpush.bf16.msrb.mxu2 %v9138_v6  ;;  %5563 = vmatmul.bf16.vlgmr.msra.gmra.mxu3 %v6306_v16  ;;  %v8773_v6 = vld [vmem:[%s11823_s0 + $0x94] sm:$0xf]  ;;  %v6319_v14 = vld [vmem:[%s11823_s0 + $0x1b8] sm:$0xf0] }
 0x125   :  { %5611 = vmatpush.bf16.msrb.mxu3 %v9146_v7  ;;  %v5175_v7 = vadd.f32 %v10392_v28, %v5161_v60  ;;  %v9170_v16 = vld [vmem:[%s11824_s1 + $0xab8] sm:$0xff]  ;;  %v6322_v17 = vor.u32 %v8774_v10, %v6319_v14  ;;  %v9156_v60 = vld [vmem:[%s11824_s1 + $0xa48] sm:$0xff]  ;;  %v6327_v14 = vld [vmem:[%s11823_s0 + $0x1c0] sm:$0xf0] }
 0x126   :  { %5570 = vmatpush.bf16.msrb.mxu0 %v9121_v20  ;;  %v5326_v48 = vpop.f32.mrf.mxu2  ;;  %v9178_v28 = vld [vmem:[%s11824_s1 + $0xaf8] sm:$0xff]  ;;  %v6310_v20 = vor.u32 %v8809_v3, %v6309_v2 }
 0x127   :  { %5584 = vmatpush.bf16.msrb.mxu1 %v9129_v21  ;;  %v5327_v49 = vadd.f32 %v5326_v48, %v5313_v43  ;;  %v5340_v50 = vpop.f32.mrf.mxu3  ;;  %v5189_v18 = vadd.f32 %v10493_v9, %v5175_v7  ;;  %v6318_v21 = vor.u32 %v8810_v5, %v6317_v4  ;;  %v9161_v9 = vld [vmem:[%s11824_s1 + $0xa70] sm:$0xff]  ;;  %v9186_v2 = vld [vmem:[%s11824_s1 + $0xb38] sm:$0xff]  ;;  %v6325_v4 = vld [vmem:[%s11823_s0 + $0xa0] sm:$0xf] }
 0x128   :  { %5598 = vmatpush.bf16.msrb.mxu2 %v9137_v25  ;;  %v10765_v25 = vpop.f32.mrf.mxu0  ;;  %v9194_v3 = vld [vmem:[%s11824_s1 + $0xb78] sm:$0xff]  ;;  %v8811_v5 = vld [vmem:[%s11823_s0 + $0x1bc] sm:$0xf0]  ;;  %v8812_v7 = vld [vmem:[%s11823_s0 + $0x1c4] sm:$0xf0] }
 0x129   :  { %5612 = vmatpush.bf16.msrb.mxu3 %v9145_v38  ;;  %v10687_v52 = vadd.f32 %v5340_v50, %v5327_v49  ;;  %v6314_v38 = vor.u32 %v8773_v6, %v6311_v8  ;;  %v5203_v35 = vadd.f32 %v10495_v13, %v5189_v18  ;;  %v9168_v13 = vld [vmem:[%s11824_s1 + $0xaa8] sm:$0xff]  ;;  %v9150_v49 = vld [vmem:[%s11824_s1 + $0xa18] sm:$0xff]  ;;  %v8775_v8 = vld [vmem:[%s11823_s0 + $0xa4] sm:$0xf] }
 0x12a   :  { %5571 = vmatpush.bf16.msrb.mxu0 %v9120_v26  ;;  %v10767_v26 = vpop.f32.mrf.mxu1  ;;  %v9158_v50 = vld [vmem:[%s11824_s1 + $0xa58] sm:$0xff]  ;;  %v6333_v6 = vld [vmem:[%s11823_s0 + $0xa8] sm:$0xf] }
 0x12b   :  { %5585 = vmatpush.bf16.msrb.mxu1 %v9128_v30  ;;  %v9153_v30 = vld [vmem:[%s11824_s1 + $0xa30] sm:$0xff]  ;;  %v5217_v36 = vadd.f32 %v10515_v23, %v5203_v35  ;;  %v9176_v23 = vld [vmem:[%s11824_s1 + $0xae8] sm:$0xff]  ;;  %v9202_v18 = vld [vmem:[%s11824_s1 + $0xbb8] sm:$0xff] }
 0x12c   :  { %5599 = vmatpush.bf16.msrb.mxu2 %v9136_v33  ;;  %v9169_v33 = vld [vmem:[%s11824_s1 + $0xab0] sm:$0xff] }
 0x12d   :  { %5613 = vmatpush.bf16.msrb.mxu3 %v9144_v22  ;;  %v9177_v22 = vld [vmem:[%s11824_s1 + $0xaf0] sm:$0xff] }
 0x12e   :  { %5572 = vmatpush.bf16.msrb.mxu0 %v9119_v39  ;;  %v9160_v39 = vld [vmem:[%s11824_s1 + $0xa68] sm:$0xff]  ;;  %v9201_v35 = vld [vmem:[%s11824_s1 + $0xbb0] sm:$0xff] }
 0x12f   :  { %5586 = vmatpush.bf16.msrb.mxu1 %v9127_v40  ;;  %v10789_v40 = vpop.f32.mrf.mxu2  ;;  %v10797_v41 = vpop.f32.mrf.mxu3 }
 0x130   :  { %5600 = vmatpush.bf16.msrb.mxu2 %v9135_v42 }
 0x131   :  { %5614 = vmatpush.bf16.msrb.mxu3 %v9143_v27  ;;  %v5231_v27 = vadd.f32 %v10523_v29, %v5217_v36  ;;  %v9175_v29 = vld [vmem:[%s11824_s1 + $0xae0] sm:$0xff]  ;;  %v9209_v36 = vld [vmem:[%s11824_s1 + $0xbf0] sm:$0xff] }
 0x132   :  { %5573 = vmatpush.bf16.msrb.mxu0 %v9118_v45  ;;  %v9159_v45 = vld [vmem:[%s11824_s1 + $0xa60] sm:$0xff] }
 0x133   :  { %5587 = vmatpush.bf16.msrb.mxu1 %v9126_v46 }
 0x134   :  { %5601 = vmatpush.bf16.msrb.mxu2 %v9134_v47  ;;  %v9167_v47 = vld [vmem:[%s11824_s1 + $0xaa0] sm:$0xff] }
 0x135   :  { %5615 = vmatpush.bf16.msrb.mxu3 %v9142_v32  ;;  %v5245_v32 = vadd.f32 %v10624_v11, %v5231_v27  ;;  %v9174_v11 = vld [vmem:[%s11824_s1 + $0xad8] sm:$0xff] }
 0x136   :  { %5574 = vmatpush.bf16.msrb.mxu0 %v9117_v53 }
 0x137   :  { %5588 = vmatpush.bf16.msrb.mxu1 %v9125_v54  ;;  %v5259_v53 = vadd.f32 %v10628_v19, %v5245_v32  ;;  %v9165_v19 = vld [vmem:[%s11824_s1 + $0xa90] sm:$0xff]  ;;  %v9199_v32 = vld [vmem:[%s11824_s1 + $0xba0] sm:$0xff] }
 0x138   :  { %5602 = vmatpush.bf16.msrb.mxu2 %v9133_v55 }
 0x139   :  { %5616 = vmatpush.bf16.msrb.mxu3 %v9141_v12  ;;  %v5273_v12 = vadd.f32 %v10649_v31, %v5259_v53  ;;  %v9173_v31 = vld [vmem:[%s11824_s1 + $0xad0] sm:$0xff]  ;;  %v9206_v53 = vld [vmem:[%s11824_s1 + $0xbd8] sm:$0xff] }
 0x13a   :  { %5575 = vmatpush.bf16.msrb.mxu0 %v9116_v57  ;;  %v9149_v57 = vld [vmem:[%s11824_s1 + $0xa10] sm:$0xff] }
 0x13b   :  { %5589 = vmatpush.bf16.msrb.mxu1 %v9124_v58  ;;  %v9157_v58 = vld [vmem:[%s11824_s1 + $0xa50] sm:$0xff] }
 0x13c   :  { %5603 = vmatpush.bf16.msrb.mxu2 %v9132_v59  ;;  %v5287_v59 = vadd.f32 %v10657_v34, %v5273_v12  ;;  %v9172_v34 = vld [vmem:[%s11824_s1 + $0xac8] sm:$0xff] }
 0x13d   :  { %5617 = vmatpush.bf16.msrb.mxu3 %v9140_v15  ;;  %v9148_v15 = vld [vmem:[%s11824_s1 + $0xa08] sm:$0xff] }
 0x13e   :  { %5576 = vmatpush.bf16.msrb.mxu0 %v9115_v61  ;;  %v5354_v42 = vpop.f32.mrf.mxu0  ;;  %v9164_v61 = vld [vmem:[%s11824_s1 + $0xa88] sm:$0xff] }
 0x13f   :  { %5590 = vmatpush.bf16.msrb.mxu1 %v9123_v62  ;;  %v5355_v43 = vadd.f32 %v5354_v42, %v10687_v52  ;;  %v5368_v46 = vpop.f32.mrf.mxu1  ;;  %v5301_v62 = vadd.f32 %v10765_v25, %v5287_v59  ;;  %v6326_v25 = vor.u32 %v8811_v5, %v6325_v4  ;;  %v9208_v42 = vld [vmem:[%s11824_s1 + $0xbe8] sm:$0xff]  ;;  %v9189_v59 = vld [vmem:[%s11824_s1 + $0xb50] sm:$0xff]  ;;  %v9179_v4 = vld [vmem:[%s11824_s1 + $0xb00] sm:$0xff] }
 0x140   :  { %5604 = vmatpush.bf16.msrb.mxu2 %v9131_v63  ;;  %v9147_v63 = vld [vmem:[%s11824_s1 + $0xa00] sm:$0xff] }
 0x141   :  { %5618 = vmatpush.bf16.msrb.mxu3 %v9139_v0  ;;  %5577 = vmatmul.bf16.vlgmr.msrb.gmra.mxu0 %v6310_v20  ;;  %v5369_v48 = vadd.f32 %v5368_v46, %v5355_v43  ;;  %v9155_v0 = vld [vmem:[%s11824_s1 + $0xa40] sm:$0xff]  ;;  %v5315_v10 = vadd.f32 %v10767_v26, %v5301_v62  ;;  %v9210_v20 = vld [vmem:[%s11824_s1 + $0xbf8] sm:$0xff]  ;;  %v6330_v26 = vor.u32 %v8775_v8, %v6327_v14  ;;  %v9180_v62 = vld [vmem:[%s11824_s1 + $0xb08] sm:$0xff] }
 0x142   :  { %5625 = vmatpush.bf16.msra.mxu0 %v9154_v24  ;;  %5591 = vmatmul.bf16.vlgmr.msrb.gmra.mxu1 %v6314_v38  ;;  %v9163_v24 = vld [vmem:[%s11824_s1 + $0xa80] sm:$0xff]  ;;  %v6334_v38 = vor.u32 %v8812_v7, %v6333_v6  ;;  %v9226_v14 = vld [vmem:[%s11824_s1 + $0xc78] sm:$0xff] }
 0x143   :  { %5639 = vmatpush.bf16.msra.mxu1 %v9162_v1  ;;  %5605 = vmatmul.bf16.vlgmr.msrb.gmra.mxu2 %v6318_v21  ;;  %v9171_v1 = vld [vmem:[%s11824_s1 + $0xac0] sm:$0xff]  ;;  %v5329_v21 = vadd.f32 %v10789_v40, %v5315_v10  ;;  %v9184_v40 = vld [vmem:[%s11824_s1 + $0xb28] sm:$0xff]  ;;  %v9218_v10 = vld [vmem:[%s11824_s1 + $0xc38] sm:$0xff] }
 0x144   :  { %5653 = vmatpush.bf16.msra.mxu2 %v9170_v16  ;;  %5619 = vmatmul.bf16.vlgmr.msrb.gmra.mxu3 %v6322_v17  ;;  %v8776_v16 = vld [vmem:[%s11823_s0 + $0xac] sm:$0xf]  ;;  %v9183_v46 = vld [vmem:[%s11824_s1 + $0xb20] sm:$0xff] }
 0x145   :  { %5667 = vmatpush.bf16.msra.mxu3 %v9178_v28  ;;  %v6335_v28 = vld [vmem:[%s11823_s0 + $0x1c8] sm:$0xf0]  ;;  %v9187_v5 = vld [vmem:[%s11824_s1 + $0xb40] sm:$0xff] }
 0x146   :  { %5626 = vmatpush.bf16.msra.mxu0 %v9153_v30  ;;  %v5382_v52 = vpop.f32.mrf.mxu2  ;;  %v5356_v17 = vpop.f32.mrf.mxu0  ;;  %v6338_v30 = vor.u32 %v8776_v16, %v6335_v28  ;;  %v9195_v6 = vld [vmem:[%s11824_s1 + $0xb80] sm:$0xff]  ;;  %v6341_v16 = vld [vmem:[%s11823_s0 + $0xb0] sm:$0xf] }
 0x147   :  { %5640 = vmatpush.bf16.msra.mxu1 %v9161_v9  ;;  %v5383_v54 = vadd.f32 %v5382_v52, %v5369_v48  ;;  %v5396_v55 = vpop.f32.mrf.mxu3  ;;  %v5370_v9 = vpop.f32.mrf.mxu1  ;;  %v9207_v48 = vld [vmem:[%s11824_s1 + $0xbe0] sm:$0xff]  ;;  %v9198_v52 = vld [vmem:[%s11824_s1 + $0xb98] sm:$0xff]  ;;  %v8813_v28 = vld [vmem:[%s11823_s0 + $0x1cc] sm:$0xf0] }
 0x148   :  { %5654 = vmatpush.bf16.msra.mxu2 %v9169_v33  ;;  %v9185_v33 = vld [vmem:[%s11824_s1 + $0xb30] sm:$0xff]  ;;  %v9203_v7 = vld [vmem:[%s11824_s1 + $0xbc0] sm:$0xff] }
 0x149   :  { %5668 = vmatpush.bf16.msra.mxu3 %v9177_v22  ;;  %v10828_v56 = vadd.f32 %v5396_v55, %v5383_v54  ;;  %v9193_v22 = vld [vmem:[%s11824_s1 + $0xb70] sm:$0xff] }
 0x14a   :  { %5627 = vmatpush.bf16.msra.mxu0 %v9152_v37  ;;  %v5343_v37 = vadd.f32 %v10797_v41, %v5329_v21  ;;  %v9200_v41 = vld [vmem:[%s11824_s1 + $0xba8] sm:$0xff]  ;;  %v8777_v21 = vld [vmem:[%s11823_s0 + $0xb4] sm:$0xf] }
 0x14b   :  { %5641 = vmatpush.bf16.msra.mxu1 %v9160_v39 }
 0x14c   :  { %5655 = vmatpush.bf16.msra.mxu2 %v9168_v13  ;;  %v5357_v39 = vadd.f32 %v5356_v17, %v5343_v37  ;;  %v9192_v13 = vld [vmem:[%s11824_s1 + $0xb68] sm:$0xff]  ;;  %v6351_v17 = vld [vmem:[%s11823_s0 + $0x1d8] sm:$0xf0]  ;;  %v9225_v37 = vld [vmem:[%s11824_s1 + $0xc70] sm:$0xff] }
 0x14d   :  { %5669 = vmatpush.bf16.msra.mxu3 %v9176_v23 }
 0x14e   :  { %5628 = vmatpush.bf16.msra.mxu0 %v9151_v44  ;;  %v5384_v23 = vpop.f32.mrf.mxu2  ;;  %v5371_v44 = vadd.f32 %v5370_v9, %v5357_v39  ;;  %v6342_v9 = vor.u32 %v8813_v28, %v6341_v16  ;;  %v9233_v39 = vld [vmem:[%s11824_s1 + $0xcb0] sm:$0xff]  ;;  %v8779_v16 = vld [vmem:[%s11823_s0 + $0xc4] sm:$0xf] }
 0x14f   :  { %5642 = vmatpush.bf16.msra.mxu1 %v9159_v45  ;;  %v5398_v27 = vpop.f32.mrf.mxu3  ;;  %v6359_v28 = vld [vmem:[%s11823_s0 + $0x1e0] sm:$0xf0] }
 0x150   :  { %5656 = vmatpush.bf16.msra.mxu2 %v9167_v47  ;;  %v9191_v47 = vld [vmem:[%s11824_s1 + $0xb60] sm:$0xff] }
 0x151   :  { %5670 = vmatpush.bf16.msra.mxu3 %v9175_v29 }
 0x152   :  { %5629 = vmatpush.bf16.msra.mxu0 %v9150_v49  ;;  %v5385_v49 = vadd.f32 %v5384_v23, %v5371_v44  ;;  %v9224_v23 = vld [vmem:[%s11824_s1 + $0xc68] sm:$0xff]  ;;  %v9215_v44 = vld [vmem:[%s11824_s1 + $0xc20] sm:$0xff] }
 0x153   :  { %5643 = vmatpush.bf16.msra.mxu1 %v9158_v50 }
 0x154   :  { %5657 = vmatpush.bf16.msra.mxu2 %v9166_v51  ;;  %v9182_v51 = vld [vmem:[%s11824_s1 + $0xb18] sm:$0xff]  ;;  %v5399_v55 = vadd.f32 %v5398_v27, %v5385_v49 }
 0x155   :  { %5671 = vmatpush.bf16.msra.mxu3 %v9174_v11  ;;  %v9190_v11 = vld [vmem:[%s11824_s1 + $0xb58] sm:$0xff] }
 0x156   :  { %5630 = vmatpush.bf16.msra.mxu0 %v9149_v57  ;;  %v9222_v49 = vld [vmem:[%s11824_s1 + $0xc58] sm:$0xff] }
 0x157   :  { %5644 = vmatpush.bf16.msra.mxu1 %v9157_v58 }
 0x158   :  { %5658 = vmatpush.bf16.msra.mxu2 %v9165_v19 }
 0x159   :  { %5672 = vmatpush.bf16.msra.mxu3 %v9173_v31  ;;  %v9181_v31 = vld [vmem:[%s11824_s1 + $0xb10] sm:$0xff] }
 0x15a   :  { %5631 = vmatpush.bf16.msra.mxu0 %v9148_v15 }
 0x15b   :  { %5645 = vmatpush.bf16.msra.mxu1 %v9156_v60  ;;  %v9197_v60 = vld [vmem:[%s11824_s1 + $0xb90] sm:$0xff] }
 0x15c   :  { %5659 = vmatpush.bf16.msra.mxu2 %v9164_v61  ;;  %v9205_v61 = vld [vmem:[%s11824_s1 + $0xbd0] sm:$0xff] }
 0x15d   :  { %5673 = vmatpush.bf16.msra.mxu3 %v9172_v34 }
 0x15e   :  { %5632 = vmatpush.bf16.msra.mxu0 %v9147_v63  ;;  %v5410_v43 = vpop.f32.mrf.mxu0  ;;  %v9188_v63 = vld [vmem:[%s11824_s1 + $0xb48] sm:$0xff] }
 0x15f   :  { %5646 = vmatpush.bf16.msra.mxu1 %v9155_v0  ;;  %v5411_v45 = vadd.f32 %v5410_v43, %v10828_v56  ;;  %v5424_v29 = vpop.f32.mrf.mxu1  ;;  %v9196_v0 = vld [vmem:[%s11824_s1 + $0xb88] sm:$0xff] }
 0x160   :  { %5660 = vmatpush.bf16.msra.mxu2 %v9163_v24  ;;  %v9204_v24 = vld [vmem:[%s11824_s1 + $0xbc8] sm:$0xff] }
 0x161   :  { %5674 = vmatpush.bf16.msra.mxu3 %v9171_v1  ;;  %5633 = vmatmul.bf16.vlgmr.msra.gmra.mxu0 %v6326_v25  ;;  %v5425_v50 = vadd.f32 %v5424_v29, %v5411_v45  ;;  %v6343_v25 = vld [vmem:[%s11823_s0 + $0x1d0] sm:$0xf0]  ;;  %v9223_v45 = vld [vmem:[%s11824_s1 + $0xc60] sm:$0xff] }
 0x162   :  { %5681 = vmatpush.bf16.msrb.mxu0 %v9186_v2  ;;  %5647 = vmatmul.bf16.vlgmr.msra.gmra.mxu1 %v6330_v26  ;;  %v9234_v26 = vld [vmem:[%s11824_s1 + $0xcb8] sm:$0xff]  ;;  %v9239_v29 = vld [vmem:[%s11824_s1 + $0xce0] sm:$0xff] }
 0x163   :  { %5695 = vmatpush.bf16.msrb.mxu1 %v9194_v3  ;;  %5661 = vmatmul.bf16.vlgmr.msra.gmra.mxu2 %v6334_v38  ;;  %v8778_v38 = vld [vmem:[%s11823_s0 + $0xbc] sm:$0xf] }
 0x164   :  { %5709 = vmatpush.bf16.msrb.mxu2 %v9202_v18  ;;  %5675 = vmatmul.bf16.vlgmr.msra.gmra.mxu3 %v6338_v30  ;;  %v6349_v18 = vld [vmem:[%s11823_s0 + $0xb8] sm:$0xf] }
 0x165   :  { %5723 = vmatpush.bf16.msrb.mxu3 %v9210_v20  ;;  %v8814_v20 = vld [vmem:[%s11823_s0 + $0x1d4] sm:$0xf0] }
 0x166   :  { %5682 = vmatpush.bf16.msrb.mxu0 %v9185_v33  ;;  %v5438_v54 = vpop.f32.mrf.mxu2  ;;  %v5412_v57 = vpop.f32.mrf.mxu0  ;;  %v9242_v30 = vld [vmem:[%s11824_s1 + $0xcf8] sm:$0xff]  ;;  %v6350_v33 = vor.u32 %v8814_v20, %v6349_v18  ;;  %v8780_v18 = vld [vmem:[%s11823_s0 + $0xcc] sm:$0xf] }
 0x167   :  { %5696 = vmatpush.bf16.msrb.mxu1 %v9193_v22  ;;  %v5439_v12 = vadd.f32 %v5438_v54, %v5425_v50  ;;  %v5452_v56 = vpop.f32.mrf.mxu3  ;;  %v5413_v58 = vadd.f32 %v5412_v57, %v5399_v55  ;;  %v5426_v15 = vpop.f32.mrf.mxu1  ;;  %v6346_v22 = vor.u32 %v8777_v21, %v6343_v25  ;;  %v9230_v50 = vld [vmem:[%s11824_s1 + $0xc98] sm:$0xff]  ;;  %v9221_v57 = vld [vmem:[%s11824_s1 + $0xc50] sm:$0xff]  ;;  %v6367_v20 = vld [vmem:[%s11823_s0 + $0x1e8] sm:$0xf0] }
 0x168   :  { %5710 = vmatpush.bf16.msrb.mxu2 %v9201_v35  ;;  %v6354_v35 = vor.u32 %v8778_v38, %v6351_v17  ;;  %v9266_v21 = vld [vmem:[%s11824_s1 + $0xdb8] sm:$0xff] }
 0x169   :  { %5724 = vmatpush.bf16.msrb.mxu3 %v9209_v36  ;;  %v10956_v19 = vadd.f32 %v5452_v56, %v5439_v12  ;;  %v5427_v34 = vadd.f32 %v5426_v15, %v5413_v58  ;;  %v9217_v36 = vld [vmem:[%s11824_s1 + $0xc30] sm:$0xff]  ;;  %v9212_v15 = vld [vmem:[%s11824_s1 + $0xc08] sm:$0xff]  ;;  %v9274_v25 = vld [vmem:[%s11824_s1 + $0xdf8] sm:$0xff] }
 0x16a   :  { %5683 = vmatpush.bf16.msrb.mxu0 %v9184_v40  ;;  %v9241_v40 = vld [vmem:[%s11824_s1 + $0xcf0] sm:$0xff] }
 0x16b   :  { %5697 = vmatpush.bf16.msrb.mxu1 %v9192_v13  ;;  %v9216_v13 = vld [vmem:[%s11824_s1 + $0xc28] sm:$0xff]  ;;  %v9213_v56 = vld [vmem:[%s11824_s1 + $0xc10] sm:$0xff] }
 0x16c   :  { %5711 = vmatpush.bf16.msrb.mxu2 %v9200_v41  ;;  %v9232_v41 = vld [vmem:[%s11824_s1 + $0xca8] sm:$0xff] }
 0x16d   :  { %5725 = vmatpush.bf16.msrb.mxu3 %v9208_v42  ;;  %v9240_v42 = vld [vmem:[%s11824_s1 + $0xce8] sm:$0xff] }
 0x16e   :  { %5684 = vmatpush.bf16.msrb.mxu0 %v9183_v46  ;;  %v5440_v1 = vpop.f32.mrf.mxu2 }
 0x16f   :  { %5698 = vmatpush.bf16.msrb.mxu1 %v9191_v47  ;;  %v5441_v2 = vadd.f32 %v5440_v1, %v5427_v34  ;;  %v5454_v3 = vpop.f32.mrf.mxu3  ;;  %v9231_v47 = vld [vmem:[%s11824_s1 + $0xca0] sm:$0xff]  ;;  %v9236_v34 = vld [vmem:[%s11824_s1 + $0xcc8] sm:$0xff] }
 0x170   :  { %5712 = vmatpush.bf16.msrb.mxu2 %v9199_v32  ;;  %v9219_v1 = vld [vmem:[%s11824_s1 + $0xc40] sm:$0xff] }
 0x171   :  { %5726 = vmatpush.bf16.msrb.mxu3 %v9207_v48  ;;  %v10994_v8 = vadd.f32 %v5454_v3, %v5441_v2  ;;  %v9214_v48 = vld [vmem:[%s11824_s1 + $0xc18] sm:$0xff]  ;;  %v9227_v2 = vld [vmem:[%s11824_s1 + $0xc80] sm:$0xff] }
 0x172   :  { %5685 = vmatpush.bf16.msrb.mxu0 %v9182_v51  ;;  %v9238_v51 = vld [vmem:[%s11824_s1 + $0xcd8] sm:$0xff]  ;;  %v9235_v3 = vld [vmem:[%s11824_s1 + $0xcc0] sm:$0xff] }
 0x173   :  { %5699 = vmatpush.bf16.msrb.mxu1 %v9190_v11 }
 0x174   :  { %5713 = vmatpush.bf16.msrb.mxu2 %v9198_v52 }
 0x175   :  { %5727 = vmatpush.bf16.msrb.mxu3 %v9206_v53 }
 0x176   :  { %5686 = vmatpush.bf16.msrb.mxu0 %v9181_v31  ;;  %v9237_v31 = vld [vmem:[%s11824_s1 + $0xcd0] sm:$0xff] }
 0x177   :  { %5700 = vmatpush.bf16.msrb.mxu1 %v9189_v59 }
 0x178   :  { %5714 = vmatpush.bf16.msrb.mxu2 %v9197_v60  ;;  %v9220_v60 = vld [vmem:[%s11824_s1 + $0xc48] sm:$0xff] }
 0x179   :  { %5728 = vmatpush.bf16.msrb.mxu3 %v9205_v61  ;;  %v9228_v61 = vld [vmem:[%s11824_s1 + $0xc88] sm:$0xff] }
 0x17a   :  { %5687 = vmatpush.bf16.msrb.mxu0 %v9180_v62 }
 0x17b   :  { %5701 = vmatpush.bf16.msrb.mxu1 %v9188_v63 }
 0x17c   :  { %5715 = vmatpush.bf16.msrb.mxu2 %v9196_v0 }
 0x17d   :  { %5729 = vmatpush.bf16.msrb.mxu3 %v9204_v24  ;;  %v9211_v24 = vld [vmem:[%s11824_s1 + $0xc00] sm:$0xff] }
 0x17e   :  { %5688 = vmatpush.bf16.msrb.mxu0 %v9179_v4  ;;  %v5466_v27 = vpop.f32.mrf.mxu0 }
 0x17f   :  { %5702 = vmatpush.bf16.msrb.mxu1 %v9187_v5  ;;  %v5467_v43 = vadd.f32 %v5466_v27, %v10956_v19  ;;  %v5480_v46 = vpop.f32.mrf.mxu1  ;;  %v9229_v19 = vld [vmem:[%s11824_s1 + $0xc90] sm:$0xff]  ;;  %v9250_v5 = vld [vmem:[%s11824_s1 + $0xd38] sm:$0xff] }
 0x180   :  { %5716 = vmatpush.bf16.msrb.mxu2 %v9195_v6  ;;  %v9258_v6 = vld [vmem:[%s11824_s1 + $0xd78] sm:$0xff] }
 0x181   :  { %5730 = vmatpush.bf16.msrb.mxu3 %v9203_v7  ;;  %5689 = vmatmul.bf16.vlgmr.msrb.gmra.mxu0 %v6342_v9  ;;  %v5481_v32 = vadd.f32 %v5480_v46, %v5467_v43  ;;  %v6357_v7 = vld [vmem:[%s11823_s0 + $0xc0] sm:$0xf]  ;;  %v9249_v9 = vld [vmem:[%s11824_s1 + $0xd30] sm:$0xff]  ;;  %v9246_v46 = vld [vmem:[%s11824_s1 + $0xd18] sm:$0xff] }
 0x182   :  { %5737 = vmatpush.bf16.msra.mxu0 %v9218_v10  ;;  %5703 = vmatmul.bf16.vlgmr.msrb.gmra.mxu1 %v6346_v22  ;;  %v6365_v10 = vld [vmem:[%s11823_s0 + $0xc8] sm:$0xf]  ;;  %v9265_v22 = vld [vmem:[%s11824_s1 + $0xdb0] sm:$0xff]  ;;  %v9263_v43 = vld [vmem:[%s11824_s1 + $0xda0] sm:$0xff] }
 0x183   :  { %5751 = vmatpush.bf16.msra.mxu1 %v9226_v14  ;;  %5717 = vmatmul.bf16.vlgmr.msrb.gmra.mxu2 %v6350_v33  ;;  %v8816_v14 = vld [vmem:[%s11823_s0 + $0x1e4] sm:$0xf0]  ;;  %v9257_v33 = vld [vmem:[%s11824_s1 + $0xd70] sm:$0xff] }
 0x184   :  { %5765 = vmatpush.bf16.msra.mxu2 %v9234_v26  ;;  %5731 = vmatmul.bf16.vlgmr.msrb.gmra.mxu3 %v6354_v35  ;;  %v6366_v17 = vor.u32 %v8816_v14, %v6365_v10  ;;  %v6362_v26 = vor.u32 %v8779_v16, %v6359_v28  ;;  %v9273_v35 = vld [vmem:[%s11824_s1 + $0xdf0] sm:$0xff]  ;;  %v8782_v10 = vld [vmem:[%s11823_s0 + $0xdc] sm:$0xf] }
 0x185   :  { %5779 = vmatpush.bf16.msra.mxu3 %v9242_v30  ;;  %v6370_v30 = vor.u32 %v8780_v18, %v6367_v20  ;;  %v6383_v14 = vld [vmem:[%s11823_s0 + $0x1f8] sm:$0xf0] }
 0x186   :  { %5738 = vmatpush.bf16.msra.mxu0 %v9217_v36  ;;  %v5494_v11 = vpop.f32.mrf.mxu2  ;;  %v5468_v54 = vpop.f32.mrf.mxu0  ;;  %v9248_v36 = vld [vmem:[%s11824_s1 + $0xd28] sm:$0xff]  ;;  %v9298_v16 = vld [vmem:[%s11824_s1 + $0xeb8] sm:$0xff] }
 0x187   :  { %5752 = vmatpush.bf16.msra.mxu1 %v9225_v37  ;;  %v5495_v52 = vadd.f32 %v5494_v11, %v5481_v32  ;;  %v5508_v53 = vpop.f32.mrf.mxu3  ;;  %v5469_v55 = vadd.f32 %v5468_v54, %v10994_v8  ;;  %v5482_v58 = vpop.f32.mrf.mxu1  ;;  %v8815_v8 = vld [vmem:[%s11823_s0 + $0x1dc] sm:$0xf0]  ;;  %v9256_v37 = vld [vmem:[%s11824_s1 + $0xd68] sm:$0xff]  ;;  %v9270_v32 = vld [vmem:[%s11824_s1 + $0xdd8] sm:$0xff] }
 0x188   :  { %5766 = vmatpush.bf16.msra.mxu2 %v9233_v39  ;;  %v6358_v38 = vor.u32 %v8815_v8, %v6357_v7  ;;  %v9264_v39 = vld [vmem:[%s11824_s1 + $0xda8] sm:$0xff]  ;;  %v9253_v54 = vld [vmem:[%s11824_s1 + $0xd50] sm:$0xff]  ;;  %v9306_v28 = vld [vmem:[%s11824_s1 + $0xef8] sm:$0xff] }
 0x189   :  { %5780 = vmatpush.bf16.msra.mxu3 %v9241_v40  ;;  %v11082_v12 = vadd.f32 %v5508_v53, %v5495_v52  ;;  %v5483_v59 = vadd.f32 %v5482_v58, %v5469_v55  ;;  %v9272_v40 = vld [vmem:[%s11824_s1 + $0xde8] sm:$0xff]  ;;  %v9245_v53 = vld [vmem:[%s11824_s1 + $0xd10] sm:$0xff] }
 0x18a   :  { %5739 = vmatpush.bf16.msra.mxu0 %v9216_v13  ;;  %v9244_v58 = vld [vmem:[%s11824_s1 + $0xd08] sm:$0xff]  ;;  %v8781_v7 = vld [vmem:[%s11823_s0 + $0xd4] sm:$0xf] }
 0x18b   :  { %5753 = vmatpush.bf16.msra.mxu1 %v9224_v23  ;;  %v6375_v8 = vld [vmem:[%s11823_s0 + $0x1f0] sm:$0xf0] }
 0x18c   :  { %5767 = vmatpush.bf16.msra.mxu2 %v9232_v41  ;;  %v9247_v41 = vld [vmem:[%s11824_s1 + $0xd20] sm:$0xff] }
 0x18d   :  { %5781 = vmatpush.bf16.msra.mxu3 %v9240_v42  ;;  %v9255_v42 = vld [vmem:[%s11824_s1 + $0xd60] sm:$0xff] }
 0x18e   :  { %5740 = vmatpush.bf16.msra.mxu0 %v9215_v44  ;;  %v5496_v62 = vpop.f32.mrf.mxu2  ;;  %v9271_v44 = vld [vmem:[%s11824_s1 + $0xde0] sm:$0xff] }
 0x18f   :  { %5754 = vmatpush.bf16.msra.mxu1 %v9223_v45  ;;  %v5497_v63 = vadd.f32 %v5496_v62, %v5483_v59  ;;  %v5510_v0 = vpop.f32.mrf.mxu3  ;;  %v9268_v59 = vld [vmem:[%s11824_s1 + $0xdc8] sm:$0xff]  ;;  %v9251_v62 = vld [vmem:[%s11824_s1 + $0xd40] sm:$0xff] }
 0x190   :  { %5768 = vmatpush.bf16.msra.mxu2 %v9231_v47  ;;  %v9254_v47 = vld [vmem:[%s11824_s1 + $0xd58] sm:$0xff] }
 0x191   :  { %5782 = vmatpush.bf16.msra.mxu3 %v9239_v29  ;;  %v11120_v4 = vadd.f32 %v5510_v0, %v5497_v63  ;;  %v9262_v29 = vld [vmem:[%s11824_s1 + $0xd98] sm:$0xff]  ;;  %v9259_v63 = vld [vmem:[%s11824_s1 + $0xd80] sm:$0xff] }
 0x192   :  { %5741 = vmatpush.bf16.msra.mxu0 %v9214_v48  ;;  %v9267_v0 = vld [vmem:[%s11824_s1 + $0xdc0] sm:$0xff] }
 0x193   :  { %5755 = vmatpush.bf16.msra.mxu1 %v9222_v49 }
 0x194   :  { %5769 = vmatpush.bf16.msra.mxu2 %v9230_v50 }
 0x195   :  { %5783 = vmatpush.bf16.msra.mxu3 %v9238_v51 }
 0x196   :  { %5742 = vmatpush.bf16.msra.mxu0 %v9213_v56  ;;  %v9269_v56 = vld [vmem:[%s11824_s1 + $0xdd0] sm:$0xff] }
 0x197   :  { %5756 = vmatpush.bf16.msra.mxu1 %v9221_v57 }
 0x198   :  { %5770 = vmatpush.bf16.msra.mxu2 %v9229_v19  ;;  %v9252_v19 = vld [vmem:[%s11824_s1 + $0xd48] sm:$0xff] }
 0x199   :  { %5784 = vmatpush.bf16.msra.mxu3 %v9237_v31  ;;  %v9260_v31 = vld [vmem:[%s11824_s1 + $0xd88] sm:$0xff] }
 0x19a   :  { %5743 = vmatpush.bf16.msra.mxu0 %v9212_v15 }
 0x19b   :  { %5757 = vmatpush.bf16.msra.mxu1 %v9220_v60 }
 0x19c   :  { %5771 = vmatpush.bf16.msra.mxu2 %v9228_v61 }
 0x19d   :  { %5785 = vmatpush.bf16.msra.mxu3 %v9236_v34  ;;  %v9243_v34 = vld [vmem:[%s11824_s1 + $0xd00] sm:$0xff] }
 0x19e   :  { %5744 = vmatpush.bf16.msra.mxu0 %v9211_v24  ;;  %v5522_v13 = vpop.f32.mrf.mxu0 }
 0x19f   :  { %5758 = vmatpush.bf16.msra.mxu1 %v9219_v1  ;;  %v5523_v23 = vadd.f32 %v5522_v13, %v11082_v12  ;;  %v5536_v27 = vpop.f32.mrf.mxu1  ;;  %v9261_v12 = vld [vmem:[%s11824_s1 + $0xd90] sm:$0xff]  ;;  %v9282_v1 = vld [vmem:[%s11824_s1 + $0xe38] sm:$0xff] }
 0x1a0   :  { %5772 = vmatpush.bf16.msra.mxu2 %v9227_v2  ;;  %v9290_v2 = vld [vmem:[%s11824_s1 + $0xe78] sm:$0xff] }
 0x1a1   :  { %5786 = vmatpush.bf16.msra.mxu3 %v9235_v3  ;;  %5745 = vmatmul.bf16.vlgmr.msra.gmra.mxu0 %v6358_v38  ;;  %v5537_v45 = vadd.f32 %v5536_v27, %v5523_v23  ;;  %v6373_v3 = vld [vmem:[%s11823_s0 + $0xd0] sm:$0xf]  ;;  %v9295_v23 = vld [vmem:[%s11824_s1 + $0xea0] sm:$0xff]  ;;  %v9278_v27 = vld [vmem:[%s11824_s1 + $0xe18] sm:$0xff] }
 0x1a2   :  { %5793 = vmatpush.bf16.msrb.mxu0 %v9250_v5  ;;  %5759 = vmatmul.bf16.vlgmr.msra.gmra.mxu1 %v6362_v26  ;;  %v6381_v5 = vld [vmem:[%s11823_s0 + $0xd8] sm:$0xf]  ;;  %v9281_v38 = vld [vmem:[%s11824_s1 + $0xe30] sm:$0xff] }
 0x1a3   :  { %5807 = vmatpush.bf16.msrb.mxu1 %v9258_v6  ;;  %5773 = vmatmul.bf16.vlgmr.msra.gmra.mxu2 %v6366_v17  ;;  %v8818_v6 = vld [vmem:[%s11823_s0 + $0x1f4] sm:$0xf0]  ;;  %v9289_v17 = vld [vmem:[%s11824_s1 + $0xe70] sm:$0xff] }
 0x1a4   :  { %5821 = vmatpush.bf16.msrb.mxu2 %v9266_v21  ;;  %5787 = vmatmul.bf16.vlgmr.msra.gmra.mxu3 %v6370_v30  ;;  %v6382_v20 = vor.u32 %v8818_v6, %v6381_v5  ;;  %v6378_v21 = vor.u32 %v8781_v7, %v6375_v8  ;;  %v9297_v26 = vld [vmem:[%s11824_s1 + $0xeb0] sm:$0xff]  ;;  %v8784_v5 = vld [vmem:[%s11823_s0 + $0xec] sm:$0xf]  ;;  %v9330_v7 = vld [vmem:[%s11824_s1 + $0xfb8] sm:$0xff] }
 0x1a5   :  { %5835 = vmatpush.bf16.msrb.mxu3 %v9274_v25  ;;  %v6386_v25 = vor.u32 %v8782_v10, %v6383_v14  ;;  %v9305_v30 = vld [vmem:[%s11824_s1 + $0xef0] sm:$0xff]  ;;  %v6399_v6 = vld [vmem:[%s11823_s0 + $0x208] sm:$0xf0]  ;;  %v9338_v8 = vld [vmem:[%s11824_s1 + $0xff8] sm:$0xff] }
 0x1a6   :  { %5794 = vmatpush.bf16.msrb.mxu0 %v9249_v9  ;;  %v5550_v48 = vpop.f32.mrf.mxu2  ;;  %v5524_v51 = vpop.f32.mrf.mxu0  ;;  %v9280_v9 = vld [vmem:[%s11824_s1 + $0xe28] sm:$0xff] }
 0x1a7   :  { %5808 = vmatpush.bf16.msrb.mxu1 %v9257_v33  ;;  %v5551_v49 = vadd.f32 %v5550_v48, %v5537_v45  ;;  %v5564_v50 = vpop.f32.mrf.mxu3  ;;  %v5525_v11 = vadd.f32 %v5524_v51, %v11120_v4  ;;  %v5538_v55 = vpop.f32.mrf.mxu1  ;;  %v8817_v4 = vld [vmem:[%s11823_s0 + $0x1ec] sm:$0xf0]  ;;  %v9288_v33 = vld [vmem:[%s11824_s1 + $0xe68] sm:$0xff]  ;;  %v9302_v45 = vld [vmem:[%s11824_s1 + $0xed8] sm:$0xff] }
 0x1a8   :  { %5822 = vmatpush.bf16.msrb.mxu2 %v9265_v22  ;;  %v6374_v18 = vor.u32 %v8817_v4, %v6373_v3  ;;  %v9296_v22 = vld [vmem:[%s11824_s1 + $0xea8] sm:$0xff]  ;;  %v9285_v51 = vld [vmem:[%s11824_s1 + $0xe50] sm:$0xff]  ;;  %v8783_v3 = vld [vmem:[%s11823_s0 + $0xe4] sm:$0xf] }
 0x1a9   :  { %5836 = vmatpush.bf16.msrb.mxu3 %v9273_v35  ;;  %v11208_v52 = vadd.f32 %v5564_v50, %v5551_v49  ;;  %v5539_v57 = vadd.f32 %v5538_v55, %v5525_v11  ;;  %v9304_v35 = vld [vmem:[%s11824_s1 + $0xee8] sm:$0xff]  ;;  %v9277_v50 = vld [vmem:[%s11824_s1 + $0xe10] sm:$0xff]  ;;  %v6391_v4 = vld [vmem:[%s11823_s0 + $0x200] sm:$0xf0] }
 0x1aa   :  { %5795 = vmatpush.bf16.msrb.mxu0 %v9248_v36  ;;  %v9276_v55 = vld [vmem:[%s11824_s1 + $0xe08] sm:$0xff] }
 0x1ab   :  { %5809 = vmatpush.bf16.msrb.mxu1 %v9256_v37 }
 0x1ac   :  { %5823 = vmatpush.bf16.msrb.mxu2 %v9264_v39  ;;  %v9279_v39 = vld [vmem:[%s11824_s1 + $0xe20] sm:$0xff] }
 0x1ad   :  { %5837 = vmatpush.bf16.msrb.mxu3 %v9272_v40  ;;  %v9287_v40 = vld [vmem:[%s11824_s1 + $0xe60] sm:$0xff] }
 0x1ae   :  { %5796 = vmatpush.bf16.msrb.mxu0 %v9247_v41  ;;  %v5552_v15 = vpop.f32.mrf.mxu2  ;;  %v9303_v41 = vld [vmem:[%s11824_s1 + $0xee0] sm:$0xff] }
 0x1af   :  { %5810 = vmatpush.bf16.msrb.mxu1 %v9255_v42  ;;  %v5553_v60 = vadd.f32 %v5552_v15, %v5539_v57  ;;  %v5566_v61 = vpop.f32.mrf.mxu3  ;;  %v9300_v57 = vld [vmem:[%s11824_s1 + $0xec8] sm:$0xff]  ;;  %v9283_v15 = vld [vmem:[%s11824_s1 + $0xe40] sm:$0xff] }
 0x1b0   :  { %5824 = vmatpush.bf16.msrb.mxu2 %v9263_v43  ;;  %v9286_v43 = vld [vmem:[%s11824_s1 + $0xe58] sm:$0xff] }
 0x1b1   :  { %5838 = vmatpush.bf16.msrb.mxu3 %v9271_v44  ;;  %v11246_v24 = vadd.f32 %v5566_v61, %v5553_v60  ;;  %v9294_v44 = vld [vmem:[%s11824_s1 + $0xe98] sm:$0xff]  ;;  %v9291_v60 = vld [vmem:[%s11824_s1 + $0xe80] sm:$0xff] }
 0x1b2   :  { %5797 = vmatpush.bf16.msrb.mxu0 %v9246_v46  ;;  %v9299_v61 = vld [vmem:[%s11824_s1 + $0xec0] sm:$0xff] }
 0x1b3   :  { %5811 = vmatpush.bf16.msrb.mxu1 %v9254_v47 }
 0x1b4   :  { %5825 = vmatpush.bf16.msrb.mxu2 %v9262_v29 }
 0x1b5   :  { %5839 = vmatpush.bf16.msrb.mxu3 %v9270_v32 }
 0x1b6   :  { %5798 = vmatpush.bf16.msrb.mxu0 %v9245_v53  ;;  %v9301_v53 = vld [vmem:[%s11824_s1 + $0xed0] sm:$0xff] }
 0x1b7   :  { %5812 = vmatpush.bf16.msrb.mxu1 %v9253_v54 }
 0x1b8   :  { %5826 = vmatpush.bf16.msrb.mxu2 %v9261_v12  ;;  %v9284_v12 = vld [vmem:[%s11824_s1 + $0xe48] sm:$0xff] }
 0x1b9   :  { %5840 = vmatpush.bf16.msrb.mxu3 %v9269_v56  ;;  %v9292_v56 = vld [vmem:[%s11824_s1 + $0xe88] sm:$0xff] }
 0x1ba   :  { %5799 = vmatpush.bf16.msrb.mxu0 %v9244_v58 }
 0x1bb   :  { %5813 = vmatpush.bf16.msrb.mxu1 %v9252_v19 }
 0x1bc   :  { %5827 = vmatpush.bf16.msrb.mxu2 %v9260_v31 }
 0x1bd   :  { %5841 = vmatpush.bf16.msrb.mxu3 %v9268_v59  ;;  %v9275_v59 = vld [vmem:[%s11824_s1 + $0xe00] sm:$0xff] }
 0x1be   :  { %5800 = vmatpush.bf16.msrb.mxu0 %v9243_v34  ;;  %v5578_v36 = vpop.f32.mrf.mxu0 }
 0x1bf   :  { %5814 = vmatpush.bf16.msrb.mxu1 %v9251_v62  ;;  %v5579_v37 = vadd.f32 %v5578_v36, %v11208_v52  ;;  %v5592_v13 = vpop.f32.mrf.mxu1  ;;  %v9293_v52 = vld [vmem:[%s11824_s1 + $0xe90] sm:$0xff]  ;;  %v9314_v62 = vld [vmem:[%s11824_s1 + $0xf38] sm:$0xff] }
 0x1c0   :  { %5828 = vmatpush.bf16.msrb.mxu2 %v9259_v63  ;;  %v9322_v63 = vld [vmem:[%s11824_s1 + $0xf78] sm:$0xff] }
 0x1c1   :  { %5842 = vmatpush.bf16.msrb.mxu3 %v9267_v0  ;;  %5801 = vmatmul.bf16.vlgmr.msrb.gmra.mxu0 %v6374_v18  ;;  %v5593_v42 = vadd.f32 %v5592_v13, %v5579_v37  ;;  %v6389_v0 = vld [vmem:[%s11823_s0 + $0xe0] sm:$0xf]  ;;  %v9313_v18 = vld [vmem:[%s11824_s1 + $0xf30] sm:$0xff]  ;;  %v9310_v36 = vld [vmem:[%s11824_s1 + $0xf18] sm:$0xff] }
 0x1c2   :  { %5849 = vmatpush.bf16.msra.mxu0 %v9282_v1  ;;  %5815 = vmatmul.bf16.vlgmr.msrb.gmra.mxu1 %v6378_v21  ;;  %v6397_v1 = vld [vmem:[%s11823_s0 + $0xe8] sm:$0xf]  ;;  %v9329_v21 = vld [vmem:[%s11824_s1 + $0xfb0] sm:$0xff]  ;;  %v9318_v37 = vld [vmem:[%s11824_s1 + $0xf58] sm:$0xff] }
 0x1c3   :  { %5863 = vmatpush.bf16.msra.mxu1 %v9290_v2  ;;  %5829 = vmatmul.bf16.vlgmr.msrb.gmra.mxu2 %v6382_v20  ;;  %v8820_v2 = vld [vmem:[%s11823_s0 + $0x204] sm:$0xf0]  ;;  %v9321_v20 = vld [vmem:[%s11824_s1 + $0xf70] sm:$0xff] }
 0x1c4   :  { %5877 = vmatpush.bf16.msra.mxu2 %v9298_v16  ;;  %5843 = vmatmul.bf16.vlgmr.msrb.gmra.mxu3 %v6386_v25  ;;  %v6398_v14 = vor.u32 %v8820_v2, %v6397_v1  ;;  %v6394_v16 = vor.u32 %v8783_v3, %v6391_v4  ;;  %v9337_v25 = vld [vmem:[%s11824_s1 + $0xff0] sm:$0xff]  ;;  %v9360_v1 = vld [vmem:[%s11824_s1 + $0x10a8] sm:$0xff]  ;;  %v9343_v3 = vld [vmem:[%s11824_s1 + $0x1020] sm:$0xff] }
 0x1c5   :  { %5891 = vmatpush.bf16.msra.mxu3 %v9306_v28  ;;  %v6402_v28 = vor.u32 %v8784_v5, %v6399_v6  ;;  %v9309_v13 = vld [vmem:[%s11824_s1 + $0xf10] sm:$0xff]  ;;  %v9368_v2 = vld [vmem:[%s11824_s1 + $0x10e8] sm:$0xff]  ;;  %v9351_v4 = vld [vmem:[%s11824_s1 + $0x1060] sm:$0xff] }
 0x1c6   :  { %5850 = vmatpush.bf16.msra.mxu0 %v9281_v38  ;;  %v5606_v46 = vpop.f32.mrf.mxu2  ;;  %v5580_v32 = vpop.f32.mrf.mxu0  ;;  %v9312_v38 = vld [vmem:[%s11824_s1 + $0xf28] sm:$0xff]  ;;  %v9359_v5 = vld [vmem:[%s11824_s1 + $0x10a0] sm:$0xff] }
 0x1c7   :  { %5864 = vmatpush.bf16.msra.mxu1 %v9289_v17  ;;  %v5607_v47 = vadd.f32 %v5606_v46, %v5593_v42  ;;  %v5620_v29 = vpop.f32.mrf.mxu3  ;;  %v5581_v48 = vadd.f32 %v5580_v32, %v11246_v24  ;;  %v5594_v11 = vpop.f32.mrf.mxu1  ;;  %v8819_v24 = vld [vmem:[%s11823_s0 + $0x1fc] sm:$0xf0]  ;;  %v9320_v17 = vld [vmem:[%s11824_s1 + $0xf68] sm:$0xff]  ;;  %v9333_v42 = vld [vmem:[%s11824_s1 + $0xfd0] sm:$0xff] }
 0x1c8   :  { %5878 = vmatpush.bf16.msra.mxu2 %v9297_v26  ;;  %v6390_v10 = vor.u32 %v8819_v24, %v6389_v0  ;;  %v9328_v26 = vld [vmem:[%s11824_s1 + $0xfa8] sm:$0xff]  ;;  %v9307_v46 = vld [vmem:[%s11824_s1 + $0xf00] sm:$0xff] }
 0x1c9   :  { %5892 = vmatpush.bf16.msra.mxu3 %v9305_v30  ;;  %v11334_v49 = vadd.f32 %v5620_v29, %v5607_v47  ;;  %v5595_v54 = vadd.f32 %v5594_v11, %v5581_v48  ;;  %v9336_v30 = vld [vmem:[%s11824_s1 + $0xfe8] sm:$0xff]  ;;  %v9315_v47 = vld [vmem:[%s11824_s1 + $0xf40] sm:$0xff]  ;;  %v9346_v48 = vld [vmem:[%s11824_s1 + $0x1038] sm:$0xff] }
 0x1ca   :  { %5851 = vmatpush.bf16.msra.mxu0 %v9280_v9  ;;  %v9311_v9 = vld [vmem:[%s11824_s1 + $0xf20] sm:$0xff]  ;;  %v8821_v11 = vld [vmem:[%s11823_s0 + $0x20c] sm:$0xf0]  ;;  %v9344_v0 = vld [vmem:[%s11824_s1 + $0x1028] sm:$0xff] }
 0x1cb   :  { %5865 = vmatpush.bf16.msra.mxu1 %v9288_v33  ;;  %v9319_v33 = vld [vmem:[%s11824_s1 + $0xf60] sm:$0xff]  ;;  %v9352_v24 = vld [vmem:[%s11824_s1 + $0x1068] sm:$0xff] }
 0x1cc   :  { %5879 = vmatpush.bf16.msra.mxu2 %v9296_v22  ;;  %v9327_v22 = vld [vmem:[%s11824_s1 + $0xfa0] sm:$0xff] }
 0x1cd   :  { %5893 = vmatpush.bf16.msra.mxu3 %v9304_v35  ;;  %v9335_v35 = vld [vmem:[%s11824_s1 + $0xfe0] sm:$0xff] }
 0x1ce   :  { %5852 = vmatpush.bf16.msra.mxu0 %v9279_v39  ;;  %v5608_v58 = vpop.f32.mrf.mxu2  ;;  %v9326_v39 = vld [vmem:[%s11824_s1 + $0xf98] sm:$0xff]  ;;  %v9323_v29 = vld [vmem:[%s11824_s1 + $0xf80] sm:$0xff] }
 0x1cf   :  { %5866 = vmatpush.bf16.msra.mxu1 %v9287_v40  ;;  %v5609_v19 = vadd.f32 %v5608_v58, %v5595_v54  ;;  %v5622_v31 = vpop.f32.mrf.mxu3  ;;  %v9334_v40 = vld [vmem:[%s11824_s1 + $0xfd8] sm:$0xff]  ;;  %v9331_v32 = vld [vmem:[%s11824_s1 + $0xfc0] sm:$0xff]  ;;  %v8785_v54 = vld [vmem:[%s11823_s0 + $0xf4] sm:$0xf] }
 0x1d0   :  { %5880 = vmatpush.bf16.msra.mxu2 %v9295_v23  ;;  %v9317_v23 = vld [vmem:[%s11824_s1 + $0xf50] sm:$0xff]  ;;  %v9370_v58 = vld [vmem:[%s11824_s1 + $0x10f8] sm:$0xff]  ;;  %v9367_v6 = vld [vmem:[%s11824_s1 + $0x10e0] sm:$0xff] }
 0x1d1   :  { %5894 = vmatpush.bf16.msra.mxu3 %v9303_v41  ;;  %v11372_v34 = vadd.f32 %v5622_v31, %v5609_v19  ;;  %v9325_v41 = vld [vmem:[%s11824_s1 + $0xf90] sm:$0xff] }
 0x1d2   :  { %5853 = vmatpush.bf16.msra.mxu0 %v9278_v27  ;;  %v9308_v27 = vld [vmem:[%s11824_s1 + $0xf08] sm:$0xff] }
 0x1d3   :  { %5867 = vmatpush.bf16.msra.mxu1 %v9286_v43  ;;  %v9316_v43 = vld [vmem:[%s11824_s1 + $0xf48] sm:$0xff] }
 0x1d4   :  { %5881 = vmatpush.bf16.msra.mxu2 %v9294_v44  ;;  %v9324_v44 = vld [vmem:[%s11824_s1 + $0xf88] sm:$0xff] }
 0x1d5   :  { %5895 = vmatpush.bf16.msra.mxu3 %v9302_v45  ;;  %v9332_v45 = vld [vmem:[%s11824_s1 + $0xfc8] sm:$0xff] }
 0x1d6   :  { %5854 = vmatpush.bf16.msra.mxu0 %v9277_v50  ;;  %v9354_v50 = vld [vmem:[%s11824_s1 + $0x1078] sm:$0xff] }
 0x1d7   :  { %5868 = vmatpush.bf16.msra.mxu1 %v9285_v51  ;;  %v6405_v51 = vld [vmem:[%s11823_s0 + $0xf0] sm:$0xf] }
 0x1d8   :  { %5882 = vmatpush.bf16.msra.mxu2 %v9293_v52  ;;  %v6413_v52 = vld [vmem:[%s11823_s0 + $0xf8] sm:$0xf]  ;;  %v6406_v19 = vor.u32 %v8821_v11, %v6405_v51  ;;  %v9376_v51 = vld [vmem:[%s11824_s1 + $0x1128] sm:$0xff] }
 0x1d9   :  { %5896 = vmatpush.bf16.msra.mxu3 %v9301_v53  ;;  %v8822_v53 = vld [vmem:[%s11823_s0 + $0x214] sm:$0xf0]  ;;  %v9384_v11 = vld [vmem:[%s11824_s1 + $0x1168] sm:$0xff] }
 0x1da   :  { %5855 = vmatpush.bf16.msra.mxu0 %v9276_v55  ;;  %v6407_v55 = vld [vmem:[%s11823_s0 + $0x210] sm:$0xf0]  ;;  %v6414_v31 = vor.u32 %v8822_v53, %v6413_v52  ;;  %v9392_v52 = vld [vmem:[%s11824_s1 + $0x11a8] sm:$0xff] }
 0x1db   :  { %5869 = vmatpush.bf16.msra.mxu1 %v9284_v12  ;;  %v8786_v12 = vld [vmem:[%s11823_s0 + $0xfc] sm:$0xf]  ;;  %v9400_v53 = vld [vmem:[%s11824_s1 + $0x11e8] sm:$0xff] }
 0x1dc   :  { %5883 = vmatpush.bf16.msra.mxu2 %v9292_v56  ;;  %v6415_v56 = vld [vmem:[%s11823_s0 + $0x218] sm:$0xf0] }
 0x1dd   :  { %5897 = vmatpush.bf16.msra.mxu3 %v9300_v57  ;;  %v9362_v57 = vld [vmem:[%s11824_s1 + $0x10b8] sm:$0xff] }
 0x1de   :  { %5856 = vmatpush.bf16.msra.mxu0 %v9275_v59  ;;  %v6410_v59 = vor.u32 %v8785_v54, %v6407_v55  ;;  %v9375_v54 = vld [vmem:[%s11824_s1 + $0x1120] sm:$0xff] }
 0x1df   :  { %5870 = vmatpush.bf16.msra.mxu1 %v9283_v15  ;;  %v6418_v15 = vor.u32 %v8786_v12, %v6415_v56  ;;  %v9383_v55 = vld [vmem:[%s11824_s1 + $0x1160] sm:$0xff] }
 0x1e0   :  { %5884 = vmatpush.bf16.msra.mxu2 %v9291_v60  ;;  %v9345_v60 = vld [vmem:[%s11824_s1 + $0x1030] sm:$0xff]  ;;  %v9391_v12 = vld [vmem:[%s11824_s1 + $0x11a0] sm:$0xff] }
 0x1e1   :  { %5898 = vmatpush.bf16.msra.mxu3 %v9299_v61  ;;  %5857 = vmatmul.bf16.vlgmr.msra.gmra.mxu0 %v6390_v10  ;;  %v9353_v61 = vld [vmem:[%s11824_s1 + $0x1070] sm:$0xff]  ;;  %v9358_v10 = vld [vmem:[%s11824_s1 + $0x1098] sm:$0xff]  ;;  %v9399_v56 = vld [vmem:[%s11824_s1 + $0x11e0] sm:$0xff] }
 0x1e2   :  { %5905 = vmatpush.bf16.msrb.mxu0 %v9314_v62  ;;  %5871 = vmatmul.bf16.vlgmr.msra.gmra.mxu1 %v6394_v16  ;;  %v9361_v62 = vld [vmem:[%s11824_s1 + $0x10b0] sm:$0xff] }
 0x1e3   :  { %5919 = vmatpush.bf16.msrb.mxu1 %v9322_v63  ;;  %5885 = vmatmul.bf16.vlgmr.msra.gmra.mxu2 %v6398_v14  ;;  %v9369_v63 = vld [vmem:[%s11824_s1 + $0x10f0] sm:$0xff]  ;;  %v9366_v14 = vld [vmem:[%s11824_s1 + $0x10d8] sm:$0xff] }
 0x1e4   :  { %5933 = vmatpush.bf16.msrb.mxu2 %v9330_v7  ;;  %5899 = vmatmul.bf16.vlgmr.msra.gmra.mxu3 %v6402_v28  ;;  %v9342_v7 = vld [vmem:[%s11824_s1 + $0x1018] sm:$0xff]  ;;  %v9341_v16 = vld [vmem:[%s11824_s1 + $0x1010] sm:$0xff] }
 0x1e5   :  { %5947 = vmatpush.bf16.msrb.mxu3 %v9338_v8  ;;  %v9350_v8 = vld [vmem:[%s11824_s1 + $0x1058] sm:$0xff]  ;;  %v9349_v28 = vld [vmem:[%s11824_s1 + $0x1050] sm:$0xff] }
 0x1e6   :  { %5906 = vmatpush.bf16.msrb.mxu0 %v9313_v18  ;;  %v9357_v18 = vld [vmem:[%s11824_s1 + $0x1090] sm:$0xff] }
 0x1e7   :  { %5920 = vmatpush.bf16.msrb.mxu1 %v9321_v20  ;;  %v9365_v20 = vld [vmem:[%s11824_s1 + $0x10d0] sm:$0xff] }
 0x1e8   :  { %5934 = vmatpush.bf16.msrb.mxu2 %v9329_v21  ;;  %v9340_v21 = vld [vmem:[%s11824_s1 + $0x1008] sm:$0xff] }
 0x1e9   :  { %5948 = vmatpush.bf16.msrb.mxu3 %v9337_v25  ;;  %v9348_v25 = vld [vmem:[%s11824_s1 + $0x1048] sm:$0xff] }
 0x1ea   :  { %5907 = vmatpush.bf16.msrb.mxu0 %v9312_v38  ;;  %v9356_v38 = vld [vmem:[%s11824_s1 + $0x1088] sm:$0xff] }
 0x1eb   :  { %5921 = vmatpush.bf16.msrb.mxu1 %v9320_v17  ;;  %v9364_v17 = vld [vmem:[%s11824_s1 + $0x10c8] sm:$0xff] }
 0x1ec   :  { %5935 = vmatpush.bf16.msrb.mxu2 %v9328_v26  ;;  %v9339_v26 = vld [vmem:[%s11824_s1 + $0x1000] sm:$0xff] }
 0x1ed   :  { %5949 = vmatpush.bf16.msrb.mxu3 %v9336_v30  ;;  %v9347_v30 = vld [vmem:[%s11824_s1 + $0x1040] sm:$0xff] }
 0x1ee   :  { %5908 = vmatpush.bf16.msrb.mxu0 %v9311_v9  ;;  %v9355_v9 = vld [vmem:[%s11824_s1 + $0x1080] sm:$0xff] }
 0x1ef   :  { %5922 = vmatpush.bf16.msrb.mxu1 %v9319_v33  ;;  %v9363_v33 = vld [vmem:[%s11824_s1 + $0x10c0] sm:$0xff] }
 0x1f0   :  { %5936 = vmatpush.bf16.msrb.mxu2 %v9327_v22  ;;  %v9378_v22 = vld [vmem:[%s11824_s1 + $0x1138] sm:$0xff] }
 0x1f1   :  { %5950 = vmatpush.bf16.msrb.mxu3 %v9335_v35  ;;  %v9386_v35 = vld [vmem:[%s11824_s1 + $0x1178] sm:$0xff] }
 0x1f2   :  { %5909 = vmatpush.bf16.msrb.mxu0 %v9310_v36  ;;  %v6421_v36 = vld [vmem:[%s11823_s0 + $0x100] sm:$0xf] }
 0x1f3   :  { %5923 = vmatpush.bf16.msrb.mxu1 %v9318_v37  ;;  %v8823_v37 = vld [vmem:[%s11823_s0 + $0x21c] sm:$0xf0] }
 0x1f4   :  { %5937 = vmatpush.bf16.msrb.mxu2 %v9326_v39  ;;  %v6429_v39 = vld [vmem:[%s11823_s0 + $0x108] sm:$0xf] }
 0x1f5   :  { %5951 = vmatpush.bf16.msrb.mxu3 %v9334_v40  ;;  %v8824_v40 = vld [vmem:[%s11823_s0 + $0x224] sm:$0xf0] }
 0x1f6   :  { %5910 = vmatpush.bf16.msrb.mxu0 %v9309_v13  ;;  %v8787_v13 = vld [vmem:[%s11823_s0 + $0x104] sm:$0xf] }
 0x1f7   :  { %5924 = vmatpush.bf16.msrb.mxu1 %v9317_v23  ;;  %v6423_v23 = vld [vmem:[%s11823_s0 + $0x220] sm:$0xf0] }
 0x1f8   :  { %5938 = vmatpush.bf16.msrb.mxu2 %v9325_v41  ;;  %v8788_v41 = vld [vmem:[%s11823_s0 + $0x10c] sm:$0xf] }
 0x1f9   :  { %5952 = vmatpush.bf16.msrb.mxu3 %v9333_v42  ;;  %v6431_v42 = vld [vmem:[%s11823_s0 + $0x228] sm:$0xf0] }
 0x1fa   :  { %5911 = vmatpush.bf16.msrb.mxu0 %v9308_v27  ;;  %v9394_v27 = vld [vmem:[%s11824_s1 + $0x11b8] sm:$0xff] }
 0x1fb   :  { %5925 = vmatpush.bf16.msrb.mxu1 %v9316_v43  ;;  %v9402_v43 = vld [vmem:[%s11824_s1 + $0x11f8] sm:$0xff] }
 0x1fc   :  { %5939 = vmatpush.bf16.msrb.mxu2 %v9324_v44  ;;  %v6422_v44 = vor.u32 %v8823_v37, %v6421_v36 }
 0x1fd   :  { %5953 = vmatpush.bf16.msrb.mxu3 %v9332_v45  ;;  %v6430_v45 = vor.u32 %v8824_v40, %v6429_v39 }
 0x1fe   :  { %5912 = vmatpush.bf16.msrb.mxu0 %v9307_v46  ;;  %v6426_v46 = vor.u32 %v8787_v13, %v6423_v23 }
 0x1ff   :  { %5926 = vmatpush.bf16.msrb.mxu1 %v9315_v47  ;;  %v6434_v47 = vor.u32 %v8788_v41, %v6431_v42 }
 0x200   :  { %5940 = vmatpush.bf16.msrb.mxu2 %v9323_v29  ;;  %v9377_v29 = vld [vmem:[%s11824_s1 + $0x1130] sm:$0xff] }
 0x201   :  { %5954 = vmatpush.bf16.msrb.mxu3 %v9331_v32  ;;  %5913 = vmatmul.bf16.vlgmr.msrb.gmra.mxu0 %v6406_v19  ;;  %v9385_v32 = vld [vmem:[%s11824_s1 + $0x1170] sm:$0xff]  ;;  %v9390_v19 = vld [vmem:[%s11824_s1 + $0x1198] sm:$0xff] }
 0x202   :  { %5961 = vmatpush.bf16.msra.mxu0 %v9346_v48  ;;  %5927 = vmatmul.bf16.vlgmr.msrb.gmra.mxu1 %v6410_v59  ;;  %v9393_v48 = vld [vmem:[%s11824_s1 + $0x11b0] sm:$0xff] }
 0x203   :  { %5975 = vmatpush.bf16.msra.mxu1 %v9354_v50  ;;  %5941 = vmatmul.bf16.vlgmr.msrb.gmra.mxu2 %v6414_v31  ;;  %v9401_v50 = vld [vmem:[%s11824_s1 + $0x11f0] sm:$0xff]  ;;  %v9398_v31 = vld [vmem:[%s11824_s1 + $0x11d8] sm:$0xff] }
 0x204   :  { %5989 = vmatpush.bf16.msra.mxu2 %v9362_v57  ;;  %5955 = vmatmul.bf16.vlgmr.msrb.gmra.mxu3 %v6418_v15  ;;  %v9374_v57 = vld [vmem:[%s11824_s1 + $0x1118] sm:$0xff]  ;;  %v9373_v59 = vld [vmem:[%s11824_s1 + $0x1110] sm:$0xff] }
 0x205   :  { %6003 = vmatpush.bf16.msra.mxu3 %v9370_v58  ;;  %v9382_v58 = vld [vmem:[%s11824_s1 + $0x1158] sm:$0xff]  ;;  %v9381_v15 = vld [vmem:[%s11824_s1 + $0x1150] sm:$0xff] }
 0x206   :  { %5962 = vmatpush.bf16.msra.mxu0 %v9345_v60  ;;  %v9389_v60 = vld [vmem:[%s11824_s1 + $0x1190] sm:$0xff] }
 0x207   :  { %5976 = vmatpush.bf16.msra.mxu1 %v9353_v61  ;;  %v9397_v61 = vld [vmem:[%s11824_s1 + $0x11d0] sm:$0xff] }
 0x208   :  { %5990 = vmatpush.bf16.msra.mxu2 %v9361_v62  ;;  %v9372_v62 = vld [vmem:[%s11824_s1 + $0x1108] sm:$0xff] }
 0x209   :  { %6004 = vmatpush.bf16.msra.mxu3 %v9369_v63  ;;  %v9380_v63 = vld [vmem:[%s11824_s1 + $0x1148] sm:$0xff] }
 0x20a   :  { %5963 = vmatpush.bf16.msra.mxu0 %v9344_v0  ;;  %v9388_v0 = vld [vmem:[%s11824_s1 + $0x1188] sm:$0xff] }
 0x20b   :  { %5977 = vmatpush.bf16.msra.mxu1 %v9352_v24  ;;  %v9396_v24 = vld [vmem:[%s11824_s1 + $0x11c8] sm:$0xff] }
 0x20c   :  { %5991 = vmatpush.bf16.msra.mxu2 %v9360_v1  ;;  %v9371_v1 = vld [vmem:[%s11824_s1 + $0x1100] sm:$0xff] }
 0x20d   :  { %6005 = vmatpush.bf16.msra.mxu3 %v9368_v2  ;;  %v9379_v2 = vld [vmem:[%s11824_s1 + $0x1140] sm:$0xff] }
 0x20e   :  { %5964 = vmatpush.bf16.msra.mxu0 %v9343_v3  ;;  %v9387_v3 = vld [vmem:[%s11824_s1 + $0x1180] sm:$0xff] }
 0x20f   :  { %5978 = vmatpush.bf16.msra.mxu1 %v9351_v4  ;;  %v9395_v4 = vld [vmem:[%s11824_s1 + $0x11c0] sm:$0xff] }
 0x210   :  { %5992 = vmatpush.bf16.msra.mxu2 %v9359_v5  ;;  %v6437_v5 = vld [vmem:[%s11823_s0 + $0x110] sm:$0xf] }
 0x211   :  { %6006 = vmatpush.bf16.msra.mxu3 %v9367_v6  ;;  %v8825_v6 = vld [vmem:[%s11823_s0 + $0x22c] sm:$0xf0] }
 0x212   :  { %5965 = vmatpush.bf16.msra.mxu0 %v9342_v7  ;;  %v8789_v7 = vld [vmem:[%s11823_s0 + $0x114] sm:$0xf] }
 0x213   :  { %5979 = vmatpush.bf16.msra.mxu1 %v9350_v8  ;;  %v6439_v8 = vld [vmem:[%s11823_s0 + $0x230] sm:$0xf0] }
 0x214   :  { %5993 = vmatpush.bf16.msra.mxu2 %v9358_v10  ;;  %v6445_v10 = vld [vmem:[%s11823_s0 + $0x118] sm:$0xf] }
 0x215   :  { %6007 = vmatpush.bf16.msra.mxu3 %v9366_v14  ;;  %v8826_v14 = vld [vmem:[%s11823_s0 + $0x234] sm:$0xf0] }
 0x216   :  { %5966 = vmatpush.bf16.msra.mxu0 %v9341_v16  ;;  %v8790_v16 = vld [vmem:[%s11823_s0 + $0x11c] sm:$0xf] }
 0x217   :  { %5980 = vmatpush.bf16.msra.mxu1 %v9349_v28  ;;  %v6447_v28 = vld [vmem:[%s11823_s0 + $0x238] sm:$0xf0] }
 0x218   :  { %5994 = vmatpush.bf16.msra.mxu2 %v9357_v18  ;;  %v6438_v18 = vor.u32 %v8825_v6, %v6437_v5 }
 0x219   :  { %6008 = vmatpush.bf16.msra.mxu3 %v9365_v20  ;;  %v6442_v20 = vor.u32 %v8789_v7, %v6439_v8  ;;  %v6090_v7 = vld [vmem:[%s11826_s3 + $0x78] sm:$0xff]  ;;  %v6089_v8 = vld [vmem:[%s11826_s3 + $0x70] sm:$0xff] }
 0x21a   :  { %5967 = vmatpush.bf16.msra.mxu0 %v9340_v21  ;;  %v6446_v21 = vor.u32 %v8826_v14, %v6445_v10 }
 0x21b   :  { %5981 = vmatpush.bf16.msra.mxu1 %v9348_v25  ;;  %v6450_v25 = vor.u32 %v8790_v16, %v6447_v28 }
 0x21c   :  { %5995 = vmatpush.bf16.msra.mxu2 %v9356_v38  ;;  %v5634_v38 = vpop.f32.mrf.mxu0 }
 0x21d   :  { %6009 = vmatpush.bf16.msra.mxu3 %v9364_v17  ;;  %v5648_v17 = vpop.f32.mrf.mxu1 }
 0x21e   :  { %5968 = vmatpush.bf16.msra.mxu0 %v9339_v26  ;;  %v5662_v26 = vpop.f32.mrf.mxu2 }
 0x21f   :  { %5982 = vmatpush.bf16.msra.mxu1 %v9347_v30  ;;  %v5676_v30 = vpop.f32.mrf.mxu3 }
 0x220   :  { %5996 = vmatpush.bf16.msra.mxu2 %v9355_v9 }
 0x221   :  { %6010 = vmatpush.bf16.msra.mxu3 %v9363_v33  ;;  %5969 = vmatmul.bf16.vlgmr.msra.gmra.mxu0 %v6422_v44 }
 0x222   :  { %6017 = vmatpush.bf16.msrb.mxu0 %v9378_v22  ;;  %5983 = vmatmul.bf16.vlgmr.msra.gmra.mxu1 %v6426_v46  ;;  %v5635_v46 = vadd.f32 %v5634_v38, %v11334_v49  ;;  %v6087_v38 = vld [vmem:[%s11826_s3 + $0x60] sm:$0xff] }
 0x223   :  { %6031 = vmatpush.bf16.msrb.mxu1 %v9386_v35  ;;  %5997 = vmatmul.bf16.vlgmr.msra.gmra.mxu2 %v6430_v45 }
 0x224   :  { %6045 = vmatpush.bf16.msrb.mxu2 %v9394_v27  ;;  %6011 = vmatmul.bf16.vlgmr.msra.gmra.mxu3 %v6434_v47  ;;  %v5636_v9 = vpop.f32.mrf.mxu0 }
 0x225   :  { %6059 = vmatpush.bf16.msrb.mxu3 %v9402_v43  ;;  %v5650_v33 = vpop.f32.mrf.mxu1 }
 0x226   :  { %6018 = vmatpush.bf16.msrb.mxu0 %v9377_v29  ;;  %v5664_v22 = vpop.f32.mrf.mxu2  ;;  %v5649_v29 = vadd.f32 %v5648_v17, %v5635_v46  ;;  %v6086_v17 = vld [vmem:[%s11826_s3 + $0x58] sm:$0xff] }
 0x227   :  { %6032 = vmatpush.bf16.msrb.mxu1 %v9385_v32  ;;  %v5678_v35 = vpop.f32.mrf.mxu3 }
 0x228   :  { %6046 = vmatpush.bf16.msrb.mxu2 %v9393_v48  ;;  %v5663_v48 = vadd.f32 %v5662_v26, %v5649_v29 }
 0x229   :  { %6060 = vmatpush.bf16.msrb.mxu3 %v9401_v50  ;;  %v5637_v50 = vadd.f32 %v5636_v9, %v11372_v34 }
 0x22a   :  { %6019 = vmatpush.bf16.msrb.mxu0 %v9376_v51 }
 0x22b   :  { %6033 = vmatpush.bf16.msrb.mxu1 %v9384_v11 }
 0x22c   :  { %6047 = vmatpush.bf16.msrb.mxu2 %v9392_v52  ;;  %v5690_v36 = vpop.f32.mrf.mxu0  ;;  %v5677_v52 = vadd.f32 %v5676_v30, %v5663_v48  ;;  %v6085_v30 = vld [vmem:[%s11826_s3 + $0x50] sm:$0xff]  ;;  %v6079_v48 = vld [vmem:[%s11826_s3 + $0x20] sm:$0xff] }
 0x22d   :  { %6061 = vmatpush.bf16.msrb.mxu3 %v9400_v53  ;;  %v5704_v37 = vpop.f32.mrf.mxu1 }
 0x22e   :  { %6020 = vmatpush.bf16.msrb.mxu0 %v9375_v54  ;;  %v5718_v39 = vpop.f32.mrf.mxu2  ;;  %v5651_v54 = vadd.f32 %v5650_v33, %v5637_v50 }
 0x22f   :  { %6034 = vmatpush.bf16.msrb.mxu1 %v9383_v55  ;;  %v5732_v40 = vpop.f32.mrf.mxu3  ;;  %v5691_v55 = vadd.f32 %v5690_v36, %v5677_v52 }
 0x230   :  { %6048 = vmatpush.bf16.msrb.mxu2 %v9391_v12 }
 0x231   :  { %6062 = vmatpush.bf16.msrb.mxu3 %v9399_v56  ;;  %v5665_v56 = vadd.f32 %v5664_v22, %v5651_v54 }
 0x232   :  { %6021 = vmatpush.bf16.msrb.mxu0 %v9374_v57  ;;  %v5705_v57 = vadd.f32 %v5704_v37, %v5691_v55  ;;  %v6083_v37 = vld [vmem:[%s11826_s3 + $0x40] sm:$0xff]  ;;  %v6077_v55 = vld [vmem:[%s11826_s3 + $0x10] sm:$0xff] }
 0x233   :  { %6035 = vmatpush.bf16.msrb.mxu1 %v9382_v58 }
 0x234   :  { %6049 = vmatpush.bf16.msrb.mxu2 %v9390_v19  ;;  %v5692_v13 = vpop.f32.mrf.mxu0 }
 0x235   :  { %6063 = vmatpush.bf16.msrb.mxu3 %v9398_v31  ;;  %v5706_v23 = vpop.f32.mrf.mxu1  ;;  %v5679_v31 = vadd.f32 %v5678_v35, %v5665_v56  ;;  %v6084_v35 = vld [vmem:[%s11826_s3 + $0x48] sm:$0xff] }
 0x236   :  { %6022 = vmatpush.bf16.msrb.mxu0 %v9373_v59  ;;  %v5720_v41 = vpop.f32.mrf.mxu2  ;;  %v5719_v59 = vadd.f32 %v5718_v39, %v5705_v57 }
 0x237   :  { %6036 = vmatpush.bf16.msrb.mxu1 %v9381_v15  ;;  %v5734_v42 = vpop.f32.mrf.mxu3  ;;  %v5693_v49 = vadd.f32 %v5692_v13, %v5679_v31  ;;  %v6075_v31 = vld [vmem:[%s11826_s3] sm:$0xff] }
 0x238   :  { %6050 = vmatpush.bf16.msrb.mxu2 %v9389_v60  ;;  %v5733_v60 = vadd.f32 %v5732_v40, %v5719_v59 }
 0x239   :  { %6064 = vmatpush.bf16.msrb.mxu3 %v9397_v61 }
 0x23a   :  { %6023 = vmatpush.bf16.msrb.mxu0 %v9372_v62  ;;  %v5707_v62 = vadd.f32 %v5706_v23, %v5693_v49 }
 0x23b   :  { %6037 = vmatpush.bf16.msrb.mxu1 %v9380_v63 }
 0x23c   :  { %6051 = vmatpush.bf16.msrb.mxu2 %v9388_v0  ;;  %v5746_v27 = vpop.f32.mrf.mxu0  ;;  %v5721_v34 = vadd.f32 %v5720_v41, %v5707_v62  ;;  %v6082_v41 = vld [vmem:[%s11826_s3 + $0x38] sm:$0xff] }
 0x23d   :  { %6065 = vmatpush.bf16.msrb.mxu3 %v9396_v24  ;;  %v5760_v43 = vpop.f32.mrf.mxu1  ;;  %v5747_v63 = vadd.f32 %v5746_v27, %v5733_v60 }
 0x23e   :  { %6024 = vmatpush.bf16.msrb.mxu0 %v9371_v1  ;;  %v5774_v44 = vpop.f32.mrf.mxu2 }
 0x23f   :  { %6038 = vmatpush.bf16.msrb.mxu1 %v9379_v2  ;;  %v5788_v45 = vpop.f32.mrf.mxu3  ;;  %v5761_v1 = vadd.f32 %v5760_v43, %v5747_v63 }
 0x240   :  { %6052 = vmatpush.bf16.msrb.mxu2 %v9387_v3  ;;  %v5735_v3 = vadd.f32 %v5734_v42, %v5721_v34 }
 0x241   :  { %6066 = vmatpush.bf16.msrb.mxu3 %v9395_v4  ;;  %6025 = vmatmul.bf16.vlgmr.msrb.gmra.mxu0 %v6438_v18  ;;  %v5775_v4 = vadd.f32 %v5774_v44, %v5761_v1 }
 0x242   :  { %6039 = vmatmul.bf16.vlgmr.msrb.gmra.mxu1 %v6442_v20  ;;  %6095 = vmatpush.msra.mxu0 %v6090_v7  ;;  %v6088_v20 = vld [vmem:[%s11826_s3 + $0x68] sm:$0xff] }
 0x243   :  { %6053 = vmatmul.bf16.vlgmr.msrb.gmra.mxu2 %v6446_v21  ;;  %9403 = vmatpush.msra.mxu1 %v6090_v7  ;;  %v5789_v10 = vadd.f32 %v5788_v45, %v5775_v4  ;;  %v6081_v45 = vld [vmem:[%s11826_s3 + $0x30] sm:$0xff] }
 0x244   :  { %6067 = vmatmul.bf16.vlgmr.msrb.gmra.mxu3 %v6450_v25  ;;  %v5748_v47 = vpop.f32.mrf.mxu0  ;;  %6096 = vmatpush.msra.mxu0 %v6089_v8 }
 0x245   :  { %v5762_v32 = vpop.f32.mrf.mxu1  ;;  %v5749_v6 = vadd.f32 %v5748_v47, %v5735_v3  ;;  %9404 = vmatpush.msra.mxu1 %v6089_v8  ;;  %v6080_v47 = vld [vmem:[%s11826_s3 + $0x28] sm:$0xff] }
 0x246   :  { %v5776_v51 = vpop.f32.mrf.mxu2  ;;  %6097 = vmatpush.msra.mxu0 %v6088_v20 }
 0x247   :  { %v5790_v11 = vpop.f32.mrf.mxu3  ;;  %v5763_v28 = vadd.f32 %v5762_v32, %v5749_v6  ;;  %9405 = vmatpush.msra.mxu1 %v6088_v20 }
 0x248   :  { %6098 = vmatpush.msra.mxu0 %v6087_v38 }
 0x249   :  { %v5777_v21 = vadd.f32 %v5776_v51, %v5763_v28  ;;  %9406 = vmatpush.msra.mxu1 %v6087_v38 }
 0x24a   :  { %6099 = vmatpush.msra.mxu0 %v6086_v17 }
 0x24b   :  { %9407 = vmatpush.msra.mxu1 %v6086_v17  ;;  %v5791_v33 = vadd.f32 %v5790_v11, %v5777_v21 }
 0x24c   :  { %v5802_v53 = vpop.f32.mrf.mxu0  ;;  %6100 = vmatpush.msra.mxu0 %v6085_v30 }
 0x24d   :  { %v5816_v12 = vpop.f32.mrf.mxu1  ;;  %v5803_v18 = vadd.f32 %v5802_v53, %v5789_v10  ;;  %9408 = vmatpush.msra.mxu1 %v6085_v30  ;;  %v6078_v53 = vld [vmem:[%s11826_s3 + $0x18] sm:$0xff] }
 0x24e   :  { %v5830_v58 = vpop.f32.mrf.mxu2  ;;  %6101 = vmatpush.msra.mxu0 %v6084_v35 }
 0x24f   :  { %v5844_v19 = vpop.f32.mrf.mxu3  ;;  %v5817_v26 = vadd.f32 %v5816_v12, %v5803_v18  ;;  %9409 = vmatpush.msra.mxu1 %v6084_v35 }
 0x250   :  { %6102 = vmatpush.msra.mxu0 %v6083_v37 }
 0x251   :  { %v5831_v22 = vadd.f32 %v5830_v58, %v5817_v26  ;;  %9410 = vmatpush.msra.mxu1 %v6083_v37  ;;  %v6076_v58 = vld [vmem:[%s11826_s3 + $0x8] sm:$0xff] }
 0x252   :  { %6103 = vmatpush.msra.mxu0 %v6082_v41 }
 0x253   :  { %v5845_v13 = vadd.f32 %v5844_v19, %v5831_v22  ;;  %9411 = vmatpush.msra.mxu1 %v6082_v41 }
 0x254   :  { %v5804_v15 = vpop.f32.mrf.mxu0  ;;  %6104 = vmatpush.msra.mxu0 %v6081_v45 }
 0x255   :  { %v5818_v61 = vpop.f32.mrf.mxu1  ;;  %v5805_v36 = vadd.f32 %v5804_v15, %v5791_v33  ;;  %9412 = vmatpush.msra.mxu1 %v6081_v45 }
 0x256   :  { %v5832_v0 = vpop.f32.mrf.mxu2  ;;  %6105 = vmatpush.msra.mxu0 %v6080_v47 }
 0x257   :  { %v11760_v24 = vpop.f32.mrf.mxu3  ;;  %v5819_v42 = vadd.f32 %v5818_v61, %v5805_v36  ;;  %9413 = vmatpush.msra.mxu1 %v6080_v47 }
 0x258   :  { %6106 = vmatpush.msra.mxu0 %v6079_v48 }
 0x259   :  { %v5833_v44 = vadd.f32 %v5832_v0, %v5819_v42  ;;  %9414 = vmatpush.msra.mxu1 %v6079_v48 }
 0x25a   :  { %6107 = vmatpush.msra.mxu0 %v6078_v53 }
 0x25b   :  { %v5847_v50 = vadd.f32 %v11760_v24, %v5833_v44  ;;  %9415 = vmatpush.msra.mxu1 %v6078_v53  ;;  %v9423_v44 = vld [vmem:[%s11827_s4] ss:$0 sm:$0xff]  ;;  %s9458_s4 = smov [#allocation2]  }
 0x25c   :  { %6108 = vmatpush.msra.mxu0 %v6077_v55  ;;  %s6149_s23 = sshll.u32 %s9458_s4, 4  ;;  %s6150_s23 = int_to_ptr.vmem [resolvable:$true] %s6149_s23 }
 0x25d   :  { %9416 = vmatpush.msra.mxu1 %v6077_v55 }
 0x25e   :  { %v5858_v2 = vpop.f32.mrf.mxu0  ;;  %6109 = vmatpush.msra.mxu0 %v6076_v58 }
 0x25f   :  { %v5872_v5 = vpop.f32.mrf.mxu1  ;;  %v5859_v27 = vadd.f32 %v5858_v2, %v5845_v13  ;;  %9417 = vmatpush.msra.mxu1 %v6076_v58 }
 0x260   :  { %6110 = vmatpush.msra.mxu0 %v6075_v31 }
 0x261   :  { %v5873_v46 = vadd.f32 %v5872_v5, %v5859_v27  ;;  %9418 = vmatpush.msra.mxu1 %v6075_v31 }
 0x266   :  { %v5886_v14 = vpop.f32.mrf.mxu2  ;;  %v5860_v25 = vpop.f32.mrf.mxu0 }
 0x267   :  { %v5900_v16 = vpop.f32.mrf.mxu3  ;;  %v5874_v9 = vpop.f32.mrf.mxu1  ;;  %v5887_v51 = vadd.f32 %v5886_v14, %v5873_v46  ;;  %v5861_v11 = vadd.f32 %v5860_v25, %v5847_v50 }
 0x269   :  { %v5901_v54 = vadd.f32 %v5900_v16, %v5887_v51  ;;  %v5875_v56 = vadd.f32 %v5874_v9, %v5861_v11 }
 0x26e   :  { %v5888_v39 = vpop.f32.mrf.mxu2 }
 0x26f   :  { %v5902_v40 = vpop.f32.mrf.mxu3  ;;  %v5889_v19 = vadd.f32 %v5888_v39, %v5875_v56 }
 0x271   :  { %v5903_v61 = vadd.f32 %v5902_v40, %v5889_v19 }
 0x27e   :  { %v5914_v23 = vpop.f32.mrf.mxu0 }
 0x27f   :  { %v5928_v43 = vpop.f32.mrf.mxu1  ;;  %v5915_v57 = vadd.f32 %v5914_v23, %v5901_v54 }
 0x281   :  { %v5929_v15 = vadd.f32 %v5928_v43, %v5915_v57 }
 0x286   :  { %v5942_v29 = vpop.f32.mrf.mxu2  ;;  %v5916_v52 = vpop.f32.mrf.mxu0 }
 0x287   :  { %v5956_v32 = vpop.f32.mrf.mxu3  ;;  %v5930_v12 = vpop.f32.mrf.mxu1  ;;  %v5943_v62 = vadd.f32 %v5942_v29, %v5929_v15  ;;  %v5917_v34 = vadd.f32 %v5916_v52, %v5903_v61 }
 0x289   :  { %v5957_v0 = vadd.f32 %v5956_v32, %v5943_v62  ;;  %v5931_v2 = vadd.f32 %v5930_v12, %v5917_v34 }
 0x28e   :  { %v5944_v59 = vpop.f32.mrf.mxu2 }
 0x28f   :  { %v5958_v49 = vpop.f32.mrf.mxu3  ;;  %v5945_v4 = vadd.f32 %v5944_v59, %v5931_v2 }
 0x291   :  { %v5959_v8 = vadd.f32 %v5958_v49, %v5945_v4 }
 0x29e   :  { %v5970_v60 = vpop.f32.mrf.mxu0 }
 0x29f   :  { %v5984_v63 = vpop.f32.mrf.mxu1  ;;  %v5971_v3 = vadd.f32 %v5970_v60, %v5957_v0 }
 0x2a1   :  { %v5985_v6 = vadd.f32 %v5984_v63, %v5971_v3 }
 0x2a6   :  { %v5998_v24 = vpop.f32.mrf.mxu2  ;;  %v5972_v5 = vpop.f32.mrf.mxu0 }
 0x2a7   :  { %v6012_v1 = vpop.f32.mrf.mxu3  ;;  %v5986_v7 = vpop.f32.mrf.mxu1  ;;  %v5999_v10 = vadd.f32 %v5998_v24, %v5985_v6  ;;  %v5973_v14 = vadd.f32 %v5972_v5, %v5959_v8 }
 0x2a9   :  { %v6013_v18 = vadd.f32 %v6012_v1, %v5999_v10  ;;  %v5987_v21 = vadd.f32 %v5986_v7, %v5973_v14 }
 0x2ae   :  { %v6000_v16 = vpop.f32.mrf.mxu2 }
 0x2af   :  { %v6014_v28 = vpop.f32.mrf.mxu3  ;;  %v6001_v17 = vadd.f32 %v6000_v16, %v5987_v21 }
 0x2b1   :  { %v6015_v33 = vadd.f32 %v6014_v28, %v6001_v17 }
 0x2be   :  { %v6026_v20 = vpop.f32.mrf.mxu0 }
 0x2bf   :  { %v6027_v25 = vadd.f32 %v6026_v20, %v6013_v18  ;;  %v6040_v38 = vpop.f32.mrf.mxu1 }
 0x2c1   :  { %v6041_v26 = vadd.f32 %v6040_v38, %v6027_v25 }
 0x2c6   :  { %v6054_v30 = vpop.f32.mrf.mxu2  ;;  %v6028_v35 = vpop.f32.mrf.mxu0 }
 0x2c7   :  { %v6068_v9 = vpop.f32.mrf.mxu3  ;;  %v6055_v22 = vadd.f32 %v6054_v30, %v6041_v26  ;;  %v6029_v37 = vadd.f32 %v6028_v35, %v6015_v33  ;;  %v6042_v40 = vpop.f32.mrf.mxu1 }
 0x2c9   :  { %v6069_v36 = vadd.f32 %v6068_v9, %v6055_v22  ;;  %v6043_v13 = vadd.f32 %v6042_v40, %v6029_v37 }
 0x2cb   :  { %v6073_v39 = vmax.f32 %v6069_v36, 0.0 }
 0x2cd   :  { %6111 = vmatmul.f32.vlgmr.msra.gmra.mxu0 %v6073_v39 }
 0x2ce   :  { %v6056_v23 = vpop.f32.mrf.mxu2 }
 0x2cf   :  { %v6057_v41 = vadd.f32 %v6056_v23, %v6043_v13  ;;  %v6070_v42 = vpop.f32.mrf.mxu3 }
 0x2d1   :  { %v6071_v27 = vadd.f32 %v6070_v42, %v6057_v41 }
 0x2d3   :  { %v6074_v43 = vmax.f32 %v6071_v27, 0.0 }
 0x2d5   :  { %6114 = vmatmul.f32.vlgmr.msra.gmra.mxu1 %v6074_v43 }
 0x34a   :  { %v6112_v45 = vpop.f32.mrf.mxu0 }
 0x34b   :  { %v6113_v46 = vadd.f32 %v9423_v44, %v6112_v45 }
 0x34d   :  { %v6119_v47 = vsel %vm6118_vm0, %v6113_v46, -inf }
 0x34e   :  { %6120 = vmax.xlane.f32.xlu0 %v6119_v47 }
 0x352   :  { %v6115_v29 = vpop.f32.mrf.mxu1 }
 0x353   :  { %v6116_v32 = vadd.f32 %v9423_v44, %v6115_v29 }
 0x355   :  { %v6122_v48 = vsel %vm6118_vm0, %v6116_v32, -inf }
 0x356   :  { %6123 = vmax.xlane.f32.xlu0 %v6122_v48 }
 0x3c1   :  { %v6121_v50 = vpop.xlane.xlu0 %6120 }
 0x3c2   :  { %v6125_v51 = vsub.f32 %v6113_v46, %v6121_v50 }
 0x3c4   :  { %v6127_v11 = vmul.f32 1.442695, %v6125_v51 }
 0x3c6   :  { %9424 = vpow2.f32 %v6127_v11 }
 0x3c9   :  { %v6124_v52 = vpop.xlane.xlu0 %6123 }
 0x3ca   :  { %v6126_v53 = vsub.f32 %v6116_v32, %v6124_v52 }
 0x3cc   :  { %v9425_v54 = vpop.eup %9424  ;;  %v6129_v55 = vmul.f32 1.442695, %v6126_v53 }
 0x3cd   :  { %v6131_v12 = vsel %vm6118_vm0, %v9425_v54, 0.0 }
 0x3ce   :  { %9426 = vpow2.f32 %v6129_v55  ;;  %6132 = vadd.xlane.f32.xlu1 %v6131_v12 }
 0x3d4   :  { %v9427_v56 = vpop.eup %9426 }
 0x3d5   :  { %v6134_v57 = vsel %vm6118_vm0, %v9427_v56, 0.0 }
 0x3d6   :  { %6135 = vadd.xlane.f32.xlu1 %v6134_v57 }
 0x441   :  { %v6133_v58 = vpop.xlane.xlu1 %6132 }
 0x442   :  { %9428 = vlog2.f32 %v6133_v58 }
 0x448   :  { %v9429_v19 = vpop.eup %9428 }
 0x449   :  { %v6138_v31 = vmul.f32 0.6931472, %v9429_v19  ;;  %v6136_v59 = vpop.xlane.xlu1 %6135 }
 0x44a   :  { %9430 = vlog2.f32 %v6136_v59 }
 0x44b   :  { %v6141_v49 = vsub.f32 %v6125_v51, %v6138_v31 }
 0x44d   :  { %6143 = vst.msk [vmem:[#allocation2] sm:$0xff] %vm6118_vm0, %v6141_v49 }
 0x450   :  { %v9431_v15 = vpop.eup %9430 }
 0x451   :  { %v6140_v60 = vmul.f32 0.6931472, %v9431_v15 }
 0x453   :  { %v6142_v61 = vsub.f32 %v6126_v53, %v6140_v60 }
 0x455   :  { %6144 = vst.msk [vmem:[#allocation2 + $0x8] sm:$0xff] %vm6118_vm0, %v6142_v61 }
 0x456   :  { %6157 = dma.vmem_to_hbm [thread:$0]  %s6150_s23, 256, %s6152_s26, [#allocation3], %s9459_s27, %s9459_s27, %s9460_s28  }
 0x457   :  { %9456 = dma.done.wait [#allocation3], 256  }
 0x458   :  { %9457 = vsyncadd [#allocation3], 4294967040 }
 0x459   :  { %6162 = vsyncpa [#allocation3], 1 }

</bundles_post_ra>
